<compile_context>
chip_gen: v6e
topology: v6e:2x2x1
jax: 0.10.0
libtpu: 0.0.40
codegen_flags: <defaults>
</compile_context>

<pallas_src>
import numpy as np
import jax
import jax.numpy as jnp
from jax.experimental import pallas as pl
from jax.experimental.pallas import tpu as pltpu


_VMEM_LIMIT = 32 * 1024 * 1024   # explicit budget; well under v7x's 64 MiB


def _round_up(x, m):
    return (x + m - 1) // m * m


def _bn_fold(bn, eps=1e-5):
    scale = bn['gamma'] * jax.lax.rsqrt(bn['var'] + eps)
    offset = bn['beta'] - bn['mean'] * scale
    return scale, offset


def _im2col(x, K, stride, padding, Sp, CKp):
    """x (N,C,H,W) -> (N, CKp, Sp) patches, rows ordered (c, ki, kj),
    columns (ho, wo) per image, zero-padded to (CKp, Sp)."""
    N, C, H, W = x.shape
    Ho = (H + 2 * padding - K) // stride + 1
    Wo = (W + 2 * padding - K) // stride + 1
    xp = jnp.pad(x, ((0, 0), (0, 0), (padding, padding), (padding, padding)))
    taps = [xp[:, :,
               ki:ki + (Ho - 1) * stride + 1:stride,
               kj:kj + (Wo - 1) * stride + 1:stride]
            for ki in range(K) for kj in range(K)]        # each (N, C, Ho, Wo)
    p = jnp.stack(taps, axis=2)                           # (N, C, K*K, Ho, Wo)
    p = p.reshape(N, C * K * K, Ho * Wo)
    return jnp.pad(p, ((0, 0), (0, CKp - C * K * K), (0, Sp - Ho * Wo)))


def _tap_masks(Ho, Wo, Sp):
    """(9, 1, Sp) f32 validity masks for a 3x3 stride-1 pad-1 conv on the
    flattened (ho, wo) lane axis (trace-time numpy constant)."""
    m = np.zeros((9, 1, Sp), np.float32)
    hw = np.arange(Ho * Wo)
    ho, wo = hw // Wo, hw % Wo
    t = 0
    for ki in range(3):
        for kj in range(3):
            ok = ((ho + ki - 1 >= 0) & (ho + ki - 1 < Ho) &
                  (wo + kj - 1 >= 0) & (wo + kj - 1 < Wo))
            m[t, 0, :Ho * Wo] = ok.astype(np.float32)
            t += 1
    return jnp.asarray(m)


def _tap_shifts(Wo, Sp):
    """Lane-roll amounts so that roll(a, shift)[m] == a[m + d], d=(ki-1)*Wo+(kj-1)."""
    return tuple((-((ki - 1) * Wo + (kj - 1))) % Sp
                 for ki in range(3) for kj in range(3))


# ------------------------------ stem kernel --------------------------------

def _stem_kernel(p_ref, w_ref, b_ref, o_ref):
    acc = jnp.dot(w_ref[...], p_ref[...], preferred_element_type=jnp.float32)
    o_ref[...] = jnp.maximum(acc + b_ref[...], 0.0)


def stem_conv(x, w, bn):
    """7x7 stride-2 pad-1 conv + BN + ReLU, fused; returns ((N,C,Sp), (Ho,Wo))."""
    N, C_in, H, W = x.shape
    C_out, K = w.shape[0], w.shape[-1]
    Ho = (H + 2 - K) // 2 + 1
    Wo = (W + 2 - K) // 2 + 1
    S = Ho * Wo
    Sp = _round_up(S, 128)
    CK = C_in * K * K
    CKp = _round_up(CK, 8)

    patches = _im2col(x, K, 2, 1, Sp, CKp)                       # (N, CKp, Sp)
    scale, offset = _bn_fold(bn)
    wf = jnp.pad(w.reshape(C_out, CK) * scale[:, None], ((0, 0), (0, CKp - CK)))
    b = offset[:, None]

    flops = 2 * N * C_out * CKp * Sp
    bytes_acc = 4 * (patches.size + wf.size + b.size + N * C_out * Sp)
    y = pl.pallas_call(
        _stem_kernel,
        out_shape=jax.ShapeDtypeStruct((N, C_out, Sp), jnp.float32),
        grid=(N,),
        in_specs=[
            pl.BlockSpec((None, CKp, Sp), lambda n: (n, 0, 0)),
            pl.BlockSpec((C_out, CKp), lambda n: (0, 0)),      # resident weight
            pl.BlockSpec((C_out, 1), lambda n: (0, 0)),        # resident offset
        ],
        out_specs=pl.BlockSpec((None, C_out, Sp), lambda n: (n, 0, 0)),
        compiler_params=pltpu.CompilerParams(
            dimension_semantics=("parallel",),
            vmem_limit_bytes=_VMEM_LIMIT),
        cost_estimate=pl.CostEstimate(flops=int(flops), transcendentals=0,
                                      bytes_accessed=int(bytes_acc)),
    )(patches, wf, b)
    return y, (Ho, Wo)


# -------------------------- fused stage (2 blocks) --------------------------

def _make_stage_kernel(shifts):
    def kernel(p1_ref, pd_ref, mask_ref, w1_ref, wd_ref, w2_ref, w3_ref,
               w4_ref, b1_ref, bd_ref, b2_ref, b3_ref, b4_ref, out_ref):

        def conv3x3_s1(a, w_ref):
            # 3x3 stride-1 pad-1 conv on the flattened (ho,wo) lane axis:
            # 9 lane rolls + edge masks + 9 (C_out,C_in)x(C_in,Sp) matmuls.
            acc = None
            for t in range(9):
                tap = a if shifts[t] == 0 else pltpu.roll(a, shifts[t], axis=1)
                tap = tap * mask_ref[t]                     # (1, Sp) broadcast
                r = jnp.dot(w_ref[t], tap, preferred_element_type=jnp.float32)
                acc = r if acc is None else acc + r
            return acc

        # --- block 1: conv1 (3x3 s2, via prefetched patches) + BN + ReLU
        h = jnp.dot(w1_ref[...], p1_ref[...], preferred_element_type=jnp.float32)
        h = jnp.maximum(h + b1_ref[...], 0.0)
        #            downsample branch: 1x1 s2 conv + BN (no ReLU)
        res = jnp.dot(wd_ref[...], pd_ref[...], preferred_element_type=jnp.float32)
        res = res + bd_ref[...]
        #            conv2 (3x3 s1) + BN + residual add + ReLU
        y1 = jnp.maximum(conv3x3_s1(h, w2_ref) + b2_ref[...] + res, 0.0)

        # --- block 2: conv1 (3x3 s1) + BN + ReLU ; conv2 + BN + identity + ReLU
        h2 = jnp.maximum(conv3x3_s1(y1, w3_ref) + b3_ref[...], 0.0)
        out_ref[...] = jnp.maximum(conv3x3_s1(h2, w4_ref) + b4_ref[...] + y1, 0.0)

    return kernel


def stage_forward(x, stage_params):
    """One ResNet stage (two BasicBlocks, first stride 2) in a single fused
    pallas_call.  x: (N, C_in, H, W) NCHW.  Returns ((N, C, Sp), (Ho, Wo))."""
    N, C_in, H, W = x.shape
    blk1, blk2 = stage_params
    C = blk1['conv1_w'].shape[0]
    Ho = (H - 1) // 2 + 1
    Wo = (W - 1) // 2 + 1
    S = Ho * Wo
    Sp = _round_up(S, 128)
    CK1 = C_in * 9                                  # multiple of 8 here

    # wrapper-side extraction only for the two stride-2 convs of block 1
    p1 = _im2col(x, 3, 2, 1, Sp, CK1)                              # (N,CK1,Sp)
    pd = x[:, :, ::2, ::2].reshape(N, C_in, S)                     # 1x1 s2 taps
    pd = jnp.pad(pd, ((0, 0), (0, 0), (0, Sp - S)))

    mask = _tap_masks(Ho, Wo, Sp)                                  # (9,1,Sp)
    shifts = _tap_shifts(Wo, Sp)

    # fold the BN scale into the conv weights; epilogue is just "+offset".
    def fold_mat(w, bn):            # (C_out,C_in,k,k) -> (C_out, C_in*k*k)
        s, o = _bn_fold(bn)
        return w.reshape(w.shape[0], -1) * s[:, None], o[:, None]

    def fold_taps(w, bn):           # (C_out,C_in,3,3) -> (9, C_out, C_in)
        s, o = _bn_fold(bn)
        wt = jnp.transpose(w, (2, 3, 0, 1)).reshape(9, w.shape[0], w.shape[1])
        return wt * s[None, :, None], o[:, None]

    w1, b1 = fold_mat(blk1['conv1_w'], blk1['bn1'])
    wd, bd = fold_mat(blk1['down_w'], blk1['down_bn'])
    w2, b2 = fold_taps(blk1['conv2_w'], blk1['bn2'])
    w3, b3 = fold_taps(blk2['conv1_w'], blk2['bn1'])
    w4, b4 = fold_taps(blk2['conv2_w'], blk2['bn2'])

    flops = 2 * N * Sp * (C * CK1 + C * C_in + 3 * 9 * C * C)
    bytes_acc = 4 * (p1.size + pd.size + mask.size + N * C * Sp
                     + w1.size + wd.size + w2.size + w3.size + w4.size)
    vec = lambda c: pl.BlockSpec((c, 1), lambda n: (0, 0))

    out = pl.pallas_call(
        _make_stage_kernel(shifts),
        out_shape=jax.ShapeDtypeStruct((N, C, Sp), jnp.float32),
        grid=(N,),
        in_specs=[
            pl.BlockSpec((None, CK1, Sp), lambda n: (n, 0, 0)),    # p1
            pl.BlockSpec((None, C_in, Sp), lambda n: (n, 0, 0)),   # pd
            pl.BlockSpec((9, 1, Sp), lambda n: (0, 0, 0)),         # masks
            pl.BlockSpec((C, CK1), lambda n: (0, 0)),              # w1 (resident)
            pl.BlockSpec((C, C_in), lambda n: (0, 0)),             # wd
            pl.BlockSpec((9, C, C), lambda n: (0, 0, 0)),          # w2
            pl.BlockSpec((9, C, C), lambda n: (0, 0, 0)),          # w3
            pl.BlockSpec((9, C, C), lambda n: (0, 0, 0)),          # w4
            vec(C), vec(C), vec(C), vec(C), vec(C),                # b1 bd b2 b3 b4
        ],
        out_specs=pl.BlockSpec((None, C, Sp), lambda n: (n, 0, 0)),
        compiler_params=pltpu.CompilerParams(
            dimension_semantics=("parallel",),
            vmem_limit_bytes=_VMEM_LIMIT),
        cost_estimate=pl.CostEstimate(flops=int(flops), transcendentals=0,
                                      bytes_accessed=int(bytes_acc)),
    )(p1, pd, mask, w1, wd, w2, w3, w4, b1, bd, b2, b3, b4)
    return out, (Ho, Wo)


# --------------------------------- model ------------------------------------

def _unflatten(y, Ho, Wo):
    N, C, _ = y.shape
    return y[:, :, :Ho * Wo].reshape(N, C, Ho, Wo)


def downsample_forward(x, params):
    y, (Ho, Wo) = stem_conv(x, params['conv1_w'], params['bn1'])
    for stage in params['layers']:
        y, (Ho, Wo) = stage_forward(_unflatten(y, Ho, Wo), stage)
    return _unflatten(y, Ho, Wo)


# ------------------------------- parameters ---------------------------------

def make_params(key, inchannels=4):
    keys = iter(jax.random.split(key, 64))

    def conv_w(cout, cin, k):
        n = k * k * cout
        return (jax.random.normal(next(keys), (cout, cin, k, k))
                * np.sqrt(2.0 / n)).astype(jnp.float32)

    def bn(c):
        return dict(gamma=jnp.ones((c,), jnp.float32),
                    beta=jnp.zeros((c,), jnp.float32),
                    mean=jnp.zeros((c,), jnp.float32),
                    var=jnp.ones((c,), jnp.float32))

    def block(cin, cout, with_down):
        p = dict(conv1_w=conv_w(cout, cin, 3), bn1=bn(cout),
                 conv2_w=conv_w(cout, cout, 3), bn2=bn(cout))
        if with_down:
            p['down_w'] = conv_w(cout, cin, 1)
            p['down_bn'] = bn(cout)
        return p

    def layer(cin, cout):
        # first block has stride 2 -> downsample branch always present
        return [block(cin, cout, True), block(cout, cout, False)]

    return dict(conv1_w=conv_w(16, inchannels, 7), bn1=bn(16),
                layers=[layer(16, 16), layer(16, 24),
                        layer(24, 16), layer(16, inchannels)])


if __name__ == "__main__":
    N, C, H, W = 2, 4, 64, 64
    key = jax.random.PRNGKey(0)
    kx, kp = jax.random.split(key)
    x = jax.random.normal(kx, (N, C, H, W), jnp.float32)
    params = make_params(kp, C)

    out = jax.jit(downsample_forward)(x, params)
    out = jax.block_until_ready(out)

    # spatial trace: 64 -> 30 (7x7 s2 p1) -> 15 -> 8 -> 4 -> 2
    assert out.shape == (N, C, 2, 2), out.shape
    assert bool(jnp.all(jnp.isfinite(out)))
    print("KERNEL_OK")
</pallas_src>

<mosaic_0001>
module attributes {stable_mosaic.version = 11 : i64} {
  func.func @_stem_kernel(%arg0: i32, %arg1: memref<1x200x1024xf32, #tpu.memory_space<vmem>>, %arg2: memref<16x200xf32, #tpu.memory_space<vmem>>, %arg3: memref<16x1xf32, #tpu.memory_space<vmem>>, %arg4: memref<1x16x1024xf32, #tpu.memory_space<vmem>>) attributes {dimension_semantics = [#tpu.dimension_semantics<parallel>], iteration_bounds = array<i64: 2>, scalar_prefetch = 0 : i64, scratch_operands = 0 : i64, tpu.core_type = #tpu.core_type<tc>, window_params = [{transform_indices = @transform_0, window_bounds = array<i64: 1, 200, 1024>}, {pipeline_mode = #tpu.pipeline_mode<synchronous>, transform_indices = @transform_1, window_bounds = array<i64: 16, 200>}, {pipeline_mode = #tpu.pipeline_mode<synchronous>, transform_indices = @transform_2, window_bounds = array<i64: 16, 1>}, {transform_indices = @transform_3, window_bounds = array<i64: 1, 16, 1024>}]} {
    %c0 = arith.constant 0 : index
    %c0_0 = arith.constant 0 : index
    %0 = vector.load %arg2[%c0, %c0_0] : memref<16x200xf32, #tpu.memory_space<vmem>>, vector<16x200xf32>
    %c0_1 = arith.constant 0 : index
    %c0_2 = arith.constant 0 : index
    %c0_3 = arith.constant 0 : index
    %1 = vector.load %arg1[%c0_1, %c0_2, %c0_3] : memref<1x200x1024xf32, #tpu.memory_space<vmem>>, vector<1x200x1024xf32>
    %2 = vector.shape_cast %1 : vector<1x200x1024xf32> to vector<200x1024xf32>
    %cst = arith.constant dense<0.000000e+00> : vector<16x1024xf32>
    %3 = tpu.matmul %0, %2, %cst {dimension_numbers = #tpu.dot_dimension_numbers<[1], [0], [0], [1], [0, 0, 1, 1], [], []>} : vector<16x200xf32>, vector<200x1024xf32>, vector<16x1024xf32> -> vector<16x1024xf32>
    %c0_4 = arith.constant 0 : index
    %c0_5 = arith.constant 0 : index
    %4 = vector.load %arg3[%c0_4, %c0_5] : memref<16x1xf32, #tpu.memory_space<vmem>>, vector<16x1xf32>
    %5 = vector.broadcast %4 : vector<16x1xf32> to vector<16x1024xf32>
    %6 = arith.addf %3, %5 : vector<16x1024xf32>
    %cst_6 = arith.constant 0.000000e+00 : f32
    %7 = vector.broadcast %cst_6 : f32 to vector<16x1024xf32>
    %8 = arith.maximumf %6, %7 : vector<16x1024xf32>
    %c0_7 = arith.constant 0 : index
    %c0_8 = arith.constant 0 : index
    %c0_9 = arith.constant 0 : index
    %9 = vector.load %arg4[%c0_7, %c0_8, %c0_9] : memref<1x16x1024xf32, #tpu.memory_space<vmem>>, vector<1x16x1024xf32>
    %10 = vector.shape_cast %9 : vector<1x16x1024xf32> to vector<16x1024xf32>
    %11 = vector.shape_cast %8 : vector<16x1024xf32> to vector<1x16x1024xf32>
    tpu.vector_store %arg4[%c0_7, %c0_8, %c0_9], %11 {strides = array<i32>} : memref<1x16x1024xf32, #tpu.memory_space<vmem>>, vector<1x16x1024xf32>,
    return
  }
  func.func @transform_0(%arg0: i32) -> (i32, i32, i32) {
    %c0_i32 = arith.constant 0 : i32
    %c0_i32_0 = arith.constant 0 : i32
    %c0_i32_1 = arith.constant 0 : i32
    return %arg0, %c0_i32, %c0_i32_0 : i32, i32, i32
  }
  func.func @transform_1(%arg0: i32) -> (i32, i32) {
    %c0_i32 = arith.constant 0 : i32
    %c0_i32_0 = arith.constant 0 : i32
    %c0_i32_1 = arith.constant 0 : i32
    return %c0_i32, %c0_i32_0 : i32, i32
  }
  func.func @transform_2(%arg0: i32) -> (i32, i32) {
    %c0_i32 = arith.constant 0 : i32
    %c0_i32_0 = arith.constant 0 : i32
    %c0_i32_1 = arith.constant 0 : i32
    return %c0_i32, %c0_i32_0 : i32, i32
  }
  func.func @transform_3(%arg0: i32) -> (i32, i32, i32) {
    %c0_i32 = arith.constant 0 : i32
    %c0_i32_0 = arith.constant 0 : i32
    %c0_i32_1 = arith.constant 0 : i32
    return %arg0, %c0_i32, %c0_i32_0 : i32, i32, i32
  }
}

module attributes {stable_mosaic.version = 11 : i64} {
  func.func @kernel(%arg0: i32, %arg1: memref<1x144x256xf32, #tpu.memory_space<vmem>>, %arg2: memref<1x16x256xf32, #tpu.memory_space<vmem>>, %arg3: memref<9x1x256xf32, #tpu.memory_space<vmem>>, %arg4: memref<16x144xf32, #tpu.memory_space<vmem>>, %arg5: memref<16x16xf32, #tpu.memory_space<vmem>>, %arg6: memref<9x16x16xf32, #tpu.memory_space<vmem>>, %arg7: memref<9x16x16xf32, #tpu.memory_space<vmem>>, %arg8: memref<9x16x16xf32, #tpu.memory_space<vmem>>, %arg9: memref<16x1xf32, #tpu.memory_space<vmem>>, %arg10: memref<16x1xf32, #tpu.memory_space<vmem>>, %arg11: memref<16x1xf32, #tpu.memory_space<vmem>>, %arg12: memref<16x1xf32, #tpu.memory_space<vmem>>, %arg13: memref<16x1xf32, #tpu.memory_space<vmem>>, %arg14: memref<1x16x256xf32, #tpu.memory_space<vmem>>) attributes {dimension_semantics = [#tpu.dimension_semantics<parallel>], iteration_bounds = array<i64: 2>, scalar_prefetch = 0 : i64, scratch_operands = 0 : i64, tpu.core_type = #tpu.core_type<tc>, window_params = [{transform_indices = @transform_0, window_bounds = array<i64: 1, 144, 256>}, {transform_indices = @transform_1, window_bounds = array<i64: 1, 16, 256>}, {pipeline_mode = #tpu.pipeline_mode<synchronous>, transform_indices = @transform_2, window_bounds = array<i64: 9, 1, 256>}, {pipeline_mode = #tpu.pipeline_mode<synchronous>, transform_indices = @transform_3, window_bounds = array<i64: 16, 144>}, {pipeline_mode = #tpu.pipeline_mode<synchronous>, transform_indices = @transform_4, window_bounds = array<i64: 16, 16>}, {pipeline_mode = #tpu.pipeline_mode<synchronous>, transform_indices = @transform_5, window_bounds = array<i64: 9, 16, 16>}, {pipeline_mode = #tpu.pipeline_mode<synchronous>, transform_indices = @transform_6, window_bounds = array<i64: 9, 16, 16>}, {pipeline_mode = #tpu.pipeline_mode<synchronous>, transform_indices = @transform_7, window_bounds = array<i64: 9, 16, 16>}, {pipeline_mode = #tpu.pipeline_mode<synchronous>, transform_indices = @transform_8, window_bounds = array<i64: 16, 1>}, {pipeline_mode = #tpu.pipeline_mode<synchronous>, transform_indices = @transform_9, window_bounds = array<i64: 16, 1>}, {pipeline_mode = #tpu.pipeline_mode<synchronous>, transform_indices = @transform_10, window_bounds = array<i64: 16, 1>}, {pipeline_mode = #tpu.pipeline_mode<synchronous>, transform_indices = @transform_11, window_bounds = array<i64: 16, 1>}, {pipeline_mode = #tpu.pipeline_mode<synchronous>, transform_indices = @transform_12, window_bounds = array<i64: 16, 1>}, {transform_indices = @transform_13, window_bounds = array<i64: 1, 16, 256>}]} {
    %c0 = arith.constant 0 : index
    %c0_0 = arith.constant 0 : index
    %0 = vector.load %arg4[%c0, %c0_0] : memref<16x144xf32, #tpu.memory_space<vmem>>, vector<16x144xf32>
    %c0_1 = arith.constant 0 : index
    %c0_2 = arith.constant 0 : index
    %c0_3 = arith.constant 0 : index
    %1 = vector.load %arg1[%c0_1, %c0_2, %c0_3] : memref<1x144x256xf32, #tpu.memory_space<vmem>>, vector<1x144x256xf32>
    %2 = vector.shape_cast %1 : vector<1x144x256xf32> to vector<144x256xf32>
    %cst = arith.constant dense<0.000000e+00> : vector<16x256xf32>
    %3 = tpu.matmul %0, %2, %cst {dimension_numbers = #tpu.dot_dimension_numbers<[1], [0], [0], [1], [0, 0, 1, 1], [], []>} : vector<16x144xf32>, vector<144x256xf32>, vector<16x256xf32> -> vector<16x256xf32>
    %c0_4 = arith.constant 0 : index
    %c0_5 = arith.constant 0 : index
    %4 = vector.load %arg9[%c0_4, %c0_5] : memref<16x1xf32, #tpu.memory_space<vmem>>, vector<16x1xf32>
    %5 = vector.broadcast %4 : vector<16x1xf32> to vector<16x256xf32>
    %6 = arith.addf %3, %5 : vector<16x256xf32>
    %cst_6 = arith.constant 0.000000e+00 : f32
    %7 = vector.broadcast %cst_6 : f32 to vector<16x256xf32>
    %8 = arith.maximumf %6, %7 : vector<16x256xf32>
    %c0_7 = arith.constant 0 : index
    %c0_8 = arith.constant 0 : index
    %9 = vector.load %arg5[%c0_7, %c0_8] : memref<16x16xf32, #tpu.memory_space<vmem>>, vector<16x16xf32>
    %c0_9 = arith.constant 0 : index
    %c0_10 = arith.constant 0 : index
    %c0_11 = arith.constant 0 : index
    %10 = vector.load %arg2[%c0_9, %c0_10, %c0_11] : memref<1x16x256xf32, #tpu.memory_space<vmem>>, vector<1x16x256xf32>
    %11 = vector.shape_cast %10 : vector<1x16x256xf32> to vector<16x256xf32>
    %cst_12 = arith.constant dense<0.000000e+00> : vector<16x256xf32>
    %12 = tpu.matmul %9, %11, %cst_12 {dimension_numbers = #tpu.dot_dimension_numbers<[1], [0], [0], [1], [0, 0, 1, 1], [], []>} : vector<16x16xf32>, vector<16x256xf32>, vector<16x256xf32> -> vector<16x256xf32>
    %c0_13 = arith.constant 0 : index
    %c0_14 = arith.constant 0 : index
    %13 = vector.load %arg10[%c0_13, %c0_14] : memref<16x1xf32, #tpu.memory_space<vmem>>, vector<16x1xf32>
    %14 = vector.broadcast %13 : vector<16x1xf32> to vector<16x256xf32>
    %15 = arith.addf %12, %14 : vector<16x256xf32>
    %c16_i32 = arith.constant 16 : i32
    %16 = tpu.dynamic_rotate %8 by %c16_i32 dim 1 : vector<16x256xf32>, i32 -> vector<16x256xf32>
    %c0_15 = arith.constant 0 : index
    %c0_16 = arith.constant 0 : index
    %c0_17 = arith.constant 0 : index
    %17 = vector.load %arg3[%c0_15, %c0_16, %c0_17] : memref<9x1x256xf32, #tpu.memory_space<vmem>>, vector<1x1x256xf32>
    %18 = vector.shape_cast %17 : vector<1x1x256xf32> to vector<1x256xf32>
    %19 = vector.broadcast %18 : vector<1x256xf32> to vector<16x256xf32>
    %20 = arith.mulf %16, %19 : vector<16x256xf32>
    %c0_18 = arith.constant 0 : index
    %c0_19 = arith.constant 0 : index
    %c0_20 = arith.constant 0 : index
    %21 = vector.load %arg6[%c0_18, %c0_19, %c0_20] : memref<9x16x16xf32, #tpu.memory_space<vmem>>, vector<1x16x16xf32>
    %22 = vector.shape_cast %21 : vector<1x16x16xf32> to vector<16x16xf32>
    %cst_21 = arith.constant dense<0.000000e+00> : vector<16x256xf32>
    %23 = tpu.matmul %22, %20, %cst_21 {dimension_numbers = #tpu.dot_dimension_numbers<[1], [0], [0], [1], [0, 0, 1, 1], [], []>} : vector<16x16xf32>, vector<16x256xf32>, vector<16x256xf32> -> vector<16x256xf32>
    %c15_i32 = arith.constant 15 : i32
    %24 = tpu.dynamic_rotate %8 by %c15_i32 dim 1 : vector<16x256xf32>, i32 -> vector<16x256xf32>
    %c1 = arith.constant 1 : index
    %c0_22 = arith.constant 0 : index
    %c0_23 = arith.constant 0 : index
    %25 = vector.load %arg3[%c1, %c0_22, %c0_23] : memref<9x1x256xf32, #tpu.memory_space<vmem>>, vector<1x1x256xf32>
    %26 = vector.shape_cast %25 : vector<1x1x256xf32> to vector<1x256xf32>
    %27 = vector.broadcast %26 : vector<1x256xf32> to vector<16x256xf32>
    %28 = arith.mulf %24, %27 : vector<16x256xf32>
    %c1_24 = arith.constant 1 : index
    %c0_25 = arith.constant 0 : index
    %c0_26 = arith.constant 0 : index
    %29 = vector.load %arg6[%c1_24, %c0_25, %c0_26] : memref<9x16x16xf32, #tpu.memory_space<vmem>>, vector<1x16x16xf32>
    %30 = vector.shape_cast %29 : vector<1x16x16xf32> to vector<16x16xf32>
    %cst_27 = arith.constant dense<0.000000e+00> : vector<16x256xf32>
    %31 = tpu.matmul %30, %28, %cst_27 {dimension_numbers = #tpu.dot_dimension_numbers<[1], [0], [0], [1], [0, 0, 1, 1], [], []>} : vector<16x16xf32>, vector<16x256xf32>, vector<16x256xf32> -> vector<16x256xf32>
    %32 = arith.addf %23, %31 : vector<16x256xf32>
    %c14_i32 = arith.constant 14 : i32
    %33 = tpu.dynamic_rotate %8 by %c14_i32 dim 1 : vector<16x256xf32>, i32 -> vector<16x256xf32>
    %c2 = arith.constant 2 : index
    %c0_28 = arith.constant 0 : index
    %c0_29 = arith.constant 0 : index
    %34 = vector.load %arg3[%c2, %c0_28, %c0_29] : memref<9x1x256xf32, #tpu.memory_space<vmem>>, vector<1x1x256xf32>
    %35 = vector.shape_cast %34 : vector<1x1x256xf32> to vector<1x256xf32>
    %36 = vector.broadcast %35 : vector<1x256xf32> to vector<16x256xf32>
    %37 = arith.mulf %33, %36 : vector<16x256xf32>
    %c2_30 = arith.constant 2 : index
    %c0_31 = arith.constant 0 : index
    %c0_32 = arith.constant 0 : index
    %38 = vector.load %arg6[%c2_30, %c0_31, %c0_32] : memref<9x16x16xf32, #tpu.memory_space<vmem>>, vector<1x16x16xf32>
    %39 = vector.shape_cast %38 : vector<1x16x16xf32> to vector<16x16xf32>
    %cst_33 = arith.constant dense<0.000000e+00> : vector<16x256xf32>
    %40 = tpu.matmul %39, %37, %cst_33 {dimension_numbers = #tpu.dot_dimension_numbers<[1], [0], [0], [1], [0, 0, 1, 1], [], []>} : vector<16x16xf32>, vector<16x256xf32>, vector<16x256xf32> -> vector<16x256xf32>
    %41 = arith.addf %32, %40 : vector<16x256xf32>
    %c1_i32 = arith.constant 1 : i32
    %42 = tpu.dynamic_rotate %8 by %c1_i32 dim 1 : vector<16x256xf32>, i32 -> vector<16x256xf32>
    %c3 = arith.constant 3 : index
    %c0_34 = arith.constant 0 : index
    %c0_35 = arith.constant 0 : index
    %43 = vector.load %arg3[%c3, %c0_34, %c0_35] : memref<9x1x256xf32, #tpu.memory_space<vmem>>, vector<1x1x256xf32>
    %44 = vector.shape_cast %43 : vector<1x1x256xf32> to vector<1x256xf32>
    %45 = vector.broadcast %44 : vector<1x256xf32> to vector<16x256xf32>
    %46 = arith.mulf %42, %45 : vector<16x256xf32>
    %c3_36 = arith.constant 3 : index
    %c0_37 = arith.constant 0 : index
    %c0_38 = arith.constant 0 : index
    %47 = vector.load %arg6[%c3_36, %c0_37, %c0_38] : memref<9x16x16xf32, #tpu.memory_space<vmem>>, vector<1x16x16xf32>
    %48 = vector.shape_cast %47 : vector<1x16x16xf32> to vector<16x16xf32>
    %cst_39 = arith.constant dense<0.000000e+00> : vector<16x256xf32>
    %49 = tpu.matmul %48, %46, %cst_39 {dimension_numbers = #tpu.dot_dimension_numbers<[1], [0], [0], [1], [0, 0, 1, 1], [], []>} : vector<16x16xf32>, vector<16x256xf32>, vector<16x256xf32> -> vector<16x256xf32>
    %50 = arith.addf %41, %49 : vector<16x256xf32>
    %c4 = arith.constant 4 : index
    %c0_40 = arith.constant 0 : index
    %c0_41 = arith.constant 0 : index
    %51 = vector.load %arg3[%c4, %c0_40, %c0_41] : memref<9x1x256xf32, #tpu.memory_space<vmem>>, vector<1x1x256xf32>
    %52 = vector.shape_cast %51 : vector<1x1x256xf32> to vector<1x256xf32>
    %53 = vector.broadcast %52 : vector<1x256xf32> to vector<16x256xf32>
    %54 = arith.mulf %8, %53 : vector<16x256xf32>
    %c4_42 = arith.constant 4 : index
    %c0_43 = arith.constant 0 : index
    %c0_44 = arith.constant 0 : index
    %55 = vector.load %arg6[%c4_42, %c0_43, %c0_44] : memref<9x16x16xf32, #tpu.memory_space<vmem>>, vector<1x16x16xf32>
    %56 = vector.shape_cast %55 : vector<1x16x16xf32> to vector<16x16xf32>
    %cst_45 = arith.constant dense<0.000000e+00> : vector<16x256xf32>
    %57 = tpu.matmul %56, %54, %cst_45 {dimension_numbers = #tpu.dot_dimension_numbers<[1], [0], [0], [1], [0, 0, 1, 1], [], []>} : vector<16x16xf32>, vector<16x256xf32>, vector<16x256xf32> -> vector<16x256xf32>
    %58 = arith.addf %50, %57 : vector<16x256xf32>
    %c255_i32 = arith.constant 255 : i32
    %59 = tpu.dynamic_rotate %8 by %c255_i32 dim 1 : vector<16x256xf32>, i32 -> vector<16x256xf32>
    %c5 = arith.constant 5 : index
    %c0_46 = arith.constant 0 : index
    %c0_47 = arith.constant 0 : index
    %60 = vector.load %arg3[%c5, %c0_46, %c0_47] : memref<9x1x256xf32, #tpu.memory_space<vmem>>, vector<1x1x256xf32>
    %61 = vector.shape_cast %60 : vector<1x1x256xf32> to vector<1x256xf32>
    %62 = vector.broadcast %61 : vector<1x256xf32> to vector<16x256xf32>
    %63 = arith.mulf %59, %62 : vector<16x256xf32>
    %c5_48 = arith.constant 5 : index
    %c0_49 = arith.constant 0 : index
    %c0_50 = arith.constant 0 : index
    %64 = vector.load %arg6[%c5_48, %c0_49, %c0_50] : memref<9x16x16xf32, #tpu.memory_space<vmem>>, vector<1x16x16xf32>
    %65 = vector.shape_cast %64 : vector<1x16x16xf32> to vector<16x16xf32>
    %cst_51 = arith.constant dense<0.000000e+00> : vector<16x256xf32>
    %66 = tpu.matmul %65, %63, %cst_51 {dimension_numbers = #tpu.dot_dimension_numbers<[1], [0], [0], [1], [0, 0, 1, 1], [], []>} : vector<16x16xf32>, vector<16x256xf32>, vector<16x256xf32> -> vector<16x256xf32>
    %67 = arith.addf %58, %66 : vector<16x256xf32>
    %c242_i32 = arith.constant 242 : i32
    %68 = tpu.dynamic_rotate %8 by %c242_i32 dim 1 : vector<16x256xf32>, i32 -> vector<16x256xf32>
    %c6 = arith.constant 6 : index
    %c0_52 = arith.constant 0 : index
    %c0_53 = arith.constant 0 : index
    %69 = vector.load %arg3[%c6, %c0_52, %c0_53] : memref<9x1x256xf32, #tpu.memory_space<vmem>>, vector<1x1x256xf32>
    %70 = vector.shape_cast %69 : vector<1x1x256xf32> to vector<1x256xf32>
    %71 = vector.broadcast %70 : vector<1x256xf32> to vector<16x256xf32>
    %72 = arith.mulf %68, %71 : vector<16x256xf32>
    %c6_54 = arith.constant 6 : index
    %c0_55 = arith.constant 0 : index
    %c0_56 = arith.constant 0 : index
    %73 = vector.load %arg6[%c6_54, %c0_55, %c0_56] : memref<9x16x16xf32, #tpu.memory_space<vmem>>, vector<1x16x16xf32>
    %74 = vector.shape_cast %73 : vector<1x16x16xf32> to vector<16x16xf32>
    %cst_57 = arith.constant dense<0.000000e+00> : vector<16x256xf32>
    %75 = tpu.matmul %74, %72, %cst_57 {dimension_numbers = #tpu.dot_dimension_numbers<[1], [0], [0], [1], [0, 0, 1, 1], [], []>} : vector<16x16xf32>, vector<16x256xf32>, vector<16x256xf32> -> vector<16x256xf32>
    %76 = arith.addf %67, %75 : vector<16x256xf32>
    %c241_i32 = arith.constant 241 : i32
    %77 = tpu.dynamic_rotate %8 by %c241_i32 dim 1 : vector<16x256xf32>, i32 -> vector<16x256xf32>
    %c7 = arith.constant 7 : index
    %c0_58 = arith.constant 0 : index
    %c0_59 = arith.constant 0 : index
    %78 = vector.load %arg3[%c7, %c0_58, %c0_59] : memref<9x1x256xf32, #tpu.memory_space<vmem>>, vector<1x1x256xf32>
    %79 = vector.shape_cast %78 : vector<1x1x256xf32> to vector<1x256xf32>
    %80 = vector.broadcast %79 : vector<1x256xf32> to vector<16x256xf32>
    %81 = arith.mulf %77, %80 : vector<16x256xf32>
    %c7_60 = arith.constant 7 : index
    %c0_61 = arith.constant 0 : index
    %c0_62 = arith.constant 0 : index
    %82 = vector.load %arg6[%c7_60, %c0_61, %c0_62] : memref<9x16x16xf32, #tpu.memory_space<vmem>>, vector<1x16x16xf32>
    %83 = vector.shape_cast %82 : vector<1x16x16xf32> to vector<16x16xf32>
    %cst_63 = arith.constant dense<0.000000e+00> : vector<16x256xf32>
    %84 = tpu.matmul %83, %81, %cst_63 {dimension_numbers = #tpu.dot_dimension_numbers<[1], [0], [0], [1], [0, 0, 1, 1], [], []>} : vector<16x16xf32>, vector<16x256xf32>, vector<16x256xf32> -> vector<16x256xf32>
    %85 = arith.addf %76, %84 : vector<16x256xf32>
    %c240_i32 = arith.constant 240 : i32
    %86 = tpu.dynamic_rotate %8 by %c240_i32 dim 1 : vector<16x256xf32>, i32 -> vector<16x256xf32>
    %c8 = arith.constant 8 : index
    %c0_64 = arith.constant 0 : index
    %c0_65 = arith.constant 0 : index
    %87 = vector.load %arg3[%c8, %c0_64, %c0_65] : memref<9x1x256xf32, #tpu.memory_space<vmem>>, vector<1x1x256xf32>
    %88 = vector.shape_cast %87 : vector<1x1x256xf32> to vector<1x256xf32>
    %89 = vector.broadcast %88 : vector<1x256xf32> to vector<16x256xf32>
    %90 = arith.mulf %86, %89 : vector<16x256xf32>
    %c8_66 = arith.constant 8 : index
    %c0_67 = arith.constant 0 : index
    %c0_68 = arith.constant 0 : index
    %91 = vector.load %arg6[%c8_66, %c0_67, %c0_68] : memref<9x16x16xf32, #tpu.memory_space<vmem>>, vector<1x16x16xf32>
    %92 = vector.shape_cast %91 : vector<1x16x16xf32> to vector<16x16xf32>
    %cst_69 = arith.constant dense<0.000000e+00> : vector<16x256xf32>
    %93 = tpu.matmul %92, %90, %cst_69 {dimension_numbers = #tpu.dot_dimension_numbers<[1], [0], [0], [1], [0, 0, 1, 1], [], []>} : vector<16x16xf32>, vector<16x256xf32>, vector<16x256xf32> -> vector<16x256xf32>
    %94 = arith.addf %85, %93 : vector<16x256xf32>
    %c0_70 = arith.constant 0 : index
    %c0_71 = arith.constant 0 : index
    %95 = vector.load %arg11[%c0_70, %c0_71] : memref<16x1xf32, #tpu.memory_space<vmem>>, vector<16x1xf32>
    %96 = vector.broadcast %95 : vector<16x1xf32> to vector<16x256xf32>
    %97 = arith.addf %94, %96 : vector<16x256xf32>
    %98 = arith.addf %97, %15 : vector<16x256xf32>
    %cst_72 = arith.constant 0.000000e+00 : f32
    %99 = vector.broadcast %cst_72 : f32 to vector<16x256xf32>
    %100 = arith.maximumf %98, %99 : vector<16x256xf32>
    %c16_i32_73 = arith.constant 16 : i32
    %101 = tpu.dynamic_rotate %100 by %c16_i32_73 dim 1 : vector<16x256xf32>, i32 -> vector<16x256xf32>
    %c0_74 = arith.constant 0 : index
    %c0_75 = arith.constant 0 : index
    %c0_76 = arith.constant 0 : index
    %102 = vector.load %arg3[%c0_74, %c0_75, %c0_76] : memref<9x1x256xf32, #tpu.memory_space<vmem>>, vector<1x1x256xf32>
    %103 = vector.shape_cast %102 : vector<1x1x256xf32> to vector<1x256xf32>
    %104 = vector.broadcast %103 : vector<1x256xf32> to vector<16x256xf32>
    %105 = arith.mulf %101, %104 : vector<16x256xf32>
    %c0_77 = arith.constant 0 : index
    %c0_78 = arith.constant 0 : index
    %c0_79 = arith.constant 0 : index
    %106 = vector.load %arg7[%c0_77, %c0_78, %c0_79] : memref<9x16x16xf32, #tpu.memory_space<vmem>>, vector<1x16x16xf32>
    %107 = vector.shape_cast %106 : vector<1x16x16xf32> to vector<16x16xf32>
    %cst_80 = arith.constant dense<0.000000e+00> : vector<16x256xf32>
    %108 = tpu.matmul %107, %105, %cst_80 {dimension_numbers = #tpu.dot_dimension_numbers<[1], [0], [0], [1], [0, 0, 1, 1], [], []>} : vector<16x16xf32>, vector<16x256xf32>, vector<16x256xf32> -> vector<16x256xf32>
    %c15_i32_81 = arith.constant 15 : i32
    %109 = tpu.dynamic_rotate %100 by %c15_i32_81 dim 1 : vector<16x256xf32>, i32 -> vector<16x256xf32>
    %c1_82 = arith.constant 1 : index
    %c0_83 = arith.constant 0 : index
    %c0_84 = arith.constant 0 : index
    %110 = vector.load %arg3[%c1_82, %c0_83, %c0_84] : memref<9x1x256xf32, #tpu.memory_space<vmem>>, vector<1x1x256xf32>
    %111 = vector.shape_cast %110 : vector<1x1x256xf32> to vector<1x256xf32>
    %112 = vector.broadcast %111 : vector<1x256xf32> to vector<16x256xf32>
    %113 = arith.mulf %109, %112 : vector<16x256xf32>
    %c1_85 = arith.constant 1 : index
    %c0_86 = arith.constant 0 : index
    %c0_87 = arith.constant 0 : index
    %114 = vector.load %arg7[%c1_85, %c0_86, %c0_87] : memref<9x16x16xf32, #tpu.memory_space<vmem>>, vector<1x16x16xf32>
    %115 = vector.shape_cast %114 : vector<1x16x16xf32> to vector<16x16xf32>
    %cst_88 = arith.constant dense<0.000000e+00> : vector<16x256xf32>
    %116 = tpu.matmul %115, %113, %cst_88 {dimension_numbers = #tpu.dot_dimension_numbers<[1], [0], [0], [1], [0, 0, 1, 1], [], []>} : vector<16x16xf32>, vector<16x256xf32>, vector<16x256xf32> -> vector<16x256xf32>
    %117 = arith.addf %108, %116 : vector<16x256xf32>
    %c14_i32_89 = arith.constant 14 : i32
    %118 = tpu.dynamic_rotate %100 by %c14_i32_89 dim 1 : vector<16x256xf32>, i32 -> vector<16x256xf32>
    %c2_90 = arith.constant 2 : index
    %c0_91 = arith.constant 0 : index
    %c0_92 = arith.constant 0 : index
    %119 = vector.load %arg3[%c2_90, %c0_91, %c0_92] : memref<9x1x256xf32, #tpu.memory_space<vmem>>, vector<1x1x256xf32>
    %120 = vector.shape_cast %119 : vector<1x1x256xf32> to vector<1x256xf32>
    %121 = vector.broadcast %120 : vector<1x256xf32> to vector<16x256xf32>
    %122 = arith.mulf %118, %121 : vector<16x256xf32>
    %c2_93 = arith.constant 2 : index
    %c0_94 = arith.constant 0 : index
    %c0_95 = arith.constant 0 : index
    %123 = vector.load %arg7[%c2_93, %c0_94, %c0_95] : memref<9x16x16xf32, #tpu.memory_space<vmem>>, vector<1x16x16xf32>
    %124 = vector.shape_cast %123 : vector<1x16x16xf32> to vector<16x16xf32>
    %cst_96 = arith.constant dense<0.000000e+00> : vector<16x256xf32>
    %125 = tpu.matmul %124, %122, %cst_96 {dimension_numbers = #tpu.dot_dimension_numbers<[1], [0], [0], [1], [0, 0, 1, 1], [], []>} : vector<16x16xf32>, vector<16x256xf32>, vector<16x256xf32> -> vector<16x256xf32>
    %126 = arith.addf %117, %125 : vector<16x256xf32>
    %c1_i32_97 = arith.constant 1 : i32
    %127 = tpu.dynamic_rotate %100 by %c1_i32_97 dim 1 : vector<16x256xf32>, i32 -> vector<16x256xf32>
    %c3_98 = arith.constant 3 : index
    %c0_99 = arith.constant 0 : index
    %c0_100 = arith.constant 0 : index
    %128 = vector.load %arg3[%c3_98, %c0_99, %c0_100] : memref<9x1x256xf32, #tpu.memory_space<vmem>>, vector<1x1x256xf32>
    %129 = vector.shape_cast %128 : vector<1x1x256xf32> to vector<1x256xf32>
    %130 = vector.broadcast %129 : vector<1x256xf32> to vector<16x256xf32>
    %131 = arith.mulf %127, %130 : vector<16x256xf32>
    %c3_101 = arith.constant 3 : index
    %c0_102 = arith.constant 0 : index
    %c0_103 = arith.constant 0 : index
    %132 = vector.load %arg7[%c3_101, %c0_102, %c0_103] : memref<9x16x16xf32, #tpu.memory_space<vmem>>, vector<1x16x16xf32>
    %133 = vector.shape_cast %132 : vector<1x16x16xf32> to vector<16x16xf32>
    %cst_104 = arith.constant dense<0.000000e+00> : vector<16x256xf32>
    %134 = tpu.matmul %133, %131, %cst_104 {dimension_numbers = #tpu.dot_dimension_numbers<[1], [0], [0], [1], [0, 0, 1, 1], [], []>} : vector<16x16xf32>, vector<16x256xf32>, vector<16x256xf32> -> vector<16x256xf32>
    %135 = arith.addf %126, %134 : vector<16x256xf32>
    %c4_105 = arith.constant 4 : index
    %c0_106 = arith.constant 0 : index
    %c0_107 = arith.constant 0 : index
    %136 = vector.load %arg3[%c4_105, %c0_106, %c0_107] : memref<9x1x256xf32, #tpu.memory_space<vmem>>, vector<1x1x256xf32>
    %137 = vector.shape_cast %136 : vector<1x1x256xf32> to vector<1x256xf32>
    %138 = vector.broadcast %137 : vector<1x256xf32> to vector<16x256xf32>
    %139 = arith.mulf %100, %138 : vector<16x256xf32>
    %c4_108 = arith.constant 4 : index
    %c0_109 = arith.constant 0 : index
    %c0_110 = arith.constant 0 : index
    %140 = vector.load %arg7[%c4_108, %c0_109, %c0_110] : memref<9x16x16xf32, #tpu.memory_space<vmem>>, vector<1x16x16xf32>
    %141 = vector.shape_cast %140 : vector<1x16x16xf32> to vector<16x16xf32>
    %cst_111 = arith.constant dense<0.000000e+00> : vector<16x256xf32>
    %142 = tpu.matmul %141, %139, %cst_111 {dimension_numbers = #tpu.dot_dimension_numbers<[1], [0], [0], [1], [0, 0, 1, 1], [], []>} : vector<16x16xf32>, vector<16x256xf32>, vector<16x256xf32> -> vector<16x256xf32>
    %143 = arith.addf %135, %142 : vector<16x256xf32>
    %c255_i32_112 = arith.constant 255 : i32
    %144 = tpu.dynamic_rotate %100 by %c255_i32_112 dim 1 : vector<16x256xf32>, i32 -> vector<16x256xf32>
    %c5_113 = arith.constant 5 : index
    %c0_114 = arith.constant 0 : index
    %c0_115 = arith.constant 0 : index
    %145 = vector.load %arg3[%c5_113, %c0_114, %c0_115] : memref<9x1x256xf32, #tpu.memory_space<vmem>>, vector<1x1x256xf32>
    %146 = vector.shape_cast %145 : vector<1x1x256xf32> to vector<1x256xf32>
    %147 = vector.broadcast %146 : vector<1x256xf32> to vector<16x256xf32>
    %148 = arith.mulf %144, %147 : vector<16x256xf32>
    %c5_116 = arith.constant 5 : index
    %c0_117 = arith.constant 0 : index
    %c0_118 = arith.constant 0 : index
    %149 = vector.load %arg7[%c5_116, %c0_117, %c0_118] : memref<9x16x16xf32, #tpu.memory_space<vmem>>, vector<1x16x16xf32>
    %150 = vector.shape_cast %149 : vector<1x16x16xf32> to vector<16x16xf32>
    %cst_119 = arith.constant dense<0.000000e+00> : vector<16x256xf32>
    %151 = tpu.matmul %150, %148, %cst_119 {dimension_numbers = #tpu.dot_dimension_numbers<[1], [0], [0], [1], [0, 0, 1, 1], [], []>} : vector<16x16xf32>, vector<16x256xf32>, vector<16x256xf32> -> vector<16x256xf32>
    %152 = arith.addf %143, %151 : vector<16x256xf32>
    %c242_i32_120 = arith.constant 242 : i32
    %153 = tpu.dynamic_rotate %100 by %c242_i32_120 dim 1 : vector<16x256xf32>, i32 -> vector<16x256xf32>
    %c6_121 = arith.constant 6 : index
    %c0_122 = arith.constant 0 : index
    %c0_123 = arith.constant 0 : index
    %154 = vector.load %arg3[%c6_121, %c0_122, %c0_123] : memref<9x1x256xf32, #tpu.memory_space<vmem>>, vector<1x1x256xf32>
    %155 = vector.shape_cast %154 : vector<1x1x256xf32> to vector<1x256xf32>
    %156 = vector.broadcast %155 : vector<1x256xf32> to vector<16x256xf32>
    %157 = arith.mulf %153, %156 : vector<16x256xf32>
    %c6_124 = arith.constant 6 : index
    %c0_125 = arith.constant 0 : index
    %c0_126 = arith.constant 0 : index
    %158 = vector.load %arg7[%c6_124, %c0_125, %c0_126] : memref<9x16x16xf32, #tpu.memory_space<vmem>>, vector<1x16x16xf32>
    %159 = vector.shape_cast %158 : vector<1x16x16xf32> to vector<16x16xf32>
    %cst_127 = arith.constant dense<0.000000e+00> : vector<16x256xf32>
    %160 = tpu.matmul %159, %157, %cst_127 {dimension_numbers = #tpu.dot_dimension_numbers<[1], [0], [0], [1], [0, 0, 1, 1], [], []>} : vector<16x16xf32>, vector<16x256xf32>, vector<16x256xf32> -> vector<16x256xf32>
    %161 = arith.addf %152, %160 : vector<16x256xf32>
    %c241_i32_128 = arith.constant 241 : i32
    %162 = tpu.dynamic_rotate %100 by %c241_i32_128 dim 1 : vector<16x256xf32>, i32 -> vector<16x256xf32>
    %c7_129 = arith.constant 7 : index
    %c0_130 = arith.constant 0 : index
    %c0_131 = arith.constant 0 : index
    %163 = vector.load %arg3[%c7_129, %c0_130, %c0_131] : memref<9x1x256xf32, #tpu.memory_space<vmem>>, vector<1x1x256xf32>
    %164 = vector.shape_cast %163 : vector<1x1x256xf32> to vector<1x256xf32>
    %165 = vector.broadcast %164 : vector<1x256xf32> to vector<16x256xf32>
    %166 = arith.mulf %162, %165 : vector<16x256xf32>
    %c7_132 = arith.constant 7 : index
    %c0_133 = arith.constant 0 : index
    %c0_134 = arith.constant 0 : index
    %167 = vector.load %arg7[%c7_132, %c0_133, %c0_134] : memref<9x16x16xf32, #tpu.memory_space<vmem>>, vector<1x16x16xf32>
    %168 = vector.shape_cast %167 : vector<1x16x16xf32> to vector<16x16xf32>
    %cst_135 = arith.constant dense<0.000000e+00> : vector<16x256xf32>
    %169 = tpu.matmul %168, %166, %cst_135 {dimension_numbers = #tpu.dot_dimension_numbers<[1], [0], [0], [1], [0, 0, 1, 1], [], []>} : vector<16x16xf32>, vector<16x256xf32>, vector<16x256xf32> -> vector<16x256xf32>
    %170 = arith.addf %161, %169 : vector<16x256xf32>
    %c240_i32_136 = arith.constant 240 : i32
    %171 = tpu.dynamic_rotate %100 by %c240_i32_136 dim 1 : vector<16x256xf32>, i32 -> vector<16x256xf32>
    %c8_137 = arith.constant 8 : index
    %c0_138 = arith.constant 0 : index
    %c0_139 = arith.constant 0 : index
    %172 = vector.load %arg3[%c8_137, %c0_138, %c0_139] : memref<9x1x256xf32, #tpu.memory_space<vmem>>, vector<1x1x256xf32>
    %173 = vector.shape_cast %172 : vector<1x1x256xf32> to vector<1x256xf32>
    %174 = vector.broadcast %173 : vector<1x256xf32> to vector<16x256xf32>
    %175 = arith.mulf %171, %174 : vector<16x256xf32>
    %c8_140 = arith.constant 8 : index
    %c0_141 = arith.constant 0 : index
    %c0_142 = arith.constant 0 : index
    %176 = vector.load %arg7[%c8_140, %c0_141, %c0_142] : memref<9x16x16xf32, #tpu.memory_space<vmem>>, vector<1x16x16xf32>
    %177 = vector.shape_cast %176 : vector<1x16x16xf32> to vector<16x16xf32>
    %cst_143 = arith.constant dense<0.000000e+00> : vector<16x256xf32>
    %178 = tpu.matmul %177, %175, %cst_143 {dimension_numbers = #tpu.dot_dimension_numbers<[1], [0], [0], [1], [0, 0, 1, 1], [], []>} : vector<16x16xf32>, vector<16x256xf32>, vector<16x256xf32> -> vector<16x256xf32>
    %179 = arith.addf %170, %178 : vector<16x256xf32>
    %c0_144 = arith.constant 0 : index
    %c0_145 = arith.constant 0 : index
    %180 = vector.load %arg12[%c0_144, %c0_145] : memref<16x1xf32, #tpu.memory_space<vmem>>, vector<16x1xf32>
    %181 = vector.broadcast %180 : vector<16x1xf32> to vector<16x256xf32>
    %182 = arith.addf %179, %181 : vector<16x256xf32>
    %cst_146 = arith.constant 0.000000e+00 : f32
    %183 = vector.broadcast %cst_146 : f32 to vector<16x256xf32>
    %184 = arith.maximumf %182, %183 : vector<16x256xf32>
    %c16_i32_147 = arith.constant 16 : i32
    %185 = tpu.dynamic_rotate %184 by %c16_i32_147 dim 1 : vector<16x256xf32>, i32 -> vector<16x256xf32>
    %c0_148 = arith.constant 0 : index
    %c0_149 = arith.constant 0 : index
    %c0_150 = arith.constant 0 : index
    %186 = vector.load %arg3[%c0_148, %c0_149, %c0_150] : memref<9x1x256xf32, #tpu.memory_space<vmem>>, vector<1x1x256xf32>
    %187 = vector.shape_cast %186 : vector<1x1x256xf32> to vector<1x256xf32>
    %188 = vector.broadcast %187 : vector<1x256xf32> to vector<16x256xf32>
    %189 = arith.mulf %185, %188 : vector<16x256xf32>
    %c0_151 = arith.constant 0 : index
    %c0_152 = arith.constant 0 : index
    %c0_153 = arith.constant 0 : index
    %190 = vector.load %arg8[%c0_151, %c0_152, %c0_153] : memref<9x16x16xf32, #tpu.memory_space<vmem>>, vector<1x16x16xf32>
    %191 = vector.shape_cast %190 : vector<1x16x16xf32> to vector<16x16xf32>
    %cst_154 = arith.constant dense<0.000000e+00> : vector<16x256xf32>
    %192 = tpu.matmul %191, %189, %cst_154 {dimension_numbers = #tpu.dot_dimension_numbers<[1], [0], [0], [1], [0, 0, 1, 1], [], []>} : vector<16x16xf32>, vector<16x256xf32>, vector<16x256xf32> -> vector<16x256xf32>
    %c15_i32_155 = arith.constant 15 : i32
    %193 = tpu.dynamic_rotate %184 by %c15_i32_155 dim 1 : vector<16x256xf32>, i32 -> vector<16x256xf32>
    %c1_156 = arith.constant 1 : index
    %c0_157 = arith.constant 0 : index
    %c0_158 = arith.constant 0 : index
    %194 = vector.load %arg3[%c1_156, %c0_157, %c0_158] : memref<9x1x256xf32, #tpu.memory_space<vmem>>, vector<1x1x256xf32>
    %195 = vector.shape_cast %194 : vector<1x1x256xf32> to vector<1x256xf32>
    %196 = vector.broadcast %195 : vector<1x256xf32> to vector<16x256xf32>
    %197 = arith.mulf %193, %196 : vector<16x256xf32>
    %c1_159 = arith.constant 1 : index
    %c0_160 = arith.constant 0 : index
    %c0_161 = arith.constant 0 : index
    %198 = vector.load %arg8[%c1_159, %c0_160, %c0_161] : memref<9x16x16xf32, #tpu.memory_space<vmem>>, vector<1x16x16xf32>
    %199 = vector.shape_cast %198 : vector<1x16x16xf32> to vector<16x16xf32>
    %cst_162 = arith.constant dense<0.000000e+00> : vector<16x256xf32>
    %200 = tpu.matmul %199, %197, %cst_162 {dimension_numbers = #tpu.dot_dimension_numbers<[1], [0], [0], [1], [0, 0, 1, 1], [], []>} : vector<16x16xf32>, vector<16x256xf32>, vector<16x256xf32> -> vector<16x256xf32>
    %201 = arith.addf %192, %200 : vector<16x256xf32>
    %c14_i32_163 = arith.constant 14 : i32
    %202 = tpu.dynamic_rotate %184 by %c14_i32_163 dim 1 : vector<16x256xf32>, i32 -> vector<16x256xf32>
    %c2_164 = arith.constant 2 : index
    %c0_165 = arith.constant 0 : index
    %c0_166 = arith.constant 0 : index
    %203 = vector.load %arg3[%c2_164, %c0_165, %c0_166] : memref<9x1x256xf32, #tpu.memory_space<vmem>>, vector<1x1x256xf32>
    %204 = vector.shape_cast %203 : vector<1x1x256xf32> to vector<1x256xf32>
    %205 = vector.broadcast %204 : vector<1x256xf32> to vector<16x256xf32>
    %206 = arith.mulf %202, %205 : vector<16x256xf32>
    %c2_167 = arith.constant 2 : index
    %c0_168 = arith.constant 0 : index
    %c0_169 = arith.constant 0 : index
    %207 = vector.load %arg8[%c2_167, %c0_168, %c0_169] : memref<9x16x16xf32, #tpu.memory_space<vmem>>, vector<1x16x16xf32>
    %208 = vector.shape_cast %207 : vector<1x16x16xf32> to vector<16x16xf32>
    %cst_170 = arith.constant dense<0.000000e+00> : vector<16x256xf32>
    %209 = tpu.matmul %208, %206, %cst_170 {dimension_numbers = #tpu.dot_dimension_numbers<[1], [0], [0], [1], [0, 0, 1, 1], [], []>} : vector<16x16xf32>, vector<16x256xf32>, vector<16x256xf32> -> vector<16x256xf32>
    %210 = arith.addf %201, %209 : vector<16x256xf32>
    %c1_i32_171 = arith.constant 1 : i32
    %211 = tpu.dynamic_rotate %184 by %c1_i32_171 dim 1 : vector<16x256xf32>, i32 -> vector<16x256xf32>
    %c3_172 = arith.constant 3 : index
    %c0_173 = arith.constant 0 : index
    %c0_174 = arith.constant 0 : index
    %212 = vector.load %arg3[%c3_172, %c0_173, %c0_174] : memref<9x1x256xf32, #tpu.memory_space<vmem>>, vector<1x1x256xf32>
    %213 = vector.shape_cast %212 : vector<1x1x256xf32> to vector<1x256xf32>
    %214 = vector.broadcast %213 : vector<1x256xf32> to vector<16x256xf32>
    %215 = arith.mulf %211, %214 : vector<16x256xf32>
    %c3_175 = arith.constant 3 : index
    %c0_176 = arith.constant 0 : index
    %c0_177 = arith.constant 0 : index
    %216 = vector.load %arg8[%c3_175, %c0_176, %c0_177] : memref<9x16x16xf32, #tpu.memory_space<vmem>>, vector<1x16x16xf32>
    %217 = vector.shape_cast %216 : vector<1x16x16xf32> to vector<16x16xf32>
    %cst_178 = arith.constant dense<0.000000e+00> : vector<16x256xf32>
    %218 = tpu.matmul %217, %215, %cst_178 {dimension_numbers = #tpu.dot_dimension_numbers<[1], [0], [0], [1], [0, 0, 1, 1], [], []>} : vector<16x16xf32>, vector<16x256xf32>, vector<16x256xf32> -> vector<16x256xf32>
    %219 = arith.addf %210, %218 : vector<16x256xf32>
    %c4_179 = arith.constant 4 : index
    %c0_180 = arith.constant 0 : index
    %c0_181 = arith.constant 0 : index
    %220 = vector.load %arg3[%c4_179, %c0_180, %c0_181] : memref<9x1x256xf32, #tpu.memory_space<vmem>>, vector<1x1x256xf32>
    %221 = vector.shape_cast %220 : vector<1x1x256xf32> to vector<1x256xf32>
    %222 = vector.broadcast %221 : vector<1x256xf32> to vector<16x256xf32>
    %223 = arith.mulf %184, %222 : vector<16x256xf32>
    %c4_182 = arith.constant 4 : index
    %c0_183 = arith.constant 0 : index
    %c0_184 = arith.constant 0 : index
    %224 = vector.load %arg8[%c4_182, %c0_183, %c0_184] : memref<9x16x16xf32, #tpu.memory_space<vmem>>, vector<1x16x16xf32>
    %225 = vector.shape_cast %224 : vector<1x16x16xf32> to vector<16x16xf32>
    %cst_185 = arith.constant dense<0.000000e+00> : vector<16x256xf32>
    %226 = tpu.matmul %225, %223, %cst_185 {dimension_numbers = #tpu.dot_dimension_numbers<[1], [0], [0], [1], [0, 0, 1, 1], [], []>} : vector<16x16xf32>, vector<16x256xf32>, vector<16x256xf32> -> vector<16x256xf32>
    %227 = arith.addf %219, %226 : vector<16x256xf32>
    %c255_i32_186 = arith.constant 255 : i32
    %228 = tpu.dynamic_rotate %184 by %c255_i32_186 dim 1 : vector<16x256xf32>, i32 -> vector<16x256xf32>
    %c5_187 = arith.constant 5 : index
    %c0_188 = arith.constant 0 : index
    %c0_189 = arith.constant 0 : index
    %229 = vector.load %arg3[%c5_187, %c0_188, %c0_189] : memref<9x1x256xf32, #tpu.memory_space<vmem>>, vector<1x1x256xf32>
    %230 = vector.shape_cast %229 : vector<1x1x256xf32> to vector<1x256xf32>
    %231 = vector.broadcast %230 : vector<1x256xf32> to vector<16x256xf32>
    %232 = arith.mulf %228, %231 : vector<16x256xf32>
    %c5_190 = arith.constant 5 : index
    %c0_191 = arith.constant 0 : index
    %c0_192 = arith.constant 0 : index
    %233 = vector.load %arg8[%c5_190, %c0_191, %c0_192] : memref<9x16x16xf32, #tpu.memory_space<vmem>>, vector<1x16x16xf32>
    %234 = vector.shape_cast %233 : vector<1x16x16xf32> to vector<16x16xf32>
    %cst_193 = arith.constant dense<0.000000e+00> : vector<16x256xf32>
    %235 = tpu.matmul %234, %232, %cst_193 {dimension_numbers = #tpu.dot_dimension_numbers<[1], [0], [0], [1], [0, 0, 1, 1], [], []>} : vector<16x16xf32>, vector<16x256xf32>, vector<16x256xf32> -> vector<16x256xf32>
    %236 = arith.addf %227, %235 : vector<16x256xf32>
    %c242_i32_194 = arith.constant 242 : i32
    %237 = tpu.dynamic_rotate %184 by %c242_i32_194 dim 1 : vector<16x256xf32>, i32 -> vector<16x256xf32>
    %c6_195 = arith.constant 6 : index
    %c0_196 = arith.constant 0 : index
    %c0_197 = arith.constant 0 : index
    %238 = vector.load %arg3[%c6_195, %c0_196, %c0_197] : memref<9x1x256xf32, #tpu.memory_space<vmem>>, vector<1x1x256xf32>
    %239 = vector.shape_cast %238 : vector<1x1x256xf32> to vector<1x256xf32>
    %240 = vector.broadcast %239 : vector<1x256xf32> to vector<16x256xf32>
    %241 = arith.mulf %237, %240 : vector<16x256xf32>
    %c6_198 = arith.constant 6 : index
    %c0_199 = arith.constant 0 : index
    %c0_200 = arith.constant 0 : index
    %242 = vector.load %arg8[%c6_198, %c0_199, %c0_200] : memref<9x16x16xf32, #tpu.memory_space<vmem>>, vector<1x16x16xf32>
    %243 = vector.shape_cast %242 : vector<1x16x16xf32> to vector<16x16xf32>
    %cst_201 = arith.constant dense<0.000000e+00> : vector<16x256xf32>
    %244 = tpu.matmul %243, %241, %cst_201 {dimension_numbers = #tpu.dot_dimension_numbers<[1], [0], [0], [1], [0, 0, 1, 1], [], []>} : vector<16x16xf32>, vector<16x256xf32>, vector<16x256xf32> -> vector<16x256xf32>
    %245 = arith.addf %236, %244 : vector<16x256xf32>
    %c241_i32_202 = arith.constant 241 : i32
    %246 = tpu.dynamic_rotate %184 by %c241_i32_202 dim 1 : vector<16x256xf32>, i32 -> vector<16x256xf32>
    %c7_203 = arith.constant 7 : index
    %c0_204 = arith.constant 0 : index
    %c0_205 = arith.constant 0 : index
    %247 = vector.load %arg3[%c7_203, %c0_204, %c0_205] : memref<9x1x256xf32, #tpu.memory_space<vmem>>, vector<1x1x256xf32>
    %248 = vector.shape_cast %247 : vector<1x1x256xf32> to vector<1x256xf32>
    %249 = vector.broadcast %248 : vector<1x256xf32> to vector<16x256xf32>
    %250 = arith.mulf %246, %249 : vector<16x256xf32>
    %c7_206 = arith.constant 7 : index
    %c0_207 = arith.constant 0 : index
    %c0_208 = arith.constant 0 : index
    %251 = vector.load %arg8[%c7_206, %c0_207, %c0_208] : memref<9x16x16xf32, #tpu.memory_space<vmem>>, vector<1x16x16xf32>
    %252 = vector.shape_cast %251 : vector<1x16x16xf32> to vector<16x16xf32>
    %cst_209 = arith.constant dense<0.000000e+00> : vector<16x256xf32>
    %253 = tpu.matmul %252, %250, %cst_209 {dimension_numbers = #tpu.dot_dimension_numbers<[1], [0], [0], [1], [0, 0, 1, 1], [], []>} : vector<16x16xf32>, vector<16x256xf32>, vector<16x256xf32> -> vector<16x256xf32>
    %254 = arith.addf %245, %253 : vector<16x256xf32>
    %c240_i32_210 = arith.constant 240 : i32
    %255 = tpu.dynamic_rotate %184 by %c240_i32_210 dim 1 : vector<16x256xf32>, i32 -> vector<16x256xf32>
    %c8_211 = arith.constant 8 : index
    %c0_212 = arith.constant 0 : index
    %c0_213 = arith.constant 0 : index
    %256 = vector.load %arg3[%c8_211, %c0_212, %c0_213] : memref<9x1x256xf32, #tpu.memory_space<vmem>>, vector<1x1x256xf32>
    %257 = vector.shape_cast %256 : vector<1x1x256xf32> to vector<1x256xf32>
    %258 = vector.broadcast %257 : vector<1x256xf32> to vector<16x256xf32>
    %259 = arith.mulf %255, %258 : vector<16x256xf32>
    %c8_214 = arith.constant 8 : index
    %c0_215 = arith.constant 0 : index
    %c0_216 = arith.constant 0 : index
    %260 = vector.load %arg8[%c8_214, %c0_215, %c0_216] : memref<9x16x16xf32, #tpu.memory_space<vmem>>, vector<1x16x16xf32>
    %261 = vector.shape_cast %260 : vector<1x16x16xf32> to vector<16x16xf32>
    %cst_217 = arith.constant dense<0.000000e+00> : vector<16x256xf32>
    %262 = tpu.matmul %261, %259, %cst_217 {dimension_numbers = #tpu.dot_dimension_numbers<[1], [0], [0], [1], [0, 0, 1, 1], [], []>} : vector<16x16xf32>, vector<16x256xf32>, vector<16x256xf32> -> vector<16x256xf32>
    %263 = arith.addf %254, %262 : vector<16x256xf32>
    %c0_218 = arith.constant 0 : index
    %c0_219 = arith.constant 0 : index
    %264 = vector.load %arg13[%c0_218, %c0_219] : memref<16x1xf32, #tpu.memory_space<vmem>>, vector<16x1xf32>
    %265 = vector.broadcast %264 : vector<16x1xf32> to vector<16x256xf32>
    %266 = arith.addf %263, %265 : vector<16x256xf32>
    %267 = arith.addf %266, %100 : vector<16x256xf32>
    %cst_220 = arith.constant 0.000000e+00 : f32
    %268 = vector.broadcast %cst_220 : f32 to vector<16x256xf32>
    %269 = arith.maximumf %267, %268 : vector<16x256xf32>
    %c0_221 = arith.constant 0 : index
    %c0_222 = arith.constant 0 : index
    %c0_223 = arith.constant 0 : index
    %270 = vector.load %arg14[%c0_221, %c0_222, %c0_223] : memref<1x16x256xf32, #tpu.memory_space<vmem>>, vector<1x16x256xf32>
    %271 = vector.shape_cast %270 : vector<1x16x256xf32> to vector<16x256xf32>
    %272 = vector.shape_cast %269 : vector<16x256xf32> to vector<1x16x256xf32>
    tpu.vector_store %arg14[%c0_221, %c0_222, %c0_223], %272 {strides = array<i32>} : memref<1x16x256xf32, #tpu.memory_space<vmem>>, vector<1x16x256xf32>,
    return
  }
  func.func @transform_0(%arg0: i32) -> (i32, i32, i32) {
    %c0_i32 = arith.constant 0 : i32
    %c0_i32_0 = arith.constant 0 : i32
    %c0_i32_1 = arith.constant 0 : i32
    return %arg0, %c0_i32, %c0_i32_0 : i32, i32, i32
  }
  func.func @transform_1(%arg0: i32) -> (i32, i32, i32) {
    %c0_i32 = arith.constant 0 : i32
    %c0_i32_0 = arith.constant 0 : i32
    %c0_i32_1 = arith.constant 0 : i32
    return %arg0, %c0_i32, %c0_i32_0 : i32, i32, i32
  }
  func.func @transform_2(%arg0: i32) -> (i32, i32, i32) {
    %c0_i32 = arith.constant 0 : i32
    %c0_i32_0 = arith.constant 0 : i32
    %c0_i32_1 = arith.constant 0 : i32
    %c0_i32_2 = arith.constant 0 : i32
    return %c0_i32, %c0_i32_0, %c0_i32_1 : i32, i32, i32
  }
  func.func @transform_3(%arg0: i32) -> (i32, i32) {
    %c0_i32 = arith.constant 0 : i32
    %c0_i32_0 = arith.constant 0 : i32
    %c0_i32_1 = arith.constant 0 : i32
    return %c0_i32, %c0_i32_0 : i32, i32
  }
  func.func @transform_4(%arg0: i32) -> (i32, i32) {
    %c0_i32 = arith.constant 0 : i32
    %c0_i32_0 = arith.constant 0 : i32
    %c0_i32_1 = arith.constant 0 : i32
    return %c0_i32, %c0_i32_0 : i32, i32
  }
  func.func @transform_5(%arg0: i32) -> (i32, i32, i32) {
    %c0_i32 = arith.constant 0 : i32
    %c0_i32_0 = arith.constant 0 : i32
    %c0_i32_1 = arith.constant 0 : i32
    %c0_i32_2 = arith.constant 0 : i32
    return %c0_i32, %c0_i32_0, %c0_i32_1 : i32, i32, i32
  }
  func.func @transform_6(%arg0: i32) -> (i32, i32, i32) {
    %c0_i32 = arith.constant 0 : i32
    %c0_i32_0 = arith.constant 0 : i32
    %c0_i32_1 = arith.constant 0 : i32
    %c0_i32_2 = arith.constant 0 : i32
    return %c0_i32, %c0_i32_0, %c0_i32_1 : i32, i32, i32
  }
  func.func @transform_7(%arg0: i32) -> (i32, i32, i32) {
    %c0_i32 = arith.constant 0 : i32
    %c0_i32_0 = arith.constant 0 : i32
    %c0_i32_1 = arith.constant 0 : i32
    %c0_i32_2 = arith.constant 0 : i32
    return %c0_i32, %c0_i32_0, %c0_i32_1 : i32, i32, i32
  }
  func.func @transform_8(%arg0: i32) -> (i32, i32) {
    %c0_i32 = arith.constant 0 : i32
    %c0_i32_0 = arith.constant 0 : i32
    %c0_i32_1 = arith.constant 0 : i32
    return %c0_i32, %c0_i32_0 : i32, i32
  }
  func.func @transform_9(%arg0: i32) -> (i32, i32) {
    %c0_i32 = arith.constant 0 : i32
    %c0_i32_0 = arith.constant 0 : i32
    %c0_i32_1 = arith.constant 0 : i32
    return %c0_i32, %c0_i32_0 : i32, i32
  }
  func.func @transform_10(%arg0: i32) -> (i32, i32) {
    %c0_i32 = arith.constant 0 : i32
    %c0_i32_0 = arith.constant 0 : i32
    %c0_i32_1 = arith.constant 0 : i32
    return %c0_i32, %c0_i32_0 : i32, i32
  }
  func.func @transform_11(%arg0: i32) -> (i32, i32) {
    %c0_i32 = arith.constant 0 : i32
    %c0_i32_0 = arith.constant 0 : i32
    %c0_i32_1 = arith.constant 0 : i32
    return %c0_i32, %c0_i32_0 : i32, i32
  }
  func.func @transform_12(%arg0: i32) -> (i32, i32) {
    %c0_i32 = arith.constant 0 : i32
    %c0_i32_0 = arith.constant 0 : i32
    %c0_i32_1 = arith.constant 0 : i32
    return %c0_i32, %c0_i32_0 : i32, i32
  }
  func.func @transform_13(%arg0: i32) -> (i32, i32, i32) {
    %c0_i32 = arith.constant 0 : i32
    %c0_i32_0 = arith.constant 0 : i32
    %c0_i32_1 = arith.constant 0 : i32
    return %arg0, %c0_i32, %c0_i32_0 : i32, i32, i32
  }
}

module attributes {stable_mosaic.version = 11 : i64} {
  func.func @kernel(%arg0: i32, %arg1: memref<1x144x128xf32, #tpu.memory_space<vmem>>, %arg2: memref<1x16x128xf32, #tpu.memory_space<vmem>>, %arg3: memref<9x1x128xf32, #tpu.memory_space<vmem>>, %arg4: memref<24x144xf32, #tpu.memory_space<vmem>>, %arg5: memref<24x16xf32, #tpu.memory_space<vmem>>, %arg6: memref<9x24x24xf32, #tpu.memory_space<vmem>>, %arg7: memref<9x24x24xf32, #tpu.memory_space<vmem>>, %arg8: memref<9x24x24xf32, #tpu.memory_space<vmem>>, %arg9: memref<24x1xf32, #tpu.memory_space<vmem>>, %arg10: memref<24x1xf32, #tpu.memory_space<vmem>>, %arg11: memref<24x1xf32, #tpu.memory_space<vmem>>, %arg12: memref<24x1xf32, #tpu.memory_space<vmem>>, %arg13: memref<24x1xf32, #tpu.memory_space<vmem>>, %arg14: memref<1x24x128xf32, #tpu.memory_space<vmem>>) attributes {dimension_semantics = [#tpu.dimension_semantics<parallel>], iteration_bounds = array<i64: 2>, scalar_prefetch = 0 : i64, scratch_operands = 0 : i64, tpu.core_type = #tpu.core_type<tc>, window_params = [{transform_indices = @transform_0, window_bounds = array<i64: 1, 144, 128>}, {transform_indices = @transform_1, window_bounds = array<i64: 1, 16, 128>}, {pipeline_mode = #tpu.pipeline_mode<synchronous>, transform_indices = @transform_2, window_bounds = array<i64: 9, 1, 128>}, {pipeline_mode = #tpu.pipeline_mode<synchronous>, transform_indices = @transform_3, window_bounds = array<i64: 24, 144>}, {pipeline_mode = #tpu.pipeline_mode<synchronous>, transform_indices = @transform_4, window_bounds = array<i64: 24, 16>}, {pipeline_mode = #tpu.pipeline_mode<synchronous>, transform_indices = @transform_5, window_bounds = array<i64: 9, 24, 24>}, {pipeline_mode = #tpu.pipeline_mode<synchronous>, transform_indices = @transform_6, window_bounds = array<i64: 9, 24, 24>}, {pipeline_mode = #tpu.pipeline_mode<synchronous>, transform_indices = @transform_7, window_bounds = array<i64: 9, 24, 24>}, {pipeline_mode = #tpu.pipeline_mode<synchronous>, transform_indices = @transform_8, window_bounds = array<i64: 24, 1>}, {pipeline_mode = #tpu.pipeline_mode<synchronous>, transform_indices = @transform_9, window_bounds = array<i64: 24, 1>}, {pipeline_mode = #tpu.pipeline_mode<synchronous>, transform_indices = @transform_10, window_bounds = array<i64: 24, 1>}, {pipeline_mode = #tpu.pipeline_mode<synchronous>, transform_indices = @transform_11, window_bounds = array<i64: 24, 1>}, {pipeline_mode = #tpu.pipeline_mode<synchronous>, transform_indices = @transform_12, window_bounds = array<i64: 24, 1>}, {transform_indices = @transform_13, window_bounds = array<i64: 1, 24, 128>}]} {
    %c0 = arith.constant 0 : index
    %c0_0 = arith.constant 0 : index
    %0 = vector.load %arg4[%c0, %c0_0] : memref<24x144xf32, #tpu.memory_space<vmem>>, vector<24x144xf32>
    %c0_1 = arith.constant 0 : index
    %c0_2 = arith.constant 0 : index
    %c0_3 = arith.constant 0 : index
    %1 = vector.load %arg1[%c0_1, %c0_2, %c0_3] : memref<1x144x128xf32, #tpu.memory_space<vmem>>, vector<1x144x128xf32>
    %2 = vector.shape_cast %1 : vector<1x144x128xf32> to vector<144x128xf32>
    %cst = arith.constant dense<0.000000e+00> : vector<24x128xf32>
    %3 = tpu.matmul %0, %2, %cst {dimension_numbers = #tpu.dot_dimension_numbers<[1], [0], [0], [1], [0, 0, 1, 1], [], []>} : vector<24x144xf32>, vector<144x128xf32>, vector<24x128xf32> -> vector<24x128xf32>
    %c0_4 = arith.constant 0 : index
    %c0_5 = arith.constant 0 : index
    %4 = vector.load %arg9[%c0_4, %c0_5] : memref<24x1xf32, #tpu.memory_space<vmem>>, vector<24x1xf32>
    %5 = vector.broadcast %4 : vector<24x1xf32> to vector<24x128xf32>
    %6 = arith.addf %3, %5 : vector<24x128xf32>
    %cst_6 = arith.constant 0.000000e+00 : f32
    %7 = vector.broadcast %cst_6 : f32 to vector<24x128xf32>
    %8 = arith.maximumf %6, %7 : vector<24x128xf32>
    %c0_7 = arith.constant 0 : index
    %c0_8 = arith.constant 0 : index
    %9 = vector.load %arg5[%c0_7, %c0_8] : memref<24x16xf32, #tpu.memory_space<vmem>>, vector<24x16xf32>
    %c0_9 = arith.constant 0 : index
    %c0_10 = arith.constant 0 : index
    %c0_11 = arith.constant 0 : index
    %10 = vector.load %arg2[%c0_9, %c0_10, %c0_11] : memref<1x16x128xf32, #tpu.memory_space<vmem>>, vector<1x16x128xf32>
    %11 = vector.shape_cast %10 : vector<1x16x128xf32> to vector<16x128xf32>
    %cst_12 = arith.constant dense<0.000000e+00> : vector<24x128xf32>
    %12 = tpu.matmul %9, %11, %cst_12 {dimension_numbers = #tpu.dot_dimension_numbers<[1], [0], [0], [1], [0, 0, 1, 1], [], []>} : vector<24x16xf32>, vector<16x128xf32>, vector<24x128xf32> -> vector<24x128xf32>
    %c0_13 = arith.constant 0 : index
    %c0_14 = arith.constant 0 : index
    %13 = vector.load %arg10[%c0_13, %c0_14] : memref<24x1xf32, #tpu.memory_space<vmem>>, vector<24x1xf32>
    %14 = vector.broadcast %13 : vector<24x1xf32> to vector<24x128xf32>
    %15 = arith.addf %12, %14 : vector<24x128xf32>
    %c9_i32 = arith.constant 9 : i32
    %16 = tpu.dynamic_rotate %8 by %c9_i32 dim 1 : vector<24x128xf32>, i32 -> vector<24x128xf32>
    %c0_15 = arith.constant 0 : index
    %c0_16 = arith.constant 0 : index
    %c0_17 = arith.constant 0 : index
    %17 = vector.load %arg3[%c0_15, %c0_16, %c0_17] : memref<9x1x128xf32, #tpu.memory_space<vmem>>, vector<1x1x128xf32>
    %18 = vector.shape_cast %17 : vector<1x1x128xf32> to vector<1x128xf32>
    %19 = vector.broadcast %18 : vector<1x128xf32> to vector<24x128xf32>
    %20 = arith.mulf %16, %19 : vector<24x128xf32>
    %c0_18 = arith.constant 0 : index
    %c0_19 = arith.constant 0 : index
    %c0_20 = arith.constant 0 : index
    %21 = vector.load %arg6[%c0_18, %c0_19, %c0_20] : memref<9x24x24xf32, #tpu.memory_space<vmem>>, vector<1x24x24xf32>
    %22 = vector.shape_cast %21 : vector<1x24x24xf32> to vector<24x24xf32>
    %cst_21 = arith.constant dense<0.000000e+00> : vector<24x128xf32>
    %23 = tpu.matmul %22, %20, %cst_21 {dimension_numbers = #tpu.dot_dimension_numbers<[1], [0], [0], [1], [0, 0, 1, 1], [], []>} : vector<24x24xf32>, vector<24x128xf32>, vector<24x128xf32> -> vector<24x128xf32>
    %c8_i32 = arith.constant 8 : i32
    %24 = tpu.dynamic_rotate %8 by %c8_i32 dim 1 : vector<24x128xf32>, i32 -> vector<24x128xf32>
    %c1 = arith.constant 1 : index
    %c0_22 = arith.constant 0 : index
    %c0_23 = arith.constant 0 : index
    %25 = vector.load %arg3[%c1, %c0_22, %c0_23] : memref<9x1x128xf32, #tpu.memory_space<vmem>>, vector<1x1x128xf32>
    %26 = vector.shape_cast %25 : vector<1x1x128xf32> to vector<1x128xf32>
    %27 = vector.broadcast %26 : vector<1x128xf32> to vector<24x128xf32>
    %28 = arith.mulf %24, %27 : vector<24x128xf32>
    %c1_24 = arith.constant 1 : index
    %c0_25 = arith.constant 0 : index
    %c0_26 = arith.constant 0 : index
    %29 = vector.load %arg6[%c1_24, %c0_25, %c0_26] : memref<9x24x24xf32, #tpu.memory_space<vmem>>, vector<1x24x24xf32>
    %30 = vector.shape_cast %29 : vector<1x24x24xf32> to vector<24x24xf32>
    %cst_27 = arith.constant dense<0.000000e+00> : vector<24x128xf32>
    %31 = tpu.matmul %30, %28, %cst_27 {dimension_numbers = #tpu.dot_dimension_numbers<[1], [0], [0], [1], [0, 0, 1, 1], [], []>} : vector<24x24xf32>, vector<24x128xf32>, vector<24x128xf32> -> vector<24x128xf32>
    %32 = arith.addf %23, %31 : vector<24x128xf32>
    %c7_i32 = arith.constant 7 : i32
    %33 = tpu.dynamic_rotate %8 by %c7_i32 dim 1 : vector<24x128xf32>, i32 -> vector<24x128xf32>
    %c2 = arith.constant 2 : index
    %c0_28 = arith.constant 0 : index
    %c0_29 = arith.constant 0 : index
    %34 = vector.load %arg3[%c2, %c0_28, %c0_29] : memref<9x1x128xf32, #tpu.memory_space<vmem>>, vector<1x1x128xf32>
    %35 = vector.shape_cast %34 : vector<1x1x128xf32> to vector<1x128xf32>
    %36 = vector.broadcast %35 : vector<1x128xf32> to vector<24x128xf32>
    %37 = arith.mulf %33, %36 : vector<24x128xf32>
    %c2_30 = arith.constant 2 : index
    %c0_31 = arith.constant 0 : index
    %c0_32 = arith.constant 0 : index
    %38 = vector.load %arg6[%c2_30, %c0_31, %c0_32] : memref<9x24x24xf32, #tpu.memory_space<vmem>>, vector<1x24x24xf32>
    %39 = vector.shape_cast %38 : vector<1x24x24xf32> to vector<24x24xf32>
    %cst_33 = arith.constant dense<0.000000e+00> : vector<24x128xf32>
    %40 = tpu.matmul %39, %37, %cst_33 {dimension_numbers = #tpu.dot_dimension_numbers<[1], [0], [0], [1], [0, 0, 1, 1], [], []>} : vector<24x24xf32>, vector<24x128xf32>, vector<24x128xf32> -> vector<24x128xf32>
    %41 = arith.addf %32, %40 : vector<24x128xf32>
    %c1_i32 = arith.constant 1 : i32
    %42 = tpu.dynamic_rotate %8 by %c1_i32 dim 1 : vector<24x128xf32>, i32 -> vector<24x128xf32>
    %c3 = arith.constant 3 : index
    %c0_34 = arith.constant 0 : index
    %c0_35 = arith.constant 0 : index
    %43 = vector.load %arg3[%c3, %c0_34, %c0_35] : memref<9x1x128xf32, #tpu.memory_space<vmem>>, vector<1x1x128xf32>
    %44 = vector.shape_cast %43 : vector<1x1x128xf32> to vector<1x128xf32>
    %45 = vector.broadcast %44 : vector<1x128xf32> to vector<24x128xf32>
    %46 = arith.mulf %42, %45 : vector<24x128xf32>
    %c3_36 = arith.constant 3 : index
    %c0_37 = arith.constant 0 : index
    %c0_38 = arith.constant 0 : index
    %47 = vector.load %arg6[%c3_36, %c0_37, %c0_38] : memref<9x24x24xf32, #tpu.memory_space<vmem>>, vector<1x24x24xf32>
    %48 = vector.shape_cast %47 : vector<1x24x24xf32> to vector<24x24xf32>
    %cst_39 = arith.constant dense<0.000000e+00> : vector<24x128xf32>
    %49 = tpu.matmul %48, %46, %cst_39 {dimension_numbers = #tpu.dot_dimension_numbers<[1], [0], [0], [1], [0, 0, 1, 1], [], []>} : vector<24x24xf32>, vector<24x128xf32>, vector<24x128xf32> -> vector<24x128xf32>
    %50 = arith.addf %41, %49 : vector<24x128xf32>
    %c4 = arith.constant 4 : index
    %c0_40 = arith.constant 0 : index
    %c0_41 = arith.constant 0 : index
    %51 = vector.load %arg3[%c4, %c0_40, %c0_41] : memref<9x1x128xf32, #tpu.memory_space<vmem>>, vector<1x1x128xf32>
    %52 = vector.shape_cast %51 : vector<1x1x128xf32> to vector<1x128xf32>
    %53 = vector.broadcast %52 : vector<1x128xf32> to vector<24x128xf32>
    %54 = arith.mulf %8, %53 : vector<24x128xf32>
    %c4_42 = arith.constant 4 : index
    %c0_43 = arith.constant 0 : index
    %c0_44 = arith.constant 0 : index
    %55 = vector.load %arg6[%c4_42, %c0_43, %c0_44] : memref<9x24x24xf32, #tpu.memory_space<vmem>>, vector<1x24x24xf32>
    %56 = vector.shape_cast %55 : vector<1x24x24xf32> to vector<24x24xf32>
    %cst_45 = arith.constant dense<0.000000e+00> : vector<24x128xf32>
    %57 = tpu.matmul %56, %54, %cst_45 {dimension_numbers = #tpu.dot_dimension_numbers<[1], [0], [0], [1], [0, 0, 1, 1], [], []>} : vector<24x24xf32>, vector<24x128xf32>, vector<24x128xf32> -> vector<24x128xf32>
    %58 = arith.addf %50, %57 : vector<24x128xf32>
    %c127_i32 = arith.constant 127 : i32
    %59 = tpu.dynamic_rotate %8 by %c127_i32 dim 1 : vector<24x128xf32>, i32 -> vector<24x128xf32>
    %c5 = arith.constant 5 : index
    %c0_46 = arith.constant 0 : index
    %c0_47 = arith.constant 0 : index
    %60 = vector.load %arg3[%c5, %c0_46, %c0_47] : memref<9x1x128xf32, #tpu.memory_space<vmem>>, vector<1x1x128xf32>
    %61 = vector.shape_cast %60 : vector<1x1x128xf32> to vector<1x128xf32>
    %62 = vector.broadcast %61 : vector<1x128xf32> to vector<24x128xf32>
    %63 = arith.mulf %59, %62 : vector<24x128xf32>
    %c5_48 = arith.constant 5 : index
    %c0_49 = arith.constant 0 : index
    %c0_50 = arith.constant 0 : index
    %64 = vector.load %arg6[%c5_48, %c0_49, %c0_50] : memref<9x24x24xf32, #tpu.memory_space<vmem>>, vector<1x24x24xf32>
    %65 = vector.shape_cast %64 : vector<1x24x24xf32> to vector<24x24xf32>
    %cst_51 = arith.constant dense<0.000000e+00> : vector<24x128xf32>
    %66 = tpu.matmul %65, %63, %cst_51 {dimension_numbers = #tpu.dot_dimension_numbers<[1], [0], [0], [1], [0, 0, 1, 1], [], []>} : vector<24x24xf32>, vector<24x128xf32>, vector<24x128xf32> -> vector<24x128xf32>
    %67 = arith.addf %58, %66 : vector<24x128xf32>
    %c121_i32 = arith.constant 121 : i32
    %68 = tpu.dynamic_rotate %8 by %c121_i32 dim 1 : vector<24x128xf32>, i32 -> vector<24x128xf32>
    %c6 = arith.constant 6 : index
    %c0_52 = arith.constant 0 : index
    %c0_53 = arith.constant 0 : index
    %69 = vector.load %arg3[%c6, %c0_52, %c0_53] : memref<9x1x128xf32, #tpu.memory_space<vmem>>, vector<1x1x128xf32>
    %70 = vector.shape_cast %69 : vector<1x1x128xf32> to vector<1x128xf32>
    %71 = vector.broadcast %70 : vector<1x128xf32> to vector<24x128xf32>
    %72 = arith.mulf %68, %71 : vector<24x128xf32>
    %c6_54 = arith.constant 6 : index
    %c0_55 = arith.constant 0 : index
    %c0_56 = arith.constant 0 : index
    %73 = vector.load %arg6[%c6_54, %c0_55, %c0_56] : memref<9x24x24xf32, #tpu.memory_space<vmem>>, vector<1x24x24xf32>
    %74 = vector.shape_cast %73 : vector<1x24x24xf32> to vector<24x24xf32>
    %cst_57 = arith.constant dense<0.000000e+00> : vector<24x128xf32>
    %75 = tpu.matmul %74, %72, %cst_57 {dimension_numbers = #tpu.dot_dimension_numbers<[1], [0], [0], [1], [0, 0, 1, 1], [], []>} : vector<24x24xf32>, vector<24x128xf32>, vector<24x128xf32> -> vector<24x128xf32>
    %76 = arith.addf %67, %75 : vector<24x128xf32>
    %c120_i32 = arith.constant 120 : i32
    %77 = tpu.dynamic_rotate %8 by %c120_i32 dim 1 : vector<24x128xf32>, i32 -> vector<24x128xf32>
    %c7 = arith.constant 7 : index
    %c0_58 = arith.constant 0 : index
    %c0_59 = arith.constant 0 : index
    %78 = vector.load %arg3[%c7, %c0_58, %c0_59] : memref<9x1x128xf32, #tpu.memory_space<vmem>>, vector<1x1x128xf32>
    %79 = vector.shape_cast %78 : vector<1x1x128xf32> to vector<1x128xf32>
    %80 = vector.broadcast %79 : vector<1x128xf32> to vector<24x128xf32>
    %81 = arith.mulf %77, %80 : vector<24x128xf32>
    %c7_60 = arith.constant 7 : index
    %c0_61 = arith.constant 0 : index
    %c0_62 = arith.constant 0 : index
    %82 = vector.load %arg6[%c7_60, %c0_61, %c0_62] : memref<9x24x24xf32, #tpu.memory_space<vmem>>, vector<1x24x24xf32>
    %83 = vector.shape_cast %82 : vector<1x24x24xf32> to vector<24x24xf32>
    %cst_63 = arith.constant dense<0.000000e+00> : vector<24x128xf32>
    %84 = tpu.matmul %83, %81, %cst_63 {dimension_numbers = #tpu.dot_dimension_numbers<[1], [0], [0], [1], [0, 0, 1, 1], [], []>} : vector<24x24xf32>, vector<24x128xf32>, vector<24x128xf32> -> vector<24x128xf32>
    %85 = arith.addf %76, %84 : vector<24x128xf32>
    %c119_i32 = arith.constant 119 : i32
    %86 = tpu.dynamic_rotate %8 by %c119_i32 dim 1 : vector<24x128xf32>, i32 -> vector<24x128xf32>
    %c8 = arith.constant 8 : index
    %c0_64 = arith.constant 0 : index
    %c0_65 = arith.constant 0 : index
    %87 = vector.load %arg3[%c8, %c0_64, %c0_65] : memref<9x1x128xf32, #tpu.memory_space<vmem>>, vector<1x1x128xf32>
    %88 = vector.shape_cast %87 : vector<1x1x128xf32> to vector<1x128xf32>
    %89 = vector.broadcast %88 : vector<1x128xf32> to vector<24x128xf32>
    %90 = arith.mulf %86, %89 : vector<24x128xf32>
    %c8_66 = arith.constant 8 : index
    %c0_67 = arith.constant 0 : index
    %c0_68 = arith.constant 0 : index
    %91 = vector.load %arg6[%c8_66, %c0_67, %c0_68] : memref<9x24x24xf32, #tpu.memory_space<vmem>>, vector<1x24x24xf32>
    %92 = vector.shape_cast %91 : vector<1x24x24xf32> to vector<24x24xf32>
    %cst_69 = arith.constant dense<0.000000e+00> : vector<24x128xf32>
    %93 = tpu.matmul %92, %90, %cst_69 {dimension_numbers = #tpu.dot_dimension_numbers<[1], [0], [0], [1], [0, 0, 1, 1], [], []>} : vector<24x24xf32>, vector<24x128xf32>, vector<24x128xf32> -> vector<24x128xf32>
    %94 = arith.addf %85, %93 : vector<24x128xf32>
    %c0_70 = arith.constant 0 : index
    %c0_71 = arith.constant 0 : index
    %95 = vector.load %arg11[%c0_70, %c0_71] : memref<24x1xf32, #tpu.memory_space<vmem>>, vector<24x1xf32>
    %96 = vector.broadcast %95 : vector<24x1xf32> to vector<24x128xf32>
    %97 = arith.addf %94, %96 : vector<24x128xf32>
    %98 = arith.addf %97, %15 : vector<24x128xf32>
    %cst_72 = arith.constant 0.000000e+00 : f32
    %99 = vector.broadcast %cst_72 : f32 to vector<24x128xf32>
    %100 = arith.maximumf %98, %99 : vector<24x128xf32>
    %c9_i32_73 = arith.constant 9 : i32
    %101 = tpu.dynamic_rotate %100 by %c9_i32_73 dim 1 : vector<24x128xf32>, i32 -> vector<24x128xf32>
    %c0_74 = arith.constant 0 : index
    %c0_75 = arith.constant 0 : index
    %c0_76 = arith.constant 0 : index
    %102 = vector.load %arg3[%c0_74, %c0_75, %c0_76] : memref<9x1x128xf32, #tpu.memory_space<vmem>>, vector<1x1x128xf32>
    %103 = vector.shape_cast %102 : vector<1x1x128xf32> to vector<1x128xf32>
    %104 = vector.broadcast %103 : vector<1x128xf32> to vector<24x128xf32>
    %105 = arith.mulf %101, %104 : vector<24x128xf32>
    %c0_77 = arith.constant 0 : index
    %c0_78 = arith.constant 0 : index
    %c0_79 = arith.constant 0 : index
    %106 = vector.load %arg7[%c0_77, %c0_78, %c0_79] : memref<9x24x24xf32, #tpu.memory_space<vmem>>, vector<1x24x24xf32>
    %107 = vector.shape_cast %106 : vector<1x24x24xf32> to vector<24x24xf32>
    %cst_80 = arith.constant dense<0.000000e+00> : vector<24x128xf32>
    %108 = tpu.matmul %107, %105, %cst_80 {dimension_numbers = #tpu.dot_dimension_numbers<[1], [0], [0], [1], [0, 0, 1, 1], [], []>} : vector<24x24xf32>, vector<24x128xf32>, vector<24x128xf32> -> vector<24x128xf32>
    %c8_i32_81 = arith.constant 8 : i32
    %109 = tpu.dynamic_rotate %100 by %c8_i32_81 dim 1 : vector<24x128xf32>, i32 -> vector<24x128xf32>
    %c1_82 = arith.constant 1 : index
    %c0_83 = arith.constant 0 : index
    %c0_84 = arith.constant 0 : index
    %110 = vector.load %arg3[%c1_82, %c0_83, %c0_84] : memref<9x1x128xf32, #tpu.memory_space<vmem>>, vector<1x1x128xf32>
    %111 = vector.shape_cast %110 : vector<1x1x128xf32> to vector<1x128xf32>
    %112 = vector.broadcast %111 : vector<1x128xf32> to vector<24x128xf32>
    %113 = arith.mulf %109, %112 : vector<24x128xf32>
    %c1_85 = arith.constant 1 : index
    %c0_86 = arith.constant 0 : index
    %c0_87 = arith.constant 0 : index
    %114 = vector.load %arg7[%c1_85, %c0_86, %c0_87] : memref<9x24x24xf32, #tpu.memory_space<vmem>>, vector<1x24x24xf32>
    %115 = vector.shape_cast %114 : vector<1x24x24xf32> to vector<24x24xf32>
    %cst_88 = arith.constant dense<0.000000e+00> : vector<24x128xf32>
    %116 = tpu.matmul %115, %113, %cst_88 {dimension_numbers = #tpu.dot_dimension_numbers<[1], [0], [0], [1], [0, 0, 1, 1], [], []>} : vector<24x24xf32>, vector<24x128xf32>, vector<24x128xf32> -> vector<24x128xf32>
    %117 = arith.addf %108, %116 : vector<24x128xf32>
    %c7_i32_89 = arith.constant 7 : i32
    %118 = tpu.dynamic_rotate %100 by %c7_i32_89 dim 1 : vector<24x128xf32>, i32 -> vector<24x128xf32>
    %c2_90 = arith.constant 2 : index
    %c0_91 = arith.constant 0 : index
    %c0_92 = arith.constant 0 : index
    %119 = vector.load %arg3[%c2_90, %c0_91, %c0_92] : memref<9x1x128xf32, #tpu.memory_space<vmem>>, vector<1x1x128xf32>
    %120 = vector.shape_cast %119 : vector<1x1x128xf32> to vector<1x128xf32>
    %121 = vector.broadcast %120 : vector<1x128xf32> to vector<24x128xf32>
    %122 = arith.mulf %118, %121 : vector<24x128xf32>
    %c2_93 = arith.constant 2 : index
    %c0_94 = arith.constant 0 : index
    %c0_95 = arith.constant 0 : index
    %123 = vector.load %arg7[%c2_93, %c0_94, %c0_95] : memref<9x24x24xf32, #tpu.memory_space<vmem>>, vector<1x24x24xf32>
    %124 = vector.shape_cast %123 : vector<1x24x24xf32> to vector<24x24xf32>
    %cst_96 = arith.constant dense<0.000000e+00> : vector<24x128xf32>
    %125 = tpu.matmul %124, %122, %cst_96 {dimension_numbers = #tpu.dot_dimension_numbers<[1], [0], [0], [1], [0, 0, 1, 1], [], []>} : vector<24x24xf32>, vector<24x128xf32>, vector<24x128xf32> -> vector<24x128xf32>
    %126 = arith.addf %117, %125 : vector<24x128xf32>
    %c1_i32_97 = arith.constant 1 : i32
    %127 = tpu.dynamic_rotate %100 by %c1_i32_97 dim 1 : vector<24x128xf32>, i32 -> vector<24x128xf32>
    %c3_98 = arith.constant 3 : index
    %c0_99 = arith.constant 0 : index
    %c0_100 = arith.constant 0 : index
    %128 = vector.load %arg3[%c3_98, %c0_99, %c0_100] : memref<9x1x128xf32, #tpu.memory_space<vmem>>, vector<1x1x128xf32>
    %129 = vector.shape_cast %128 : vector<1x1x128xf32> to vector<1x128xf32>
    %130 = vector.broadcast %129 : vector<1x128xf32> to vector<24x128xf32>
    %131 = arith.mulf %127, %130 : vector<24x128xf32>
    %c3_101 = arith.constant 3 : index
    %c0_102 = arith.constant 0 : index
    %c0_103 = arith.constant 0 : index
    %132 = vector.load %arg7[%c3_101, %c0_102, %c0_103] : memref<9x24x24xf32, #tpu.memory_space<vmem>>, vector<1x24x24xf32>
    %133 = vector.shape_cast %132 : vector<1x24x24xf32> to vector<24x24xf32>
    %cst_104 = arith.constant dense<0.000000e+00> : vector<24x128xf32>
    %134 = tpu.matmul %133, %131, %cst_104 {dimension_numbers = #tpu.dot_dimension_numbers<[1], [0], [0], [1], [0, 0, 1, 1], [], []>} : vector<24x24xf32>, vector<24x128xf32>, vector<24x128xf32> -> vector<24x128xf32>
    %135 = arith.addf %126, %134 : vector<24x128xf32>
    %c4_105 = arith.constant 4 : index
    %c0_106 = arith.constant 0 : index
    %c0_107 = arith.constant 0 : index
    %136 = vector.load %arg3[%c4_105, %c0_106, %c0_107] : memref<9x1x128xf32, #tpu.memory_space<vmem>>, vector<1x1x128xf32>
    %137 = vector.shape_cast %136 : vector<1x1x128xf32> to vector<1x128xf32>
    %138 = vector.broadcast %137 : vector<1x128xf32> to vector<24x128xf32>
    %139 = arith.mulf %100, %138 : vector<24x128xf32>
    %c4_108 = arith.constant 4 : index
    %c0_109 = arith.constant 0 : index
    %c0_110 = arith.constant 0 : index
    %140 = vector.load %arg7[%c4_108, %c0_109, %c0_110] : memref<9x24x24xf32, #tpu.memory_space<vmem>>, vector<1x24x24xf32>
    %141 = vector.shape_cast %140 : vector<1x24x24xf32> to vector<24x24xf32>
    %cst_111 = arith.constant dense<0.000000e+00> : vector<24x128xf32>
    %142 = tpu.matmul %141, %139, %cst_111 {dimension_numbers = #tpu.dot_dimension_numbers<[1], [0], [0], [1], [0, 0, 1, 1], [], []>} : vector<24x24xf32>, vector<24x128xf32>, vector<24x128xf32> -> vector<24x128xf32>
    %143 = arith.addf %135, %142 : vector<24x128xf32>
    %c127_i32_112 = arith.constant 127 : i32
    %144 = tpu.dynamic_rotate %100 by %c127_i32_112 dim 1 : vector<24x128xf32>, i32 -> vector<24x128xf32>
    %c5_113 = arith.constant 5 : index
    %c0_114 = arith.constant 0 : index
    %c0_115 = arith.constant 0 : index
    %145 = vector.load %arg3[%c5_113, %c0_114, %c0_115] : memref<9x1x128xf32, #tpu.memory_space<vmem>>, vector<1x1x128xf32>
    %146 = vector.shape_cast %145 : vector<1x1x128xf32> to vector<1x128xf32>
    %147 = vector.broadcast %146 : vector<1x128xf32> to vector<24x128xf32>
    %148 = arith.mulf %144, %147 : vector<24x128xf32>
    %c5_116 = arith.constant 5 : index
    %c0_117 = arith.constant 0 : index
    %c0_118 = arith.constant 0 : index
    %149 = vector.load %arg7[%c5_116, %c0_117, %c0_118] : memref<9x24x24xf32, #tpu.memory_space<vmem>>, vector<1x24x24xf32>
    %150 = vector.shape_cast %149 : vector<1x24x24xf32> to vector<24x24xf32>
    %cst_119 = arith.constant dense<0.000000e+00> : vector<24x128xf32>
    %151 = tpu.matmul %150, %148, %cst_119 {dimension_numbers = #tpu.dot_dimension_numbers<[1], [0], [0], [1], [0, 0, 1, 1], [], []>} : vector<24x24xf32>, vector<24x128xf32>, vector<24x128xf32> -> vector<24x128xf32>
    %152 = arith.addf %143, %151 : vector<24x128xf32>
    %c121_i32_120 = arith.constant 121 : i32
    %153 = tpu.dynamic_rotate %100 by %c121_i32_120 dim 1 : vector<24x128xf32>, i32 -> vector<24x128xf32>
    %c6_121 = arith.constant 6 : index
    %c0_122 = arith.constant 0 : index
    %c0_123 = arith.constant 0 : index
    %154 = vector.load %arg3[%c6_121, %c0_122, %c0_123] : memref<9x1x128xf32, #tpu.memory_space<vmem>>, vector<1x1x128xf32>
    %155 = vector.shape_cast %154 : vector<1x1x128xf32> to vector<1x128xf32>
    %156 = vector.broadcast %155 : vector<1x128xf32> to vector<24x128xf32>
    %157 = arith.mulf %153, %156 : vector<24x128xf32>
    %c6_124 = arith.constant 6 : index
    %c0_125 = arith.constant 0 : index
    %c0_126 = arith.constant 0 : index
    %158 = vector.load %arg7[%c6_124, %c0_125, %c0_126] : memref<9x24x24xf32, #tpu.memory_space<vmem>>, vector<1x24x24xf32>
    %159 = vector.shape_cast %158 : vector<1x24x24xf32> to vector<24x24xf32>
    %cst_127 = arith.constant dense<0.000000e+00> : vector<24x128xf32>
    %160 = tpu.matmul %159, %157, %cst_127 {dimension_numbers = #tpu.dot_dimension_numbers<[1], [0], [0], [1], [0, 0, 1, 1], [], []>} : vector<24x24xf32>, vector<24x128xf32>, vector<24x128xf32> -> vector<24x128xf32>
    %161 = arith.addf %152, %160 : vector<24x128xf32>
    %c120_i32_128 = arith.constant 120 : i32
    %162 = tpu.dynamic_rotate %100 by %c120_i32_128 dim 1 : vector<24x128xf32>, i32 -> vector<24x128xf32>
    %c7_129 = arith.constant 7 : index
    %c0_130 = arith.constant 0 : index
    %c0_131 = arith.constant 0 : index
    %163 = vector.load %arg3[%c7_129, %c0_130, %c0_131] : memref<9x1x128xf32, #tpu.memory_space<vmem>>, vector<1x1x128xf32>
    %164 = vector.shape_cast %163 : vector<1x1x128xf32> to vector<1x128xf32>
    %165 = vector.broadcast %164 : vector<1x128xf32> to vector<24x128xf32>
    %166 = arith.mulf %162, %165 : vector<24x128xf32>
    %c7_132 = arith.constant 7 : index
    %c0_133 = arith.constant 0 : index
    %c0_134 = arith.constant 0 : index
    %167 = vector.load %arg7[%c7_132, %c0_133, %c0_134] : memref<9x24x24xf32, #tpu.memory_space<vmem>>, vector<1x24x24xf32>
    %168 = vector.shape_cast %167 : vector<1x24x24xf32> to vector<24x24xf32>
    %cst_135 = arith.constant dense<0.000000e+00> : vector<24x128xf32>
    %169 = tpu.matmul %168, %166, %cst_135 {dimension_numbers = #tpu.dot_dimension_numbers<[1], [0], [0], [1], [0, 0, 1, 1], [], []>} : vector<24x24xf32>, vector<24x128xf32>, vector<24x128xf32> -> vector<24x128xf32>
    %170 = arith.addf %161, %169 : vector<24x128xf32>
    %c119_i32_136 = arith.constant 119 : i32
    %171 = tpu.dynamic_rotate %100 by %c119_i32_136 dim 1 : vector<24x128xf32>, i32 -> vector<24x128xf32>
    %c8_137 = arith.constant 8 : index
    %c0_138 = arith.constant 0 : index
    %c0_139 = arith.constant 0 : index
    %172 = vector.load %arg3[%c8_137, %c0_138, %c0_139] : memref<9x1x128xf32, #tpu.memory_space<vmem>>, vector<1x1x128xf32>
    %173 = vector.shape_cast %172 : vector<1x1x128xf32> to vector<1x128xf32>
    %174 = vector.broadcast %173 : vector<1x128xf32> to vector<24x128xf32>
    %175 = arith.mulf %171, %174 : vector<24x128xf32>
    %c8_140 = arith.constant 8 : index
    %c0_141 = arith.constant 0 : index
    %c0_142 = arith.constant 0 : index
    %176 = vector.load %arg7[%c8_140, %c0_141, %c0_142] : memref<9x24x24xf32, #tpu.memory_space<vmem>>, vector<1x24x24xf32>
    %177 = vector.shape_cast %176 : vector<1x24x24xf32> to vector<24x24xf32>
    %cst_143 = arith.constant dense<0.000000e+00> : vector<24x128xf32>
    %178 = tpu.matmul %177, %175, %cst_143 {dimension_numbers = #tpu.dot_dimension_numbers<[1], [0], [0], [1], [0, 0, 1, 1], [], []>} : vector<24x24xf32>, vector<24x128xf32>, vector<24x128xf32> -> vector<24x128xf32>
    %179 = arith.addf %170, %178 : vector<24x128xf32>
    %c0_144 = arith.constant 0 : index
    %c0_145 = arith.constant 0 : index
    %180 = vector.load %arg12[%c0_144, %c0_145] : memref<24x1xf32, #tpu.memory_space<vmem>>, vector<24x1xf32>
    %181 = vector.broadcast %180 : vector<24x1xf32> to vector<24x128xf32>
    %182 = arith.addf %179, %181 : vector<24x128xf32>
    %cst_146 = arith.constant 0.000000e+00 : f32
    %183 = vector.broadcast %cst_146 : f32 to vector<24x128xf32>
    %184 = arith.maximumf %182, %183 : vector<24x128xf32>
    %c9_i32_147 = arith.constant 9 : i32
    %185 = tpu.dynamic_rotate %184 by %c9_i32_147 dim 1 : vector<24x128xf32>, i32 -> vector<24x128xf32>
    %c0_148 = arith.constant 0 : index
    %c0_149 = arith.constant 0 : index
    %c0_150 = arith.constant 0 : index
    %186 = vector.load %arg3[%c0_148, %c0_149, %c0_150] : memref<9x1x128xf32, #tpu.memory_space<vmem>>, vector<1x1x128xf32>
    %187 = vector.shape_cast %186 : vector<1x1x128xf32> to vector<1x128xf32>
    %188 = vector.broadcast %187 : vector<1x128xf32> to vector<24x128xf32>
    %189 = arith.mulf %185, %188 : vector<24x128xf32>
    %c0_151 = arith.constant 0 : index
    %c0_152 = arith.constant 0 : index
    %c0_153 = arith.constant 0 : index
    %190 = vector.load %arg8[%c0_151, %c0_152, %c0_153] : memref<9x24x24xf32, #tpu.memory_space<vmem>>, vector<1x24x24xf32>
    %191 = vector.shape_cast %190 : vector<1x24x24xf32> to vector<24x24xf32>
    %cst_154 = arith.constant dense<0.000000e+00> : vector<24x128xf32>
    %192 = tpu.matmul %191, %189, %cst_154 {dimension_numbers = #tpu.dot_dimension_numbers<[1], [0], [0], [1], [0, 0, 1, 1], [], []>} : vector<24x24xf32>, vector<24x128xf32>, vector<24x128xf32> -> vector<24x128xf32>
    %c8_i32_155 = arith.constant 8 : i32
    %193 = tpu.dynamic_rotate %184 by %c8_i32_155 dim 1 : vector<24x128xf32>, i32 -> vector<24x128xf32>
    %c1_156 = arith.constant 1 : index
    %c0_157 = arith.constant 0 : index
    %c0_158 = arith.constant 0 : index
    %194 = vector.load %arg3[%c1_156, %c0_157, %c0_158] : memref<9x1x128xf32, #tpu.memory_space<vmem>>, vector<1x1x128xf32>
    %195 = vector.shape_cast %194 : vector<1x1x128xf32> to vector<1x128xf32>
    %196 = vector.broadcast %195 : vector<1x128xf32> to vector<24x128xf32>
    %197 = arith.mulf %193, %196 : vector<24x128xf32>
    %c1_159 = arith.constant 1 : index
    %c0_160 = arith.constant 0 : index
    %c0_161 = arith.constant 0 : index
    %198 = vector.load %arg8[%c1_159, %c0_160, %c0_161] : memref<9x24x24xf32, #tpu.memory_space<vmem>>, vector<1x24x24xf32>
    %199 = vector.shape_cast %198 : vector<1x24x24xf32> to vector<24x24xf32>
    %cst_162 = arith.constant dense<0.000000e+00> : vector<24x128xf32>
    %200 = tpu.matmul %199, %197, %cst_162 {dimension_numbers = #tpu.dot_dimension_numbers<[1], [0], [0], [1], [0, 0, 1, 1], [], []>} : vector<24x24xf32>, vector<24x128xf32>, vector<24x128xf32> -> vector<24x128xf32>
    %201 = arith.addf %192, %200 : vector<24x128xf32>
    %c7_i32_163 = arith.constant 7 : i32
    %202 = tpu.dynamic_rotate %184 by %c7_i32_163 dim 1 : vector<24x128xf32>, i32 -> vector<24x128xf32>
    %c2_164 = arith.constant 2 : index
    %c0_165 = arith.constant 0 : index
    %c0_166 = arith.constant 0 : index
    %203 = vector.load %arg3[%c2_164, %c0_165, %c0_166] : memref<9x1x128xf32, #tpu.memory_space<vmem>>, vector<1x1x128xf32>
    %204 = vector.shape_cast %203 : vector<1x1x128xf32> to vector<1x128xf32>
    %205 = vector.broadcast %204 : vector<1x128xf32> to vector<24x128xf32>
    %206 = arith.mulf %202, %205 : vector<24x128xf32>
    %c2_167 = arith.constant 2 : index
    %c0_168 = arith.constant 0 : index
    %c0_169 = arith.constant 0 : index
    %207 = vector.load %arg8[%c2_167, %c0_168, %c0_169] : memref<9x24x24xf32, #tpu.memory_space<vmem>>, vector<1x24x24xf32>
    %208 = vector.shape_cast %207 : vector<1x24x24xf32> to vector<24x24xf32>
    %cst_170 = arith.constant dense<0.000000e+00> : vector<24x128xf32>
    %209 = tpu.matmul %208, %206, %cst_170 {dimension_numbers = #tpu.dot_dimension_numbers<[1], [0], [0], [1], [0, 0, 1, 1], [], []>} : vector<24x24xf32>, vector<24x128xf32>, vector<24x128xf32> -> vector<24x128xf32>
    %210 = arith.addf %201, %209 : vector<24x128xf32>
    %c1_i32_171 = arith.constant 1 : i32
    %211 = tpu.dynamic_rotate %184 by %c1_i32_171 dim 1 : vector<24x128xf32>, i32 -> vector<24x128xf32>
    %c3_172 = arith.constant 3 : index
    %c0_173 = arith.constant 0 : index
    %c0_174 = arith.constant 0 : index
    %212 = vector.load %arg3[%c3_172, %c0_173, %c0_174] : memref<9x1x128xf32, #tpu.memory_space<vmem>>, vector<1x1x128xf32>
    %213 = vector.shape_cast %212 : vector<1x1x128xf32> to vector<1x128xf32>
    %214 = vector.broadcast %213 : vector<1x128xf32> to vector<24x128xf32>
    %215 = arith.mulf %211, %214 : vector<24x128xf32>
    %c3_175 = arith.constant 3 : index
    %c0_176 = arith.constant 0 : index
    %c0_177 = arith.constant 0 : index
    %216 = vector.load %arg8[%c3_175, %c0_176, %c0_177] : memref<9x24x24xf32, #tpu.memory_space<vmem>>, vector<1x24x24xf32>
    %217 = vector.shape_cast %216 : vector<1x24x24xf32> to vector<24x24xf32>
    %cst_178 = arith.constant dense<0.000000e+00> : vector<24x128xf32>
    %218 = tpu.matmul %217, %215, %cst_178 {dimension_numbers = #tpu.dot_dimension_numbers<[1], [0], [0], [1], [0, 0, 1, 1], [], []>} : vector<24x24xf32>, vector<24x128xf32>, vector<24x128xf32> -> vector<24x128xf32>
    %219 = arith.addf %210, %218 : vector<24x128xf32>
    %c4_179 = arith.constant 4 : index
    %c0_180 = arith.constant 0 : index
    %c0_181 = arith.constant 0 : index
    %220 = vector.load %arg3[%c4_179, %c0_180, %c0_181] : memref<9x1x128xf32, #tpu.memory_space<vmem>>, vector<1x1x128xf32>
    %221 = vector.shape_cast %220 : vector<1x1x128xf32> to vector<1x128xf32>
    %222 = vector.broadcast %221 : vector<1x128xf32> to vector<24x128xf32>
    %223 = arith.mulf %184, %222 : vector<24x128xf32>
    %c4_182 = arith.constant 4 : index
    %c0_183 = arith.constant 0 : index
    %c0_184 = arith.constant 0 : index
    %224 = vector.load %arg8[%c4_182, %c0_183, %c0_184] : memref<9x24x24xf32, #tpu.memory_space<vmem>>, vector<1x24x24xf32>
    %225 = vector.shape_cast %224 : vector<1x24x24xf32> to vector<24x24xf32>
    %cst_185 = arith.constant dense<0.000000e+00> : vector<24x128xf32>
    %226 = tpu.matmul %225, %223, %cst_185 {dimension_numbers = #tpu.dot_dimension_numbers<[1], [0], [0], [1], [0, 0, 1, 1], [], []>} : vector<24x24xf32>, vector<24x128xf32>, vector<24x128xf32> -> vector<24x128xf32>
    %227 = arith.addf %219, %226 : vector<24x128xf32>
    %c127_i32_186 = arith.constant 127 : i32
    %228 = tpu.dynamic_rotate %184 by %c127_i32_186 dim 1 : vector<24x128xf32>, i32 -> vector<24x128xf32>
    %c5_187 = arith.constant 5 : index
    %c0_188 = arith.constant 0 : index
    %c0_189 = arith.constant 0 : index
    %229 = vector.load %arg3[%c5_187, %c0_188, %c0_189] : memref<9x1x128xf32, #tpu.memory_space<vmem>>, vector<1x1x128xf32>
    %230 = vector.shape_cast %229 : vector<1x1x128xf32> to vector<1x128xf32>
    %231 = vector.broadcast %230 : vector<1x128xf32> to vector<24x128xf32>
    %232 = arith.mulf %228, %231 : vector<24x128xf32>
    %c5_190 = arith.constant 5 : index
    %c0_191 = arith.constant 0 : index
    %c0_192 = arith.constant 0 : index
    %233 = vector.load %arg8[%c5_190, %c0_191, %c0_192] : memref<9x24x24xf32, #tpu.memory_space<vmem>>, vector<1x24x24xf32>
    %234 = vector.shape_cast %233 : vector<1x24x24xf32> to vector<24x24xf32>
    %cst_193 = arith.constant dense<0.000000e+00> : vector<24x128xf32>
    %235 = tpu.matmul %234, %232, %cst_193 {dimension_numbers = #tpu.dot_dimension_numbers<[1], [0], [0], [1], [0, 0, 1, 1], [], []>} : vector<24x24xf32>, vector<24x128xf32>, vector<24x128xf32> -> vector<24x128xf32>
    %236 = arith.addf %227, %235 : vector<24x128xf32>
    %c121_i32_194 = arith.constant 121 : i32
    %237 = tpu.dynamic_rotate %184 by %c121_i32_194 dim 1 : vector<24x128xf32>, i32 -> vector<24x128xf32>
    %c6_195 = arith.constant 6 : index
    %c0_196 = arith.constant 0 : index
    %c0_197 = arith.constant 0 : index
    %238 = vector.load %arg3[%c6_195, %c0_196, %c0_197] : memref<9x1x128xf32, #tpu.memory_space<vmem>>, vector<1x1x128xf32>
    %239 = vector.shape_cast %238 : vector<1x1x128xf32> to vector<1x128xf32>
    %240 = vector.broadcast %239 : vector<1x128xf32> to vector<24x128xf32>
    %241 = arith.mulf %237, %240 : vector<24x128xf32>
    %c6_198 = arith.constant 6 : index
    %c0_199 = arith.constant 0 : index
    %c0_200 = arith.constant 0 : index
    %242 = vector.load %arg8[%c6_198, %c0_199, %c0_200] : memref<9x24x24xf32, #tpu.memory_space<vmem>>, vector<1x24x24xf32>
    %243 = vector.shape_cast %242 : vector<1x24x24xf32> to vector<24x24xf32>
    %cst_201 = arith.constant dense<0.000000e+00> : vector<24x128xf32>
    %244 = tpu.matmul %243, %241, %cst_201 {dimension_numbers = #tpu.dot_dimension_numbers<[1], [0], [0], [1], [0, 0, 1, 1], [], []>} : vector<24x24xf32>, vector<24x128xf32>, vector<24x128xf32> -> vector<24x128xf32>
    %245 = arith.addf %236, %244 : vector<24x128xf32>
    %c120_i32_202 = arith.constant 120 : i32
    %246 = tpu.dynamic_rotate %184 by %c120_i32_202 dim 1 : vector<24x128xf32>, i32 -> vector<24x128xf32>
    %c7_203 = arith.constant 7 : index
    %c0_204 = arith.constant 0 : index
    %c0_205 = arith.constant 0 : index
    %247 = vector.load %arg3[%c7_203, %c0_204, %c0_205] : memref<9x1x128xf32, #tpu.memory_space<vmem>>, vector<1x1x128xf32>
    %248 = vector.shape_cast %247 : vector<1x1x128xf32> to vector<1x128xf32>
    %249 = vector.broadcast %248 : vector<1x128xf32> to vector<24x128xf32>
    %250 = arith.mulf %246, %249 : vector<24x128xf32>
    %c7_206 = arith.constant 7 : index
    %c0_207 = arith.constant 0 : index
    %c0_208 = arith.constant 0 : index
    %251 = vector.load %arg8[%c7_206, %c0_207, %c0_208] : memref<9x24x24xf32, #tpu.memory_space<vmem>>, vector<1x24x24xf32>
    %252 = vector.shape_cast %251 : vector<1x24x24xf32> to vector<24x24xf32>
    %cst_209 = arith.constant dense<0.000000e+00> : vector<24x128xf32>
    %253 = tpu.matmul %252, %250, %cst_209 {dimension_numbers = #tpu.dot_dimension_numbers<[1], [0], [0], [1], [0, 0, 1, 1], [], []>} : vector<24x24xf32>, vector<24x128xf32>, vector<24x128xf32> -> vector<24x128xf32>
    %254 = arith.addf %245, %253 : vector<24x128xf32>
    %c119_i32_210 = arith.constant 119 : i32
    %255 = tpu.dynamic_rotate %184 by %c119_i32_210 dim 1 : vector<24x128xf32>, i32 -> vector<24x128xf32>
    %c8_211 = arith.constant 8 : index
    %c0_212 = arith.constant 0 : index
    %c0_213 = arith.constant 0 : index
    %256 = vector.load %arg3[%c8_211, %c0_212, %c0_213] : memref<9x1x128xf32, #tpu.memory_space<vmem>>, vector<1x1x128xf32>
    %257 = vector.shape_cast %256 : vector<1x1x128xf32> to vector<1x128xf32>
    %258 = vector.broadcast %257 : vector<1x128xf32> to vector<24x128xf32>
    %259 = arith.mulf %255, %258 : vector<24x128xf32>
    %c8_214 = arith.constant 8 : index
    %c0_215 = arith.constant 0 : index
    %c0_216 = arith.constant 0 : index
    %260 = vector.load %arg8[%c8_214, %c0_215, %c0_216] : memref<9x24x24xf32, #tpu.memory_space<vmem>>, vector<1x24x24xf32>
    %261 = vector.shape_cast %260 : vector<1x24x24xf32> to vector<24x24xf32>
    %cst_217 = arith.constant dense<0.000000e+00> : vector<24x128xf32>
    %262 = tpu.matmul %261, %259, %cst_217 {dimension_numbers = #tpu.dot_dimension_numbers<[1], [0], [0], [1], [0, 0, 1, 1], [], []>} : vector<24x24xf32>, vector<24x128xf32>, vector<24x128xf32> -> vector<24x128xf32>
    %263 = arith.addf %254, %262 : vector<24x128xf32>
    %c0_218 = arith.constant 0 : index
    %c0_219 = arith.constant 0 : index
    %264 = vector.load %arg13[%c0_218, %c0_219] : memref<24x1xf32, #tpu.memory_space<vmem>>, vector<24x1xf32>
    %265 = vector.broadcast %264 : vector<24x1xf32> to vector<24x128xf32>
    %266 = arith.addf %263, %265 : vector<24x128xf32>
    %267 = arith.addf %266, %100 : vector<24x128xf32>
    %cst_220 = arith.constant 0.000000e+00 : f32
    %268 = vector.broadcast %cst_220 : f32 to vector<24x128xf32>
    %269 = arith.maximumf %267, %268 : vector<24x128xf32>
    %c0_221 = arith.constant 0 : index
    %c0_222 = arith.constant 0 : index
    %c0_223 = arith.constant 0 : index
    %270 = vector.load %arg14[%c0_221, %c0_222, %c0_223] : memref<1x24x128xf32, #tpu.memory_space<vmem>>, vector<1x24x128xf32>
    %271 = vector.shape_cast %270 : vector<1x24x128xf32> to vector<24x128xf32>
    %272 = vector.shape_cast %269 : vector<24x128xf32> to vector<1x24x128xf32>
    tpu.vector_store %arg14[%c0_221, %c0_222, %c0_223], %272 {strides = array<i32>} : memref<1x24x128xf32, #tpu.memory_space<vmem>>, vector<1x24x128xf32>,
    return
  }
  func.func @transform_0(%arg0: i32) -> (i32, i32, i32) {
    %c0_i32 = arith.constant 0 : i32
    %c0_i32_0 = arith.constant 0 : i32
    %c0_i32_1 = arith.constant 0 : i32
    return %arg0, %c0_i32, %c0_i32_0 : i32, i32, i32
  }
  func.func @transform_1(%arg0: i32) -> (i32, i32, i32) {
    %c0_i32 = arith.constant 0 : i32
    %c0_i32_0 = arith.constant 0 : i32
    %c0_i32_1 = arith.constant 0 : i32
    return %arg0, %c0_i32, %c0_i32_0 : i32, i32, i32
  }
  func.func @transform_2(%arg0: i32) -> (i32, i32, i32) {
    %c0_i32 = arith.constant 0 : i32
    %c0_i32_0 = arith.constant 0 : i32
    %c0_i32_1 = arith.constant 0 : i32
    %c0_i32_2 = arith.constant 0 : i32
    return %c0_i32, %c0_i32_0, %c0_i32_1 : i32, i32, i32
  }
  func.func @transform_3(%arg0: i32) -> (i32, i32) {
    %c0_i32 = arith.constant 0 : i32
    %c0_i32_0 = arith.constant 0 : i32
    %c0_i32_1 = arith.constant 0 : i32
    return %c0_i32, %c0_i32_0 : i32, i32
  }
  func.func @transform_4(%arg0: i32) -> (i32, i32) {
    %c0_i32 = arith.constant 0 : i32
    %c0_i32_0 = arith.constant 0 : i32
    %c0_i32_1 = arith.constant 0 : i32
    return %c0_i32, %c0_i32_0 : i32, i32
  }
  func.func @transform_5(%arg0: i32) -> (i32, i32, i32) {
    %c0_i32 = arith.constant 0 : i32
    %c0_i32_0 = arith.constant 0 : i32
    %c0_i32_1 = arith.constant 0 : i32
    %c0_i32_2 = arith.constant 0 : i32
    return %c0_i32, %c0_i32_0, %c0_i32_1 : i32, i32, i32
  }
  func.func @transform_6(%arg0: i32) -> (i32, i32, i32) {
    %c0_i32 = arith.constant 0 : i32
    %c0_i32_0 = arith.constant 0 : i32
    %c0_i32_1 = arith.constant 0 : i32
    %c0_i32_2 = arith.constant 0 : i32
    return %c0_i32, %c0_i32_0, %c0_i32_1 : i32, i32, i32
  }
  func.func @transform_7(%arg0: i32) -> (i32, i32, i32) {
    %c0_i32 = arith.constant 0 : i32
    %c0_i32_0 = arith.constant 0 : i32
    %c0_i32_1 = arith.constant 0 : i32
    %c0_i32_2 = arith.constant 0 : i32
    return %c0_i32, %c0_i32_0, %c0_i32_1 : i32, i32, i32
  }
  func.func @transform_8(%arg0: i32) -> (i32, i32) {
    %c0_i32 = arith.constant 0 : i32
    %c0_i32_0 = arith.constant 0 : i32
    %c0_i32_1 = arith.constant 0 : i32
    return %c0_i32, %c0_i32_0 : i32, i32
  }
  func.func @transform_9(%arg0: i32) -> (i32, i32) {
    %c0_i32 = arith.constant 0 : i32
    %c0_i32_0 = arith.constant 0 : i32
    %c0_i32_1 = arith.constant 0 : i32
    return %c0_i32, %c0_i32_0 : i32, i32
  }
  func.func @transform_10(%arg0: i32) -> (i32, i32) {
    %c0_i32 = arith.constant 0 : i32
    %c0_i32_0 = arith.constant 0 : i32
    %c0_i32_1 = arith.constant 0 : i32
    return %c0_i32, %c0_i32_0 : i32, i32
  }
  func.func @transform_11(%arg0: i32) -> (i32, i32) {
    %c0_i32 = arith.constant 0 : i32
    %c0_i32_0 = arith.constant 0 : i32
    %c0_i32_1 = arith.constant 0 : i32
    return %c0_i32, %c0_i32_0 : i32, i32
  }
  func.func @transform_12(%arg0: i32) -> (i32, i32) {
    %c0_i32 = arith.constant 0 : i32
    %c0_i32_0 = arith.constant 0 : i32
    %c0_i32_1 = arith.constant 0 : i32
    return %c0_i32, %c0_i32_0 : i32, i32
  }
  func.func @transform_13(%arg0: i32) -> (i32, i32, i32) {
    %c0_i32 = arith.constant 0 : i32
    %c0_i32_0 = arith.constant 0 : i32
    %c0_i32_1 = arith.constant 0 : i32
    return %arg0, %c0_i32, %c0_i32_0 : i32, i32, i32
  }
}

module attributes {stable_mosaic.version = 11 : i64} {
  func.func @kernel(%arg0: i32, %arg1: memref<1x216x128xf32, #tpu.memory_space<vmem>>, %arg2: memref<1x24x128xf32, #tpu.memory_space<vmem>>, %arg3: memref<9x1x128xf32, #tpu.memory_space<vmem>>, %arg4: memref<16x216xf32, #tpu.memory_space<vmem>>, %arg5: memref<16x24xf32, #tpu.memory_space<vmem>>, %arg6: memref<9x16x16xf32, #tpu.memory_space<vmem>>, %arg7: memref<9x16x16xf32, #tpu.memory_space<vmem>>, %arg8: memref<9x16x16xf32, #tpu.memory_space<vmem>>, %arg9: memref<16x1xf32, #tpu.memory_space<vmem>>, %arg10: memref<16x1xf32, #tpu.memory_space<vmem>>, %arg11: memref<16x1xf32, #tpu.memory_space<vmem>>, %arg12: memref<16x1xf32, #tpu.memory_space<vmem>>, %arg13: memref<16x1xf32, #tpu.memory_space<vmem>>, %arg14: memref<1x16x128xf32, #tpu.memory_space<vmem>>) attributes {dimension_semantics = [#tpu.dimension_semantics<parallel>], iteration_bounds = array<i64: 2>, scalar_prefetch = 0 : i64, scratch_operands = 0 : i64, tpu.core_type = #tpu.core_type<tc>, window_params = [{transform_indices = @transform_0, window_bounds = array<i64: 1, 216, 128>}, {transform_indices = @transform_1, window_bounds = array<i64: 1, 24, 128>}, {pipeline_mode = #tpu.pipeline_mode<synchronous>, transform_indices = @transform_2, window_bounds = array<i64: 9, 1, 128>}, {pipeline_mode = #tpu.pipeline_mode<synchronous>, transform_indices = @transform_3, window_bounds = array<i64: 16, 216>}, {pipeline_mode = #tpu.pipeline_mode<synchronous>, transform_indices = @transform_4, window_bounds = array<i64: 16, 24>}, {pipeline_mode = #tpu.pipeline_mode<synchronous>, transform_indices = @transform_5, window_bounds = array<i64: 9, 16, 16>}, {pipeline_mode = #tpu.pipeline_mode<synchronous>, transform_indices = @transform_6, window_bounds = array<i64: 9, 16, 16>}, {pipeline_mode = #tpu.pipeline_mode<synchronous>, transform_indices = @transform_7, window_bounds = array<i64: 9, 16, 16>}, {pipeline_mode = #tpu.pipeline_mode<synchronous>, transform_indices = @transform_8, window_bounds = array<i64: 16, 1>}, {pipeline_mode = #tpu.pipeline_mode<synchronous>, transform_indices = @transform_9, window_bounds = array<i64: 16, 1>}, {pipeline_mode = #tpu.pipeline_mode<synchronous>, transform_indices = @transform_10, window_bounds = array<i64: 16, 1>}, {pipeline_mode = #tpu.pipeline_mode<synchronous>, transform_indices = @transform_11, window_bounds = array<i64: 16, 1>}, {pipeline_mode = #tpu.pipeline_mode<synchronous>, transform_indices = @transform_12, window_bounds = array<i64: 16, 1>}, {transform_indices = @transform_13, window_bounds = array<i64: 1, 16, 128>}]} {
    %c0 = arith.constant 0 : index
    %c0_0 = arith.constant 0 : index
    %0 = vector.load %arg4[%c0, %c0_0] : memref<16x216xf32, #tpu.memory_space<vmem>>, vector<16x216xf32>
    %c0_1 = arith.constant 0 : index
    %c0_2 = arith.constant 0 : index
    %c0_3 = arith.constant 0 : index
    %1 = vector.load %arg1[%c0_1, %c0_2, %c0_3] : memref<1x216x128xf32, #tpu.memory_space<vmem>>, vector<1x216x128xf32>
    %2 = vector.shape_cast %1 : vector<1x216x128xf32> to vector<216x128xf32>
    %cst = arith.constant dense<0.000000e+00> : vector<16x128xf32>
    %3 = tpu.matmul %0, %2, %cst {dimension_numbers = #tpu.dot_dimension_numbers<[1], [0], [0], [1], [0, 0, 1, 1], [], []>} : vector<16x216xf32>, vector<216x128xf32>, vector<16x128xf32> -> vector<16x128xf32>
    %c0_4 = arith.constant 0 : index
    %c0_5 = arith.constant 0 : index
    %4 = vector.load %arg9[%c0_4, %c0_5] : memref<16x1xf32, #tpu.memory_space<vmem>>, vector<16x1xf32>
    %5 = vector.broadcast %4 : vector<16x1xf32> to vector<16x128xf32>
    %6 = arith.addf %3, %5 : vector<16x128xf32>
    %cst_6 = arith.constant 0.000000e+00 : f32
    %7 = vector.broadcast %cst_6 : f32 to vector<16x128xf32>
    %8 = arith.maximumf %6, %7 : vector<16x128xf32>
    %c0_7 = arith.constant 0 : index
    %c0_8 = arith.constant 0 : index
    %9 = vector.load %arg5[%c0_7, %c0_8] : memref<16x24xf32, #tpu.memory_space<vmem>>, vector<16x24xf32>
    %c0_9 = arith.constant 0 : index
    %c0_10 = arith.constant 0 : index
    %c0_11 = arith.constant 0 : index
    %10 = vector.load %arg2[%c0_9, %c0_10, %c0_11] : memref<1x24x128xf32, #tpu.memory_space<vmem>>, vector<1x24x128xf32>
    %11 = vector.shape_cast %10 : vector<1x24x128xf32> to vector<24x128xf32>
    %cst_12 = arith.constant dense<0.000000e+00> : vector<16x128xf32>
    %12 = tpu.matmul %9, %11, %cst_12 {dimension_numbers = #tpu.dot_dimension_numbers<[1], [0], [0], [1], [0, 0, 1, 1], [], []>} : vector<16x24xf32>, vector<24x128xf32>, vector<16x128xf32> -> vector<16x128xf32>
    %c0_13 = arith.constant 0 : index
    %c0_14 = arith.constant 0 : index
    %13 = vector.load %arg10[%c0_13, %c0_14] : memref<16x1xf32, #tpu.memory_space<vmem>>, vector<16x1xf32>
    %14 = vector.broadcast %13 : vector<16x1xf32> to vector<16x128xf32>
    %15 = arith.addf %12, %14 : vector<16x128xf32>
    %c5_i32 = arith.constant 5 : i32
    %16 = tpu.dynamic_rotate %8 by %c5_i32 dim 1 : vector<16x128xf32>, i32 -> vector<16x128xf32>
    %c0_15 = arith.constant 0 : index
    %c0_16 = arith.constant 0 : index
    %c0_17 = arith.constant 0 : index
    %17 = vector.load %arg3[%c0_15, %c0_16, %c0_17] : memref<9x1x128xf32, #tpu.memory_space<vmem>>, vector<1x1x128xf32>
    %18 = vector.shape_cast %17 : vector<1x1x128xf32> to vector<1x128xf32>
    %19 = vector.broadcast %18 : vector<1x128xf32> to vector<16x128xf32>
    %20 = arith.mulf %16, %19 : vector<16x128xf32>
    %c0_18 = arith.constant 0 : index
    %c0_19 = arith.constant 0 : index
    %c0_20 = arith.constant 0 : index
    %21 = vector.load %arg6[%c0_18, %c0_19, %c0_20] : memref<9x16x16xf32, #tpu.memory_space<vmem>>, vector<1x16x16xf32>
    %22 = vector.shape_cast %21 : vector<1x16x16xf32> to vector<16x16xf32>
    %cst_21 = arith.constant dense<0.000000e+00> : vector<16x128xf32>
    %23 = tpu.matmul %22, %20, %cst_21 {dimension_numbers = #tpu.dot_dimension_numbers<[1], [0], [0], [1], [0, 0, 1, 1], [], []>} : vector<16x16xf32>, vector<16x128xf32>, vector<16x128xf32> -> vector<16x128xf32>
    %c4_i32 = arith.constant 4 : i32
    %24 = tpu.dynamic_rotate %8 by %c4_i32 dim 1 : vector<16x128xf32>, i32 -> vector<16x128xf32>
    %c1 = arith.constant 1 : index
    %c0_22 = arith.constant 0 : index
    %c0_23 = arith.constant 0 : index
    %25 = vector.load %arg3[%c1, %c0_22, %c0_23] : memref<9x1x128xf32, #tpu.memory_space<vmem>>, vector<1x1x128xf32>
    %26 = vector.shape_cast %25 : vector<1x1x128xf32> to vector<1x128xf32>
    %27 = vector.broadcast %26 : vector<1x128xf32> to vector<16x128xf32>
    %28 = arith.mulf %24, %27 : vector<16x128xf32>
    %c1_24 = arith.constant 1 : index
    %c0_25 = arith.constant 0 : index
    %c0_26 = arith.constant 0 : index
    %29 = vector.load %arg6[%c1_24, %c0_25, %c0_26] : memref<9x16x16xf32, #tpu.memory_space<vmem>>, vector<1x16x16xf32>
    %30 = vector.shape_cast %29 : vector<1x16x16xf32> to vector<16x16xf32>
    %cst_27 = arith.constant dense<0.000000e+00> : vector<16x128xf32>
    %31 = tpu.matmul %30, %28, %cst_27 {dimension_numbers = #tpu.dot_dimension_numbers<[1], [0], [0], [1], [0, 0, 1, 1], [], []>} : vector<16x16xf32>, vector<16x128xf32>, vector<16x128xf32> -> vector<16x128xf32>
    %32 = arith.addf %23, %31 : vector<16x128xf32>
    %c3_i32 = arith.constant 3 : i32
    %33 = tpu.dynamic_rotate %8 by %c3_i32 dim 1 : vector<16x128xf32>, i32 -> vector<16x128xf32>
    %c2 = arith.constant 2 : index
    %c0_28 = arith.constant 0 : index
    %c0_29 = arith.constant 0 : index
    %34 = vector.load %arg3[%c2, %c0_28, %c0_29] : memref<9x1x128xf32, #tpu.memory_space<vmem>>, vector<1x1x128xf32>
    %35 = vector.shape_cast %34 : vector<1x1x128xf32> to vector<1x128xf32>
    %36 = vector.broadcast %35 : vector<1x128xf32> to vector<16x128xf32>
    %37 = arith.mulf %33, %36 : vector<16x128xf32>
    %c2_30 = arith.constant 2 : index
    %c0_31 = arith.constant 0 : index
    %c0_32 = arith.constant 0 : index
    %38 = vector.load %arg6[%c2_30, %c0_31, %c0_32] : memref<9x16x16xf32, #tpu.memory_space<vmem>>, vector<1x16x16xf32>
    %39 = vector.shape_cast %38 : vector<1x16x16xf32> to vector<16x16xf32>
    %cst_33 = arith.constant dense<0.000000e+00> : vector<16x128xf32>
    %40 = tpu.matmul %39, %37, %cst_33 {dimension_numbers = #tpu.dot_dimension_numbers<[1], [0], [0], [1], [0, 0, 1, 1], [], []>} : vector<16x16xf32>, vector<16x128xf32>, vector<16x128xf32> -> vector<16x128xf32>
    %41 = arith.addf %32, %40 : vector<16x128xf32>
    %c1_i32 = arith.constant 1 : i32
    %42 = tpu.dynamic_rotate %8 by %c1_i32 dim 1 : vector<16x128xf32>, i32 -> vector<16x128xf32>
    %c3 = arith.constant 3 : index
    %c0_34 = arith.constant 0 : index
    %c0_35 = arith.constant 0 : index
    %43 = vector.load %arg3[%c3, %c0_34, %c0_35] : memref<9x1x128xf32, #tpu.memory_space<vmem>>, vector<1x1x128xf32>
    %44 = vector.shape_cast %43 : vector<1x1x128xf32> to vector<1x128xf32>
    %45 = vector.broadcast %44 : vector<1x128xf32> to vector<16x128xf32>
    %46 = arith.mulf %42, %45 : vector<16x128xf32>
    %c3_36 = arith.constant 3 : index
    %c0_37 = arith.constant 0 : index
    %c0_38 = arith.constant 0 : index
    %47 = vector.load %arg6[%c3_36, %c0_37, %c0_38] : memref<9x16x16xf32, #tpu.memory_space<vmem>>, vector<1x16x16xf32>
    %48 = vector.shape_cast %47 : vector<1x16x16xf32> to vector<16x16xf32>
    %cst_39 = arith.constant dense<0.000000e+00> : vector<16x128xf32>
    %49 = tpu.matmul %48, %46, %cst_39 {dimension_numbers = #tpu.dot_dimension_numbers<[1], [0], [0], [1], [0, 0, 1, 1], [], []>} : vector<16x16xf32>, vector<16x128xf32>, vector<16x128xf32> -> vector<16x128xf32>
    %50 = arith.addf %41, %49 : vector<16x128xf32>
    %c4 = arith.constant 4 : index
    %c0_40 = arith.constant 0 : index
    %c0_41 = arith.constant 0 : index
    %51 = vector.load %arg3[%c4, %c0_40, %c0_41] : memref<9x1x128xf32, #tpu.memory_space<vmem>>, vector<1x1x128xf32>
    %52 = vector.shape_cast %51 : vector<1x1x128xf32> to vector<1x128xf32>
    %53 = vector.broadcast %52 : vector<1x128xf32> to vector<16x128xf32>
    %54 = arith.mulf %8, %53 : vector<16x128xf32>
    %c4_42 = arith.constant 4 : index
    %c0_43 = arith.constant 0 : index
    %c0_44 = arith.constant 0 : index
    %55 = vector.load %arg6[%c4_42, %c0_43, %c0_44] : memref<9x16x16xf32, #tpu.memory_space<vmem>>, vector<1x16x16xf32>
    %56 = vector.shape_cast %55 : vector<1x16x16xf32> to vector<16x16xf32>
    %cst_45 = arith.constant dense<0.000000e+00> : vector<16x128xf32>
    %57 = tpu.matmul %56, %54, %cst_45 {dimension_numbers = #tpu.dot_dimension_numbers<[1], [0], [0], [1], [0, 0, 1, 1], [], []>} : vector<16x16xf32>, vector<16x128xf32>, vector<16x128xf32> -> vector<16x128xf32>
    %58 = arith.addf %50, %57 : vector<16x128xf32>
    %c127_i32 = arith.constant 127 : i32
    %59 = tpu.dynamic_rotate %8 by %c127_i32 dim 1 : vector<16x128xf32>, i32 -> vector<16x128xf32>
    %c5 = arith.constant 5 : index
    %c0_46 = arith.constant 0 : index
    %c0_47 = arith.constant 0 : index
    %60 = vector.load %arg3[%c5, %c0_46, %c0_47] : memref<9x1x128xf32, #tpu.memory_space<vmem>>, vector<1x1x128xf32>
    %61 = vector.shape_cast %60 : vector<1x1x128xf32> to vector<1x128xf32>
    %62 = vector.broadcast %61 : vector<1x128xf32> to vector<16x128xf32>
    %63 = arith.mulf %59, %62 : vector<16x128xf32>
    %c5_48 = arith.constant 5 : index
    %c0_49 = arith.constant 0 : index
    %c0_50 = arith.constant 0 : index
    %64 = vector.load %arg6[%c5_48, %c0_49, %c0_50] : memref<9x16x16xf32, #tpu.memory_space<vmem>>, vector<1x16x16xf32>
    %65 = vector.shape_cast %64 : vector<1x16x16xf32> to vector<16x16xf32>
    %cst_51 = arith.constant dense<0.000000e+00> : vector<16x128xf32>
    %66 = tpu.matmul %65, %63, %cst_51 {dimension_numbers = #tpu.dot_dimension_numbers<[1], [0], [0], [1], [0, 0, 1, 1], [], []>} : vector<16x16xf32>, vector<16x128xf32>, vector<16x128xf32> -> vector<16x128xf32>
    %67 = arith.addf %58, %66 : vector<16x128xf32>
    %c125_i32 = arith.constant 125 : i32
    %68 = tpu.dynamic_rotate %8 by %c125_i32 dim 1 : vector<16x128xf32>, i32 -> vector<16x128xf32>
    %c6 = arith.constant 6 : index
    %c0_52 = arith.constant 0 : index
    %c0_53 = arith.constant 0 : index
    %69 = vector.load %arg3[%c6, %c0_52, %c0_53] : memref<9x1x128xf32, #tpu.memory_space<vmem>>, vector<1x1x128xf32>
    %70 = vector.shape_cast %69 : vector<1x1x128xf32> to vector<1x128xf32>
    %71 = vector.broadcast %70 : vector<1x128xf32> to vector<16x128xf32>
    %72 = arith.mulf %68, %71 : vector<16x128xf32>
    %c6_54 = arith.constant 6 : index
    %c0_55 = arith.constant 0 : index
    %c0_56 = arith.constant 0 : index
    %73 = vector.load %arg6[%c6_54, %c0_55, %c0_56] : memref<9x16x16xf32, #tpu.memory_space<vmem>>, vector<1x16x16xf32>
    %74 = vector.shape_cast %73 : vector<1x16x16xf32> to vector<16x16xf32>
    %cst_57 = arith.constant dense<0.000000e+00> : vector<16x128xf32>
    %75 = tpu.matmul %74, %72, %cst_57 {dimension_numbers = #tpu.dot_dimension_numbers<[1], [0], [0], [1], [0, 0, 1, 1], [], []>} : vector<16x16xf32>, vector<16x128xf32>, vector<16x128xf32> -> vector<16x128xf32>
    %76 = arith.addf %67, %75 : vector<16x128xf32>
    %c124_i32 = arith.constant 124 : i32
    %77 = tpu.dynamic_rotate %8 by %c124_i32 dim 1 : vector<16x128xf32>, i32 -> vector<16x128xf32>
    %c7 = arith.constant 7 : index
    %c0_58 = arith.constant 0 : index
    %c0_59 = arith.constant 0 : index
    %78 = vector.load %arg3[%c7, %c0_58, %c0_59] : memref<9x1x128xf32, #tpu.memory_space<vmem>>, vector<1x1x128xf32>
    %79 = vector.shape_cast %78 : vector<1x1x128xf32> to vector<1x128xf32>
    %80 = vector.broadcast %79 : vector<1x128xf32> to vector<16x128xf32>
    %81 = arith.mulf %77, %80 : vector<16x128xf32>
    %c7_60 = arith.constant 7 : index
    %c0_61 = arith.constant 0 : index
    %c0_62 = arith.constant 0 : index
    %82 = vector.load %arg6[%c7_60, %c0_61, %c0_62] : memref<9x16x16xf32, #tpu.memory_space<vmem>>, vector<1x16x16xf32>
    %83 = vector.shape_cast %82 : vector<1x16x16xf32> to vector<16x16xf32>
    %cst_63 = arith.constant dense<0.000000e+00> : vector<16x128xf32>
    %84 = tpu.matmul %83, %81, %cst_63 {dimension_numbers = #tpu.dot_dimension_numbers<[1], [0], [0], [1], [0, 0, 1, 1], [], []>} : vector<16x16xf32>, vector<16x128xf32>, vector<16x128xf32> -> vector<16x128xf32>
    %85 = arith.addf %76, %84 : vector<16x128xf32>
    %c123_i32 = arith.constant 123 : i32
    %86 = tpu.dynamic_rotate %8 by %c123_i32 dim 1 : vector<16x128xf32>, i32 -> vector<16x128xf32>
    %c8 = arith.constant 8 : index
    %c0_64 = arith.constant 0 : index
    %c0_65 = arith.constant 0 : index
    %87 = vector.load %arg3[%c8, %c0_64, %c0_65] : memref<9x1x128xf32, #tpu.memory_space<vmem>>, vector<1x1x128xf32>
    %88 = vector.shape_cast %87 : vector<1x1x128xf32> to vector<1x128xf32>
    %89 = vector.broadcast %88 : vector<1x128xf32> to vector<16x128xf32>
    %90 = arith.mulf %86, %89 : vector<16x128xf32>
    %c8_66 = arith.constant 8 : index
    %c0_67 = arith.constant 0 : index
    %c0_68 = arith.constant 0 : index
    %91 = vector.load %arg6[%c8_66, %c0_67, %c0_68] : memref<9x16x16xf32, #tpu.memory_space<vmem>>, vector<1x16x16xf32>
    %92 = vector.shape_cast %91 : vector<1x16x16xf32> to vector<16x16xf32>
    %cst_69 = arith.constant dense<0.000000e+00> : vector<16x128xf32>
    %93 = tpu.matmul %92, %90, %cst_69 {dimension_numbers = #tpu.dot_dimension_numbers<[1], [0], [0], [1], [0, 0, 1, 1], [], []>} : vector<16x16xf32>, vector<16x128xf32>, vector<16x128xf32> -> vector<16x128xf32>
    %94 = arith.addf %85, %93 : vector<16x128xf32>
    %c0_70 = arith.constant 0 : index
    %c0_71 = arith.constant 0 : index
    %95 = vector.load %arg11[%c0_70, %c0_71] : memref<16x1xf32, #tpu.memory_space<vmem>>, vector<16x1xf32>
    %96 = vector.broadcast %95 : vector<16x1xf32> to vector<16x128xf32>
    %97 = arith.addf %94, %96 : vector<16x128xf32>
    %98 = arith.addf %97, %15 : vector<16x128xf32>
    %cst_72 = arith.constant 0.000000e+00 : f32
    %99 = vector.broadcast %cst_72 : f32 to vector<16x128xf32>
    %100 = arith.maximumf %98, %99 : vector<16x128xf32>
    %c5_i32_73 = arith.constant 5 : i32
    %101 = tpu.dynamic_rotate %100 by %c5_i32_73 dim 1 : vector<16x128xf32>, i32 -> vector<16x128xf32>
    %c0_74 = arith.constant 0 : index
    %c0_75 = arith.constant 0 : index
    %c0_76 = arith.constant 0 : index
    %102 = vector.load %arg3[%c0_74, %c0_75, %c0_76] : memref<9x1x128xf32, #tpu.memory_space<vmem>>, vector<1x1x128xf32>
    %103 = vector.shape_cast %102 : vector<1x1x128xf32> to vector<1x128xf32>
    %104 = vector.broadcast %103 : vector<1x128xf32> to vector<16x128xf32>
    %105 = arith.mulf %101, %104 : vector<16x128xf32>
    %c0_77 = arith.constant 0 : index
    %c0_78 = arith.constant 0 : index
    %c0_79 = arith.constant 0 : index
    %106 = vector.load %arg7[%c0_77, %c0_78, %c0_79] : memref<9x16x16xf32, #tpu.memory_space<vmem>>, vector<1x16x16xf32>
    %107 = vector.shape_cast %106 : vector<1x16x16xf32> to vector<16x16xf32>
    %cst_80 = arith.constant dense<0.000000e+00> : vector<16x128xf32>
    %108 = tpu.matmul %107, %105, %cst_80 {dimension_numbers = #tpu.dot_dimension_numbers<[1], [0], [0], [1], [0, 0, 1, 1], [], []>} : vector<16x16xf32>, vector<16x128xf32>, vector<16x128xf32> -> vector<16x128xf32>
    %c4_i32_81 = arith.constant 4 : i32
    %109 = tpu.dynamic_rotate %100 by %c4_i32_81 dim 1 : vector<16x128xf32>, i32 -> vector<16x128xf32>
    %c1_82 = arith.constant 1 : index
    %c0_83 = arith.constant 0 : index
    %c0_84 = arith.constant 0 : index
    %110 = vector.load %arg3[%c1_82, %c0_83, %c0_84] : memref<9x1x128xf32, #tpu.memory_space<vmem>>, vector<1x1x128xf32>
    %111 = vector.shape_cast %110 : vector<1x1x128xf32> to vector<1x128xf32>
    %112 = vector.broadcast %111 : vector<1x128xf32> to vector<16x128xf32>
    %113 = arith.mulf %109, %112 : vector<16x128xf32>
    %c1_85 = arith.constant 1 : index
    %c0_86 = arith.constant 0 : index
    %c0_87 = arith.constant 0 : index
    %114 = vector.load %arg7[%c1_85, %c0_86, %c0_87] : memref<9x16x16xf32, #tpu.memory_space<vmem>>, vector<1x16x16xf32>
    %115 = vector.shape_cast %114 : vector<1x16x16xf32> to vector<16x16xf32>
    %cst_88 = arith.constant dense<0.000000e+00> : vector<16x128xf32>
    %116 = tpu.matmul %115, %113, %cst_88 {dimension_numbers = #tpu.dot_dimension_numbers<[1], [0], [0], [1], [0, 0, 1, 1], [], []>} : vector<16x16xf32>, vector<16x128xf32>, vector<16x128xf32> -> vector<16x128xf32>
    %117 = arith.addf %108, %116 : vector<16x128xf32>
    %c3_i32_89 = arith.constant 3 : i32
    %118 = tpu.dynamic_rotate %100 by %c3_i32_89 dim 1 : vector<16x128xf32>, i32 -> vector<16x128xf32>
    %c2_90 = arith.constant 2 : index
    %c0_91 = arith.constant 0 : index
    %c0_92 = arith.constant 0 : index
    %119 = vector.load %arg3[%c2_90, %c0_91, %c0_92] : memref<9x1x128xf32, #tpu.memory_space<vmem>>, vector<1x1x128xf32>
    %120 = vector.shape_cast %119 : vector<1x1x128xf32> to vector<1x128xf32>
    %121 = vector.broadcast %120 : vector<1x128xf32> to vector<16x128xf32>
    %122 = arith.mulf %118, %121 : vector<16x128xf32>
    %c2_93 = arith.constant 2 : index
    %c0_94 = arith.constant 0 : index
    %c0_95 = arith.constant 0 : index
    %123 = vector.load %arg7[%c2_93, %c0_94, %c0_95] : memref<9x16x16xf32, #tpu.memory_space<vmem>>, vector<1x16x16xf32>
    %124 = vector.shape_cast %123 : vector<1x16x16xf32> to vector<16x16xf32>
    %cst_96 = arith.constant dense<0.000000e+00> : vector<16x128xf32>
    %125 = tpu.matmul %124, %122, %cst_96 {dimension_numbers = #tpu.dot_dimension_numbers<[1], [0], [0], [1], [0, 0, 1, 1], [], []>} : vector<16x16xf32>, vector<16x128xf32>, vector<16x128xf32> -> vector<16x128xf32>
    %126 = arith.addf %117, %125 : vector<16x128xf32>
    %c1_i32_97 = arith.constant 1 : i32
    %127 = tpu.dynamic_rotate %100 by %c1_i32_97 dim 1 : vector<16x128xf32>, i32 -> vector<16x128xf32>
    %c3_98 = arith.constant 3 : index
    %c0_99 = arith.constant 0 : index
    %c0_100 = arith.constant 0 : index
    %128 = vector.load %arg3[%c3_98, %c0_99, %c0_100] : memref<9x1x128xf32, #tpu.memory_space<vmem>>, vector<1x1x128xf32>
    %129 = vector.shape_cast %128 : vector<1x1x128xf32> to vector<1x128xf32>
    %130 = vector.broadcast %129 : vector<1x128xf32> to vector<16x128xf32>
    %131 = arith.mulf %127, %130 : vector<16x128xf32>
    %c3_101 = arith.constant 3 : index
    %c0_102 = arith.constant 0 : index
    %c0_103 = arith.constant 0 : index
    %132 = vector.load %arg7[%c3_101, %c0_102, %c0_103] : memref<9x16x16xf32, #tpu.memory_space<vmem>>, vector<1x16x16xf32>
    %133 = vector.shape_cast %132 : vector<1x16x16xf32> to vector<16x16xf32>
    %cst_104 = arith.constant dense<0.000000e+00> : vector<16x128xf32>
    %134 = tpu.matmul %133, %131, %cst_104 {dimension_numbers = #tpu.dot_dimension_numbers<[1], [0], [0], [1], [0, 0, 1, 1], [], []>} : vector<16x16xf32>, vector<16x128xf32>, vector<16x128xf32> -> vector<16x128xf32>
    %135 = arith.addf %126, %134 : vector<16x128xf32>
    %c4_105 = arith.constant 4 : index
    %c0_106 = arith.constant 0 : index
    %c0_107 = arith.constant 0 : index
    %136 = vector.load %arg3[%c4_105, %c0_106, %c0_107] : memref<9x1x128xf32, #tpu.memory_space<vmem>>, vector<1x1x128xf32>
    %137 = vector.shape_cast %136 : vector<1x1x128xf32> to vector<1x128xf32>
    %138 = vector.broadcast %137 : vector<1x128xf32> to vector<16x128xf32>
    %139 = arith.mulf %100, %138 : vector<16x128xf32>
    %c4_108 = arith.constant 4 : index
    %c0_109 = arith.constant 0 : index
    %c0_110 = arith.constant 0 : index
    %140 = vector.load %arg7[%c4_108, %c0_109, %c0_110] : memref<9x16x16xf32, #tpu.memory_space<vmem>>, vector<1x16x16xf32>
    %141 = vector.shape_cast %140 : vector<1x16x16xf32> to vector<16x16xf32>
    %cst_111 = arith.constant dense<0.000000e+00> : vector<16x128xf32>
    %142 = tpu.matmul %141, %139, %cst_111 {dimension_numbers = #tpu.dot_dimension_numbers<[1], [0], [0], [1], [0, 0, 1, 1], [], []>} : vector<16x16xf32>, vector<16x128xf32>, vector<16x128xf32> -> vector<16x128xf32>
    %143 = arith.addf %135, %142 : vector<16x128xf32>
    %c127_i32_112 = arith.constant 127 : i32
    %144 = tpu.dynamic_rotate %100 by %c127_i32_112 dim 1 : vector<16x128xf32>, i32 -> vector<16x128xf32>
    %c5_113 = arith.constant 5 : index
    %c0_114 = arith.constant 0 : index
    %c0_115 = arith.constant 0 : index
    %145 = vector.load %arg3[%c5_113, %c0_114, %c0_115] : memref<9x1x128xf32, #tpu.memory_space<vmem>>, vector<1x1x128xf32>
    %146 = vector.shape_cast %145 : vector<1x1x128xf32> to vector<1x128xf32>
    %147 = vector.broadcast %146 : vector<1x128xf32> to vector<16x128xf32>
    %148 = arith.mulf %144, %147 : vector<16x128xf32>
    %c5_116 = arith.constant 5 : index
    %c0_117 = arith.constant 0 : index
    %c0_118 = arith.constant 0 : index
    %149 = vector.load %arg7[%c5_116, %c0_117, %c0_118] : memref<9x16x16xf32, #tpu.memory_space<vmem>>, vector<1x16x16xf32>
    %150 = vector.shape_cast %149 : vector<1x16x16xf32> to vector<16x16xf32>
    %cst_119 = arith.constant dense<0.000000e+00> : vector<16x128xf32>
    %151 = tpu.matmul %150, %148, %cst_119 {dimension_numbers = #tpu.dot_dimension_numbers<[1], [0], [0], [1], [0, 0, 1, 1], [], []>} : vector<16x16xf32>, vector<16x128xf32>, vector<16x128xf32> -> vector<16x128xf32>
    %152 = arith.addf %143, %151 : vector<16x128xf32>
    %c125_i32_120 = arith.constant 125 : i32
    %153 = tpu.dynamic_rotate %100 by %c125_i32_120 dim 1 : vector<16x128xf32>, i32 -> vector<16x128xf32>
    %c6_121 = arith.constant 6 : index
    %c0_122 = arith.constant 0 : index
    %c0_123 = arith.constant 0 : index
    %154 = vector.load %arg3[%c6_121, %c0_122, %c0_123] : memref<9x1x128xf32, #tpu.memory_space<vmem>>, vector<1x1x128xf32>
    %155 = vector.shape_cast %154 : vector<1x1x128xf32> to vector<1x128xf32>
    %156 = vector.broadcast %155 : vector<1x128xf32> to vector<16x128xf32>
    %157 = arith.mulf %153, %156 : vector<16x128xf32>
    %c6_124 = arith.constant 6 : index
    %c0_125 = arith.constant 0 : index
    %c0_126 = arith.constant 0 : index
    %158 = vector.load %arg7[%c6_124, %c0_125, %c0_126] : memref<9x16x16xf32, #tpu.memory_space<vmem>>, vector<1x16x16xf32>
    %159 = vector.shape_cast %158 : vector<1x16x16xf32> to vector<16x16xf32>
    %cst_127 = arith.constant dense<0.000000e+00> : vector<16x128xf32>
    %160 = tpu.matmul %159, %157, %cst_127 {dimension_numbers = #tpu.dot_dimension_numbers<[1], [0], [0], [1], [0, 0, 1, 1], [], []>} : vector<16x16xf32>, vector<16x128xf32>, vector<16x128xf32> -> vector<16x128xf32>
    %161 = arith.addf %152, %160 : vector<16x128xf32>
    %c124_i32_128 = arith.constant 124 : i32
    %162 = tpu.dynamic_rotate %100 by %c124_i32_128 dim 1 : vector<16x128xf32>, i32 -> vector<16x128xf32>
    %c7_129 = arith.constant 7 : index
    %c0_130 = arith.constant 0 : index
    %c0_131 = arith.constant 0 : index
    %163 = vector.load %arg3[%c7_129, %c0_130, %c0_131] : memref<9x1x128xf32, #tpu.memory_space<vmem>>, vector<1x1x128xf32>
    %164 = vector.shape_cast %163 : vector<1x1x128xf32> to vector<1x128xf32>
    %165 = vector.broadcast %164 : vector<1x128xf32> to vector<16x128xf32>
    %166 = arith.mulf %162, %165 : vector<16x128xf32>
    %c7_132 = arith.constant 7 : index
    %c0_133 = arith.constant 0 : index
    %c0_134 = arith.constant 0 : index
    %167 = vector.load %arg7[%c7_132, %c0_133, %c0_134] : memref<9x16x16xf32, #tpu.memory_space<vmem>>, vector<1x16x16xf32>
    %168 = vector.shape_cast %167 : vector<1x16x16xf32> to vector<16x16xf32>
    %cst_135 = arith.constant dense<0.000000e+00> : vector<16x128xf32>
    %169 = tpu.matmul %168, %166, %cst_135 {dimension_numbers = #tpu.dot_dimension_numbers<[1], [0], [0], [1], [0, 0, 1, 1], [], []>} : vector<16x16xf32>, vector<16x128xf32>, vector<16x128xf32> -> vector<16x128xf32>
    %170 = arith.addf %161, %169 : vector<16x128xf32>
    %c123_i32_136 = arith.constant 123 : i32
    %171 = tpu.dynamic_rotate %100 by %c123_i32_136 dim 1 : vector<16x128xf32>, i32 -> vector<16x128xf32>
    %c8_137 = arith.constant 8 : index
    %c0_138 = arith.constant 0 : index
    %c0_139 = arith.constant 0 : index
    %172 = vector.load %arg3[%c8_137, %c0_138, %c0_139] : memref<9x1x128xf32, #tpu.memory_space<vmem>>, vector<1x1x128xf32>
    %173 = vector.shape_cast %172 : vector<1x1x128xf32> to vector<1x128xf32>
    %174 = vector.broadcast %173 : vector<1x128xf32> to vector<16x128xf32>
    %175 = arith.mulf %171, %174 : vector<16x128xf32>
    %c8_140 = arith.constant 8 : index
    %c0_141 = arith.constant 0 : index
    %c0_142 = arith.constant 0 : index
    %176 = vector.load %arg7[%c8_140, %c0_141, %c0_142] : memref<9x16x16xf32, #tpu.memory_space<vmem>>, vector<1x16x16xf32>
    %177 = vector.shape_cast %176 : vector<1x16x16xf32> to vector<16x16xf32>
    %cst_143 = arith.constant dense<0.000000e+00> : vector<16x128xf32>
    %178 = tpu.matmul %177, %175, %cst_143 {dimension_numbers = #tpu.dot_dimension_numbers<[1], [0], [0], [1], [0, 0, 1, 1], [], []>} : vector<16x16xf32>, vector<16x128xf32>, vector<16x128xf32> -> vector<16x128xf32>
    %179 = arith.addf %170, %178 : vector<16x128xf32>
    %c0_144 = arith.constant 0 : index
    %c0_145 = arith.constant 0 : index
    %180 = vector.load %arg12[%c0_144, %c0_145] : memref<16x1xf32, #tpu.memory_space<vmem>>, vector<16x1xf32>
    %181 = vector.broadcast %180 : vector<16x1xf32> to vector<16x128xf32>
    %182 = arith.addf %179, %181 : vector<16x128xf32>
    %cst_146 = arith.constant 0.000000e+00 : f32
    %183 = vector.broadcast %cst_146 : f32 to vector<16x128xf32>
    %184 = arith.maximumf %182, %183 : vector<16x128xf32>
    %c5_i32_147 = arith.constant 5 : i32
    %185 = tpu.dynamic_rotate %184 by %c5_i32_147 dim 1 : vector<16x128xf32>, i32 -> vector<16x128xf32>
    %c0_148 = arith.constant 0 : index
    %c0_149 = arith.constant 0 : index
    %c0_150 = arith.constant 0 : index
    %186 = vector.load %arg3[%c0_148, %c0_149, %c0_150] : memref<9x1x128xf32, #tpu.memory_space<vmem>>, vector<1x1x128xf32>
    %187 = vector.shape_cast %186 : vector<1x1x128xf32> to vector<1x128xf32>
    %188 = vector.broadcast %187 : vector<1x128xf32> to vector<16x128xf32>
    %189 = arith.mulf %185, %188 : vector<16x128xf32>
    %c0_151 = arith.constant 0 : index
    %c0_152 = arith.constant 0 : index
    %c0_153 = arith.constant 0 : index
    %190 = vector.load %arg8[%c0_151, %c0_152, %c0_153] : memref<9x16x16xf32, #tpu.memory_space<vmem>>, vector<1x16x16xf32>
    %191 = vector.shape_cast %190 : vector<1x16x16xf32> to vector<16x16xf32>
    %cst_154 = arith.constant dense<0.000000e+00> : vector<16x128xf32>
    %192 = tpu.matmul %191, %189, %cst_154 {dimension_numbers = #tpu.dot_dimension_numbers<[1], [0], [0], [1], [0, 0, 1, 1], [], []>} : vector<16x16xf32>, vector<16x128xf32>, vector<16x128xf32> -> vector<16x128xf32>
    %c4_i32_155 = arith.constant 4 : i32
    %193 = tpu.dynamic_rotate %184 by %c4_i32_155 dim 1 : vector<16x128xf32>, i32 -> vector<16x128xf32>
    %c1_156 = arith.constant 1 : index
    %c0_157 = arith.constant 0 : index
    %c0_158 = arith.constant 0 : index
    %194 = vector.load %arg3[%c1_156, %c0_157, %c0_158] : memref<9x1x128xf32, #tpu.memory_space<vmem>>, vector<1x1x128xf32>
    %195 = vector.shape_cast %194 : vector<1x1x128xf32> to vector<1x128xf32>
    %196 = vector.broadcast %195 : vector<1x128xf32> to vector<16x128xf32>
    %197 = arith.mulf %193, %196 : vector<16x128xf32>
    %c1_159 = arith.constant 1 : index
    %c0_160 = arith.constant 0 : index
    %c0_161 = arith.constant 0 : index
    %198 = vector.load %arg8[%c1_159, %c0_160, %c0_161] : memref<9x16x16xf32, #tpu.memory_space<vmem>>, vector<1x16x16xf32>
    %199 = vector.shape_cast %198 : vector<1x16x16xf32> to vector<16x16xf32>
    %cst_162 = arith.constant dense<0.000000e+00> : vector<16x128xf32>
    %200 = tpu.matmul %199, %197, %cst_162 {dimension_numbers = #tpu.dot_dimension_numbers<[1], [0], [0], [1], [0, 0, 1, 1], [], []>} : vector<16x16xf32>, vector<16x128xf32>, vector<16x128xf32> -> vector<16x128xf32>
    %201 = arith.addf %192, %200 : vector<16x128xf32>
    %c3_i32_163 = arith.constant 3 : i32
    %202 = tpu.dynamic_rotate %184 by %c3_i32_163 dim 1 : vector<16x128xf32>, i32 -> vector<16x128xf32>
    %c2_164 = arith.constant 2 : index
    %c0_165 = arith.constant 0 : index
    %c0_166 = arith.constant 0 : index
    %203 = vector.load %arg3[%c2_164, %c0_165, %c0_166] : memref<9x1x128xf32, #tpu.memory_space<vmem>>, vector<1x1x128xf32>
    %204 = vector.shape_cast %203 : vector<1x1x128xf32> to vector<1x128xf32>
    %205 = vector.broadcast %204 : vector<1x128xf32> to vector<16x128xf32>
    %206 = arith.mulf %202, %205 : vector<16x128xf32>
    %c2_167 = arith.constant 2 : index
    %c0_168 = arith.constant 0 : index
    %c0_169 = arith.constant 0 : index
    %207 = vector.load %arg8[%c2_167, %c0_168, %c0_169] : memref<9x16x16xf32, #tpu.memory_space<vmem>>, vector<1x16x16xf32>
    %208 = vector.shape_cast %207 : vector<1x16x16xf32> to vector<16x16xf32>
    %cst_170 = arith.constant dense<0.000000e+00> : vector<16x128xf32>
    %209 = tpu.matmul %208, %206, %cst_170 {dimension_numbers = #tpu.dot_dimension_numbers<[1], [0], [0], [1], [0, 0, 1, 1], [], []>} : vector<16x16xf32>, vector<16x128xf32>, vector<16x128xf32> -> vector<16x128xf32>
    %210 = arith.addf %201, %209 : vector<16x128xf32>
    %c1_i32_171 = arith.constant 1 : i32
    %211 = tpu.dynamic_rotate %184 by %c1_i32_171 dim 1 : vector<16x128xf32>, i32 -> vector<16x128xf32>
    %c3_172 = arith.constant 3 : index
    %c0_173 = arith.constant 0 : index
    %c0_174 = arith.constant 0 : index
    %212 = vector.load %arg3[%c3_172, %c0_173, %c0_174] : memref<9x1x128xf32, #tpu.memory_space<vmem>>, vector<1x1x128xf32>
    %213 = vector.shape_cast %212 : vector<1x1x128xf32> to vector<1x128xf32>
    %214 = vector.broadcast %213 : vector<1x128xf32> to vector<16x128xf32>
    %215 = arith.mulf %211, %214 : vector<16x128xf32>
    %c3_175 = arith.constant 3 : index
    %c0_176 = arith.constant 0 : index
    %c0_177 = arith.constant 0 : index
    %216 = vector.load %arg8[%c3_175, %c0_176, %c0_177] : memref<9x16x16xf32, #tpu.memory_space<vmem>>, vector<1x16x16xf32>
    %217 = vector.shape_cast %216 : vector<1x16x16xf32> to vector<16x16xf32>
    %cst_178 = arith.constant dense<0.000000e+00> : vector<16x128xf32>
    %218 = tpu.matmul %217, %215, %cst_178 {dimension_numbers = #tpu.dot_dimension_numbers<[1], [0], [0], [1], [0, 0, 1, 1], [], []>} : vector<16x16xf32>, vector<16x128xf32>, vector<16x128xf32> -> vector<16x128xf32>
    %219 = arith.addf %210, %218 : vector<16x128xf32>
    %c4_179 = arith.constant 4 : index
    %c0_180 = arith.constant 0 : index
    %c0_181 = arith.constant 0 : index
    %220 = vector.load %arg3[%c4_179, %c0_180, %c0_181] : memref<9x1x128xf32, #tpu.memory_space<vmem>>, vector<1x1x128xf32>
    %221 = vector.shape_cast %220 : vector<1x1x128xf32> to vector<1x128xf32>
    %222 = vector.broadcast %221 : vector<1x128xf32> to vector<16x128xf32>
    %223 = arith.mulf %184, %222 : vector<16x128xf32>
    %c4_182 = arith.constant 4 : index
    %c0_183 = arith.constant 0 : index
    %c0_184 = arith.constant 0 : index
    %224 = vector.load %arg8[%c4_182, %c0_183, %c0_184] : memref<9x16x16xf32, #tpu.memory_space<vmem>>, vector<1x16x16xf32>
    %225 = vector.shape_cast %224 : vector<1x16x16xf32> to vector<16x16xf32>
    %cst_185 = arith.constant dense<0.000000e+00> : vector<16x128xf32>
    %226 = tpu.matmul %225, %223, %cst_185 {dimension_numbers = #tpu.dot_dimension_numbers<[1], [0], [0], [1], [0, 0, 1, 1], [], []>} : vector<16x16xf32>, vector<16x128xf32>, vector<16x128xf32> -> vector<16x128xf32>
    %227 = arith.addf %219, %226 : vector<16x128xf32>
    %c127_i32_186 = arith.constant 127 : i32
    %228 = tpu.dynamic_rotate %184 by %c127_i32_186 dim 1 : vector<16x128xf32>, i32 -> vector<16x128xf32>
    %c5_187 = arith.constant 5 : index
    %c0_188 = arith.constant 0 : index
    %c0_189 = arith.constant 0 : index
    %229 = vector.load %arg3[%c5_187, %c0_188, %c0_189] : memref<9x1x128xf32, #tpu.memory_space<vmem>>, vector<1x1x128xf32>
    %230 = vector.shape_cast %229 : vector<1x1x128xf32> to vector<1x128xf32>
    %231 = vector.broadcast %230 : vector<1x128xf32> to vector<16x128xf32>
    %232 = arith.mulf %228, %231 : vector<16x128xf32>
    %c5_190 = arith.constant 5 : index
    %c0_191 = arith.constant 0 : index
    %c0_192 = arith.constant 0 : index
    %233 = vector.load %arg8[%c5_190, %c0_191, %c0_192] : memref<9x16x16xf32, #tpu.memory_space<vmem>>, vector<1x16x16xf32>
    %234 = vector.shape_cast %233 : vector<1x16x16xf32> to vector<16x16xf32>
    %cst_193 = arith.constant dense<0.000000e+00> : vector<16x128xf32>
    %235 = tpu.matmul %234, %232, %cst_193 {dimension_numbers = #tpu.dot_dimension_numbers<[1], [0], [0], [1], [0, 0, 1, 1], [], []>} : vector<16x16xf32>, vector<16x128xf32>, vector<16x128xf32> -> vector<16x128xf32>
    %236 = arith.addf %227, %235 : vector<16x128xf32>
    %c125_i32_194 = arith.constant 125 : i32
    %237 = tpu.dynamic_rotate %184 by %c125_i32_194 dim 1 : vector<16x128xf32>, i32 -> vector<16x128xf32>
    %c6_195 = arith.constant 6 : index
    %c0_196 = arith.constant 0 : index
    %c0_197 = arith.constant 0 : index
    %238 = vector.load %arg3[%c6_195, %c0_196, %c0_197] : memref<9x1x128xf32, #tpu.memory_space<vmem>>, vector<1x1x128xf32>
    %239 = vector.shape_cast %238 : vector<1x1x128xf32> to vector<1x128xf32>
    %240 = vector.broadcast %239 : vector<1x128xf32> to vector<16x128xf32>
    %241 = arith.mulf %237, %240 : vector<16x128xf32>
    %c6_198 = arith.constant 6 : index
    %c0_199 = arith.constant 0 : index
    %c0_200 = arith.constant 0 : index
    %242 = vector.load %arg8[%c6_198, %c0_199, %c0_200] : memref<9x16x16xf32, #tpu.memory_space<vmem>>, vector<1x16x16xf32>
    %243 = vector.shape_cast %242 : vector<1x16x16xf32> to vector<16x16xf32>
    %cst_201 = arith.constant dense<0.000000e+00> : vector<16x128xf32>
    %244 = tpu.matmul %243, %241, %cst_201 {dimension_numbers = #tpu.dot_dimension_numbers<[1], [0], [0], [1], [0, 0, 1, 1], [], []>} : vector<16x16xf32>, vector<16x128xf32>, vector<16x128xf32> -> vector<16x128xf32>
    %245 = arith.addf %236, %244 : vector<16x128xf32>
    %c124_i32_202 = arith.constant 124 : i32
    %246 = tpu.dynamic_rotate %184 by %c124_i32_202 dim 1 : vector<16x128xf32>, i32 -> vector<16x128xf32>
    %c7_203 = arith.constant 7 : index
    %c0_204 = arith.constant 0 : index
    %c0_205 = arith.constant 0 : index
    %247 = vector.load %arg3[%c7_203, %c0_204, %c0_205] : memref<9x1x128xf32, #tpu.memory_space<vmem>>, vector<1x1x128xf32>
    %248 = vector.shape_cast %247 : vector<1x1x128xf32> to vector<1x128xf32>
    %249 = vector.broadcast %248 : vector<1x128xf32> to vector<16x128xf32>
    %250 = arith.mulf %246, %249 : vector<16x128xf32>
    %c7_206 = arith.constant 7 : index
    %c0_207 = arith.constant 0 : index
    %c0_208 = arith.constant 0 : index
    %251 = vector.load %arg8[%c7_206, %c0_207, %c0_208] : memref<9x16x16xf32, #tpu.memory_space<vmem>>, vector<1x16x16xf32>
    %252 = vector.shape_cast %251 : vector<1x16x16xf32> to vector<16x16xf32>
    %cst_209 = arith.constant dense<0.000000e+00> : vector<16x128xf32>
    %253 = tpu.matmul %252, %250, %cst_209 {dimension_numbers = #tpu.dot_dimension_numbers<[1], [0], [0], [1], [0, 0, 1, 1], [], []>} : vector<16x16xf32>, vector<16x128xf32>, vector<16x128xf32> -> vector<16x128xf32>
    %254 = arith.addf %245, %253 : vector<16x128xf32>
    %c123_i32_210 = arith.constant 123 : i32
    %255 = tpu.dynamic_rotate %184 by %c123_i32_210 dim 1 : vector<16x128xf32>, i32 -> vector<16x128xf32>
    %c8_211 = arith.constant 8 : index
    %c0_212 = arith.constant 0 : index
    %c0_213 = arith.constant 0 : index
    %256 = vector.load %arg3[%c8_211, %c0_212, %c0_213] : memref<9x1x128xf32, #tpu.memory_space<vmem>>, vector<1x1x128xf32>
    %257 = vector.shape_cast %256 : vector<1x1x128xf32> to vector<1x128xf32>
    %258 = vector.broadcast %257 : vector<1x128xf32> to vector<16x128xf32>
    %259 = arith.mulf %255, %258 : vector<16x128xf32>
    %c8_214 = arith.constant 8 : index
    %c0_215 = arith.constant 0 : index
    %c0_216 = arith.constant 0 : index
    %260 = vector.load %arg8[%c8_214, %c0_215, %c0_216] : memref<9x16x16xf32, #tpu.memory_space<vmem>>, vector<1x16x16xf32>
    %261 = vector.shape_cast %260 : vector<1x16x16xf32> to vector<16x16xf32>
    %cst_217 = arith.constant dense<0.000000e+00> : vector<16x128xf32>
    %262 = tpu.matmul %261, %259, %cst_217 {dimension_numbers = #tpu.dot_dimension_numbers<[1], [0], [0], [1], [0, 0, 1, 1], [], []>} : vector<16x16xf32>, vector<16x128xf32>, vector<16x128xf32> -> vector<16x128xf32>
    %263 = arith.addf %254, %262 : vector<16x128xf32>
    %c0_218 = arith.constant 0 : index
    %c0_219 = arith.constant 0 : index
    %264 = vector.load %arg13[%c0_218, %c0_219] : memref<16x1xf32, #tpu.memory_space<vmem>>, vector<16x1xf32>
    %265 = vector.broadcast %264 : vector<16x1xf32> to vector<16x128xf32>
    %266 = arith.addf %263, %265 : vector<16x128xf32>
    %267 = arith.addf %266, %100 : vector<16x128xf32>
    %cst_220 = arith.constant 0.000000e+00 : f32
    %268 = vector.broadcast %cst_220 : f32 to vector<16x128xf32>
    %269 = arith.maximumf %267, %268 : vector<16x128xf32>
    %c0_221 = arith.constant 0 : index
    %c0_222 = arith.constant 0 : index
    %c0_223 = arith.constant 0 : index
    %270 = vector.load %arg14[%c0_221, %c0_222, %c0_223] : memref<1x16x128xf32, #tpu.memory_space<vmem>>, vector<1x16x128xf32>
    %271 = vector.shape_cast %270 : vector<1x16x128xf32> to vector<16x128xf32>
    %272 = vector.shape_cast %269 : vector<16x128xf32> to vector<1x16x128xf32>
    tpu.vector_store %arg14[%c0_221, %c0_222, %c0_223], %272 {strides = array<i32>} : memref<1x16x128xf32, #tpu.memory_space<vmem>>, vector<1x16x128xf32>,
    return
  }
  func.func @transform_0(%arg0: i32) -> (i32, i32, i32) {
    %c0_i32 = arith.constant 0 : i32
    %c0_i32_0 = arith.constant 0 : i32
    %c0_i32_1 = arith.constant 0 : i32
    return %arg0, %c0_i32, %c0_i32_0 : i32, i32, i32
  }
  func.func @transform_1(%arg0: i32) -> (i32, i32, i32) {
    %c0_i32 = arith.constant 0 : i32
    %c0_i32_0 = arith.constant 0 : i32
    %c0_i32_1 = arith.constant 0 : i32
    return %arg0, %c0_i32, %c0_i32_0 : i32, i32, i32
  }
  func.func @transform_2(%arg0: i32) -> (i32, i32, i32) {
    %c0_i32 = arith.constant 0 : i32
    %c0_i32_0 = arith.constant 0 : i32
    %c0_i32_1 = arith.constant 0 : i32
    %c0_i32_2 = arith.constant 0 : i32
    return %c0_i32, %c0_i32_0, %c0_i32_1 : i32, i32, i32
  }
  func.func @transform_3(%arg0: i32) -> (i32, i32) {
    %c0_i32 = arith.constant 0 : i32
    %c0_i32_0 = arith.constant 0 : i32
    %c0_i32_1 = arith.constant 0 : i32
    return %c0_i32, %c0_i32_0 : i32, i32
  }
  func.func @transform_4(%arg0: i32) -> (i32, i32) {
    %c0_i32 = arith.constant 0 : i32
    %c0_i32_0 = arith.constant 0 : i32
    %c0_i32_1 = arith.constant 0 : i32
    return %c0_i32, %c0_i32_0 : i32, i32
  }
  func.func @transform_5(%arg0: i32) -> (i32, i32, i32) {
    %c0_i32 = arith.constant 0 : i32
    %c0_i32_0 = arith.constant 0 : i32
    %c0_i32_1 = arith.constant 0 : i32
    %c0_i32_2 = arith.constant 0 : i32
    return %c0_i32, %c0_i32_0, %c0_i32_1 : i32, i32, i32
  }
  func.func @transform_6(%arg0: i32) -> (i32, i32, i32) {
    %c0_i32 = arith.constant 0 : i32
    %c0_i32_0 = arith.constant 0 : i32
    %c0_i32_1 = arith.constant 0 : i32
    %c0_i32_2 = arith.constant 0 : i32
    return %c0_i32, %c0_i32_0, %c0_i32_1 : i32, i32, i32
  }
  func.func @transform_7(%arg0: i32) -> (i32, i32, i32) {
    %c0_i32 = arith.constant 0 : i32
    %c0_i32_0 = arith.constant 0 : i32
    %c0_i32_1 = arith.constant 0 : i32
    %c0_i32_2 = arith.constant 0 : i32
    return %c0_i32, %c0_i32_0, %c0_i32_1 : i32, i32, i32
  }
  func.func @transform_8(%arg0: i32) -> (i32, i32) {
    %c0_i32 = arith.constant 0 : i32
    %c0_i32_0 = arith.constant 0 : i32
    %c0_i32_1 = arith.constant 0 : i32
    return %c0_i32, %c0_i32_0 : i32, i32
  }
  func.func @transform_9(%arg0: i32) -> (i32, i32) {
    %c0_i32 = arith.constant 0 : i32
    %c0_i32_0 = arith.constant 0 : i32
    %c0_i32_1 = arith.constant 0 : i32
    return %c0_i32, %c0_i32_0 : i32, i32
  }
  func.func @transform_10(%arg0: i32) -> (i32, i32) {
    %c0_i32 = arith.constant 0 : i32
    %c0_i32_0 = arith.constant 0 : i32
    %c0_i32_1 = arith.constant 0 : i32
    return %c0_i32, %c0_i32_0 : i32, i32
  }
  func.func @transform_11(%arg0: i32) -> (i32, i32) {
    %c0_i32 = arith.constant 0 : i32
    %c0_i32_0 = arith.constant 0 : i32
    %c0_i32_1 = arith.constant 0 : i32
    return %c0_i32, %c0_i32_0 : i32, i32
  }
  func.func @transform_12(%arg0: i32) -> (i32, i32) {
    %c0_i32 = arith.constant 0 : i32
    %c0_i32_0 = arith.constant 0 : i32
    %c0_i32_1 = arith.constant 0 : i32
    return %c0_i32, %c0_i32_0 : i32, i32
  }
  func.func @transform_13(%arg0: i32) -> (i32, i32, i32) {
    %c0_i32 = arith.constant 0 : i32
    %c0_i32_0 = arith.constant 0 : i32
    %c0_i32_1 = arith.constant 0 : i32
    return %arg0, %c0_i32, %c0_i32_0 : i32, i32, i32
  }
}

module attributes {stable_mosaic.version = 11 : i64} {
  func.func @kernel(%arg0: i32, %arg1: memref<1x144x128xf32, #tpu.memory_space<vmem>>, %arg2: memref<1x16x128xf32, #tpu.memory_space<vmem>>, %arg3: memref<9x1x128xf32, #tpu.memory_space<vmem>>, %arg4: memref<4x144xf32, #tpu.memory_space<vmem>>, %arg5: memref<4x16xf32, #tpu.memory_space<vmem>>, %arg6: memref<9x4x4xf32, #tpu.memory_space<vmem>>, %arg7: memref<9x4x4xf32, #tpu.memory_space<vmem>>, %arg8: memref<9x4x4xf32, #tpu.memory_space<vmem>>, %arg9: memref<4x1xf32, #tpu.memory_space<vmem>>, %arg10: memref<4x1xf32, #tpu.memory_space<vmem>>, %arg11: memref<4x1xf32, #tpu.memory_space<vmem>>, %arg12: memref<4x1xf32, #tpu.memory_space<vmem>>, %arg13: memref<4x1xf32, #tpu.memory_space<vmem>>, %arg14: memref<1x4x128xf32, #tpu.memory_space<vmem>>) attributes {dimension_semantics = [#tpu.dimension_semantics<parallel>], iteration_bounds = array<i64: 2>, scalar_prefetch = 0 : i64, scratch_operands = 0 : i64, tpu.core_type = #tpu.core_type<tc>, window_params = [{transform_indices = @transform_0, window_bounds = array<i64: 1, 144, 128>}, {transform_indices = @transform_1, window_bounds = array<i64: 1, 16, 128>}, {pipeline_mode = #tpu.pipeline_mode<synchronous>, transform_indices = @transform_2, window_bounds = array<i64: 9, 1, 128>}, {pipeline_mode = #tpu.pipeline_mode<synchronous>, transform_indices = @transform_3, window_bounds = array<i64: 4, 144>}, {pipeline_mode = #tpu.pipeline_mode<synchronous>, transform_indices = @transform_4, window_bounds = array<i64: 4, 16>}, {pipeline_mode = #tpu.pipeline_mode<synchronous>, transform_indices = @transform_5, window_bounds = array<i64: 9, 4, 4>}, {pipeline_mode = #tpu.pipeline_mode<synchronous>, transform_indices = @transform_6, window_bounds = array<i64: 9, 4, 4>}, {pipeline_mode = #tpu.pipeline_mode<synchronous>, transform_indices = @transform_7, window_bounds = array<i64: 9, 4, 4>}, {pipeline_mode = #tpu.pipeline_mode<synchronous>, transform_indices = @transform_8, window_bounds = array<i64: 4, 1>}, {pipeline_mode = #tpu.pipeline_mode<synchronous>, transform_indices = @transform_9, window_bounds = array<i64: 4, 1>}, {pipeline_mode = #tpu.pipeline_mode<synchronous>, transform_indices = @transform_10, window_bounds = array<i64: 4, 1>}, {pipeline_mode = #tpu.pipeline_mode<synchronous>, transform_indices = @transform_11, window_bounds = array<i64: 4, 1>}, {pipeline_mode = #tpu.pipeline_mode<synchronous>, transform_indices = @transform_12, window_bounds = array<i64: 4, 1>}, {transform_indices = @transform_13, window_bounds = array<i64: 1, 4, 128>}]} {
    %c0 = arith.constant 0 : index
    %c0_0 = arith.constant 0 : index
    %0 = vector.load %arg4[%c0, %c0_0] : memref<4x144xf32, #tpu.memory_space<vmem>>, vector<4x144xf32>
    %c0_1 = arith.constant 0 : index
    %c0_2 = arith.constant 0 : index
    %c0_3 = arith.constant 0 : index
    %1 = vector.load %arg1[%c0_1, %c0_2, %c0_3] : memref<1x144x128xf32, #tpu.memory_space<vmem>>, vector<1x144x128xf32>
    %2 = vector.shape_cast %1 : vector<1x144x128xf32> to vector<144x128xf32>
    %cst = arith.constant dense<0.000000e+00> : vector<4x128xf32>
    %3 = tpu.matmul %0, %2, %cst {dimension_numbers = #tpu.dot_dimension_numbers<[1], [0], [0], [1], [0, 0, 1, 1], [], []>} : vector<4x144xf32>, vector<144x128xf32>, vector<4x128xf32> -> vector<4x128xf32>
    %c0_4 = arith.constant 0 : index
    %c0_5 = arith.constant 0 : index
    %4 = vector.load %arg9[%c0_4, %c0_5] : memref<4x1xf32, #tpu.memory_space<vmem>>, vector<4x1xf32>
    %5 = vector.broadcast %4 : vector<4x1xf32> to vector<4x128xf32>
    %6 = arith.addf %3, %5 : vector<4x128xf32>
    %cst_6 = arith.constant 0.000000e+00 : f32
    %7 = vector.broadcast %cst_6 : f32 to vector<4x128xf32>
    %8 = arith.maximumf %6, %7 : vector<4x128xf32>
    %c0_7 = arith.constant 0 : index
    %c0_8 = arith.constant 0 : index
    %9 = vector.load %arg5[%c0_7, %c0_8] : memref<4x16xf32, #tpu.memory_space<vmem>>, vector<4x16xf32>
    %c0_9 = arith.constant 0 : index
    %c0_10 = arith.constant 0 : index
    %c0_11 = arith.constant 0 : index
    %10 = vector.load %arg2[%c0_9, %c0_10, %c0_11] : memref<1x16x128xf32, #tpu.memory_space<vmem>>, vector<1x16x128xf32>
    %11 = vector.shape_cast %10 : vector<1x16x128xf32> to vector<16x128xf32>
    %cst_12 = arith.constant dense<0.000000e+00> : vector<4x128xf32>
    %12 = tpu.matmul %9, %11, %cst_12 {dimension_numbers = #tpu.dot_dimension_numbers<[1], [0], [0], [1], [0, 0, 1, 1], [], []>} : vector<4x16xf32>, vector<16x128xf32>, vector<4x128xf32> -> vector<4x128xf32>
    %c0_13 = arith.constant 0 : index
    %c0_14 = arith.constant 0 : index
    %13 = vector.load %arg10[%c0_13, %c0_14] : memref<4x1xf32, #tpu.memory_space<vmem>>, vector<4x1xf32>
    %14 = vector.broadcast %13 : vector<4x1xf32> to vector<4x128xf32>
    %15 = arith.addf %12, %14 : vector<4x128xf32>
    %c3_i32 = arith.constant 3 : i32
    %16 = tpu.dynamic_rotate %8 by %c3_i32 dim 1 : vector<4x128xf32>, i32 -> vector<4x128xf32>
    %c0_15 = arith.constant 0 : index
    %c0_16 = arith.constant 0 : index
    %c0_17 = arith.constant 0 : index
    %17 = vector.load %arg3[%c0_15, %c0_16, %c0_17] : memref<9x1x128xf32, #tpu.memory_space<vmem>>, vector<1x1x128xf32>
    %18 = vector.shape_cast %17 : vector<1x1x128xf32> to vector<1x128xf32>
    %19 = vector.broadcast %18 : vector<1x128xf32> to vector<4x128xf32>
    %20 = arith.mulf %16, %19 : vector<4x128xf32>
    %c0_18 = arith.constant 0 : index
    %c0_19 = arith.constant 0 : index
    %c0_20 = arith.constant 0 : index
    %21 = vector.load %arg6[%c0_18, %c0_19, %c0_20] : memref<9x4x4xf32, #tpu.memory_space<vmem>>, vector<1x4x4xf32>
    %22 = vector.shape_cast %21 : vector<1x4x4xf32> to vector<4x4xf32>
    %cst_21 = arith.constant dense<0.000000e+00> : vector<4x128xf32>
    %23 = tpu.matmul %22, %20, %cst_21 {dimension_numbers = #tpu.dot_dimension_numbers<[1], [0], [0], [1], [0, 0, 1, 1], [], []>} : vector<4x4xf32>, vector<4x128xf32>, vector<4x128xf32> -> vector<4x128xf32>
    %c2_i32 = arith.constant 2 : i32
    %24 = tpu.dynamic_rotate %8 by %c2_i32 dim 1 : vector<4x128xf32>, i32 -> vector<4x128xf32>
    %c1 = arith.constant 1 : index
    %c0_22 = arith.constant 0 : index
    %c0_23 = arith.constant 0 : index
    %25 = vector.load %arg3[%c1, %c0_22, %c0_23] : memref<9x1x128xf32, #tpu.memory_space<vmem>>, vector<1x1x128xf32>
    %26 = vector.shape_cast %25 : vector<1x1x128xf32> to vector<1x128xf32>
    %27 = vector.broadcast %26 : vector<1x128xf32> to vector<4x128xf32>
    %28 = arith.mulf %24, %27 : vector<4x128xf32>
    %c1_24 = arith.constant 1 : index
    %c0_25 = arith.constant 0 : index
    %c0_26 = arith.constant 0 : index
    %29 = vector.load %arg6[%c1_24, %c0_25, %c0_26] : memref<9x4x4xf32, #tpu.memory_space<vmem>>, vector<1x4x4xf32>
    %30 = vector.shape_cast %29 : vector<1x4x4xf32> to vector<4x4xf32>
    %cst_27 = arith.constant dense<0.000000e+00> : vector<4x128xf32>
    %31 = tpu.matmul %30, %28, %cst_27 {dimension_numbers = #tpu.dot_dimension_numbers<[1], [0], [0], [1], [0, 0, 1, 1], [], []>} : vector<4x4xf32>, vector<4x128xf32>, vector<4x128xf32> -> vector<4x128xf32>
    %32 = arith.addf %23, %31 : vector<4x128xf32>
    %c1_i32 = arith.constant 1 : i32
    %33 = tpu.dynamic_rotate %8 by %c1_i32 dim 1 : vector<4x128xf32>, i32 -> vector<4x128xf32>
    %c2 = arith.constant 2 : index
    %c0_28 = arith.constant 0 : index
    %c0_29 = arith.constant 0 : index
    %34 = vector.load %arg3[%c2, %c0_28, %c0_29] : memref<9x1x128xf32, #tpu.memory_space<vmem>>, vector<1x1x128xf32>
    %35 = vector.shape_cast %34 : vector<1x1x128xf32> to vector<1x128xf32>
    %36 = vector.broadcast %35 : vector<1x128xf32> to vector<4x128xf32>
    %37 = arith.mulf %33, %36 : vector<4x128xf32>
    %c2_30 = arith.constant 2 : index
    %c0_31 = arith.constant 0 : index
    %c0_32 = arith.constant 0 : index
    %38 = vector.load %arg6[%c2_30, %c0_31, %c0_32] : memref<9x4x4xf32, #tpu.memory_space<vmem>>, vector<1x4x4xf32>
    %39 = vector.shape_cast %38 : vector<1x4x4xf32> to vector<4x4xf32>
    %cst_33 = arith.constant dense<0.000000e+00> : vector<4x128xf32>
    %40 = tpu.matmul %39, %37, %cst_33 {dimension_numbers = #tpu.dot_dimension_numbers<[1], [0], [0], [1], [0, 0, 1, 1], [], []>} : vector<4x4xf32>, vector<4x128xf32>, vector<4x128xf32> -> vector<4x128xf32>
    %41 = arith.addf %32, %40 : vector<4x128xf32>
    %c1_i32_34 = arith.constant 1 : i32
    %42 = tpu.dynamic_rotate %8 by %c1_i32_34 dim 1 : vector<4x128xf32>, i32 -> vector<4x128xf32>
    %c3 = arith.constant 3 : index
    %c0_35 = arith.constant 0 : index
    %c0_36 = arith.constant 0 : index
    %43 = vector.load %arg3[%c3, %c0_35, %c0_36] : memref<9x1x128xf32, #tpu.memory_space<vmem>>, vector<1x1x128xf32>
    %44 = vector.shape_cast %43 : vector<1x1x128xf32> to vector<1x128xf32>
    %45 = vector.broadcast %44 : vector<1x128xf32> to vector<4x128xf32>
    %46 = arith.mulf %42, %45 : vector<4x128xf32>
    %c3_37 = arith.constant 3 : index
    %c0_38 = arith.constant 0 : index
    %c0_39 = arith.constant 0 : index
    %47 = vector.load %arg6[%c3_37, %c0_38, %c0_39] : memref<9x4x4xf32, #tpu.memory_space<vmem>>, vector<1x4x4xf32>
    %48 = vector.shape_cast %47 : vector<1x4x4xf32> to vector<4x4xf32>
    %cst_40 = arith.constant dense<0.000000e+00> : vector<4x128xf32>
    %49 = tpu.matmul %48, %46, %cst_40 {dimension_numbers = #tpu.dot_dimension_numbers<[1], [0], [0], [1], [0, 0, 1, 1], [], []>} : vector<4x4xf32>, vector<4x128xf32>, vector<4x128xf32> -> vector<4x128xf32>
    %50 = arith.addf %41, %49 : vector<4x128xf32>
    %c4 = arith.constant 4 : index
    %c0_41 = arith.constant 0 : index
    %c0_42 = arith.constant 0 : index
    %51 = vector.load %arg3[%c4, %c0_41, %c0_42] : memref<9x1x128xf32, #tpu.memory_space<vmem>>, vector<1x1x128xf32>
    %52 = vector.shape_cast %51 : vector<1x1x128xf32> to vector<1x128xf32>
    %53 = vector.broadcast %52 : vector<1x128xf32> to vector<4x128xf32>
    %54 = arith.mulf %8, %53 : vector<4x128xf32>
    %c4_43 = arith.constant 4 : index
    %c0_44 = arith.constant 0 : index
    %c0_45 = arith.constant 0 : index
    %55 = vector.load %arg6[%c4_43, %c0_44, %c0_45] : memref<9x4x4xf32, #tpu.memory_space<vmem>>, vector<1x4x4xf32>
    %56 = vector.shape_cast %55 : vector<1x4x4xf32> to vector<4x4xf32>
    %cst_46 = arith.constant dense<0.000000e+00> : vector<4x128xf32>
    %57 = tpu.matmul %56, %54, %cst_46 {dimension_numbers = #tpu.dot_dimension_numbers<[1], [0], [0], [1], [0, 0, 1, 1], [], []>} : vector<4x4xf32>, vector<4x128xf32>, vector<4x128xf32> -> vector<4x128xf32>
    %58 = arith.addf %50, %57 : vector<4x128xf32>
    %c127_i32 = arith.constant 127 : i32
    %59 = tpu.dynamic_rotate %8 by %c127_i32 dim 1 : vector<4x128xf32>, i32 -> vector<4x128xf32>
    %c5 = arith.constant 5 : index
    %c0_47 = arith.constant 0 : index
    %c0_48 = arith.constant 0 : index
    %60 = vector.load %arg3[%c5, %c0_47, %c0_48] : memref<9x1x128xf32, #tpu.memory_space<vmem>>, vector<1x1x128xf32>
    %61 = vector.shape_cast %60 : vector<1x1x128xf32> to vector<1x128xf32>
    %62 = vector.broadcast %61 : vector<1x128xf32> to vector<4x128xf32>
    %63 = arith.mulf %59, %62 : vector<4x128xf32>
    %c5_49 = arith.constant 5 : index
    %c0_50 = arith.constant 0 : index
    %c0_51 = arith.constant 0 : index
    %64 = vector.load %arg6[%c5_49, %c0_50, %c0_51] : memref<9x4x4xf32, #tpu.memory_space<vmem>>, vector<1x4x4xf32>
    %65 = vector.shape_cast %64 : vector<1x4x4xf32> to vector<4x4xf32>
    %cst_52 = arith.constant dense<0.000000e+00> : vector<4x128xf32>
    %66 = tpu.matmul %65, %63, %cst_52 {dimension_numbers = #tpu.dot_dimension_numbers<[1], [0], [0], [1], [0, 0, 1, 1], [], []>} : vector<4x4xf32>, vector<4x128xf32>, vector<4x128xf32> -> vector<4x128xf32>
    %67 = arith.addf %58, %66 : vector<4x128xf32>
    %c127_i32_53 = arith.constant 127 : i32
    %68 = tpu.dynamic_rotate %8 by %c127_i32_53 dim 1 : vector<4x128xf32>, i32 -> vector<4x128xf32>
    %c6 = arith.constant 6 : index
    %c0_54 = arith.constant 0 : index
    %c0_55 = arith.constant 0 : index
    %69 = vector.load %arg3[%c6, %c0_54, %c0_55] : memref<9x1x128xf32, #tpu.memory_space<vmem>>, vector<1x1x128xf32>
    %70 = vector.shape_cast %69 : vector<1x1x128xf32> to vector<1x128xf32>
    %71 = vector.broadcast %70 : vector<1x128xf32> to vector<4x128xf32>
    %72 = arith.mulf %68, %71 : vector<4x128xf32>
    %c6_56 = arith.constant 6 : index
    %c0_57 = arith.constant 0 : index
    %c0_58 = arith.constant 0 : index
    %73 = vector.load %arg6[%c6_56, %c0_57, %c0_58] : memref<9x4x4xf32, #tpu.memory_space<vmem>>, vector<1x4x4xf32>
    %74 = vector.shape_cast %73 : vector<1x4x4xf32> to vector<4x4xf32>
    %cst_59 = arith.constant dense<0.000000e+00> : vector<4x128xf32>
    %75 = tpu.matmul %74, %72, %cst_59 {dimension_numbers = #tpu.dot_dimension_numbers<[1], [0], [0], [1], [0, 0, 1, 1], [], []>} : vector<4x4xf32>, vector<4x128xf32>, vector<4x128xf32> -> vector<4x128xf32>
    %76 = arith.addf %67, %75 : vector<4x128xf32>
    %c126_i32 = arith.constant 126 : i32
    %77 = tpu.dynamic_rotate %8 by %c126_i32 dim 1 : vector<4x128xf32>, i32 -> vector<4x128xf32>
    %c7 = arith.constant 7 : index
    %c0_60 = arith.constant 0 : index
    %c0_61 = arith.constant 0 : index
    %78 = vector.load %arg3[%c7, %c0_60, %c0_61] : memref<9x1x128xf32, #tpu.memory_space<vmem>>, vector<1x1x128xf32>
    %79 = vector.shape_cast %78 : vector<1x1x128xf32> to vector<1x128xf32>
    %80 = vector.broadcast %79 : vector<1x128xf32> to vector<4x128xf32>
    %81 = arith.mulf %77, %80 : vector<4x128xf32>
    %c7_62 = arith.constant 7 : index
    %c0_63 = arith.constant 0 : index
    %c0_64 = arith.constant 0 : index
    %82 = vector.load %arg6[%c7_62, %c0_63, %c0_64] : memref<9x4x4xf32, #tpu.memory_space<vmem>>, vector<1x4x4xf32>
    %83 = vector.shape_cast %82 : vector<1x4x4xf32> to vector<4x4xf32>
    %cst_65 = arith.constant dense<0.000000e+00> : vector<4x128xf32>
    %84 = tpu.matmul %83, %81, %cst_65 {dimension_numbers = #tpu.dot_dimension_numbers<[1], [0], [0], [1], [0, 0, 1, 1], [], []>} : vector<4x4xf32>, vector<4x128xf32>, vector<4x128xf32> -> vector<4x128xf32>
    %85 = arith.addf %76, %84 : vector<4x128xf32>
    %c125_i32 = arith.constant 125 : i32
    %86 = tpu.dynamic_rotate %8 by %c125_i32 dim 1 : vector<4x128xf32>, i32 -> vector<4x128xf32>
    %c8 = arith.constant 8 : index
    %c0_66 = arith.constant 0 : index
    %c0_67 = arith.constant 0 : index
    %87 = vector.load %arg3[%c8, %c0_66, %c0_67] : memref<9x1x128xf32, #tpu.memory_space<vmem>>, vector<1x1x128xf32>
    %88 = vector.shape_cast %87 : vector<1x1x128xf32> to vector<1x128xf32>
    %89 = vector.broadcast %88 : vector<1x128xf32> to vector<4x128xf32>
    %90 = arith.mulf %86, %89 : vector<4x128xf32>
    %c8_68 = arith.constant 8 : index
    %c0_69 = arith.constant 0 : index
    %c0_70 = arith.constant 0 : index
    %91 = vector.load %arg6[%c8_68, %c0_69, %c0_70] : memref<9x4x4xf32, #tpu.memory_space<vmem>>, vector<1x4x4xf32>
    %92 = vector.shape_cast %91 : vector<1x4x4xf32> to vector<4x4xf32>
    %cst_71 = arith.constant dense<0.000000e+00> : vector<4x128xf32>
    %93 = tpu.matmul %92, %90, %cst_71 {dimension_numbers = #tpu.dot_dimension_numbers<[1], [0], [0], [1], [0, 0, 1, 1], [], []>} : vector<4x4xf32>, vector<4x128xf32>, vector<4x128xf32> -> vector<4x128xf32>
    %94 = arith.addf %85, %93 : vector<4x128xf32>
    %c0_72 = arith.constant 0 : index
    %c0_73 = arith.constant 0 : index
    %95 = vector.load %arg11[%c0_72, %c0_73] : memref<4x1xf32, #tpu.memory_space<vmem>>, vector<4x1xf32>
    %96 = vector.broadcast %95 : vector<4x1xf32> to vector<4x128xf32>
    %97 = arith.addf %94, %96 : vector<4x128xf32>
    %98 = arith.addf %97, %15 : vector<4x128xf32>
    %cst_74 = arith.constant 0.000000e+00 : f32
    %99 = vector.broadcast %cst_74 : f32 to vector<4x128xf32>
    %100 = arith.maximumf %98, %99 : vector<4x128xf32>
    %c3_i32_75 = arith.constant 3 : i32
    %101 = tpu.dynamic_rotate %100 by %c3_i32_75 dim 1 : vector<4x128xf32>, i32 -> vector<4x128xf32>
    %c0_76 = arith.constant 0 : index
    %c0_77 = arith.constant 0 : index
    %c0_78 = arith.constant 0 : index
    %102 = vector.load %arg3[%c0_76, %c0_77, %c0_78] : memref<9x1x128xf32, #tpu.memory_space<vmem>>, vector<1x1x128xf32>
    %103 = vector.shape_cast %102 : vector<1x1x128xf32> to vector<1x128xf32>
    %104 = vector.broadcast %103 : vector<1x128xf32> to vector<4x128xf32>
    %105 = arith.mulf %101, %104 : vector<4x128xf32>
    %c0_79 = arith.constant 0 : index
    %c0_80 = arith.constant 0 : index
    %c0_81 = arith.constant 0 : index
    %106 = vector.load %arg7[%c0_79, %c0_80, %c0_81] : memref<9x4x4xf32, #tpu.memory_space<vmem>>, vector<1x4x4xf32>
    %107 = vector.shape_cast %106 : vector<1x4x4xf32> to vector<4x4xf32>
    %cst_82 = arith.constant dense<0.000000e+00> : vector<4x128xf32>
    %108 = tpu.matmul %107, %105, %cst_82 {dimension_numbers = #tpu.dot_dimension_numbers<[1], [0], [0], [1], [0, 0, 1, 1], [], []>} : vector<4x4xf32>, vector<4x128xf32>, vector<4x128xf32> -> vector<4x128xf32>
    %c2_i32_83 = arith.constant 2 : i32
    %109 = tpu.dynamic_rotate %100 by %c2_i32_83 dim 1 : vector<4x128xf32>, i32 -> vector<4x128xf32>
    %c1_84 = arith.constant 1 : index
    %c0_85 = arith.constant 0 : index
    %c0_86 = arith.constant 0 : index
    %110 = vector.load %arg3[%c1_84, %c0_85, %c0_86] : memref<9x1x128xf32, #tpu.memory_space<vmem>>, vector<1x1x128xf32>
    %111 = vector.shape_cast %110 : vector<1x1x128xf32> to vector<1x128xf32>
    %112 = vector.broadcast %111 : vector<1x128xf32> to vector<4x128xf32>
    %113 = arith.mulf %109, %112 : vector<4x128xf32>
    %c1_87 = arith.constant 1 : index
    %c0_88 = arith.constant 0 : index
    %c0_89 = arith.constant 0 : index
    %114 = vector.load %arg7[%c1_87, %c0_88, %c0_89] : memref<9x4x4xf32, #tpu.memory_space<vmem>>, vector<1x4x4xf32>
    %115 = vector.shape_cast %114 : vector<1x4x4xf32> to vector<4x4xf32>
    %cst_90 = arith.constant dense<0.000000e+00> : vector<4x128xf32>
    %116 = tpu.matmul %115, %113, %cst_90 {dimension_numbers = #tpu.dot_dimension_numbers<[1], [0], [0], [1], [0, 0, 1, 1], [], []>} : vector<4x4xf32>, vector<4x128xf32>, vector<4x128xf32> -> vector<4x128xf32>
    %117 = arith.addf %108, %116 : vector<4x128xf32>
    %c1_i32_91 = arith.constant 1 : i32
    %118 = tpu.dynamic_rotate %100 by %c1_i32_91 dim 1 : vector<4x128xf32>, i32 -> vector<4x128xf32>
    %c2_92 = arith.constant 2 : index
    %c0_93 = arith.constant 0 : index
    %c0_94 = arith.constant 0 : index
    %119 = vector.load %arg3[%c2_92, %c0_93, %c0_94] : memref<9x1x128xf32, #tpu.memory_space<vmem>>, vector<1x1x128xf32>
    %120 = vector.shape_cast %119 : vector<1x1x128xf32> to vector<1x128xf32>
    %121 = vector.broadcast %120 : vector<1x128xf32> to vector<4x128xf32>
    %122 = arith.mulf %118, %121 : vector<4x128xf32>
    %c2_95 = arith.constant 2 : index
    %c0_96 = arith.constant 0 : index
    %c0_97 = arith.constant 0 : index
    %123 = vector.load %arg7[%c2_95, %c0_96, %c0_97] : memref<9x4x4xf32, #tpu.memory_space<vmem>>, vector<1x4x4xf32>
    %124 = vector.shape_cast %123 : vector<1x4x4xf32> to vector<4x4xf32>
    %cst_98 = arith.constant dense<0.000000e+00> : vector<4x128xf32>
    %125 = tpu.matmul %124, %122, %cst_98 {dimension_numbers = #tpu.dot_dimension_numbers<[1], [0], [0], [1], [0, 0, 1, 1], [], []>} : vector<4x4xf32>, vector<4x128xf32>, vector<4x128xf32> -> vector<4x128xf32>
    %126 = arith.addf %117, %125 : vector<4x128xf32>
    %c1_i32_99 = arith.constant 1 : i32
    %127 = tpu.dynamic_rotate %100 by %c1_i32_99 dim 1 : vector<4x128xf32>, i32 -> vector<4x128xf32>
    %c3_100 = arith.constant 3 : index
    %c0_101 = arith.constant 0 : index
    %c0_102 = arith.constant 0 : index
    %128 = vector.load %arg3[%c3_100, %c0_101, %c0_102] : memref<9x1x128xf32, #tpu.memory_space<vmem>>, vector<1x1x128xf32>
    %129 = vector.shape_cast %128 : vector<1x1x128xf32> to vector<1x128xf32>
    %130 = vector.broadcast %129 : vector<1x128xf32> to vector<4x128xf32>
    %131 = arith.mulf %127, %130 : vector<4x128xf32>
    %c3_103 = arith.constant 3 : index
    %c0_104 = arith.constant 0 : index
    %c0_105 = arith.constant 0 : index
    %132 = vector.load %arg7[%c3_103, %c0_104, %c0_105] : memref<9x4x4xf32, #tpu.memory_space<vmem>>, vector<1x4x4xf32>
    %133 = vector.shape_cast %132 : vector<1x4x4xf32> to vector<4x4xf32>
    %cst_106 = arith.constant dense<0.000000e+00> : vector<4x128xf32>
    %134 = tpu.matmul %133, %131, %cst_106 {dimension_numbers = #tpu.dot_dimension_numbers<[1], [0], [0], [1], [0, 0, 1, 1], [], []>} : vector<4x4xf32>, vector<4x128xf32>, vector<4x128xf32> -> vector<4x128xf32>
    %135 = arith.addf %126, %134 : vector<4x128xf32>
    %c4_107 = arith.constant 4 : index
    %c0_108 = arith.constant 0 : index
    %c0_109 = arith.constant 0 : index
    %136 = vector.load %arg3[%c4_107, %c0_108, %c0_109] : memref<9x1x128xf32, #tpu.memory_space<vmem>>, vector<1x1x128xf32>
    %137 = vector.shape_cast %136 : vector<1x1x128xf32> to vector<1x128xf32>
    %138 = vector.broadcast %137 : vector<1x128xf32> to vector<4x128xf32>
    %139 = arith.mulf %100, %138 : vector<4x128xf32>
    %c4_110 = arith.constant 4 : index
    %c0_111 = arith.constant 0 : index
    %c0_112 = arith.constant 0 : index
    %140 = vector.load %arg7[%c4_110, %c0_111, %c0_112] : memref<9x4x4xf32, #tpu.memory_space<vmem>>, vector<1x4x4xf32>
    %141 = vector.shape_cast %140 : vector<1x4x4xf32> to vector<4x4xf32>
    %cst_113 = arith.constant dense<0.000000e+00> : vector<4x128xf32>
    %142 = tpu.matmul %141, %139, %cst_113 {dimension_numbers = #tpu.dot_dimension_numbers<[1], [0], [0], [1], [0, 0, 1, 1], [], []>} : vector<4x4xf32>, vector<4x128xf32>, vector<4x128xf32> -> vector<4x128xf32>
    %143 = arith.addf %135, %142 : vector<4x128xf32>
    %c127_i32_114 = arith.constant 127 : i32
    %144 = tpu.dynamic_rotate %100 by %c127_i32_114 dim 1 : vector<4x128xf32>, i32 -> vector<4x128xf32>
    %c5_115 = arith.constant 5 : index
    %c0_116 = arith.constant 0 : index
    %c0_117 = arith.constant 0 : index
    %145 = vector.load %arg3[%c5_115, %c0_116, %c0_117] : memref<9x1x128xf32, #tpu.memory_space<vmem>>, vector<1x1x128xf32>
    %146 = vector.shape_cast %145 : vector<1x1x128xf32> to vector<1x128xf32>
    %147 = vector.broadcast %146 : vector<1x128xf32> to vector<4x128xf32>
    %148 = arith.mulf %144, %147 : vector<4x128xf32>
    %c5_118 = arith.constant 5 : index
    %c0_119 = arith.constant 0 : index
    %c0_120 = arith.constant 0 : index
    %149 = vector.load %arg7[%c5_118, %c0_119, %c0_120] : memref<9x4x4xf32, #tpu.memory_space<vmem>>, vector<1x4x4xf32>
    %150 = vector.shape_cast %149 : vector<1x4x4xf32> to vector<4x4xf32>
    %cst_121 = arith.constant dense<0.000000e+00> : vector<4x128xf32>
    %151 = tpu.matmul %150, %148, %cst_121 {dimension_numbers = #tpu.dot_dimension_numbers<[1], [0], [0], [1], [0, 0, 1, 1], [], []>} : vector<4x4xf32>, vector<4x128xf32>, vector<4x128xf32> -> vector<4x128xf32>
    %152 = arith.addf %143, %151 : vector<4x128xf32>
    %c127_i32_122 = arith.constant 127 : i32
    %153 = tpu.dynamic_rotate %100 by %c127_i32_122 dim 1 : vector<4x128xf32>, i32 -> vector<4x128xf32>
    %c6_123 = arith.constant 6 : index
    %c0_124 = arith.constant 0 : index
    %c0_125 = arith.constant 0 : index
    %154 = vector.load %arg3[%c6_123, %c0_124, %c0_125] : memref<9x1x128xf32, #tpu.memory_space<vmem>>, vector<1x1x128xf32>
    %155 = vector.shape_cast %154 : vector<1x1x128xf32> to vector<1x128xf32>
    %156 = vector.broadcast %155 : vector<1x128xf32> to vector<4x128xf32>
    %157 = arith.mulf %153, %156 : vector<4x128xf32>
    %c6_126 = arith.constant 6 : index
    %c0_127 = arith.constant 0 : index
    %c0_128 = arith.constant 0 : index
    %158 = vector.load %arg7[%c6_126, %c0_127, %c0_128] : memref<9x4x4xf32, #tpu.memory_space<vmem>>, vector<1x4x4xf32>
    %159 = vector.shape_cast %158 : vector<1x4x4xf32> to vector<4x4xf32>
    %cst_129 = arith.constant dense<0.000000e+00> : vector<4x128xf32>
    %160 = tpu.matmul %159, %157, %cst_129 {dimension_numbers = #tpu.dot_dimension_numbers<[1], [0], [0], [1], [0, 0, 1, 1], [], []>} : vector<4x4xf32>, vector<4x128xf32>, vector<4x128xf32> -> vector<4x128xf32>
    %161 = arith.addf %152, %160 : vector<4x128xf32>
    %c126_i32_130 = arith.constant 126 : i32
    %162 = tpu.dynamic_rotate %100 by %c126_i32_130 dim 1 : vector<4x128xf32>, i32 -> vector<4x128xf32>
    %c7_131 = arith.constant 7 : index
    %c0_132 = arith.constant 0 : index
    %c0_133 = arith.constant 0 : index
    %163 = vector.load %arg3[%c7_131, %c0_132, %c0_133] : memref<9x1x128xf32, #tpu.memory_space<vmem>>, vector<1x1x128xf32>
    %164 = vector.shape_cast %163 : vector<1x1x128xf32> to vector<1x128xf32>
    %165 = vector.broadcast %164 : vector<1x128xf32> to vector<4x128xf32>
    %166 = arith.mulf %162, %165 : vector<4x128xf32>
    %c7_134 = arith.constant 7 : index
    %c0_135 = arith.constant 0 : index
    %c0_136 = arith.constant 0 : index
    %167 = vector.load %arg7[%c7_134, %c0_135, %c0_136] : memref<9x4x4xf32, #tpu.memory_space<vmem>>, vector<1x4x4xf32>
    %168 = vector.shape_cast %167 : vector<1x4x4xf32> to vector<4x4xf32>
    %cst_137 = arith.constant dense<0.000000e+00> : vector<4x128xf32>
    %169 = tpu.matmul %168, %166, %cst_137 {dimension_numbers = #tpu.dot_dimension_numbers<[1], [0], [0], [1], [0, 0, 1, 1], [], []>} : vector<4x4xf32>, vector<4x128xf32>, vector<4x128xf32> -> vector<4x128xf32>
    %170 = arith.addf %161, %169 : vector<4x128xf32>
    %c125_i32_138 = arith.constant 125 : i32
    %171 = tpu.dynamic_rotate %100 by %c125_i32_138 dim 1 : vector<4x128xf32>, i32 -> vector<4x128xf32>
    %c8_139 = arith.constant 8 : index
    %c0_140 = arith.constant 0 : index
    %c0_141 = arith.constant 0 : index
    %172 = vector.load %arg3[%c8_139, %c0_140, %c0_141] : memref<9x1x128xf32, #tpu.memory_space<vmem>>, vector<1x1x128xf32>
    %173 = vector.shape_cast %172 : vector<1x1x128xf32> to vector<1x128xf32>
    %174 = vector.broadcast %173 : vector<1x128xf32> to vector<4x128xf32>
    %175 = arith.mulf %171, %174 : vector<4x128xf32>
    %c8_142 = arith.constant 8 : index
    %c0_143 = arith.constant 0 : index
    %c0_144 = arith.constant 0 : index
    %176 = vector.load %arg7[%c8_142, %c0_143, %c0_144] : memref<9x4x4xf32, #tpu.memory_space<vmem>>, vector<1x4x4xf32>
    %177 = vector.shape_cast %176 : vector<1x4x4xf32> to vector<4x4xf32>
    %cst_145 = arith.constant dense<0.000000e+00> : vector<4x128xf32>
    %178 = tpu.matmul %177, %175, %cst_145 {dimension_numbers = #tpu.dot_dimension_numbers<[1], [0], [0], [1], [0, 0, 1, 1], [], []>} : vector<4x4xf32>, vector<4x128xf32>, vector<4x128xf32> -> vector<4x128xf32>
    %179 = arith.addf %170, %178 : vector<4x128xf32>
    %c0_146 = arith.constant 0 : index
    %c0_147 = arith.constant 0 : index
    %180 = vector.load %arg12[%c0_146, %c0_147] : memref<4x1xf32, #tpu.memory_space<vmem>>, vector<4x1xf32>
    %181 = vector.broadcast %180 : vector<4x1xf32> to vector<4x128xf32>
    %182 = arith.addf %179, %181 : vector<4x128xf32>
    %cst_148 = arith.constant 0.000000e+00 : f32
    %183 = vector.broadcast %cst_148 : f32 to vector<4x128xf32>
    %184 = arith.maximumf %182, %183 : vector<4x128xf32>
    %c3_i32_149 = arith.constant 3 : i32
    %185 = tpu.dynamic_rotate %184 by %c3_i32_149 dim 1 : vector<4x128xf32>, i32 -> vector<4x128xf32>
    %c0_150 = arith.constant 0 : index
    %c0_151 = arith.constant 0 : index
    %c0_152 = arith.constant 0 : index
    %186 = vector.load %arg3[%c0_150, %c0_151, %c0_152] : memref<9x1x128xf32, #tpu.memory_space<vmem>>, vector<1x1x128xf32>
    %187 = vector.shape_cast %186 : vector<1x1x128xf32> to vector<1x128xf32>
    %188 = vector.broadcast %187 : vector<1x128xf32> to vector<4x128xf32>
    %189 = arith.mulf %185, %188 : vector<4x128xf32>
    %c0_153 = arith.constant 0 : index
    %c0_154 = arith.constant 0 : index
    %c0_155 = arith.constant 0 : index
    %190 = vector.load %arg8[%c0_153, %c0_154, %c0_155] : memref<9x4x4xf32, #tpu.memory_space<vmem>>, vector<1x4x4xf32>
    %191 = vector.shape_cast %190 : vector<1x4x4xf32> to vector<4x4xf32>
    %cst_156 = arith.constant dense<0.000000e+00> : vector<4x128xf32>
    %192 = tpu.matmul %191, %189, %cst_156 {dimension_numbers = #tpu.dot_dimension_numbers<[1], [0], [0], [1], [0, 0, 1, 1], [], []>} : vector<4x4xf32>, vector<4x128xf32>, vector<4x128xf32> -> vector<4x128xf32>
    %c2_i32_157 = arith.constant 2 : i32
    %193 = tpu.dynamic_rotate %184 by %c2_i32_157 dim 1 : vector<4x128xf32>, i32 -> vector<4x128xf32>
    %c1_158 = arith.constant 1 : index
    %c0_159 = arith.constant 0 : index
    %c0_160 = arith.constant 0 : index
    %194 = vector.load %arg3[%c1_158, %c0_159, %c0_160] : memref<9x1x128xf32, #tpu.memory_space<vmem>>, vector<1x1x128xf32>
    %195 = vector.shape_cast %194 : vector<1x1x128xf32> to vector<1x128xf32>
    %196 = vector.broadcast %195 : vector<1x128xf32> to vector<4x128xf32>
    %197 = arith.mulf %193, %196 : vector<4x128xf32>
    %c1_161 = arith.constant 1 : index
    %c0_162 = arith.constant 0 : index
    %c0_163 = arith.constant 0 : index
    %198 = vector.load %arg8[%c1_161, %c0_162, %c0_163] : memref<9x4x4xf32, #tpu.memory_space<vmem>>, vector<1x4x4xf32>
    %199 = vector.shape_cast %198 : vector<1x4x4xf32> to vector<4x4xf32>
    %cst_164 = arith.constant dense<0.000000e+00> : vector<4x128xf32>
    %200 = tpu.matmul %199, %197, %cst_164 {dimension_numbers = #tpu.dot_dimension_numbers<[1], [0], [0], [1], [0, 0, 1, 1], [], []>} : vector<4x4xf32>, vector<4x128xf32>, vector<4x128xf32> -> vector<4x128xf32>
    %201 = arith.addf %192, %200 : vector<4x128xf32>
    %c1_i32_165 = arith.constant 1 : i32
    %202 = tpu.dynamic_rotate %184 by %c1_i32_165 dim 1 : vector<4x128xf32>, i32 -> vector<4x128xf32>
    %c2_166 = arith.constant 2 : index
    %c0_167 = arith.constant 0 : index
    %c0_168 = arith.constant 0 : index
    %203 = vector.load %arg3[%c2_166, %c0_167, %c0_168] : memref<9x1x128xf32, #tpu.memory_space<vmem>>, vector<1x1x128xf32>
    %204 = vector.shape_cast %203 : vector<1x1x128xf32> to vector<1x128xf32>
    %205 = vector.broadcast %204 : vector<1x128xf32> to vector<4x128xf32>
    %206 = arith.mulf %202, %205 : vector<4x128xf32>
    %c2_169 = arith.constant 2 : index
    %c0_170 = arith.constant 0 : index
    %c0_171 = arith.constant 0 : index
    %207 = vector.load %arg8[%c2_169, %c0_170, %c0_171] : memref<9x4x4xf32, #tpu.memory_space<vmem>>, vector<1x4x4xf32>
    %208 = vector.shape_cast %207 : vector<1x4x4xf32> to vector<4x4xf32>
    %cst_172 = arith.constant dense<0.000000e+00> : vector<4x128xf32>
    %209 = tpu.matmul %208, %206, %cst_172 {dimension_numbers = #tpu.dot_dimension_numbers<[1], [0], [0], [1], [0, 0, 1, 1], [], []>} : vector<4x4xf32>, vector<4x128xf32>, vector<4x128xf32> -> vector<4x128xf32>
    %210 = arith.addf %201, %209 : vector<4x128xf32>
    %c1_i32_173 = arith.constant 1 : i32
    %211 = tpu.dynamic_rotate %184 by %c1_i32_173 dim 1 : vector<4x128xf32>, i32 -> vector<4x128xf32>
    %c3_174 = arith.constant 3 : index
    %c0_175 = arith.constant 0 : index
    %c0_176 = arith.constant 0 : index
    %212 = vector.load %arg3[%c3_174, %c0_175, %c0_176] : memref<9x1x128xf32, #tpu.memory_space<vmem>>, vector<1x1x128xf32>
    %213 = vector.shape_cast %212 : vector<1x1x128xf32> to vector<1x128xf32>
    %214 = vector.broadcast %213 : vector<1x128xf32> to vector<4x128xf32>
    %215 = arith.mulf %211, %214 : vector<4x128xf32>
    %c3_177 = arith.constant 3 : index
    %c0_178 = arith.constant 0 : index
    %c0_179 = arith.constant 0 : index
    %216 = vector.load %arg8[%c3_177, %c0_178, %c0_179] : memref<9x4x4xf32, #tpu.memory_space<vmem>>, vector<1x4x4xf32>
    %217 = vector.shape_cast %216 : vector<1x4x4xf32> to vector<4x4xf32>
    %cst_180 = arith.constant dense<0.000000e+00> : vector<4x128xf32>
    %218 = tpu.matmul %217, %215, %cst_180 {dimension_numbers = #tpu.dot_dimension_numbers<[1], [0], [0], [1], [0, 0, 1, 1], [], []>} : vector<4x4xf32>, vector<4x128xf32>, vector<4x128xf32> -> vector<4x128xf32>
    %219 = arith.addf %210, %218 : vector<4x128xf32>
    %c4_181 = arith.constant 4 : index
    %c0_182 = arith.constant 0 : index
    %c0_183 = arith.constant 0 : index
    %220 = vector.load %arg3[%c4_181, %c0_182, %c0_183] : memref<9x1x128xf32, #tpu.memory_space<vmem>>, vector<1x1x128xf32>
    %221 = vector.shape_cast %220 : vector<1x1x128xf32> to vector<1x128xf32>
    %222 = vector.broadcast %221 : vector<1x128xf32> to vector<4x128xf32>
    %223 = arith.mulf %184, %222 : vector<4x128xf32>
    %c4_184 = arith.constant 4 : index
    %c0_185 = arith.constant 0 : index
    %c0_186 = arith.constant 0 : index
    %224 = vector.load %arg8[%c4_184, %c0_185, %c0_186] : memref<9x4x4xf32, #tpu.memory_space<vmem>>, vector<1x4x4xf32>
    %225 = vector.shape_cast %224 : vector<1x4x4xf32> to vector<4x4xf32>
    %cst_187 = arith.constant dense<0.000000e+00> : vector<4x128xf32>
    %226 = tpu.matmul %225, %223, %cst_187 {dimension_numbers = #tpu.dot_dimension_numbers<[1], [0], [0], [1], [0, 0, 1, 1], [], []>} : vector<4x4xf32>, vector<4x128xf32>, vector<4x128xf32> -> vector<4x128xf32>
    %227 = arith.addf %219, %226 : vector<4x128xf32>
    %c127_i32_188 = arith.constant 127 : i32
    %228 = tpu.dynamic_rotate %184 by %c127_i32_188 dim 1 : vector<4x128xf32>, i32 -> vector<4x128xf32>
    %c5_189 = arith.constant 5 : index
    %c0_190 = arith.constant 0 : index
    %c0_191 = arith.constant 0 : index
    %229 = vector.load %arg3[%c5_189, %c0_190, %c0_191] : memref<9x1x128xf32, #tpu.memory_space<vmem>>, vector<1x1x128xf32>
    %230 = vector.shape_cast %229 : vector<1x1x128xf32> to vector<1x128xf32>
    %231 = vector.broadcast %230 : vector<1x128xf32> to vector<4x128xf32>
    %232 = arith.mulf %228, %231 : vector<4x128xf32>
    %c5_192 = arith.constant 5 : index
    %c0_193 = arith.constant 0 : index
    %c0_194 = arith.constant 0 : index
    %233 = vector.load %arg8[%c5_192, %c0_193, %c0_194] : memref<9x4x4xf32, #tpu.memory_space<vmem>>, vector<1x4x4xf32>
    %234 = vector.shape_cast %233 : vector<1x4x4xf32> to vector<4x4xf32>
    %cst_195 = arith.constant dense<0.000000e+00> : vector<4x128xf32>
    %235 = tpu.matmul %234, %232, %cst_195 {dimension_numbers = #tpu.dot_dimension_numbers<[1], [0], [0], [1], [0, 0, 1, 1], [], []>} : vector<4x4xf32>, vector<4x128xf32>, vector<4x128xf32> -> vector<4x128xf32>
    %236 = arith.addf %227, %235 : vector<4x128xf32>
    %c127_i32_196 = arith.constant 127 : i32
    %237 = tpu.dynamic_rotate %184 by %c127_i32_196 dim 1 : vector<4x128xf32>, i32 -> vector<4x128xf32>
    %c6_197 = arith.constant 6 : index
    %c0_198 = arith.constant 0 : index
    %c0_199 = arith.constant 0 : index
    %238 = vector.load %arg3[%c6_197, %c0_198, %c0_199] : memref<9x1x128xf32, #tpu.memory_space<vmem>>, vector<1x1x128xf32>
    %239 = vector.shape_cast %238 : vector<1x1x128xf32> to vector<1x128xf32>
    %240 = vector.broadcast %239 : vector<1x128xf32> to vector<4x128xf32>
    %241 = arith.mulf %237, %240 : vector<4x128xf32>
    %c6_200 = arith.constant 6 : index
    %c0_201 = arith.constant 0 : index
    %c0_202 = arith.constant 0 : index
    %242 = vector.load %arg8[%c6_200, %c0_201, %c0_202] : memref<9x4x4xf32, #tpu.memory_space<vmem>>, vector<1x4x4xf32>
    %243 = vector.shape_cast %242 : vector<1x4x4xf32> to vector<4x4xf32>
    %cst_203 = arith.constant dense<0.000000e+00> : vector<4x128xf32>
    %244 = tpu.matmul %243, %241, %cst_203 {dimension_numbers = #tpu.dot_dimension_numbers<[1], [0], [0], [1], [0, 0, 1, 1], [], []>} : vector<4x4xf32>, vector<4x128xf32>, vector<4x128xf32> -> vector<4x128xf32>
    %245 = arith.addf %236, %244 : vector<4x128xf32>
    %c126_i32_204 = arith.constant 126 : i32
    %246 = tpu.dynamic_rotate %184 by %c126_i32_204 dim 1 : vector<4x128xf32>, i32 -> vector<4x128xf32>
    %c7_205 = arith.constant 7 : index
    %c0_206 = arith.constant 0 : index
    %c0_207 = arith.constant 0 : index
    %247 = vector.load %arg3[%c7_205, %c0_206, %c0_207] : memref<9x1x128xf32, #tpu.memory_space<vmem>>, vector<1x1x128xf32>
    %248 = vector.shape_cast %247 : vector<1x1x128xf32> to vector<1x128xf32>
    %249 = vector.broadcast %248 : vector<1x128xf32> to vector<4x128xf32>
    %250 = arith.mulf %246, %249 : vector<4x128xf32>
    %c7_208 = arith.constant 7 : index
    %c0_209 = arith.constant 0 : index
    %c0_210 = arith.constant 0 : index
    %251 = vector.load %arg8[%c7_208, %c0_209, %c0_210] : memref<9x4x4xf32, #tpu.memory_space<vmem>>, vector<1x4x4xf32>
    %252 = vector.shape_cast %251 : vector<1x4x4xf32> to vector<4x4xf32>
    %cst_211 = arith.constant dense<0.000000e+00> : vector<4x128xf32>
    %253 = tpu.matmul %252, %250, %cst_211 {dimension_numbers = #tpu.dot_dimension_numbers<[1], [0], [0], [1], [0, 0, 1, 1], [], []>} : vector<4x4xf32>, vector<4x128xf32>, vector<4x128xf32> -> vector<4x128xf32>
    %254 = arith.addf %245, %253 : vector<4x128xf32>
    %c125_i32_212 = arith.constant 125 : i32
    %255 = tpu.dynamic_rotate %184 by %c125_i32_212 dim 1 : vector<4x128xf32>, i32 -> vector<4x128xf32>
    %c8_213 = arith.constant 8 : index
    %c0_214 = arith.constant 0 : index
    %c0_215 = arith.constant 0 : index
    %256 = vector.load %arg3[%c8_213, %c0_214, %c0_215] : memref<9x1x128xf32, #tpu.memory_space<vmem>>, vector<1x1x128xf32>
    %257 = vector.shape_cast %256 : vector<1x1x128xf32> to vector<1x128xf32>
    %258 = vector.broadcast %257 : vector<1x128xf32> to vector<4x128xf32>
    %259 = arith.mulf %255, %258 : vector<4x128xf32>
    %c8_216 = arith.constant 8 : index
    %c0_217 = arith.constant 0 : index
    %c0_218 = arith.constant 0 : index
    %260 = vector.load %arg8[%c8_216, %c0_217, %c0_218] : memref<9x4x4xf32, #tpu.memory_space<vmem>>, vector<1x4x4xf32>
    %261 = vector.shape_cast %260 : vector<1x4x4xf32> to vector<4x4xf32>
    %cst_219 = arith.constant dense<0.000000e+00> : vector<4x128xf32>
    %262 = tpu.matmul %261, %259, %cst_219 {dimension_numbers = #tpu.dot_dimension_numbers<[1], [0], [0], [1], [0, 0, 1, 1], [], []>} : vector<4x4xf32>, vector<4x128xf32>, vector<4x128xf32> -> vector<4x128xf32>
    %263 = arith.addf %254, %262 : vector<4x128xf32>
    %c0_220 = arith.constant 0 : index
    %c0_221 = arith.constant 0 : index
    %264 = vector.load %arg13[%c0_220, %c0_221] : memref<4x1xf32, #tpu.memory_space<vmem>>, vector<4x1xf32>
    %265 = vector.broadcast %264 : vector<4x1xf32> to vector<4x128xf32>
    %266 = arith.addf %263, %265 : vector<4x128xf32>
    %267 = arith.addf %266, %100 : vector<4x128xf32>
    %cst_222 = arith.constant 0.000000e+00 : f32
    %268 = vector.broadcast %cst_222 : f32 to vector<4x128xf32>
    %269 = arith.maximumf %267, %268 : vector<4x128xf32>
    %c0_223 = arith.constant 0 : index
    %c0_224 = arith.constant 0 : index
    %c0_225 = arith.constant 0 : index
    %270 = vector.load %arg14[%c0_223, %c0_224, %c0_225] : memref<1x4x128xf32, #tpu.memory_space<vmem>>, vector<1x4x128xf32>
    %271 = vector.shape_cast %270 : vector<1x4x128xf32> to vector<4x128xf32>
    %272 = vector.shape_cast %269 : vector<4x128xf32> to vector<1x4x128xf32>
    tpu.vector_store %arg14[%c0_223, %c0_224, %c0_225], %272 {strides = array<i32>} : memref<1x4x128xf32, #tpu.memory_space<vmem>>, vector<1x4x128xf32>,
    return
  }
  func.func @transform_0(%arg0: i32) -> (i32, i32, i32) {
    %c0_i32 = arith.constant 0 : i32
    %c0_i32_0 = arith.constant 0 : i32
    %c0_i32_1 = arith.constant 0 : i32
    return %arg0, %c0_i32, %c0_i32_0 : i32, i32, i32
  }
  func.func @transform_1(%arg0: i32) -> (i32, i32, i32) {
    %c0_i32 = arith.constant 0 : i32
    %c0_i32_0 = arith.constant 0 : i32
    %c0_i32_1 = arith.constant 0 : i32
    return %arg0, %c0_i32, %c0_i32_0 : i32, i32, i32
  }
  func.func @transform_2(%arg0: i32) -> (i32, i32, i32) {
    %c0_i32 = arith.constant 0 : i32
    %c0_i32_0 = arith.constant 0 : i32
    %c0_i32_1 = arith.constant 0 : i32
    %c0_i32_2 = arith.constant 0 : i32
    return %c0_i32, %c0_i32_0, %c0_i32_1 : i32, i32, i32
  }
  func.func @transform_3(%arg0: i32) -> (i32, i32) {
    %c0_i32 = arith.constant 0 : i32
    %c0_i32_0 = arith.constant 0 : i32
    %c0_i32_1 = arith.constant 0 : i32
    return %c0_i32, %c0_i32_0 : i32, i32
  }
  func.func @transform_4(%arg0: i32) -> (i32, i32) {
    %c0_i32 = arith.constant 0 : i32
    %c0_i32_0 = arith.constant 0 : i32
    %c0_i32_1 = arith.constant 0 : i32
    return %c0_i32, %c0_i32_0 : i32, i32
  }
  func.func @transform_5(%arg0: i32) -> (i32, i32, i32) {
    %c0_i32 = arith.constant 0 : i32
    %c0_i32_0 = arith.constant 0 : i32
    %c0_i32_1 = arith.constant 0 : i32
    %c0_i32_2 = arith.constant 0 : i32
    return %c0_i32, %c0_i32_0, %c0_i32_1 : i32, i32, i32
  }
  func.func @transform_6(%arg0: i32) -> (i32, i32, i32) {
    %c0_i32 = arith.constant 0 : i32
    %c0_i32_0 = arith.constant 0 : i32
    %c0_i32_1 = arith.constant 0 : i32
    %c0_i32_2 = arith.constant 0 : i32
    return %c0_i32, %c0_i32_0, %c0_i32_1 : i32, i32, i32
  }
  func.func @transform_7(%arg0: i32) -> (i32, i32, i32) {
    %c0_i32 = arith.constant 0 : i32
    %c0_i32_0 = arith.constant 0 : i32
    %c0_i32_1 = arith.constant 0 : i32
    %c0_i32_2 = arith.constant 0 : i32
    return %c0_i32, %c0_i32_0, %c0_i32_1 : i32, i32, i32
  }
  func.func @transform_8(%arg0: i32) -> (i32, i32) {
    %c0_i32 = arith.constant 0 : i32
    %c0_i32_0 = arith.constant 0 : i32
    %c0_i32_1 = arith.constant 0 : i32
    return %c0_i32, %c0_i32_0 : i32, i32
  }
  func.func @transform_9(%arg0: i32) -> (i32, i32) {
    %c0_i32 = arith.constant 0 : i32
    %c0_i32_0 = arith.constant 0 : i32
    %c0_i32_1 = arith.constant 0 : i32
    return %c0_i32, %c0_i32_0 : i32, i32
  }
  func.func @transform_10(%arg0: i32) -> (i32, i32) {
    %c0_i32 = arith.constant 0 : i32
    %c0_i32_0 = arith.constant 0 : i32
    %c0_i32_1 = arith.constant 0 : i32
    return %c0_i32, %c0_i32_0 : i32, i32
  }
  func.func @transform_11(%arg0: i32) -> (i32, i32) {
    %c0_i32 = arith.constant 0 : i32
    %c0_i32_0 = arith.constant 0 : i32
    %c0_i32_1 = arith.constant 0 : i32
    return %c0_i32, %c0_i32_0 : i32, i32
  }
  func.func @transform_12(%arg0: i32) -> (i32, i32) {
    %c0_i32 = arith.constant 0 : i32
    %c0_i32_0 = arith.constant 0 : i32
    %c0_i32_1 = arith.constant 0 : i32
    return %c0_i32, %c0_i32_0 : i32, i32
  }
  func.func @transform_13(%arg0: i32) -> (i32, i32, i32) {
    %c0_i32 = arith.constant 0 : i32
    %c0_i32_0 = arith.constant 0 : i32
    %c0_i32_1 = arith.constant 0 : i32
    return %arg0, %c0_i32, %c0_i32_0 : i32, i32, i32
  }
}

</mosaic_0001>

<bundles_post_ra>
// kernel: downsample_forward.5
= control target key start
LH: loop header
LB: loop body
LE: loop exit
PB: predicated region body
PF: predicated region fallthrough
CT: control target
= control target key end

     0   :  { %s848_s12 = smov 0   ;;  %s1127_s0 = inlined_call_operand.vmem [shape: f32[2,200,1024], index: 0, kind: input, shape index: {}]   ;;  %s1128_s1 = inlined_call_operand.vmem [shape: f32[16,200], index: 1, kind: input, shape index: {}]   ;;  %s1129_s2 = inlined_call_operand.vmem [shape: f32[16,1], index: 2, kind: input, shape index: {}]   ;;  %s1130_s3 = inlined_call_operand.vmem [shape: f32[2,16,1024], index: 3, kind: output, shape index: {}]  }
   0x1 LB: > { %s789_s13 = sadd.s32 4294967295, %s825_s12   ;;  %p793_p0 = scmp.ge.s32.totalorder %s825_s12, 1  ;;  %s825_s12 = sphi %s848_s12, %s13_s12  }
   0x2   : > { %p137_p1 = scmp.lt.s32.totalorder %s825_s12, 3 }
   0x4   : > { %p138_p2 = pnand %p793_p0, %p137_p1 }
   0x5   : > { %p161_p3 = scmp.lt.s32.totalorder (!%p138_p2), %s789_s13, 1 }
   0x6   : > { %141 = sbr.rel (%p138_p2) target bundleno = 325 (0x145), region = 32 }
   0xb   : > { %v859_v0 = vld [vmem:[%s1128_s1 + $0x8] sm:$0xff]  ;;  %vm387_vm0 = vcmask 588800   ;;  %v375_v1 = vld [vmem:[%s1129_s2] sm:$0xff]  ;;  %s1132_s13 = smov (!%p161_p3, %s789_s13), 1  ;;  %v827_v2 = vmov 0  }
   0xc   : > { %797 = vmatprep.mubr.msk.f32.mxu0 %vm387_vm0, %v859_v0  ;;  %799 = vmatprep.mubr.msk.f32.mxu1 %vm387_vm0, %v859_v0  ;;  %s808_s18 = smul.u32 1600, %s1132_s13  ;;  %v376_v3 = vld [vmem:[%s1129_s2 + $0x8] sm:$0xff]  ;;  %s807_s30 = sshll.u32 %s1132_s13, 7 }
   0xd   : > { %818 = vset.pattern.permute.xlu0 %v827_v2  ;;  %s1106_s6 = scalar_lea.vmem %s1130_s3, %s807_s30 }
   0xe   : > { %379 = vperm.xlu0 %818, %v375_v1   ;;  %s877_s23 = scalar_lea.vmem %s1127_s0, %s808_s18 }
   0xf   : > { %v296_v4 = vld [vmem:[%s877_s23 + $0x3c8] sm:$0xff]  ;;  %v298_v5 = vld [vmem:[%s877_s23 + $0x3d8] sm:$0xff]  ;;  %v295_v6 = vld [vmem:[%s877_s23 + $0x3c0] sm:$0xff] }
  0x10   : > { %394 = vmatprep.subr.mxu0 %v296_v4  ;;  %471 = vmatprep.subr.mxu1 %v298_v5  ;;  %v297_v7 = vld [vmem:[%s877_s23 + $0x3d0] sm:$0xff]  ;;  %v288_v8 = vld [vmem:[%s877_s23 + $0x388] sm:$0xff]  ;;  %v290_v9 = vld [vmem:[%s877_s23 + $0x398] sm:$0xff] }
  0x11   : > { %395 = vmatpush1.msra.mxu0 %v295_v6  ;;  %472 = vmatpush1.msra.mxu1 %v297_v7  ;;  %v287_v10 = vld [vmem:[%s877_s23 + $0x380] sm:$0xff]  ;;  %v289_v11 = vld [vmem:[%s877_s23 + $0x390] sm:$0xff]  ;;  %v280_v12 = vld [vmem:[%s877_s23 + $0x348] sm:$0xff] }
  0x12   : > { %384 = vperm.xlu0 %818, %v376_v3   ;;  %396 = vmatprep.subr.mxu0 %v288_v8  ;;  %v282_v13 = vld [vmem:[%s877_s23 + $0x358] sm:$0xff]  ;;  %v279_v14 = vld [vmem:[%s877_s23 + $0x340] sm:$0xff]  ;;  %v281_v15 = vld [vmem:[%s877_s23 + $0x350] sm:$0xff] }
  0x13   : > { %473 = vmatprep.subr.mxu1 %v290_v9  ;;  %397 = vmatpush1.msra.mxu0 %v287_v10  ;;  %v272_v16 = vld [vmem:[%s877_s23 + $0x308] sm:$0xff]  ;;  %v274_v17 = vld [vmem:[%s877_s23 + $0x318] sm:$0xff]  ;;  %v271_v18 = vld [vmem:[%s877_s23 + $0x300] sm:$0xff] }
  0x14   : > { %474 = vmatpush1.msra.mxu1 %v289_v11  ;;  %398 = vmatprep.subr.mxu0 %v280_v12  ;;  %v273_v19 = vld [vmem:[%s877_s23 + $0x310] sm:$0xff]  ;;  %v264_v20 = vld [vmem:[%s877_s23 + $0x2c8] sm:$0xff]  ;;  %v266_v21 = vld [vmem:[%s877_s23 + $0x2d8] sm:$0xff] }
  0x15   : > { %475 = vmatprep.subr.mxu1 %v282_v13  ;;  %399 = vmatpush1.msra.mxu0 %v279_v14  ;;  %v263_v22 = vld [vmem:[%s877_s23 + $0x2c0] sm:$0xff]  ;;  %v265_v23 = vld [vmem:[%s877_s23 + $0x2d0] sm:$0xff]  ;;  %v256_v24 = vld [vmem:[%s877_s23 + $0x288] sm:$0xff] }
  0x16   : > { %476 = vmatpush1.msra.mxu1 %v281_v15  ;;  %400 = vmatprep.subr.mxu0 %v272_v16  ;;  %v258_v25 = vld [vmem:[%s877_s23 + $0x298] sm:$0xff]  ;;  %v255_v26 = vld [vmem:[%s877_s23 + $0x280] sm:$0xff]  ;;  %v257_v27 = vld [vmem:[%s877_s23 + $0x290] sm:$0xff] }
  0x17   : > { %477 = vmatprep.subr.mxu1 %v274_v17  ;;  %401 = vmatpush1.msra.mxu0 %v271_v18  ;;  %v248_v28 = vld [vmem:[%s877_s23 + $0x248] sm:$0xff]  ;;  %v250_v29 = vld [vmem:[%s877_s23 + $0x258] sm:$0xff]  ;;  %v247_v30 = vld [vmem:[%s877_s23 + $0x240] sm:$0xff] }
  0x18   : > { %478 = vmatpush1.msra.mxu1 %v273_v19  ;;  %402 = vmatprep.subr.mxu0 %v264_v20  ;;  %v249_v31 = vld [vmem:[%s877_s23 + $0x250] sm:$0xff]  ;;  %v240_v32 = vld [vmem:[%s877_s23 + $0x208] sm:$0xff]  ;;  %v242_v33 = vld [vmem:[%s877_s23 + $0x218] sm:$0xff] }
  0x19   : > { %479 = vmatprep.subr.mxu1 %v266_v21  ;;  %403 = vmatpush1.msra.mxu0 %v263_v22  ;;  %v239_v34 = vld [vmem:[%s877_s23 + $0x200] sm:$0xff]  ;;  %v241_v35 = vld [vmem:[%s877_s23 + $0x210] sm:$0xff]  ;;  %v232_v36 = vld [vmem:[%s877_s23 + $0x1c8] sm:$0xff] }
  0x1a   : > { %480 = vmatpush1.msra.mxu1 %v265_v23  ;;  %404 = vmatprep.subr.mxu0 %v256_v24  ;;  %v234_v37 = vld [vmem:[%s877_s23 + $0x1d8] sm:$0xff]  ;;  %v231_v38 = vld [vmem:[%s877_s23 + $0x1c0] sm:$0xff]  ;;  %v233_v39 = vld [vmem:[%s877_s23 + $0x1d0] sm:$0xff] }
  0x1b   : > { %481 = vmatprep.subr.mxu1 %v258_v25  ;;  %405 = vmatpush1.msra.mxu0 %v255_v26  ;;  %v224_v40 = vld [vmem:[%s877_s23 + $0x188] sm:$0xff]  ;;  %v226_v41 = vld [vmem:[%s877_s23 + $0x198] sm:$0xff]  ;;  %v223_v42 = vld [vmem:[%s877_s23 + $0x180] sm:$0xff] }
  0x1c   : > { %482 = vmatpush1.msra.mxu1 %v257_v27  ;;  %406 = vmatprep.subr.mxu0 %v248_v28  ;;  %v225_v43 = vld [vmem:[%s877_s23 + $0x190] sm:$0xff]  ;;  %v216_v44 = vld [vmem:[%s877_s23 + $0x148] sm:$0xff]  ;;  %v218_v45 = vld [vmem:[%s877_s23 + $0x158] sm:$0xff] }
  0x1d   : > { %483 = vmatprep.subr.mxu1 %v250_v29  ;;  %407 = vmatpush1.msra.mxu0 %v247_v30  ;;  %v215_v46 = vld [vmem:[%s877_s23 + $0x140] sm:$0xff]  ;;  %v217_v47 = vld [vmem:[%s877_s23 + $0x150] sm:$0xff]  ;;  %v208_v48 = vld [vmem:[%s877_s23 + $0x108] sm:$0xff] }
  0x1e   : > { %484 = vmatpush1.msra.mxu1 %v249_v31  ;;  %408 = vmatprep.subr.mxu0 %v240_v32  ;;  %v210_v49 = vld [vmem:[%s877_s23 + $0x118] sm:$0xff]  ;;  %v207_v50 = vld [vmem:[%s877_s23 + $0x100] sm:$0xff]  ;;  %v209_v51 = vld [vmem:[%s877_s23 + $0x110] sm:$0xff] }
  0x1f   : > { %485 = vmatprep.subr.mxu1 %v242_v33  ;;  %409 = vmatpush1.msra.mxu0 %v239_v34  ;;  %v200_v52 = vld [vmem:[%s877_s23 + $0xc8] sm:$0xff]  ;;  %v202_v53 = vld [vmem:[%s877_s23 + $0xd8] sm:$0xff]  ;;  %v199_v54 = vld [vmem:[%s877_s23 + $0xc0] sm:$0xff] }
  0x20   : > { %486 = vmatpush1.msra.mxu1 %v241_v35  ;;  %410 = vmatprep.subr.mxu0 %v232_v36  ;;  %v201_v55 = vld [vmem:[%s877_s23 + $0xd0] sm:$0xff]  ;;  %v192_v56 = vld [vmem:[%s877_s23 + $0x88] sm:$0xff]  ;;  %v194_v57 = vld [vmem:[%s877_s23 + $0x98] sm:$0xff] }
  0x21   : > { %487 = vmatprep.subr.mxu1 %v234_v37  ;;  %411 = vmatpush1.msra.mxu0 %v231_v38  ;;  %v191_v58 = vld [vmem:[%s877_s23 + $0x80] sm:$0xff]  ;;  %v193_v59 = vld [vmem:[%s877_s23 + $0x90] sm:$0xff]  ;;  %v184_v60 = vld [vmem:[%s877_s23 + $0x48] sm:$0xff] }
  0x22   : > { %488 = vmatpush1.msra.mxu1 %v233_v39  ;;  %412 = vmatprep.subr.mxu0 %v224_v40  ;;  %v186_v61 = vld [vmem:[%s877_s23 + $0x58] sm:$0xff]  ;;  %v183_v62 = vld [vmem:[%s877_s23 + $0x40] sm:$0xff]  ;;  %v185_v63 = vld [vmem:[%s877_s23 + $0x50] sm:$0xff] }
  0x23   : > { %489 = vmatprep.subr.mxu1 %v226_v41  ;;  %413 = vmatpush1.msra.mxu0 %v223_v42  ;;  %v176_v1 = vld [vmem:[%s877_s23 + $0x8] sm:$0xff]  ;;  %v178_v2 = vld [vmem:[%s877_s23 + $0x18] sm:$0xff]  ;;  %v175_v3 = vld [vmem:[%s877_s23] sm:$0xff] }
  0x24   : > { %490 = vmatpush1.msra.mxu1 %v225_v43  ;;  %414 = vmatprep.subr.mxu0 %v216_v44  ;;  %v177_v4 = vld [vmem:[%s877_s23 + $0x10] sm:$0xff]  ;;  %v368_v5 = vld [vmem:[%s877_s23 + $0x608] sm:$0xff]  ;;  %v370_v6 = vld [vmem:[%s877_s23 + $0x618] sm:$0xff] }
  0x25   : > { %491 = vmatprep.subr.mxu1 %v218_v45  ;;  %415 = vmatpush1.msra.mxu0 %v215_v46  ;;  %v367_v7 = vld [vmem:[%s877_s23 + $0x600] sm:$0xff]  ;;  %v369_v8 = vld [vmem:[%s877_s23 + $0x610] sm:$0xff]  ;;  %v360_v9 = vld [vmem:[%s877_s23 + $0x5c8] sm:$0xff] }
  0x26   : > { %492 = vmatpush1.msra.mxu1 %v217_v47  ;;  %416 = vmatprep.subr.mxu0 %v208_v48  ;;  %v362_v10 = vld [vmem:[%s877_s23 + $0x5d8] sm:$0xff]  ;;  %v359_v11 = vld [vmem:[%s877_s23 + $0x5c0] sm:$0xff]  ;;  %v361_v12 = vld [vmem:[%s877_s23 + $0x5d0] sm:$0xff] }
  0x27   : > { %493 = vmatprep.subr.mxu1 %v210_v49  ;;  %417 = vmatpush1.msra.mxu0 %v207_v50  ;;  %v352_v13 = vld [vmem:[%s877_s23 + $0x588] sm:$0xff]  ;;  %v354_v14 = vld [vmem:[%s877_s23 + $0x598] sm:$0xff]  ;;  %v351_v15 = vld [vmem:[%s877_s23 + $0x580] sm:$0xff] }
  0x28   : > { %494 = vmatpush1.msra.mxu1 %v209_v51  ;;  %418 = vmatprep.subr.mxu0 %v200_v52  ;;  %v353_v16 = vld [vmem:[%s877_s23 + $0x590] sm:$0xff]  ;;  %v344_v17 = vld [vmem:[%s877_s23 + $0x548] sm:$0xff]  ;;  %v346_v18 = vld [vmem:[%s877_s23 + $0x558] sm:$0xff] }
  0x29   : > { %495 = vmatprep.subr.mxu1 %v202_v53  ;;  %419 = vmatpush1.msra.mxu0 %v199_v54  ;;  %v343_v19 = vld [vmem:[%s877_s23 + $0x540] sm:$0xff]  ;;  %v345_v20 = vld [vmem:[%s877_s23 + $0x550] sm:$0xff]  ;;  %v336_v21 = vld [vmem:[%s877_s23 + $0x508] sm:$0xff] }
  0x2a   : > { %496 = vmatpush1.msra.mxu1 %v201_v55  ;;  %420 = vmatprep.subr.mxu0 %v192_v56  ;;  %v338_v22 = vld [vmem:[%s877_s23 + $0x518] sm:$0xff]  ;;  %v335_v23 = vld [vmem:[%s877_s23 + $0x500] sm:$0xff]  ;;  %v337_v24 = vld [vmem:[%s877_s23 + $0x510] sm:$0xff] }
  0x2b   : > { %497 = vmatprep.subr.mxu1 %v194_v57  ;;  %421 = vmatpush1.msra.mxu0 %v191_v58  ;;  %v328_v25 = vld [vmem:[%s877_s23 + $0x4c8] sm:$0xff]  ;;  %v330_v26 = vld [vmem:[%s877_s23 + $0x4d8] sm:$0xff]  ;;  %v327_v27 = vld [vmem:[%s877_s23 + $0x4c0] sm:$0xff] }
  0x2c   : > { %498 = vmatpush1.msra.mxu1 %v193_v59  ;;  %422 = vmatprep.subr.mxu0 %v184_v60  ;;  %v329_v28 = vld [vmem:[%s877_s23 + $0x4d0] sm:$0xff]  ;;  %v320_v29 = vld [vmem:[%s877_s23 + $0x488] sm:$0xff]  ;;  %v322_v30 = vld [vmem:[%s877_s23 + $0x498] sm:$0xff] }
  0x2d   : > { %499 = vmatprep.subr.mxu1 %v186_v61  ;;  %423 = vmatpush1.msra.mxu0 %v183_v62  ;;  %v319_v31 = vld [vmem:[%s877_s23 + $0x480] sm:$0xff]  ;;  %v321_v32 = vld [vmem:[%s877_s23 + $0x490] sm:$0xff]  ;;  %v312_v33 = vld [vmem:[%s877_s23 + $0x448] sm:$0xff] }
  0x2e   : > { %500 = vmatpush1.msra.mxu1 %v185_v63  ;;  %424 = vmatprep.subr.mxu0 %v176_v1  ;;  %v314_v34 = vld [vmem:[%s877_s23 + $0x458] sm:$0xff]  ;;  %v311_v35 = vld [vmem:[%s877_s23 + $0x440] sm:$0xff]  ;;  %v313_v36 = vld [vmem:[%s877_s23 + $0x450] sm:$0xff] }
  0x2f   : > { %501 = vmatprep.subr.mxu1 %v178_v2  ;;  %425 = vmatpush1.msra.mxu0 %v175_v3  ;;  %v304_v37 = vld [vmem:[%s877_s23 + $0x408] sm:$0xff]  ;;  %v306_v38 = vld [vmem:[%s877_s23 + $0x418] sm:$0xff]  ;;  %v303_v39 = vld [vmem:[%s877_s23 + $0x400] sm:$0xff] }
  0x30   : > { %502 = vmatpush1.msra.mxu1 %v177_v4  ;;  %440 = vmatprep.subr.mxu0 %v368_v5  ;;  %v305_v40 = vld [vmem:[%s877_s23 + $0x410] sm:$0xff]  ;;  %v982_v41 = vld [vmem:[%s1128_s1] sm:$0xff]  ;;  %v300_v42 = vld [vmem:[%s877_s23 + $0x3e8] sm:$0xff] }
  0x31   : > { %517 = vmatprep.subr.mxu1 %v370_v6  ;;  %441 = vmatpush2.msra.mxu0 %v367_v7  ;;  %v302_v43 = vld [vmem:[%s877_s23 + $0x3f8] sm:$0xff]  ;;  %v299_v44 = vld [vmem:[%s877_s23 + $0x3e0] sm:$0xff]  ;;  %v301_v45 = vld [vmem:[%s877_s23 + $0x3f0] sm:$0xff] }
  0x32   : > { %518 = vmatpush2.msra.mxu1 %v369_v8  ;;  %442 = vmatprep.subr.mxu0 %v360_v9  ;;  %v292_v46 = vld [vmem:[%s877_s23 + $0x3a8] sm:$0xff]  ;;  %v294_v47 = vld [vmem:[%s877_s23 + $0x3b8] sm:$0xff]  ;;  %v291_v48 = vld [vmem:[%s877_s23 + $0x3a0] sm:$0xff] }
  0x33   : > { %519 = vmatprep.subr.mxu1 %v362_v10  ;;  %443 = vmatpush2.msra.mxu0 %v359_v11  ;;  %v293_v49 = vld [vmem:[%s877_s23 + $0x3b0] sm:$0xff]  ;;  %v284_v50 = vld [vmem:[%s877_s23 + $0x368] sm:$0xff]  ;;  %v286_v51 = vld [vmem:[%s877_s23 + $0x378] sm:$0xff] }
  0x34   : > { %520 = vmatpush2.msra.mxu1 %v361_v12  ;;  %444 = vmatprep.subr.mxu0 %v352_v13  ;;  %v283_v52 = vld [vmem:[%s877_s23 + $0x360] sm:$0xff]  ;;  %v285_v53 = vld [vmem:[%s877_s23 + $0x370] sm:$0xff]  ;;  %v276_v54 = vld [vmem:[%s877_s23 + $0x328] sm:$0xff] }
  0x35   : > { %521 = vmatprep.subr.mxu1 %v354_v14  ;;  %445 = vmatpush2.msra.mxu0 %v351_v15  ;;  %v278_v55 = vld [vmem:[%s877_s23 + $0x338] sm:$0xff]  ;;  %v275_v56 = vld [vmem:[%s877_s23 + $0x320] sm:$0xff]  ;;  %v277_v57 = vld [vmem:[%s877_s23 + $0x330] sm:$0xff] }
  0x36   : > { %522 = vmatpush2.msra.mxu1 %v353_v16  ;;  %446 = vmatprep.subr.mxu0 %v344_v17  ;;  %v268_v58 = vld [vmem:[%s877_s23 + $0x2e8] sm:$0xff]  ;;  %v270_v59 = vld [vmem:[%s877_s23 + $0x2f8] sm:$0xff]  ;;  %v267_v60 = vld [vmem:[%s877_s23 + $0x2e0] sm:$0xff] }
  0x37   : > { %523 = vmatprep.subr.mxu1 %v346_v18  ;;  %447 = vmatpush2.msra.mxu0 %v343_v19  ;;  %v269_v61 = vld [vmem:[%s877_s23 + $0x2f0] sm:$0xff]  ;;  %v260_v62 = vld [vmem:[%s877_s23 + $0x2a8] sm:$0xff]  ;;  %v262_v63 = vld [vmem:[%s877_s23 + $0x2b8] sm:$0xff] }
  0x38   : > { %524 = vmatpush2.msra.mxu1 %v345_v20  ;;  %448 = vmatprep.subr.mxu0 %v336_v21  ;;  %v259_v1 = vld [vmem:[%s877_s23 + $0x2a0] sm:$0xff]  ;;  %v261_v2 = vld [vmem:[%s877_s23 + $0x2b0] sm:$0xff]  ;;  %v252_v3 = vld [vmem:[%s877_s23 + $0x268] sm:$0xff] }
  0x39   : > { %525 = vmatprep.subr.mxu1 %v338_v22  ;;  %449 = vmatpush2.msra.mxu0 %v335_v23  ;;  %v254_v4 = vld [vmem:[%s877_s23 + $0x278] sm:$0xff]  ;;  %v251_v5 = vld [vmem:[%s877_s23 + $0x260] sm:$0xff]  ;;  %v253_v6 = vld [vmem:[%s877_s23 + $0x270] sm:$0xff] }
  0x3a   : > { %526 = vmatpush2.msra.mxu1 %v337_v24  ;;  %450 = vmatprep.subr.mxu0 %v328_v25  ;;  %v244_v7 = vld [vmem:[%s877_s23 + $0x228] sm:$0xff]  ;;  %v246_v8 = vld [vmem:[%s877_s23 + $0x238] sm:$0xff]  ;;  %v243_v9 = vld [vmem:[%s877_s23 + $0x220] sm:$0xff] }
  0x3b   : > { %527 = vmatprep.subr.mxu1 %v330_v26  ;;  %451 = vmatpush2.msra.mxu0 %v327_v27  ;;  %v245_v10 = vld [vmem:[%s877_s23 + $0x230] sm:$0xff]  ;;  %v236_v11 = vld [vmem:[%s877_s23 + $0x1e8] sm:$0xff]  ;;  %v238_v12 = vld [vmem:[%s877_s23 + $0x1f8] sm:$0xff] }
  0x3c   : > { %528 = vmatpush2.msra.mxu1 %v329_v28  ;;  %452 = vmatprep.subr.mxu0 %v320_v29  ;;  %v235_v13 = vld [vmem:[%s877_s23 + $0x1e0] sm:$0xff]  ;;  %v237_v14 = vld [vmem:[%s877_s23 + $0x1f0] sm:$0xff]  ;;  %v228_v15 = vld [vmem:[%s877_s23 + $0x1a8] sm:$0xff] }
  0x3d   : > { %529 = vmatprep.subr.mxu1 %v322_v30  ;;  %453 = vmatpush2.msra.mxu0 %v319_v31  ;;  %v230_v16 = vld [vmem:[%s877_s23 + $0x1b8] sm:$0xff]  ;;  %v227_v17 = vld [vmem:[%s877_s23 + $0x1a0] sm:$0xff]  ;;  %v229_v18 = vld [vmem:[%s877_s23 + $0x1b0] sm:$0xff] }
  0x3e   : > { %530 = vmatpush2.msra.mxu1 %v321_v32  ;;  %454 = vmatprep.subr.mxu0 %v312_v33  ;;  %v220_v19 = vld [vmem:[%s877_s23 + $0x168] sm:$0xff]  ;;  %v222_v20 = vld [vmem:[%s877_s23 + $0x178] sm:$0xff]  ;;  %v219_v21 = vld [vmem:[%s877_s23 + $0x160] sm:$0xff] }
  0x3f   : > { %531 = vmatprep.subr.mxu1 %v314_v34  ;;  %455 = vmatpush2.msra.mxu0 %v311_v35  ;;  %v221_v22 = vld [vmem:[%s877_s23 + $0x170] sm:$0xff]  ;;  %v212_v23 = vld [vmem:[%s877_s23 + $0x128] sm:$0xff]  ;;  %v214_v24 = vld [vmem:[%s877_s23 + $0x138] sm:$0xff] }
  0x40   : > { %532 = vmatpush2.msra.mxu1 %v313_v36  ;;  %456 = vmatprep.subr.mxu0 %v304_v37  ;;  %v211_v25 = vld [vmem:[%s877_s23 + $0x120] sm:$0xff]  ;;  %v213_v26 = vld [vmem:[%s877_s23 + $0x130] sm:$0xff]  ;;  %v204_v27 = vld [vmem:[%s877_s23 + $0xe8] sm:$0xff] }
  0x41   : > { %533 = vmatprep.subr.mxu1 %v306_v38  ;;  %457 = vmatpush2.msra.mxu0 %v303_v39  ;;  %v206_v28 = vld [vmem:[%s877_s23 + $0xf8] sm:$0xff]  ;;  %v203_v29 = vld [vmem:[%s877_s23 + $0xe0] sm:$0xff]  ;;  %v205_v30 = vld [vmem:[%s877_s23 + $0xf0] sm:$0xff] }
  0x42   : > { %534 = vmatpush2.msra.mxu1 %v305_v40  ;;  %459 = vmatmul.mubr.f32.vlgmr.msra.gmra.mxu0 %v982_v41  ;;  %v196_v31 = vld [vmem:[%s877_s23 + $0xa8] sm:$0xff]  ;;  %v198_v32 = vld [vmem:[%s877_s23 + $0xb8] sm:$0xff]  ;;  %v195_v33 = vld [vmem:[%s877_s23 + $0xa0] sm:$0xff] }
  0x43   : > { %536 = vmatmul.mubr.f32.vlgmr.msra.gmra.mxu1 %v982_v41  ;;  %548 = vmatprep.subr.mxu0 %v300_v42  ;;  %v197_v34 = vld [vmem:[%s877_s23 + $0xb0] sm:$0xff]  ;;  %v188_v35 = vld [vmem:[%s877_s23 + $0x68] sm:$0xff]  ;;  %v190_v36 = vld [vmem:[%s877_s23 + $0x78] sm:$0xff] }
  0x44   : > { %625 = vmatprep.subr.mxu1 %v302_v43  ;;  %549 = vmatpush1.msra.mxu0 %v299_v44  ;;  %v187_v37 = vld [vmem:[%s877_s23 + $0x60] sm:$0xff]  ;;  %v189_v38 = vld [vmem:[%s877_s23 + $0x70] sm:$0xff]  ;;  %v180_v39 = vld [vmem:[%s877_s23 + $0x28] sm:$0xff] }
  0x45   : > { %626 = vmatpush1.msra.mxu1 %v301_v45  ;;  %550 = vmatprep.subr.mxu0 %v292_v46  ;;  %v182_v40 = vld [vmem:[%s877_s23 + $0x38] sm:$0xff]  ;;  %v179_v42 = vld [vmem:[%s877_s23 + $0x20] sm:$0xff]  ;;  %v181_v43 = vld [vmem:[%s877_s23 + $0x30] sm:$0xff] }
  0x46   : > { %627 = vmatprep.subr.mxu1 %v294_v47  ;;  %551 = vmatpush1.msra.mxu0 %v291_v48  ;;  %v372_v44 = vld [vmem:[%s877_s23 + $0x628] sm:$0xff]  ;;  %v374_v45 = vld [vmem:[%s877_s23 + $0x638] sm:$0xff]  ;;  %v371_v46 = vld [vmem:[%s877_s23 + $0x620] sm:$0xff] }
  0x47   : > { %628 = vmatpush1.msra.mxu1 %v293_v49  ;;  %552 = vmatprep.subr.mxu0 %v284_v50  ;;  %v373_v47 = vld [vmem:[%s877_s23 + $0x630] sm:$0xff]  ;;  %v364_v48 = vld [vmem:[%s877_s23 + $0x5e8] sm:$0xff]  ;;  %v366_v49 = vld [vmem:[%s877_s23 + $0x5f8] sm:$0xff] }
  0x48   : > { %629 = vmatprep.subr.mxu1 %v286_v51  ;;  %553 = vmatpush1.msra.mxu0 %v283_v52  ;;  %v363_v50 = vld [vmem:[%s877_s23 + $0x5e0] sm:$0xff]  ;;  %v365_v51 = vld [vmem:[%s877_s23 + $0x5f0] sm:$0xff]  ;;  %v356_v52 = vld [vmem:[%s877_s23 + $0x5a8] sm:$0xff] }
  0x49   : > { %630 = vmatpush1.msra.mxu1 %v285_v53  ;;  %554 = vmatprep.subr.mxu0 %v276_v54  ;;  %v358_v53 = vld [vmem:[%s877_s23 + $0x5b8] sm:$0xff]  ;;  %v355_v54 = vld [vmem:[%s877_s23 + $0x5a0] sm:$0xff] }
  0x4a   : > { %631 = vmatprep.subr.mxu1 %v278_v55  ;;  %555 = vmatpush1.msra.mxu0 %v275_v56  ;;  %v357_v55 = vld [vmem:[%s877_s23 + $0x5b0] sm:$0xff]  ;;  %v348_v56 = vld [vmem:[%s877_s23 + $0x568] sm:$0xff] }
  0x4b   : > { %632 = vmatpush1.msra.mxu1 %v277_v57  ;;  %556 = vmatprep.subr.mxu0 %v268_v58  ;;  %v350_v57 = vld [vmem:[%s877_s23 + $0x578] sm:$0xff]  ;;  %v347_v58 = vld [vmem:[%s877_s23 + $0x560] sm:$0xff] }
  0x4c   : > { %633 = vmatprep.subr.mxu1 %v270_v59  ;;  %557 = vmatpush1.msra.mxu0 %v267_v60  ;;  %v349_v59 = vld [vmem:[%s877_s23 + $0x570] sm:$0xff]  ;;  %v340_v60 = vld [vmem:[%s877_s23 + $0x528] sm:$0xff] }
  0x4d   : > { %634 = vmatpush1.msra.mxu1 %v269_v61  ;;  %558 = vmatprep.subr.mxu0 %v260_v62  ;;  %v342_v61 = vld [vmem:[%s877_s23 + $0x538] sm:$0xff]  ;;  %v339_v62 = vld [vmem:[%s877_s23 + $0x520] sm:$0xff] }
  0x4e   : > { %635 = vmatprep.subr.mxu1 %v262_v63  ;;  %559 = vmatpush1.msra.mxu0 %v259_v1  ;;  %v341_v63 = vld [vmem:[%s877_s23 + $0x530] sm:$0xff]  ;;  %v332_v1 = vld [vmem:[%s877_s23 + $0x4e8] sm:$0xff] }
  0x4f   : > { %636 = vmatpush1.msra.mxu1 %v261_v2  ;;  %560 = vmatprep.subr.mxu0 %v252_v3  ;;  %v334_v2 = vld [vmem:[%s877_s23 + $0x4f8] sm:$0xff] }
  0x50   : > { %637 = vmatprep.subr.mxu1 %v254_v4  ;;  %561 = vmatpush1.msra.mxu0 %v251_v5  ;;  %v174_v3 = vld [vmem:[%s1128_s1 + $0x18] sm:$0xff]  ;;  %v331_v4 = vld [vmem:[%s877_s23 + $0x4e0] sm:$0xff]  ;;  %v333_v5 = vld [vmem:[%s877_s23 + $0x4f0] sm:$0xff] }
  0x51   : > { %638 = vmatpush1.msra.mxu1 %v253_v6  ;;  %562 = vmatprep.subr.mxu0 %v244_v7  ;;  %v173_v6 = vld [vmem:[%s1128_s1 + $0x10] sm:$0xff]  ;;  %v324_v7 = vld [vmem:[%s877_s23 + $0x4a8] sm:$0xff] }
  0x52   : > { %639 = vmatprep.subr.mxu1 %v246_v8  ;;  %563 = vmatpush1.msra.mxu0 %v243_v9  ;;  %v326_v8 = vld [vmem:[%s877_s23 + $0x4b8] sm:$0xff]  ;;  %v323_v9 = vld [vmem:[%s877_s23 + $0x4a0] sm:$0xff] }
  0x53   : > { %640 = vmatpush1.msra.mxu1 %v245_v10  ;;  %564 = vmatprep.subr.mxu0 %v236_v11  ;;  %v325_v10 = vld [vmem:[%s877_s23 + $0x4b0] sm:$0xff]  ;;  %v316_v11 = vld [vmem:[%s877_s23 + $0x468] sm:$0xff] }
  0x54   : > { %641 = vmatprep.subr.mxu1 %v238_v12  ;;  %565 = vmatpush1.msra.mxu0 %v235_v13  ;;  %v318_v12 = vld [vmem:[%s877_s23 + $0x478] sm:$0xff]  ;;  %v315_v13 = vld [vmem:[%s877_s23 + $0x460] sm:$0xff] }
  0x55   : > { %642 = vmatpush1.msra.mxu1 %v237_v14  ;;  %566 = vmatprep.subr.mxu0 %v228_v15  ;;  %v317_v14 = vld [vmem:[%s877_s23 + $0x470] sm:$0xff]  ;;  %v308_v15 = vld [vmem:[%s877_s23 + $0x428] sm:$0xff] }
  0x56   : > { %643 = vmatprep.subr.mxu1 %v230_v16  ;;  %567 = vmatpush1.msra.mxu0 %v227_v17  ;;  %v310_v16 = vld [vmem:[%s877_s23 + $0x438] sm:$0xff]  ;;  %v307_v17 = vld [vmem:[%s877_s23 + $0x420] sm:$0xff] }
  0x57   : > { %644 = vmatpush1.msra.mxu1 %v229_v18  ;;  %568 = vmatprep.subr.mxu0 %v220_v19  ;;  %v309_v18 = vld [vmem:[%s877_s23 + $0x430] sm:$0xff] }
  0x58   : > { %645 = vmatprep.subr.mxu1 %v222_v20  ;;  %569 = vmatpush1.msra.mxu0 %v219_v21 }
  0x59   : > { %646 = vmatpush1.msra.mxu1 %v221_v22  ;;  %570 = vmatprep.subr.mxu0 %v212_v23 }
  0x5a   : > { %647 = vmatprep.subr.mxu1 %v214_v24  ;;  %571 = vmatpush1.msra.mxu0 %v211_v25 }
  0x5b   : > { %648 = vmatpush1.msra.mxu1 %v213_v26  ;;  %572 = vmatprep.subr.mxu0 %v204_v27 }
  0x5c   : > { %649 = vmatprep.subr.mxu1 %v206_v28  ;;  %573 = vmatpush1.msra.mxu0 %v203_v29 }
  0x5d   : > { %650 = vmatpush1.msra.mxu1 %v205_v30  ;;  %574 = vmatprep.subr.mxu0 %v196_v31 }
  0x5e   : > { %651 = vmatprep.subr.mxu1 %v198_v32  ;;  %575 = vmatpush1.msra.mxu0 %v195_v33 }
  0x5f   : > { %652 = vmatpush1.msra.mxu1 %v197_v34  ;;  %576 = vmatprep.subr.mxu0 %v188_v35 }
  0x60   : > { %653 = vmatprep.subr.mxu1 %v190_v36  ;;  %577 = vmatpush1.msra.mxu0 %v187_v37 }
  0x61   : > { %654 = vmatpush1.msra.mxu1 %v189_v38  ;;  %578 = vmatprep.subr.mxu0 %v180_v39 }
  0x62   : > { %655 = vmatprep.subr.mxu1 %v182_v40  ;;  %579 = vmatpush1.msra.mxu0 %v179_v42 }
  0x63   : > { %656 = vmatpush1.msra.mxu1 %v181_v43  ;;  %594 = vmatprep.subr.mxu0 %v372_v44 }
  0x64   : > { %671 = vmatprep.subr.mxu1 %v374_v45  ;;  %595 = vmatpush2.msra.mxu0 %v371_v46 }
  0x65   : > { %672 = vmatpush2.msra.mxu1 %v373_v47  ;;  %596 = vmatprep.subr.mxu0 %v364_v48 }
  0x66   : > { %673 = vmatprep.subr.mxu1 %v366_v49  ;;  %597 = vmatpush2.msra.mxu0 %v363_v50 }
  0x67   : > { %674 = vmatpush2.msra.mxu1 %v365_v51  ;;  %598 = vmatprep.subr.mxu0 %v356_v52 }
  0x68   : > { %675 = vmatprep.subr.mxu1 %v358_v53  ;;  %599 = vmatpush2.msra.mxu0 %v355_v54 }
  0x69   : > { %676 = vmatpush2.msra.mxu1 %v357_v55  ;;  %600 = vmatprep.subr.mxu0 %v348_v56 }
  0x6a   : > { %677 = vmatprep.subr.mxu1 %v350_v57  ;;  %601 = vmatpush2.msra.mxu0 %v347_v58 }
  0x6b   : > { %678 = vmatpush2.msra.mxu1 %v349_v59  ;;  %602 = vmatprep.subr.mxu0 %v340_v60 }
  0x6c   : > { %679 = vmatprep.subr.mxu1 %v342_v61  ;;  %603 = vmatpush2.msra.mxu0 %v339_v62 }
  0x6d   : > { %680 = vmatpush2.msra.mxu1 %v341_v63  ;;  %604 = vmatprep.subr.mxu0 %v332_v1 }
  0x6e   : > { %681 = vmatprep.subr.mxu1 %v334_v2  ;;  %798 = vmatprep.mubr.msk.f32.mxu0 %vm387_vm0, %v174_v3 }
  0x6f   : > { %800 = vmatprep.mubr.msk.f32.mxu1 %vm387_vm0, %v174_v3  ;;  %605 = vmatpush2.msra.mxu0 %v331_v4 }
  0x70   : > { %682 = vmatpush2.msra.mxu1 %v333_v5  ;;  %465 = vmatmul.mubr.f32.gmra.mxu0 %v173_v6 }
  0x71   : > { %542 = vmatmul.mubr.f32.gmra.mxu1 %v173_v6  ;;  %606 = vmatprep.subr.mxu0 %v324_v7 }
  0x72   : > { %683 = vmatprep.subr.mxu1 %v326_v8  ;;  %607 = vmatpush2.msra.mxu0 %v323_v9 }
  0x73   : > { %684 = vmatpush2.msra.mxu1 %v325_v10  ;;  %608 = vmatprep.subr.mxu0 %v316_v11 }
  0x74   : > { %685 = vmatprep.subr.mxu1 %v318_v12  ;;  %609 = vmatpush2.msra.mxu0 %v315_v13 }
  0x75   : > { %686 = vmatpush2.msra.mxu1 %v317_v14  ;;  %610 = vmatprep.subr.mxu0 %v308_v15 }
  0x76   : > { %687 = vmatprep.subr.mxu1 %v310_v16  ;;  %611 = vmatpush2.msra.mxu0 %v307_v17 }
  0x77   : > { %801 = vmatprep.mubr.msk.f32.mxu0 %vm387_vm0, %v859_v0  ;;  %688 = vmatpush2.msra.mxu1 %v309_v18 }
  0x78   : > { %803 = vmatprep.mubr.msk.f32.mxu1 %vm387_vm0, %v859_v0  ;;  %613 = vmatmul.mubr.f32.vlgmr.msra.gmra.mxu0 %v982_v41 }
  0x79   : > { %690 = vmatmul.mubr.f32.vlgmr.msra.gmra.mxu1 %v982_v41  ;;  %802 = vmatprep.mubr.msk.f32.mxu0 %vm387_vm0, %v174_v3 }
  0x7a   : > { %804 = vmatprep.mubr.msk.f32.mxu1 %vm387_vm0, %v174_v3 }
  0x7c   : > { %619 = vmatmul.mubr.f32.gmra.mxu0 %v173_v6 }
  0x7d   : > { %696 = vmatmul.mubr.f32.gmra.mxu1 %v173_v6 }
  0x89   : > { %v380_v19 = vpop.permute.xlu0 %379 }
  0x8d   : > { %v385_v30 = vpop.permute.xlu0 %384 }
 0x102   : > { %v460_v20 = vpop.f32.mrf.mxu0 }
 0x103   : > { %v537_v21 = vpop.f32.mrf.mxu1  ;;  %v461_v22 = vadd.f32 %v460_v20, %v380_v19 }
 0x104   : > { %v538_v23 = vadd.f32 %v537_v21, %v380_v19  ;;  %v462_v0 = vpop.f32.mrf.mxu0 }
 0x105   : > { %v539_v41 = vpop.f32.mrf.mxu1  ;;  %v702_v24 = vmax.f32 %v461_v22, 0.0  ;;  %v463_v26 = vadd.f32 %v462_v0, %v380_v19 }
 0x106   : > { %v704_v25 = vmax.f32 %v538_v23, 0.0  ;;  %v540_v27 = vadd.f32 %v539_v41, %v380_v19 }
 0x107   : > { %718 = vst [vmem:[%s1106_s6] sm:$0xff] %v702_v24  ;;  %v703_v28 = vmax.f32 %v463_v26, 0.0 }
 0x108   : > { %720 = vst [vmem:[%s1106_s6 + $0x10] sm:$0xff] %v704_v25  ;;  %v705_v29 = vmax.f32 %v540_v27, 0.0 }
 0x109   : > { %719 = vst [vmem:[%s1106_s6 + $0x8] sm:$0xff] %v703_v28 }
 0x10a   : > { %721 = vst [vmem:[%s1106_s6 + $0x18] sm:$0xff] %v705_v29 }
 0x130   : > { %v466_v31 = vpop.f32.mrf.mxu0 }
 0x131   : > { %v543_v32 = vpop.f32.mrf.mxu1  ;;  %v467_v33 = vadd.f32 %v466_v31, %v385_v30 }
 0x132   : > { %v544_v34 = vadd.f32 %v543_v32, %v385_v30  ;;  %v468_v35 = vpop.f32.mrf.mxu0 }
 0x133   : > { %v545_v36 = vpop.f32.mrf.mxu1  ;;  %v710_v37 = vmax.f32 %v467_v33, 0.0  ;;  %v469_v39 = vadd.f32 %v468_v35, %v385_v30 }
 0x134   : > { %v712_v38 = vmax.f32 %v544_v34, 0.0  ;;  %v546_v40 = vadd.f32 %v545_v36, %v385_v30 }
 0x135   : > { %726 = vst [vmem:[%s1106_s6 + $0x40] sm:$0xff] %v710_v37  ;;  %v711_v42 = vmax.f32 %v469_v39, 0.0 }
 0x136   : > { %728 = vst [vmem:[%s1106_s6 + $0x50] sm:$0xff] %v712_v38  ;;  %v713_v43 = vmax.f32 %v546_v40, 0.0 }
 0x137   : > { %727 = vst [vmem:[%s1106_s6 + $0x48] sm:$0xff] %v711_v42 }
 0x138   : > { %729 = vst [vmem:[%s1106_s6 + $0x58] sm:$0xff] %v713_v43  ;;  %v614_v44 = vpop.f32.mrf.mxu0 }
 0x139   : > { %v691_v45 = vpop.f32.mrf.mxu1  ;;  %v615_v46 = vadd.f32 %v614_v44, %v380_v19 }
 0x13a   : > { %v692_v47 = vadd.f32 %v691_v45, %v380_v19  ;;  %v616_v48 = vpop.f32.mrf.mxu0 }
 0x13b   : > { %v693_v49 = vpop.f32.mrf.mxu1  ;;  %v706_v50 = vmax.f32 %v615_v46, 0.0  ;;  %v617_v52 = vadd.f32 %v616_v48, %v380_v19 }
 0x13c   : > { %v708_v51 = vmax.f32 %v692_v47, 0.0  ;;  %v694_v53 = vadd.f32 %v693_v49, %v380_v19  ;;  %v620_v54 = vpop.f32.mrf.mxu0 }
 0x13d   : > { %v697_v55 = vpop.f32.mrf.mxu1  ;;  %722 = vst [vmem:[%s1106_s6 + $0x20] sm:$0xff] %v706_v50  ;;  %v707_v56 = vmax.f32 %v617_v52, 0.0  ;;  %v621_v58 = vadd.f32 %v620_v54, %v385_v30 }
 0x13e   : > { %724 = vst [vmem:[%s1106_s6 + $0x30] sm:$0xff] %v708_v51  ;;  %v709_v57 = vmax.f32 %v694_v53, 0.0  ;;  %v698_v59 = vadd.f32 %v697_v55, %v385_v30  ;;  %v622_v60 = vpop.f32.mrf.mxu0 }
 0x13f   : > { %v699_v61 = vpop.f32.mrf.mxu1  ;;  %723 = vst [vmem:[%s1106_s6 + $0x28] sm:$0xff] %v707_v56  ;;  %v714_v62 = vmax.f32 %v621_v58, 0.0  ;;  %v623_v1 = vadd.f32 %v622_v60, %v385_v30 }
 0x140   : > { %725 = vst [vmem:[%s1106_s6 + $0x38] sm:$0xff] %v709_v57  ;;  %v716_v63 = vmax.f32 %v698_v59, 0.0  ;;  %v700_v2 = vadd.f32 %v699_v61, %v385_v30 }
 0x141   : > { %730 = vst [vmem:[%s1106_s6 + $0x60] sm:$0xff] %v714_v62  ;;  %v715_v3 = vmax.f32 %v623_v1, 0.0 }
 0x142   : > { %732 = vst [vmem:[%s1106_s6 + $0x70] sm:$0xff] %v716_v63  ;;  %v717_v4 = vmax.f32 %v700_v2, 0.0 }
 0x143   : > { %731 = vst [vmem:[%s1106_s6 + $0x68] sm:$0xff] %v715_v3 }
 0x144   : > { %733 = vst [vmem:[%s1106_s6 + $0x78] sm:$0xff] %v717_v4 }
 0x145 PF: > { %s13_s12 = sadd.s32 1, %s825_s12  }
 0x146   : > { %p10_p4 = scmp.ge.s32.totalorder %s13_s12, 4  }
 0x148   :  { %12 = sbr.rel (!%p10_p4) target bundleno = 1 (0x1), region = 62 }

// kernel: downsample_forward.6
= control target key start
LH: loop header
LB: loop body
LE: loop exit
PB: predicated region body
PF: predicated region fallthrough
CT: control target
= control target key end

     0   :  { %s4007_s25 = smov 0   ;;  %s5125_s0 = inlined_call_operand.vmem [shape: f32[2,144,256], index: 0, kind: input, shape index: {}]   ;;  %s5126_s1 = inlined_call_operand.vmem [shape: f32[2,16,256], index: 1, kind: input, shape index: {}]   ;;  %s5127_s2 = inlined_call_operand.vmem [shape: f32[9,1,256], index: 2, kind: input, shape index: {}]   ;;  %s5128_s3 = inlined_call_operand.vmem [shape: f32[16,144], index: 3, kind: input, shape index: {}]   ;;  %s5129_s4 = inlined_call_operand.vmem [shape: f32[16,16], index: 4, kind: input, shape index: {}]   ;;  %s5130_s5 = inlined_call_operand.vmem [shape: f32[9,16,16], index: 5, kind: input, shape index: {}]   ;;  %s5131_s6 = inlined_call_operand.vmem [shape: f32[9,16,16], index: 6, kind: input, shape index: {}]   ;;  %s5132_s7 = inlined_call_operand.vmem [shape: f32[9,16,16], index: 7, kind: input, shape index: {}]   ;;  %s5133_s8 = inlined_call_operand.vmem [shape: f32[16,1], index: 8, kind: input, shape index: {}]   ;;  %s5134_s9 = inlined_call_operand.vmem [shape: f32[16,1], index: 9, kind: input, shape index: {}]   ;;  %s5135_s10 = inlined_call_operand.vmem [shape: f32[16,1], index: 10, kind: input, shape index: {}]   ;;  %s5136_s11 = inlined_call_operand.vmem [shape: f32[16,1], index: 11, kind: input, shape index: {}]   ;;  %s5137_s12 = inlined_call_operand.vmem [shape: f32[16,1], index: 12, kind: input, shape index: {}]   ;;  %s5138_s13 = inlined_call_operand.vmem [shape: f32[2,16,256], index: 13, kind: output, shape index: {}]  }
   0x1 LB: > { %s3766_s26 = sadd.s32 4294967295, %s3925_s25   ;;  %p3770_p0 = scmp.ge.s32.totalorder %s3925_s25, 1  ;;  %s3925_s25 = sphi %s4007_s25, %s23_s25  }
   0x2   : > { %p397_p1 = scmp.lt.s32.totalorder %s3925_s25, 3 }
   0x4   : > { %p398_p2 = pnand %p3770_p0, %p397_p1 }
   0x5   : > { %p446_p3 = scmp.lt.s32.totalorder (!%p398_p2), %s3766_s26, 1  ;;  %s3931_s24 = smov (!%p398_p2), 14  }
   0x6   : > { %401 = sbr.rel (%p398_p2) target bundleno = 1409 (0x581), region = 72  ;;  %s3932_s27 = smov (!%p398_p2), 1  }
   0x7   : > { %s3933_s28 = smov (!%p398_p2), 127   ;;  %s3934_s29 = smov (!%p398_p2), 114  }
   0x8   : > { %s3935_s15 = smov (!%p398_p2), 113  }
   0xb   : > { %v462_v0 = vld [vmem:[%s5128_s3 + $0x8] sm:$0xff]  ;;  %vm513_vm0 = vcmask 130048   ;;  %v3927_v1 = vmov 0   ;;  %s5143_s26 = smov (!%p446_p3, %s3766_s26), 1  ;;  %v5139_v3 = vmov 0.0   ;;  %v501_v4 = vld [vmem:[%s5133_s8] sm:$0xff]  ;;  %v710_v51 = vlaneseq }
   0xc   : > { %3776 = vmatprep.mubr.msk.f32.mxu0 %vm513_vm0, %v462_v0  ;;  %3917 = vset.pattern.permute.xlu0 %v3927_v1  ;;  %v502_v2 = vld [vmem:[%s5133_s8 + $0x8] sm:$0xff]  ;;  %s3898_s16 = smul.u32 288, %s5143_s26  ;;  %s3892_s17 = sshll.u32 %s5143_s26, 5  ;;  %v601_v22 = vld [vmem:[%s5129_s4] sm:$0xff]  ;;  %v464_v48 = vld [vmem:[%s5128_s3 + $0x18] sm:$0xff] }
   0xd   : > { %510 = vperm.xlu0 %3917, %v502_v2   ;;  %689 = vmatprep.mubr.f32.mxu1 %v5139_v3  ;;  %s4035_s20 = scalar_lea.vmem %s5126_s1, %s3892_s17  ;;  %v602_v28 = vld [vmem:[%s5129_s4 + $0x8] sm:$0xff]  ;;  %v461_v47 = vld [vmem:[%s5128_s3] sm:$0xff]  ;;  %v463_v49 = vld [vmem:[%s5128_s3 + $0x10] sm:$0xff]  ;;  %v720_v56 = vshrl.u32 %v710_v51, 7 }
   0xe   : > { %3918 = vset.pattern.permute.xlu1 %v3927_v1  ;;  %s4040_s23 = scalar_lea.vmem %s5125_s0, %s3898_s16  ;;  %v606_v5 = vld [vmem:[%s4035_s20 + $0x18] sm:$0xff]  ;;  %v605_v6 = vld [vmem:[%s4035_s20 + $0x10] sm:$0xff]  ;;  %v604_v7 = vld [vmem:[%s4035_s20 + $0x8] sm:$0xff]  ;;  %s3936_s16 = smov 112  }
   0xf   : > { %v496_v8 = vld [vmem:[%s4040_s23 + $0xf8] sm:$0xff]  ;;  %v495_v9 = vld [vmem:[%s4040_s23 + $0xf0] sm:$0xff]  ;;  %v494_v10 = vld [vmem:[%s4040_s23 + $0xe8] sm:$0xff]  ;;  %653 = vmatprep.subr.mxu1 %v606_v5  ;;  %v4107_v62 = vsub.s32 1, %v720_v56  ;;  %v4109_v0 = vsub.s32 0, %v720_v56 }
  0x10   : > { %520 = vmatprep.subr.mxu0 %v496_v8  ;;  %v493_v11 = vld [vmem:[%s4040_s23 + $0xe0] sm:$0xff]  ;;  %654 = vmatpush1.msra.mxu1 %v605_v6  ;;  %v492_v12 = vld [vmem:[%s4040_s23 + $0xd8] sm:$0xff]  ;;  %v491_v13 = vld [vmem:[%s4040_s23 + $0xd0] sm:$0xff] }
  0x11   : > { %505 = vperm.xlu0 %3917, %v501_v4   ;;  %521 = vmatpush1.msra.mxu0 %v495_v9  ;;  %v490_v14 = vld [vmem:[%s4040_s23 + $0xc8] sm:$0xff]  ;;  %v489_v15 = vld [vmem:[%s4040_s23 + $0xc0] sm:$0xff]  ;;  %v488_v16 = vld [vmem:[%s4040_s23 + $0xb8] sm:$0xff] }
  0x12   : > { %655 = vmatprep.subr.mxu1 %v604_v7  ;;  %522 = vmatprep.subr.mxu0 %v494_v10  ;;  %v487_v17 = vld [vmem:[%s4040_s23 + $0xb0] sm:$0xff]  ;;  %v486_v18 = vld [vmem:[%s4040_s23 + $0xa8] sm:$0xff]  ;;  %v485_v19 = vld [vmem:[%s4040_s23 + $0xa0] sm:$0xff] }
  0x13   : > { %523 = vmatpush1.msra.mxu0 %v493_v11  ;;  %v484_v20 = vld [vmem:[%s4040_s23 + $0x98] sm:$0xff]  ;;  %v483_v21 = vld [vmem:[%s4040_s23 + $0x90] sm:$0xff]  ;;  %v482_v23 = vld [vmem:[%s4040_s23 + $0x88] sm:$0xff] }
  0x14   : > { %524 = vmatprep.subr.mxu0 %v492_v12  ;;  %v603_v24 = vld [vmem:[%s4035_s20] sm:$0xff]  ;;  %v480_v26 = vld [vmem:[%s4040_s23 + $0x78] sm:$0xff]  ;;  %v479_v27 = vld [vmem:[%s4040_s23 + $0x70] sm:$0xff]  ;;  %s3929_s20 = smov 15  }
  0x15   : > { %525 = vmatpush1.msra.mxu0 %v491_v13  ;;  %v481_v25 = vld [vmem:[%s4040_s23 + $0x80] sm:$0xff]  ;;  %656 = vmatpush1.msra.mxu1 %v603_v24  ;;  %v478_v29 = vld [vmem:[%s4040_s23 + $0x68] sm:$0xff]  ;;  %v476_v31 = vld [vmem:[%s4040_s23 + $0x58] sm:$0xff] }
  0x16   : > { %526 = vmatprep.subr.mxu0 %v490_v14  ;;  %3778 = vmatmul.mubr.msk.f32.vlgmr.msra.gmra.mxu1 %vm513_vm0, %v601_v22  ;;  %v477_v30 = vld [vmem:[%s4040_s23 + $0x60] sm:$0xff]  ;;  %v475_v32 = vld [vmem:[%s4040_s23 + $0x50] sm:$0xff]  ;;  %v474_v33 = vld [vmem:[%s4040_s23 + $0x48] sm:$0xff] }
  0x17   : > { %527 = vmatpush1.msra.mxu0 %v489_v15  ;;  %695 = vmatprep.mubr.f32.mxu1 %v5139_v3  ;;  %v473_v34 = vld [vmem:[%s4040_s23 + $0x40] sm:$0xff]  ;;  %v472_v35 = vld [vmem:[%s4040_s23 + $0x38] sm:$0xff]  ;;  %v471_v36 = vld [vmem:[%s4040_s23 + $0x30] sm:$0xff] }
  0x18   : > { %528 = vmatprep.subr.mxu0 %v488_v16  ;;  %v470_v37 = vld [vmem:[%s4040_s23 + $0x28] sm:$0xff]  ;;  %v469_v38 = vld [vmem:[%s4040_s23 + $0x20] sm:$0xff]  ;;  %v468_v39 = vld [vmem:[%s4040_s23 + $0x18] sm:$0xff] }
  0x19   : > { %529 = vmatpush1.msra.mxu0 %v487_v17  ;;  %v467_v40 = vld [vmem:[%s4040_s23 + $0x10] sm:$0xff]  ;;  %v466_v41 = vld [vmem:[%s4040_s23 + $0x8] sm:$0xff]  ;;  %v465_v42 = vld [vmem:[%s4040_s23] sm:$0xff] }
  0x1a   : > { %530 = vmatprep.subr.mxu0 %v486_v18  ;;  %3779 = vmatmul.mubr.msk.f32.gmra.mxu1 %vm513_vm0, %v602_v28  ;;  %v500_v43 = vld [vmem:[%s4040_s23 + $0x118] sm:$0xff]  ;;  %v499_v44 = vld [vmem:[%s4040_s23 + $0x110] sm:$0xff]  ;;  %v498_v45 = vld [vmem:[%s4040_s23 + $0x108] sm:$0xff] }
  0x1b   : > { %531 = vmatpush1.msra.mxu0 %v485_v19  ;;  %838 = vmatprep.mubr.f32.mxu1 %v5139_v3  ;;  %v497_v46 = vld [vmem:[%s4040_s23 + $0x100] sm:$0xff]  ;;  %v3797_v2 = vld [vmem:[%s5127_s2 + $0x8] sm:$0x3]  ;;  %s3930_s23 = smov 16  }
  0x1c   : > { %532 = vmatprep.subr.mxu0 %v484_v20  ;;  %v4118_v6 = vrot.slane %v3797_v2, %v4107_v62  ;;  %v4121_v7 = vrot.slane %v3797_v2, %v4109_v0  ;;  %v3798_v12 = vld [vmem:[%s5130_s5 + $0x40] sm:$0xff]  ;;  %v608_v13 = vld [vmem:[%s5134_s9 + $0x8] sm:$0xff] }
  0x1d   : > { %533 = vmatpush1.msra.mxu0 %v483_v21  ;;  %v607_v14 = vld [vmem:[%s5134_s9] sm:$0xff]  ;;  %v1762_v15 = vld [vmem:[%s5135_s10 + $0x8] sm:$0xff] }
  0x1e   : > { %534 = vmatprep.subr.mxu0 %v482_v23  ;;  %v1761_v16 = vld [vmem:[%s5135_s10] sm:$0xff]  ;;  %v4198_v23 = vand.u32 127, %v710_v51 }
  0x1f   : > { %535 = vmatpush1.msra.mxu0 %v481_v25 }
  0x20   : > { %536 = vmatprep.subr.mxu0 %v480_v26  ;;  %v3780_v26 = vld [vmem:[%s5127_s2 + $0x2] sm:$0x3]  ;;  %vm743_vm1 = vcmp.lt.s32.totalorder %v4198_v23, 15  ;;  %vm712_vm2 = vcmp.lt.s32.totalorder %v4198_v23, 16  ;;  %vm942_vm3 = vcmp.lt.s32.totalorder %v4198_v23, 14  ;;  %vm1062_vm4 = vcmp.lt.s32.totalorder %v4198_v23, 1 }
  0x21   : > { %537 = vmatpush1.msra.mxu0 %v479_v27  ;;  %v4207_v28 = vrot.slane %v3780_v26, %v4109_v0  ;;  %vm1289_vm5 = vcmp.lt.s32.totalorder %v4198_v23, 127  ;;  %vm1409_vm6 = vcmp.lt.s32.totalorder %v4198_v23, 114  ;;  %vm1529_vm7 = vcmp.lt.s32.totalorder %v4198_v23, 113 }
  0x22   : > { %538 = vmatprep.subr.mxu0 %v478_v29  ;;  %v4210_v29 = vrot.slane %v3780_v26, %v4107_v62  ;;  %vm1649_vm8 = vcmp.lt.s32.totalorder %v4198_v23, 112  ;;  %v3886_v23 = vld [vmem:[%s5132_s7 + $0x80] sm:$0xff] }
  0x23   : > { %539 = vmatpush1.msra.mxu0 %v477_v30 }
  0x24   : > { %540 = vmatprep.subr.mxu0 %v476_v31 }
  0x25   : > { %541 = vmatpush1.msra.mxu0 %v475_v32 }
  0x26   : > { %542 = vmatprep.subr.mxu0 %v474_v33 }
  0x27   : > { %543 = vmatpush1.msra.mxu0 %v473_v34 }
  0x28   : > { %544 = vmatprep.subr.mxu0 %v472_v35 }
  0x29   : > { %545 = vmatpush1.msra.mxu0 %v471_v36 }
  0x2a   : > { %546 = vmatprep.subr.mxu0 %v470_v37 }
  0x2b   : > { %547 = vmatpush1.msra.mxu0 %v469_v38 }
  0x2c   : > { %548 = vmatprep.subr.mxu0 %v468_v39 }
  0x2d   : > { %549 = vmatpush1.msra.mxu0 %v467_v40 }
  0x2e   : > { %550 = vmatprep.subr.mxu0 %v466_v41  ;;  %v717_v41 = vld [vmem:[%s5127_s2] sm:$0x3] }
  0x2f   : > { %551 = vmatpush1.msra.mxu0 %v465_v42  ;;  %v3781_v42 = vld [vmem:[%s5130_s5 + $0x10] sm:$0xff] }
  0x30   : > { %580 = vmatprep.subr.mxu0 %v500_v43 }
  0x31   : > { %581 = vmatpush2.msra.mxu0 %v499_v44  ;;  %v4234_v44 = vrot.slane %v717_v41, %v4109_v0 }
  0x32   : > { %582 = vmatprep.subr.mxu0 %v498_v45  ;;  %v4237_v45 = vrot.slane %v717_v41, %v4107_v62  ;;  %v3802_v41 = vld [vmem:[%s5127_s2 + $0xa] sm:$0x3] }
  0x33   : > { %583 = vmatpush2.msra.mxu0 %v497_v46 }
  0x34   : > { %585 = vmatmul.mubr.f32.vlgmr.msra.gmra.mxu0 %v461_v47 }
  0x35   : > { %3777 = vmatprep.mubr.msk.f32.mxu0 %vm513_vm0, %v464_v48 }
  0x38   : > { %591 = vmatmul.mubr.f32.gmra.mxu0 %v463_v49 }
  0x39   : > { %1264 = vmatprep.mubr.f32.mxu0 %v5139_v3 }
  0x88   : > { %v511_v50 = vpop.permute.xlu0 %510 }
  0x8c   : > { %v506_v52 = vpop.permute.xlu0 %505 }
  0xf4   : > { %v586_v53 = vpop.f32.mrf.mxu0 }
  0xf5   : > { %v587_v54 = vadd.f32 %v586_v53, %v506_v52 }
  0xf6   : > { %v588_v55 = vpop.f32.mrf.mxu0 }
  0xf7   : > { %v597_v57 = vmax.f32 %v587_v54, 0.0  ;;  %v589_v58 = vadd.f32 %v588_v55, %v506_v52 }
  0xf8   : > { %v592_v59 = vpop.f32.mrf.mxu0 }
  0xf9   : > { %v4104_v60 = vmax.f32 %v589_v58, 0.0  ;;  %v593_v61 = vadd.f32 %v592_v59, %v511_v50  ;;  %735 = vrot.lane.b32.xlu0 %v597_v57, %s3929_s20  ;;  %v4139_v11 = vmul.f32 %v4121_v7, %v597_v57  ;;  %v3787_v58 = vld [vmem:[%s5127_s2 + $0x4] sm:$0x3] }
  0xfa   : > { %v594_v63 = vpop.f32.mrf.mxu0  ;;  %v733_v59 = vld [vmem:[%s5130_s5] sm:$0xff] }
  0xfb   : > { %v595_v1 = vadd.f32 %v594_v63, %v511_v50  ;;  %739 = vrot.lane.b32.xlu1 %v4104_v60, %s3929_s20  ;;  %v599_v4 = vmax.f32 %v593_v61, 0.0  ;;  %v4135_v10 = vmul.f32 %v4118_v6, %v4104_v60  ;;  %v3782_v50 = vld [vmem:[%s5130_s5 + $0x18] sm:$0xff]  ;;  %v4272_v61 = vrot.slane %v3787_v58, %v4109_v0 }
  0xfc   : > { %v4275_v63 = vrot.slane %v3787_v58, %v4107_v62 }
  0xfd   : > { %v600_v5 = vmax.f32 %v595_v1, 0.0  ;;  %702 = vrot.lane.b32.xlu0 %v597_v57, %s3930_s23  ;;  %v4129_v9 = vmul.f32 %v4121_v7, %v599_v4 }
  0xff   : > { %706 = vrot.lane.b32.xlu1 %v4104_v60, %s3930_s23  ;;  %v4126_v8 = vmul.f32 %v4118_v6, %v600_v5 }
 0x101   : > { %1228 = vmatprep.subr.mxu0 %v4126_v8  ;;  %934 = vrot.lane.b32.xlu0 %v597_v57, %s3931_s24 }
 0x102   : > { %1229 = vmatpush1.msra.mxu0 %v4129_v9 }
 0x103   : > { %938 = vrot.lane.b32.xlu1 %v4104_v60, %s3931_s24  ;;  %1230 = vmatprep.subr.mxu0 %v4135_v10 }
 0x104   : > { %1231 = vmatpush1.msra.mxu0 %v4139_v11 }
 0x105   : > { %1054 = vrot.lane.b32.xlu0 %v597_v57, %s3932_s27  ;;  %3800 = vmatmul.mubr.msk.f32.vlgmr.msra.gmra.mxu0 %vm513_vm0, %v3798_v12  ;;  %v734_v12 = vld [vmem:[%s5130_s5 + $0x8] sm:$0xff] }
 0x106   : > { %1504 = vmatprep.mubr.f32.mxu0 %v5139_v3 }
 0x107   : > { %737 = vrot.lane.b32.xlu1 %v599_v4, %s3929_s20 }
 0x109   : > { %704 = vrot.lane.b32.xlu0 %v599_v4, %s3930_s23 }
 0x10b   : > { %741 = vrot.lane.b32.xlu1 %v600_v5, %s3929_s20 }
 0x10d   : > { %936 = vrot.lane.b32.xlu0 %v599_v4, %s3931_s24 }
 0x10f   : > { %1058 = vrot.lane.b32.xlu1 %v4104_v60, %s3932_s27 }
 0x111   : > { %1056 = vrot.lane.b32.xlu0 %v599_v4, %s3932_s27 }
 0x113   : > { %708 = vrot.lane.b32.xlu1 %v600_v5, %s3930_s23 }
 0x115   : > { %1283 = vrot.lane.b32.xlu0 %v599_v4, %s3933_s28 }
 0x117   : > { %1285 = vrot.lane.b32.xlu1 %v4104_v60, %s3933_s28 }
 0x119   : > { %1281 = vrot.lane.b32.xlu0 %v597_v57, %s3933_s28 }
 0x11b   : > { %940 = vrot.lane.b32.xlu1 %v600_v5, %s3931_s24 }
 0x11d   : > { %1403 = vrot.lane.b32.xlu0 %v599_v4, %s3934_s29 }
 0x11f   : > { %1405 = vrot.lane.b32.xlu1 %v4104_v60, %s3934_s29 }
 0x121   : > { %1401 = vrot.lane.b32.xlu0 %v597_v57, %s3934_s29 }
 0x123   : > { %1060 = vrot.lane.b32.xlu1 %v600_v5, %s3932_s27 }
 0x125   : > { %1523 = vrot.lane.b32.xlu0 %v599_v4, %s3935_s15 }
 0x127   : > { %1525 = vrot.lane.b32.xlu1 %v4104_v60, %s3935_s15 }
 0x129   : > { %1521 = vrot.lane.b32.xlu0 %v597_v57, %s3935_s15 }
 0x12b   : > { %1287 = vrot.lane.b32.xlu1 %v600_v5, %s3933_s28 }
 0x12d   : > { %1643 = vrot.lane.b32.xlu0 %v599_v4, %s3936_s16 }
 0x12f   : > { %1407 = vrot.lane.b32.xlu1 %v600_v5, %s3934_s29 }
 0x131   : > { %1641 = vrot.lane.b32.xlu0 %v597_v57, %s3936_s16 }
 0x133   : > { %1527 = vrot.lane.b32.xlu1 %v600_v5, %s3935_s15 }
 0x135   : > { %616 = vperm.xlu0 %3917, %v608_v13  }
 0x137   : > { %1647 = vrot.lane.b32.xlu1 %v600_v5, %s3936_s16 }
 0x139   : > { %611 = vperm.xlu0 %3917, %v607_v14  }
 0x13b   : > { %1645 = vrot.lane.b32.xlu1 %v4104_v60, %s3936_s16 }
 0x13f   : > { %1770 = vperm.xlu1 %3918, %v1762_v15  }
 0x143   : > { %1765 = vperm.xlu1 %3918, %v1761_v16  }
 0x16b   : > { %v736_v17 = vpop.permute.xlu0 %735 }
 0x16d   : > { %v740_v18 = vpop.permute.xlu1 %739 }
 0x16e   : > { %v744_v31 = vsel %vm743_vm1, %v736_v17, %v740_v18  ;;  %v746_v34 = vsel %vm743_vm1, %v740_v18, %v736_v17 }
 0x16f   : > { %v703_v19 = vpop.permute.xlu0 %702  ;;  %v762_v39 = vmul.f32 %v4210_v29, %v744_v31  ;;  %v761_v40 = vmul.f32 %v4207_v28, %v746_v34 }
 0x171   : > { %v707_v20 = vpop.permute.xlu1 %706 }
 0x172   : > { %v713_v47 = vsel %vm712_vm2, %v703_v19, %v707_v20  ;;  %v715_v51 = vsel %vm712_vm2, %v707_v20, %v703_v19  ;;  %v3792_v20 = vld [vmem:[%s5127_s2 + $0x6] sm:$0x3] }
 0x173   : > { %v4193_v21 = vpop.permute.xlu0 %934  ;;  %v730_v56 = vmul.f32 %v4237_v45, %v713_v47  ;;  %v729_v57 = vmul.f32 %v4234_v44, %v715_v51 }
 0x175   : > { %v4195_v22 = vpop.permute.xlu1 %938 }
 0x176   : > { %v943_v2 = vsel %vm942_vm3, %v4193_v21, %v4195_v22  ;;  %v945_v13 = vsel %vm942_vm3, %v4195_v22, %v4193_v21  ;;  %v3788_v21 = vld [vmem:[%s5130_s5 + $0x20] sm:$0xff]  ;;  %v4312_v22 = vrot.slane %v3792_v20, %v4109_v0 }
 0x177   : > { %v4200_v24 = vpop.permute.xlu0 %1054  ;;  %v961_v18 = vmul.f32 %v4275_v63, %v943_v2  ;;  %v960_v19 = vmul.f32 %v4272_v61, %v945_v13 }
 0x179   : > { %v738_v25 = vpop.permute.xlu1 %737 }
 0x17b   : > { %v705_v27 = vpop.permute.xlu0 %704 }
 0x17d   : > { %v742_v30 = vpop.permute.xlu1 %741 }
 0x17e   : > { %v745_v32 = vsel %vm743_vm1, %v738_v25, %v742_v30  ;;  %v747_v33 = vsel %vm743_vm1, %v742_v30, %v738_v25  ;;  %v4315_v25 = vrot.slane %v3792_v20, %v4107_v62 }
 0x17f   : > { %v763_v35 = vmul.f32 %v4207_v28, %v747_v33  ;;  %v764_v36 = vmul.f32 %v4210_v29, %v745_v32  ;;  %v937_v37 = vpop.permute.xlu0 %936  ;;  %v3789_v33 = vld [vmem:[%s5130_s5 + $0x28] sm:$0xff] }
 0x181   : > { %802 = vmatprep.subr.mxu1 %v764_v36  ;;  %v4222_v38 = vpop.permute.xlu1 %1058 }
 0x182   : > { %803 = vmatpush1.msra.mxu1 %v763_v35  ;;  %v1063_v30 = vsel %vm1062_vm4, %v4200_v24, %v4222_v38  ;;  %v1065_v34 = vsel %vm1062_vm4, %v4222_v38, %v4200_v24  ;;  %v3793_v24 = vld [vmem:[%s5130_s5 + $0x30] sm:$0xff] }
 0x183   : > { %804 = vmatprep.subr.mxu1 %v762_v39  ;;  %v1057_v43 = vpop.permute.xlu0 %1056 }
 0x184   : > { %805 = vmatpush1.msra.mxu1 %v761_v40  ;;  %v1080_v40 = vmul.f32 %v4312_v22, %v1065_v34 }
 0x185   : > { %v709_v46 = vpop.permute.xlu1 %708  ;;  %3783 = vmatmul.mubr.msk.f32.vlgmr.msra.gmra.mxu1 %vm513_vm0, %v3781_v42  ;;  %v4350_v42 = vrot.slane %v3802_v41, %v4107_v62 }
 0x186   : > { %v714_v48 = vsel %vm712_vm2, %v705_v27, %v709_v46  ;;  %v716_v49 = vsel %vm712_vm2, %v709_v46, %v705_v27  ;;  %844 = vmatprep.mubr.f32.mxu1 %v5139_v3 }
 0x187   : > { %v731_v52 = vmul.f32 %v4234_v44, %v716_v49  ;;  %v732_v53 = vmul.f32 %v4237_v45, %v714_v48  ;;  %v4254_v54 = vpop.permute.xlu0 %1283  ;;  %v3794_v48 = vld [vmem:[%s5130_s5 + $0x38] sm:$0xff] }
 0x189   : > { %v4256_v55 = vpop.permute.xlu1 %1285  ;;  %3784 = vmatmul.mubr.msk.f32.gmra.mxu1 %vm513_vm0, %v3782_v50  ;;  %885 = vmatprep.subr.mxu1 %v732_v53 }
 0x18a   : > { %886 = vmatpush1.msra.mxu1 %v731_v52  ;;  %921 = vmatprep.mubr.f32.mxu1 %v5139_v3 }
 0x18b   : > { %887 = vmatprep.subr.mxu1 %v730_v56  ;;  %v4269_v60 = vpop.permute.xlu0 %1281 }
 0x18c   : > { %888 = vmatpush1.msra.mxu1 %v729_v57  ;;  %v1290_v51 = vsel %vm1289_vm5, %v4269_v60, %v4256_v55  ;;  %v1292_v57 = vsel %vm1289_vm5, %v4256_v55, %v4269_v60 }
 0x18d   : > { %v941_v1 = vpop.permute.xlu1 %940  ;;  %3785 = vmatmul.mubr.msk.f32.vlgmr.msra.gmra.mxu1 %vm513_vm0, %v733_v59 }
 0x18e   : > { %v944_v4 = vsel %vm942_vm3, %v937_v37, %v941_v1  ;;  %v946_v5 = vsel %vm942_vm3, %v941_v1, %v937_v37  ;;  %927 = vmatprep.mubr.f32.mxu1 %v5139_v3  ;;  %v1081_v37 = vmul.f32 %v4315_v25, %v1063_v30  ;;  %v3799_v1 = vld [vmem:[%s5130_s5 + $0x48] sm:$0xff] }
 0x18f   : > { %v962_v14 = vmul.f32 %v4272_v61, %v946_v5  ;;  %v963_v15 = vmul.f32 %v4275_v63, %v944_v4  ;;  %v4296_v16 = vpop.permute.xlu0 %1403 }
 0x191   : > { %v4298_v17 = vpop.permute.xlu1 %1405  ;;  %3786 = vmatmul.mubr.msk.f32.gmra.mxu1 %vm513_vm0, %v734_v12  ;;  %1001 = vmatprep.subr.mxu1 %v963_v15 }
 0x192   : > { %1002 = vmatpush1.msra.mxu1 %v962_v14  ;;  %1037 = vmatprep.mubr.f32.mxu1 %v5139_v3 }
 0x193   : > { %1003 = vmatprep.subr.mxu1 %v961_v18  ;;  %v1402_v26 = vpop.permute.xlu0 %1401 }
 0x194   : > { %1004 = vmatpush1.msra.mxu1 %v960_v19  ;;  %v1412_v58 = vsel %vm1409_vm6, %v4298_v17, %v1402_v26  ;;  %v1410_v55 = vsel %vm1409_vm6, %v1402_v26, %v4298_v17 }
 0x195   : > { %v1061_v27 = vpop.permute.xlu1 %1060  ;;  %3790 = vmatmul.mubr.msk.f32.vlgmr.msra.gmra.mxu1 %vm513_vm0, %v3788_v21 }
 0x196   : > { %v1064_v31 = vsel %vm1062_vm4, %v1057_v43, %v1061_v27  ;;  %v1066_v32 = vsel %vm1062_vm4, %v1061_v27, %v1057_v43  ;;  %1043 = vmatprep.mubr.f32.mxu1 %v5139_v3  ;;  %v3807_v43 = vld [vmem:[%s5127_s2 + $0xc] sm:$0x3] }
 0x197   : > { %v1082_v35 = vmul.f32 %v4312_v22, %v1066_v32  ;;  %v1083_v36 = vmul.f32 %v4315_v25, %v1064_v31  ;;  %v1524_v38 = vpop.permute.xlu0 %1523  ;;  %v4372_v50 = vrot.slane %v3807_v43, %v4109_v0  ;;  %v4383_v52 = vrot.slane %v3807_v43, %v4107_v62  ;;  %v3808_v31 = vld [vmem:[%s5130_s5 + $0x60] sm:$0xff] }
 0x199   : > { %v4337_v39 = vpop.permute.xlu1 %1525  ;;  %3791 = vmatmul.mubr.msk.f32.gmra.mxu1 %vm513_vm0, %v3789_v33  ;;  %1121 = vmatprep.subr.mxu1 %v1083_v36  ;;  %v1428_v17 = vmul.f32 %v4383_v52, %v1412_v58  ;;  %v1427_v19 = vmul.f32 %v4372_v50, %v1410_v55 }
 0x19a   : > { %1122 = vmatpush1.msra.mxu1 %v1082_v35  ;;  %1157 = vmatprep.mubr.f32.mxu1 %v5139_v3 }
 0x19b   : > { %1123 = vmatprep.subr.mxu1 %v1081_v37 }
 0x19c   : > { %1124 = vmatpush1.msra.mxu1 %v1080_v40 }
 0x19d   : > { %v1288_v46 = vpop.permute.xlu1 %1287  ;;  %3795 = vmatmul.mubr.msk.f32.vlgmr.msra.gmra.mxu1 %vm513_vm0, %v3793_v24  ;;  %3894 = vmatprep.subr.mxu1 %v4126_v8  ;;  %v4369_v8 = vrot.slane %v3802_v41, %v4109_v0  ;;  %v3804_v41 = vld [vmem:[%s5130_s5 + $0x58] sm:$0xff]  ;;  %v3809_v24 = vld [vmem:[%s5130_s5 + $0x68] sm:$0xff] }
 0x19e   : > { %v1293_v47 = vsel %vm1289_vm5, %v1288_v46, %v4254_v54  ;;  %3896 = vmatpush1.msra.mxu1 %v4129_v9  ;;  %1163 = vmatprep.mubr.f32.mxu1 %v5139_v3  ;;  %v3812_v9 = vld [vmem:[%s5127_s2 + $0xe] sm:$0x3]  ;;  %v1291_v53 = vsel %vm1289_vm5, %v4254_v54, %v1288_v46 }
 0x19f   : > { %v1310_v49 = vmul.f32 %v4350_v42, %v1293_v47  ;;  %3895 = vmatprep.subr.mxu1 %v4135_v10  ;;  %v1522_v10 = vpop.permute.xlu0 %1521  ;;  %v4414_v60 = vrot.slane %v3812_v9, %v4109_v0  ;;  %v4419_v5 = vrot.slane %v3812_v9, %v4107_v62  ;;  %v1309_v12 = vmul.f32 %v4369_v8, %v1291_v53  ;;  %v3813_v9 = vld [vmem:[%s5130_s5 + $0x70] sm:$0xff]  ;;  %v3819_v53 = vld [vmem:[%s5130_s5 + $0x88] sm:$0xff] }
 0x1a0   : > { %3897 = vmatpush1.msra.mxu1 %v4139_v11  ;;  %v3817_v11 = vld [vmem:[%s5127_s2 + $0x10] sm:$0x3]  ;;  %v1307_v15 = vmul.f32 %v4369_v8, %v1290_v51  ;;  %v1532_v21 = vsel %vm1529_vm7, %v4337_v39, %v1522_v10  ;;  %v1530_v32 = vsel %vm1529_vm7, %v1522_v10, %v4337_v39  ;;  %v3818_v51 = vld [vmem:[%s5130_s5 + $0x80] sm:$0xff]  ;;  %v3814_v10 = vld [vmem:[%s5130_s5 + $0x78] sm:$0xff] }
 0x1a1   : > { %v1408_v56 = vpop.permute.xlu1 %1407  ;;  %3796 = vmatmul.mubr.msk.f32.gmra.mxu1 %vm513_vm0, %v3794_v48  ;;  %1348 = vmatprep.subr.mxu1 %v1310_v49  ;;  %v4423_v13 = vrot.slane %v3817_v11, %v4109_v0  ;;  %v4426_v14 = vrot.slane %v3817_v11, %v4107_v62  ;;  %v3803_v62 = vld [vmem:[%s5130_s5 + $0x50] sm:$0xff]  ;;  %v1548_v34 = vmul.f32 %v4419_v5, %v1532_v21 }
 0x1a2   : > { %v1411_v54 = vsel %vm1409_vm6, %v4296_v16, %v1408_v56  ;;  %v1413_v59 = vsel %vm1409_vm6, %v1408_v56, %v4296_v16  ;;  %1270 = vmatprep.mubr.f32.mxu1 %v5139_v3  ;;  %v1308_v16 = vmul.f32 %v4350_v42, %v1292_v57  ;;  %v1547_v37 = vmul.f32 %v4414_v60, %v1530_v32  ;;  %v691_v56 = vpop.f32.mrf.mxu1 }
 0x1a3   : > { %v1429_v2 = vmul.f32 %v4372_v50, %v1411_v54  ;;  %v1430_v4 = vmul.f32 %v4383_v52, %v1413_v59  ;;  %v1644_v26 = vpop.permute.xlu0 %1643 }
 0x1a4   : > { %v693_v11 = vpop.f32.mrf.mxu1 }
 0x1a5   : > { %v1528_v18 = vpop.permute.xlu1 %1527  ;;  %3801 = vmatmul.mubr.msk.f32.vlgmr.msra.gmra.mxu1 %vm513_vm0, %v3799_v1  ;;  %1468 = vmatprep.subr.mxu0 %v1430_v4 }
 0x1a6   : > { %v1531_v20 = vsel %vm1529_vm7, %v1524_v38, %v1528_v18  ;;  %v1533_v0 = vsel %vm1529_vm7, %v1528_v18, %v1524_v38  ;;  %1349 = vmatpush1.msra.mxu1 %v1309_v12  ;;  %1469 = vmatpush1.msra.mxu0 %v1429_v2  ;;  %v4501_v57 = vpop.f32.mrf.mxu1 }
 0x1a7   : > { %v1549_v27 = vmul.f32 %v4414_v60, %v1531_v20  ;;  %v1550_v30 = vmul.f32 %v4419_v5, %v1533_v0  ;;  %1350 = vmatprep.subr.mxu1 %v1308_v16  ;;  %1470 = vmatprep.subr.mxu0 %v1428_v17  ;;  %v1642_v38 = vpop.permute.xlu0 %1641 }
 0x1a8   : > { %1351 = vmatpush1.msra.mxu1 %v1307_v15  ;;  %1384 = vmatprep.mubr.f32.mxu1 %v5139_v3  ;;  %v4503_v58 = vpop.f32.mrf.mxu1 }
 0x1a9   : > { %1471 = vmatpush1.msra.mxu0 %v1427_v19  ;;  %v1648_v33 = vpop.permute.xlu1 %1647  ;;  %3805 = vmatmul.mubr.msk.f32.vlgmr.msra.gmra.mxu1 %vm513_vm0, %v3803_v62 }
 0x1aa   : > { %v1651_v35 = vsel %vm1649_vm8, %v1644_v26, %v1648_v33  ;;  %v1653_v36 = vsel %vm1649_vm8, %v1648_v33, %v1644_v26  ;;  %3810 = vmatmul.mubr.msk.f32.vlgmr.msra.gmra.mxu0 %vm513_vm0, %v3808_v31  ;;  %1588 = vmatprep.subr.mxu1 %v1550_v30 }
 0x1ab   : > { %v1669_v39 = vmul.f32 %v4423_v13, %v1651_v35  ;;  %v1670_v40 = vmul.f32 %v4426_v14, %v1653_v36  ;;  %1589 = vmatpush1.msra.mxu1 %v1549_v27  ;;  %1390 = vmatprep.mubr.f32.mxu1 %v5139_v3 }
 0x1ac   : > { %1590 = vmatprep.subr.mxu1 %v1548_v34  ;;  %1510 = vmatprep.mubr.f32.mxu0 %v5139_v3 }
 0x1ad   : > { %1591 = vmatpush1.msra.mxu1 %v1547_v37  ;;  %v1646_v43 = vpop.permute.xlu1 %1645  ;;  %1708 = vmatprep.subr.mxu0 %v1670_v40 }
 0x1ae   : > { %v1650_v46 = vsel %vm1649_vm8, %v1642_v38, %v1646_v43  ;;  %v1652_v47 = vsel %vm1649_vm8, %v1646_v43, %v1642_v38  ;;  %3806 = vmatmul.mubr.msk.f32.gmra.mxu1 %vm513_vm0, %v3804_v41  ;;  %3811 = vmatmul.mubr.msk.f32.gmra.mxu0 %vm513_vm0, %v3809_v24 }
 0x1af   : > { %v1667_v48 = vmul.f32 %v4423_v13, %v1650_v46  ;;  %v1668_v49 = vmul.f32 %v4426_v14, %v1652_v47  ;;  %1709 = vmatpush1.msra.mxu0 %v1669_v39  ;;  %1624 = vmatprep.mubr.f32.mxu1 %v5139_v3 }
 0x1b0   : > { %1744 = vmatprep.mubr.f32.mxu0 %v5139_v3  ;;  %v617_v43 = vpop.permute.xlu0 %616 }
 0x1b1   : > { %1710 = vmatprep.subr.mxu0 %v1668_v49 }
 0x1b2   : > { %3815 = vmatmul.mubr.msk.f32.vlgmr.msra.gmra.mxu1 %vm513_vm0, %v3813_v9  ;;  %1711 = vmatpush1.msra.mxu0 %v1667_v48 }
 0x1b3   : > { %3820 = vmatmul.mubr.msk.f32.vlgmr.msra.gmra.mxu0 %vm513_vm0, %v3818_v51  ;;  %1630 = vmatprep.mubr.f32.mxu1 %v5139_v3 }
 0x1b4   : > { %1750 = vmatprep.mubr.f32.mxu0 %v5139_v3 }
 0x1b6   : > { %3816 = vmatmul.mubr.msk.f32.gmra.mxu1 %vm513_vm0, %v3814_v10 }
 0x1b7   : > { %3821 = vmatmul.mubr.msk.f32.gmra.mxu0 %vm513_vm0, %v3819_v53  ;;  %1892 = vmatprep.mubr.f32.mxu1 %v5139_v3 }
 0x1b8   : > { %1975 = vmatprep.mubr.f32.mxu0 %v5139_v3 }
 0x1ba   : > { %v1771_v51 = vpop.permute.xlu1 %1770 }
 0x1c5   : > { %v1266_v27 = vpop.f32.mrf.mxu0 }
 0x1c7   : > { %v1268_v36 = vpop.f32.mrf.mxu0 }
 0x245   : > { %v840_v54 = vpop.f32.mrf.mxu1 }
 0x247   : > { %v842_v59 = vpop.f32.mrf.mxu1 }
 0x249   : > { %v846_v1 = vpop.f32.mrf.mxu1 }
 0x24b   : > { %v848_v55 = vpop.f32.mrf.mxu1 }
 0x24d   : > { %v923_v2 = vpop.f32.mrf.mxu1 }
 0x24e   : > { %v924_v21 = vadd.f32 %v923_v2, %v840_v54  ;;  %v612_v2 = vpop.permute.xlu0 %611 }
 0x24f   : > { %v925_v4 = vpop.f32.mrf.mxu1 }
 0x250   : > { %v926_v30 = vadd.f32 %v925_v4, %v842_v59 }
 0x251   : > { %v929_v12 = vpop.f32.mrf.mxu1 }
 0x253   : > { %v931_v15 = vpop.f32.mrf.mxu1 }
 0x255   : > { %v1039_v16 = vpop.f32.mrf.mxu1 }
 0x256   : > { %v1050_v31 = vadd.f32 %v1039_v16, %v924_v21 }
 0x257   : > { %v1041_v17 = vpop.f32.mrf.mxu1 }
 0x258   : > { %v1051_v33 = vadd.f32 %v1041_v17, %v926_v30 }
 0x259   : > { %v1045_v18 = vpop.f32.mrf.mxu1 }
 0x25b   : > { %v1047_v19 = vpop.f32.mrf.mxu1 }
 0x25d   : > { %v1159_v20 = vpop.f32.mrf.mxu1 }
 0x25e   : > { %v1170_v34 = vadd.f32 %v1159_v20, %v1050_v31  ;;  %v692_v31 = vadd.f32 %v691_v56, %v612_v2 }
 0x25f   : > { %v1161_v0 = vpop.f32.mrf.mxu1 }
 0x260   : > { %v1171_v37 = vadd.f32 %v1161_v0, %v1051_v33  ;;  %v1277_v41 = vadd.f32 %v1266_v27, %v1170_v34  ;;  %v930_v0 = vadd.f32 %v929_v12, %v846_v1  ;;  %v1766_v33 = vpop.permute.xlu1 %1765  ;;  %v932_v34 = vadd.f32 %v931_v15, %v848_v55 }
 0x261   : > { %v1165_v62 = vpop.f32.mrf.mxu1 }
 0x262   : > { %v1278_v46 = vadd.f32 %v1268_v36, %v1171_v37  ;;  %v1052_v36 = vadd.f32 %v1045_v18, %v930_v0 }
 0x263   : > { %v1167_v26 = vpop.f32.mrf.mxu1 }
 0x265   : > { %v1272_v32 = vpop.f32.mrf.mxu1 }
 0x267   : > { %v1274_v35 = vpop.f32.mrf.mxu1 }
 0x269   : > { %v1386_v39 = vpop.f32.mrf.mxu1 }
 0x26a   : > { %v1506_v40 = vpop.f32.mrf.mxu0  ;;  %v1397_v47 = vadd.f32 %v1386_v39, %v1277_v41  ;;  %v694_v41 = vadd.f32 %v693_v11, %v612_v2 }
 0x26b   : > { %v1388_v24 = vpop.f32.mrf.mxu1 }
 0x26c   : > { %v1508_v38 = vpop.f32.mrf.mxu0  ;;  %v1398_v9 = vadd.f32 %v1388_v24, %v1278_v46  ;;  %v1517_v53 = vadd.f32 %v1506_v40, %v1397_v47  ;;  %v1053_v24 = vadd.f32 %v1047_v19, %v932_v34  ;;  %v1172_v40 = vadd.f32 %v1165_v62, %v1052_v36 }
 0x26e   : > { %v1392_v48 = vpop.f32.mrf.mxu1  ;;  %v1512_v49 = vpop.f32.mrf.mxu0  ;;  %v1518_v4 = vadd.f32 %v1508_v38, %v1398_v9  ;;  %v1173_v3 = vadd.f32 %v1167_v26, %v1053_v24  ;;  %v1279_v38 = vadd.f32 %v1272_v32, %v1172_v40 }
 0x270   : > { %v1394_v10 = vpop.f32.mrf.mxu1  ;;  %v1514_v54 = vpop.f32.mrf.mxu0  ;;  %v1280_v1 = vadd.f32 %v1274_v35, %v1173_v3  ;;  %v1399_v12 = vadd.f32 %v1392_v48, %v1279_v38 }
 0x272   : > { %v1626_v59 = vpop.f32.mrf.mxu1  ;;  %v1400_v55 = vadd.f32 %v1394_v10, %v1280_v1  ;;  %v1519_v11 = vadd.f32 %v1512_v49, %v1399_v12  ;;  %v698_v49 = vadd.f32 %v4501_v57, %v617_v43 }
 0x273   : > { %v1637_v16 = vadd.f32 %v1626_v59, %v1517_v53  ;;  %v1746_v17 = vpop.f32.mrf.mxu0 }
 0x274   : > { %v1628_v20 = vpop.f32.mrf.mxu1  ;;  %v1520_v19 = vadd.f32 %v1514_v54, %v1400_v55  ;;  %v700_v54 = vadd.f32 %v4503_v58, %v617_v43  ;;  %v2719_v58 = vld [vmem:[%s5136_s11 + $0x8] sm:$0xff]  ;;  %v2718_v43 = vld [vmem:[%s5136_s11] sm:$0xff] }
 0x275   : > { %v1638_v21 = vadd.f32 %v1628_v20, %v1518_v4  ;;  %v1757_v27 = vadd.f32 %v1746_v17, %v1637_v16  ;;  %v1748_v30 = vpop.f32.mrf.mxu0 }
 0x276   : > { %v1632_v56 = vpop.f32.mrf.mxu1 }
 0x277   : > { %v1773_v37 = vadd.f32 %v1766_v33, %v1757_v27  ;;  %v1758_v39 = vadd.f32 %v1748_v30, %v1638_v21  ;;  %v1752_v18 = vpop.f32.mrf.mxu0  ;;  %v1639_v62 = vadd.f32 %v1632_v56, %v1519_v11 }
 0x278   : > { %v1634_v15 = vpop.f32.mrf.mxu1 }
 0x279   : > { %v1777_v46 = vadd.f32 %v1773_v37, %v692_v31  ;;  %v1774_v47 = vadd.f32 %v1766_v33, %v1758_v39  ;;  %v1640_v3 = vadd.f32 %v1634_v15, %v1520_v19  ;;  %v1754_v26 = vpop.f32.mrf.mxu0  ;;  %v1759_v32 = vadd.f32 %v1752_v18, %v1639_v62  ;;  %v3822_v19 = vld [vmem:[%s5131_s6 + $0x10] sm:$0xff] }
 0x27b   : > { %v4505_v9 = vmax.f32 %v1777_v46, 0.0  ;;  %v1778_v53 = vadd.f32 %v1774_v47, %v694_v41  ;;  %v1760_v35 = vadd.f32 %v1754_v26, %v1640_v3  ;;  %v1775_v48 = vadd.f32 %v1771_v51, %v1759_v32 }
 0x27d   : > { %v4507_v59 = vmax.f32 %v1778_v53, 0.0  ;;  %1803 = vrot.lane.b32.xlu0 %v4505_v9, %s3929_s20  ;;  %v1776_v10 = vadd.f32 %v1771_v51, %v1760_v35  ;;  %v1779_v2 = vadd.f32 %v1775_v48, %v698_v49 }
 0x27f   : > { %1807 = vrot.lane.b32.xlu1 %v4507_v59, %s3929_s20  ;;  %v1780_v4 = vadd.f32 %v1776_v10, %v700_v54  ;;  %v4533_v16 = vmax.f32 %v1779_v2, 0.0  ;;  %v5141_v2 = vmov 0.0  }
 0x281   : > { %1785 = vrot.lane.b32.xlu0 %v4505_v9, %s3930_s23  ;;  %v4537_v57 = vmax.f32 %v1780_v4, 0.0  ;;  %v3823_v4 = vld [vmem:[%s5131_s6 + $0x18] sm:$0xff] }
 0x283   : > { %1789 = vrot.lane.b32.xlu1 %v4507_v59, %s3930_s23 }
 0x285   : > { %1988 = vrot.lane.b32.xlu0 %v4505_v9, %s3931_s24 }
 0x287   : > { %1992 = vrot.lane.b32.xlu1 %v4507_v59, %s3931_s24 }
 0x289   : > { %2094 = vrot.lane.b32.xlu0 %v4505_v9, %s3932_s27 }
 0x28b   : > { %2098 = vrot.lane.b32.xlu1 %v4507_v59, %s3932_s27 }
 0x28d   : > { %2294 = vrot.lane.b32.xlu0 %v4505_v9, %s3933_s28 }
 0x28f   : > { %2298 = vrot.lane.b32.xlu1 %v4507_v59, %s3933_s28 }
 0x291   : > { %2400 = vrot.lane.b32.xlu0 %v4505_v9, %s3934_s29 }
 0x293   : > { %2404 = vrot.lane.b32.xlu1 %v4507_v59, %s3934_s29 }
 0x295   : > { %1805 = vrot.lane.b32.xlu0 %v4533_v16, %s3929_s20 }
 0x297   : > { %1809 = vrot.lane.b32.xlu1 %v4537_v57, %s3929_s20 }
 0x299   : > { %1787 = vrot.lane.b32.xlu0 %v4533_v16, %s3930_s23 }
 0x29b   : > { %1791 = vrot.lane.b32.xlu1 %v4537_v57, %s3930_s23 }
 0x29d   : > { %1990 = vrot.lane.b32.xlu0 %v4533_v16, %s3931_s24 }
 0x29f   : > { %1994 = vrot.lane.b32.xlu1 %v4537_v57, %s3931_s24 }
 0x2a1   : > { %2506 = vrot.lane.b32.xlu0 %v4505_v9, %s3935_s15 }
 0x2a3   : > { %2510 = vrot.lane.b32.xlu1 %v4507_v59, %s3935_s15 }
 0x2a5   : > { %2096 = vrot.lane.b32.xlu0 %v4533_v16, %s3932_s27 }
 0x2a7   : > { %2100 = vrot.lane.b32.xlu1 %v4537_v57, %s3932_s27 }
 0x2a9   : > { %2296 = vrot.lane.b32.xlu0 %v4533_v16, %s3933_s28 }
 0x2ab   : > { %2300 = vrot.lane.b32.xlu1 %v4537_v57, %s3933_s28 }
 0x2ad   : > { %2402 = vrot.lane.b32.xlu0 %v4533_v16, %s3934_s29 }
 0x2af   : > { %2406 = vrot.lane.b32.xlu1 %v4537_v57, %s3934_s29 }
 0x2b1   : > { %2508 = vrot.lane.b32.xlu0 %v4533_v16, %s3935_s15 }
 0x2b3   : > { %2512 = vrot.lane.b32.xlu1 %v4537_v57, %s3935_s15 }
 0x2b5   : > { %2614 = vrot.lane.b32.xlu0 %v4533_v16, %s3936_s16 }
 0x2b7   : > { %2618 = vrot.lane.b32.xlu1 %v4537_v57, %s3936_s16 }
 0x2b9   : > { %2612 = vrot.lane.b32.xlu0 %v4505_v9, %s3936_s16 }
 0x2bb   : > { %2616 = vrot.lane.b32.xlu1 %v4507_v59, %s3936_s16 }
 0x2bd   : > { %2727 = vperm.xlu0 %3917, %v2719_v58   ;;  %v1801_v58 = vld [vmem:[%s5131_s6] sm:$0xff] }
 0x2bf   : > { %2722 = vperm.xlu1 %3918, %v2718_v43  }
 0x2ef   : > { %v1804_v51 = vpop.permute.xlu0 %1803 }
 0x2f1   : > { %v1808_v17 = vpop.permute.xlu1 %1807 }
 0x2f2   : > { %v1811_v24 = vsel %vm743_vm1, %v1804_v51, %v1808_v17  ;;  %v1813_v47 = vsel %vm743_vm1, %v1808_v17, %v1804_v51 }
 0x2f3   : > { %v1786_v20 = vpop.permute.xlu0 %1785  ;;  %v1816_v12 = vmul.f32 %v1811_v24, %v4210_v29  ;;  %v1815_v55 = vmul.f32 %v1813_v47, %v4207_v28  ;;  %v1802_v24 = vld [vmem:[%s5131_s6 + $0x8] sm:$0xff] }
 0x2f5   : > { %v1790_v0 = vpop.permute.xlu1 %1789 }
 0x2f6   : > { %v1793_v11 = vsel %vm712_vm2, %v1786_v20, %v1790_v0  ;;  %v1795_v62 = vsel %vm712_vm2, %v1790_v0, %v1786_v20 }
 0x2f7   : > { %v1989_v21 = vpop.permute.xlu0 %1988  ;;  %v1798_v35 = vmul.f32 %v1793_v11, %v4237_v45  ;;  %v1797_v49 = vmul.f32 %v1795_v62, %v4234_v44 }
 0x2f9   : > { %v1993_v27 = vpop.permute.xlu1 %1992 }
 0x2fa   : > { %v1996_v43 = vsel %vm942_vm3, %v1989_v21, %v1993_v27  ;;  %v1998_v0 = vsel %vm942_vm3, %v1993_v27, %v1989_v21  ;;  %v3828_v27 = vld [vmem:[%s5131_s6 + $0x20] sm:$0xff] }
 0x2fb   : > { %v4585_v30 = vpop.permute.xlu0 %2094 }
 0x2fd   : > { %v4587_v31 = vpop.permute.xlu1 %2098 }
 0x2fe   : > { %v2102_v47 = vsel %vm1062_vm4, %v4585_v30, %v4587_v31 }
 0x2ff   : > { %v4589_v33 = vpop.permute.xlu0 %2294  ;;  %v2107_v62 = vmul.f32 %v2102_v47, %v4315_v25 }
 0x301   : > { %v4591_v34 = vpop.permute.xlu1 %2298 }
 0x303   : > { %v4593_v36 = vpop.permute.xlu0 %2400 }
 0x305   : > { %v4595_v37 = vpop.permute.xlu1 %2404 }
 0x307   : > { %v1806_v39 = vpop.permute.xlu0 %1805 }
 0x309   : > { %v1810_v41 = vpop.permute.xlu1 %1809 }
 0x30a   : > { %v1812_v40 = vsel %vm743_vm1, %v1806_v39, %v1810_v41  ;;  %v1814_v46 = vsel %vm743_vm1, %v1810_v41, %v1806_v39  ;;  %v2001_v41 = vmul.f32 %v1996_v43, %v4275_v63 }
 0x30b   : > { %v1817_v38 = vmul.f32 %v1814_v46, %v4207_v28  ;;  %v1818_v53 = vmul.f32 %v1812_v40, %v4210_v29  ;;  %v1788_v1 = vpop.permute.xlu0 %1787  ;;  %v2000_v40 = vmul.f32 %v1998_v0, %v4272_v61  ;;  %v2203_v46 = vmul.f32 %v4537_v57, %v4118_v6 }
 0x30d   : > { %1856 = vmatprep.subr.mxu1 %v1818_v53  ;;  %v1792_v56 = vpop.permute.xlu1 %1791  ;;  %v2202_v53 = vmul.f32 %v4533_v16, %v4121_v7 }
 0x30e   : > { %v1794_v15 = vsel %vm712_vm2, %v1788_v1, %v1792_v56  ;;  %v1796_v18 = vsel %vm712_vm2, %v1792_v56, %v1788_v1  ;;  %1857 = vmatpush1.msra.mxu1 %v1817_v38  ;;  %v2201_v1 = vmul.f32 %v4507_v59, %v4118_v6 }
 0x30f   : > { %v1799_v3 = vmul.f32 %v1796_v18, %v4234_v44  ;;  %v1800_v26 = vmul.f32 %v1794_v15, %v4237_v45  ;;  %v1991_v32 = vpop.permute.xlu0 %1990  ;;  %1858 = vmatprep.subr.mxu1 %v1816_v12  ;;  %v2104_v12 = vsel %vm1062_vm4, %v4587_v31, %v4585_v30  ;;  %v2200_v30 = vmul.f32 %v4505_v9, %v4121_v7  ;;  %v3829_v31 = vld [vmem:[%s5131_s6 + $0x28] sm:$0xff] }
 0x310   : > { %1859 = vmatpush1.msra.mxu1 %v1815_v55 }
 0x311   : > { %3824 = vmatmul.mubr.msk.f32.vlgmr.msra.gmra.mxu1 %vm513_vm0, %v3822_v19  ;;  %1939 = vmatprep.subr.mxu0 %v1800_v26  ;;  %v1995_v48 = vpop.permute.xlu1 %1994  ;;  %v2106_v19 = vmul.f32 %v2104_v12, %v4312_v22 }
 0x312   : > { %v1997_v10 = vsel %vm942_vm3, %v1991_v32, %v1995_v48  ;;  %v1999_v54 = vsel %vm942_vm3, %v1995_v48, %v1991_v32  ;;  %1940 = vmatpush1.msra.mxu0 %v1799_v3  ;;  %1898 = vmatprep.mubr.f32.mxu1 %v5141_v2  ;;  %v2302_v3 = vsel %vm1289_vm5, %v4589_v33, %v4591_v34 }
 0x313   : > { %v2002_v51 = vmul.f32 %v1999_v54, %v4272_v61  ;;  %v2003_v17 = vmul.f32 %v1997_v10, %v4275_v63  ;;  %v4640_v20 = vpop.permute.xlu0 %2506  ;;  %1941 = vmatprep.subr.mxu0 %v1798_v35  ;;  %v2304_v32 = vsel %vm1289_vm5, %v4591_v34, %v4589_v33  ;;  %v3836_v33 = vld [vmem:[%s5131_s6 + $0x40] sm:$0xff]  ;;  %v2306_v34 = vmul.f32 %v2302_v3, %v4369_v8 }
 0x314   : > { %1942 = vmatpush1.msra.mxu0 %v1797_v49  ;;  %v3832_v49 = vld [vmem:[%s5131_s6 + $0x30] sm:$0xff] }
 0x315   : > { %3825 = vmatmul.mubr.msk.f32.gmra.mxu1 %vm513_vm0, %v3823_v4  ;;  %3826 = vmatmul.mubr.msk.f32.vlgmr.msra.gmra.mxu0 %vm513_vm0, %v1801_v58  ;;  %v4646_v39 = vpop.permute.xlu1 %2510  ;;  %v2307_v58 = vmul.f32 %v2304_v32, %v4350_v42  ;;  %v3845_v32 = vld [vmem:[%s5131_s6 + $0x68] sm:$0xff] }
 0x316   : > { %2041 = vmatprep.subr.mxu1 %v2003_v17  ;;  %1981 = vmatprep.mubr.f32.mxu0 %v5141_v2  ;;  %v2516_v12 = vsel %vm1529_vm7, %v4646_v39, %v4640_v20 }
 0x317   : > { %2042 = vmatpush1.msra.mxu1 %v2002_v51  ;;  %v2097_v21 = vpop.permute.xlu0 %2096  ;;  %2077 = vmatprep.mubr.f32.mxu1 %v5141_v2  ;;  %v2408_v51 = vsel %vm1409_vm6, %v4593_v36, %v4595_v37 }
 0x318   : > { %2043 = vmatprep.subr.mxu1 %v2001_v41  ;;  %v3833_v41 = vld [vmem:[%s5131_s6 + $0x38] sm:$0xff]  ;;  %v2412_v47 = vmul.f32 %v2408_v51, %v4372_v50 }
 0x319   : > { %2044 = vmatpush1.msra.mxu1 %v2000_v40  ;;  %3827 = vmatmul.mubr.msk.f32.gmra.mxu0 %vm513_vm0, %v1802_v24  ;;  %v2101_v38 = vpop.permute.xlu1 %2100  ;;  %v2410_v24 = vsel %vm1409_vm6, %v4595_v37, %v4593_v36 }
 0x31a   : > { %3830 = vmatmul.mubr.msk.f32.vlgmr.msra.gmra.mxu1 %vm513_vm0, %v3828_v27  ;;  %2241 = vmatprep.subr.mxu1 %v2203_v46  ;;  %v2103_v56 = vsel %vm1062_vm4, %v2097_v21, %v2101_v38  ;;  %v2105_v55 = vsel %vm1062_vm4, %v2101_v38, %v2097_v21  ;;  %v3837_v46 = vld [vmem:[%s5131_s6 + $0x48] sm:$0xff]  ;;  %v2413_v37 = vmul.f32 %v2410_v24, %v4383_v52 }
 0x31b   : > { %v2108_v11 = vmul.f32 %v2105_v55, %v4312_v22  ;;  %v2109_v15 = vmul.f32 %v2103_v56, %v4315_v25  ;;  %2242 = vmatpush1.msra.mxu1 %v2202_v53  ;;  %v2297_v18 = vpop.permute.xlu0 %2296  ;;  %2083 = vmatprep.mubr.f32.mxu1 %v5141_v2 }
 0x31c   : > { %2243 = vmatprep.subr.mxu1 %v2201_v1  ;;  %2183 = vmatprep.mubr.f32.mxu0 %v5141_v2  ;;  %v3840_v1 = vld [vmem:[%s5131_s6 + $0x50] sm:$0xff] }
 0x31d   : > { %2244 = vmatpush1.msra.mxu1 %v2200_v30  ;;  %2147 = vmatprep.subr.mxu0 %v2109_v15  ;;  %v2301_v26 = vpop.permute.xlu1 %2300  ;;  %v3844_v15 = vld [vmem:[%s5131_s6 + $0x60] sm:$0xff] }
 0x31e   : > { %3831 = vmatmul.mubr.msk.f32.gmra.mxu1 %vm513_vm0, %v3829_v31  ;;  %v2303_v35 = vsel %vm1289_vm5, %v2297_v18, %v2301_v26  ;;  %v2305_v48 = vsel %vm1289_vm5, %v2301_v26, %v2297_v18  ;;  %2148 = vmatpush1.msra.mxu0 %v2108_v11  ;;  %v2514_v18 = vsel %vm1529_vm7, %v4640_v20, %v4646_v39  ;;  %v3841_v26 = vld [vmem:[%s5131_s6 + $0x58] sm:$0xff] }
 0x31f   : > { %v2308_v10 = vmul.f32 %v2303_v35, %v4369_v8  ;;  %v2309_v54 = vmul.f32 %v2305_v48, %v4350_v42  ;;  %v2403_v4 = vpop.permute.xlu0 %2402  ;;  %2149 = vmatprep.subr.mxu0 %v2107_v62  ;;  %2277 = vmatprep.mubr.f32.mxu1 %v5141_v2  ;;  %v2519_v31 = vmul.f32 %v2516_v12, %v4419_v5 }
 0x320   : > { %2150 = vmatpush1.msra.mxu0 %v2106_v19  ;;  %v2518_v3 = vmul.f32 %v2514_v18, %v4414_v60 }
 0x321   : > { %3834 = vmatmul.mubr.msk.f32.vlgmr.msra.gmra.mxu0 %vm513_vm0, %v3832_v49  ;;  %2347 = vmatprep.subr.mxu0 %v2309_v54  ;;  %v2407_v43 = vpop.permute.xlu1 %2406 }
 0x322   : > { %v2409_v17 = vsel %vm1409_vm6, %v2403_v4, %v2407_v43  ;;  %v2411_v0 = vsel %vm1409_vm6, %v2407_v43, %v2403_v4  ;;  %3838 = vmatmul.mubr.msk.f32.vlgmr.msra.gmra.mxu1 %vm513_vm0, %v3836_v33  ;;  %2348 = vmatpush1.msra.mxu0 %v2308_v10  ;;  %v3848_v33 = vld [vmem:[%s5131_s6 + $0x70] sm:$0xff]  ;;  %v3853_v43 = vld [vmem:[%s5131_s6 + $0x88] sm:$0xff] }
 0x323   : > { %v2414_v40 = vmul.f32 %v2409_v17, %v4372_v50  ;;  %v2415_v21 = vmul.f32 %v2411_v0, %v4383_v52  ;;  %v2509_v27 = vpop.permute.xlu0 %2508  ;;  %2349 = vmatprep.subr.mxu0 %v2307_v58  ;;  %2189 = vmatprep.mubr.f32.mxu0 %v5141_v2  ;;  %v3849_v58 = vld [vmem:[%s5131_s6 + $0x78] sm:$0xff] }
 0x324   : > { %2283 = vmatprep.mubr.f32.mxu1 %v5141_v2  ;;  %2350 = vmatpush1.msra.mxu0 %v2306_v34  ;;  %v3852_v34 = vld [vmem:[%s5131_s6 + $0x80] sm:$0xff] }
 0x325   : > { %3835 = vmatmul.mubr.msk.f32.gmra.mxu0 %vm513_vm0, %v3833_v41  ;;  %v2513_v36 = vpop.permute.xlu1 %2512  ;;  %2453 = vmatprep.subr.mxu1 %v2415_v21 }
 0x326   : > { %v2515_v38 = vsel %vm1529_vm7, %v2509_v27, %v2513_v36  ;;  %v2517_v53 = vsel %vm1529_vm7, %v2513_v36, %v2509_v27  ;;  %3839 = vmatmul.mubr.msk.f32.gmra.mxu1 %vm513_vm0, %v3837_v46  ;;  %2383 = vmatprep.mubr.f32.mxu0 %v5141_v2 }
 0x327   : > { %v2520_v56 = vmul.f32 %v2515_v38, %v4414_v60  ;;  %v2521_v55 = vmul.f32 %v2517_v53, %v4419_v5  ;;  %2454 = vmatpush1.msra.mxu1 %v2414_v40  ;;  %v2615_v11 = vpop.permute.xlu0 %2614  ;;  %2489 = vmatprep.mubr.f32.mxu1 %v5141_v2 }
 0x328   : > { %2455 = vmatprep.subr.mxu1 %v2413_v37 }
 0x329   : > { %2456 = vmatpush1.msra.mxu1 %v2412_v47  ;;  %3842 = vmatmul.mubr.msk.f32.vlgmr.msra.gmra.mxu0 %vm513_vm0, %v3840_v1  ;;  %v2619_v30 = vpop.permute.xlu1 %2618 }
 0x32a   : > { %2559 = vmatprep.subr.mxu0 %v2521_v55  ;;  %v2621_v19 = vsel %vm1649_vm8, %v2615_v11, %v2619_v30  ;;  %v2623_v62 = vsel %vm1649_vm8, %v2619_v30, %v2615_v11  ;;  %3846 = vmatmul.mubr.msk.f32.vlgmr.msra.gmra.mxu1 %vm513_vm0, %v3844_v15 }
 0x32b   : > { %v2626_v20 = vmul.f32 %v2621_v19, %v4423_v13  ;;  %v2627_v39 = vmul.f32 %v2623_v62, %v4426_v14  ;;  %2560 = vmatpush1.msra.mxu0 %v2520_v56  ;;  %2389 = vmatprep.mubr.f32.mxu0 %v5141_v2  ;;  %v2613_v35 = vpop.permute.xlu0 %2612 }
 0x32c   : > { %2561 = vmatprep.subr.mxu0 %v2519_v31  ;;  %2495 = vmatprep.mubr.f32.mxu1 %v5141_v2 }
 0x32d   : > { %2562 = vmatpush1.msra.mxu0 %v2518_v3  ;;  %v2617_v48 = vpop.permute.xlu1 %2616  ;;  %2665 = vmatprep.subr.mxu1 %v2627_v39 }
 0x32e   : > { %3843 = vmatmul.mubr.msk.f32.gmra.mxu0 %vm513_vm0, %v3841_v26  ;;  %v2620_v49 = vsel %vm1649_vm8, %v2613_v35, %v2617_v48  ;;  %v2622_v10 = vsel %vm1649_vm8, %v2617_v48, %v2613_v35  ;;  %3847 = vmatmul.mubr.msk.f32.gmra.mxu1 %vm513_vm0, %v3845_v32 }
 0x32f   : > { %v2624_v54 = vmul.f32 %v2620_v49, %v4423_v13  ;;  %v2625_v4 = vmul.f32 %v2622_v10, %v4426_v14  ;;  %2666 = vmatpush1.msra.mxu1 %v2626_v20  ;;  %2595 = vmatprep.mubr.f32.mxu0 %v5141_v2 }
 0x330   : > { %2701 = vmatprep.mubr.f32.mxu1 %v5141_v2 }
 0x331   : > { %2667 = vmatprep.subr.mxu1 %v2625_v4 }
 0x332   : > { %3850 = vmatmul.mubr.msk.f32.vlgmr.msra.gmra.mxu0 %vm513_vm0, %v3848_v33  ;;  %2668 = vmatpush1.msra.mxu1 %v2624_v54 }
 0x333   : > { %3854 = vmatmul.mubr.msk.f32.vlgmr.msra.gmra.mxu1 %vm513_vm0, %v3852_v34  ;;  %2601 = vmatprep.mubr.f32.mxu0 %v5141_v2 }
 0x334   : > { %2707 = vmatprep.mubr.f32.mxu1 %v5141_v2 }
 0x336   : > { %3851 = vmatmul.mubr.msk.f32.gmra.mxu0 %vm513_vm0, %v3849_v58 }
 0x337   : > { %3855 = vmatmul.mubr.msk.f32.gmra.mxu1 %vm513_vm0, %v3853_v43  ;;  %2845 = vmatprep.mubr.f32.mxu0 %v5141_v2 }
 0x338   : > { %2928 = vmatprep.mubr.f32.mxu1 %v5141_v2 }
 0x3d1   : > { %v1894_v51 = vpop.f32.mrf.mxu1 }
 0x3d3   : > { %v1896_v17 = vpop.f32.mrf.mxu1 }
 0x3d5   : > { %v1900_v0 = vpop.f32.mrf.mxu1  ;;  %v1977_v41 = vpop.f32.mrf.mxu0 }
 0x3d6   : > { %v1978_v1 = vadd.f32 %v1977_v41, %v1894_v51 }
 0x3d7   : > { %v1902_v24 = vpop.f32.mrf.mxu1  ;;  %v1979_v40 = vpop.f32.mrf.mxu0 }
 0x3d8   : > { %v1980_v55 = vadd.f32 %v1979_v40, %v1896_v17 }
 0x3d9   : > { %v1983_v27 = vpop.f32.mrf.mxu0 }
 0x3da   : > { %v2079_v21 = vpop.f32.mrf.mxu1 }
 0x3db   : > { %v1985_v36 = vpop.f32.mrf.mxu0  ;;  %v2090_v11 = vadd.f32 %v2079_v21, %v1978_v1  ;;  %v1984_v21 = vadd.f32 %v1983_v27, %v1900_v0 }
 0x3dc   : > { %v2081_v46 = vpop.f32.mrf.mxu1 }
 0x3dd   : > { %v2091_v30 = vadd.f32 %v2081_v46, %v1980_v55 }
 0x3de   : > { %v2085_v47 = vpop.f32.mrf.mxu1 }
 0x3df   : > { %v2092_v55 = vadd.f32 %v2085_v47, %v1984_v21 }
 0x3e0   : > { %v2087_v37 = vpop.f32.mrf.mxu1 }
 0x3e1   : > { %v2185_v38 = vpop.f32.mrf.mxu0 }
 0x3e2   : > { %v2279_v53 = vpop.f32.mrf.mxu1  ;;  %v2196_v31 = vadd.f32 %v2185_v38, %v2090_v11 }
 0x3e3   : > { %v2187_v12 = vpop.f32.mrf.mxu0 }
 0x3e4   : > { %v2281_v56 = vpop.f32.mrf.mxu1  ;;  %v2197_v3 = vadd.f32 %v2187_v12, %v2091_v30  ;;  %v2290_v26 = vadd.f32 %v2279_v53, %v2196_v31  ;;  %v2723_v53 = vpop.permute.xlu1 %2722  ;;  %v1986_v12 = vadd.f32 %v1985_v36, %v1902_v24 }
 0x3e5   : > { %v2191_v15 = vpop.f32.mrf.mxu0 }
 0x3e6   : > { %v2285_v18 = vpop.f32.mrf.mxu1  ;;  %v2291_v48 = vadd.f32 %v2281_v56, %v2197_v3  ;;  %v2093_v30 = vadd.f32 %v2087_v37, %v1986_v12  ;;  %v2198_v31 = vadd.f32 %v2191_v15, %v2092_v55 }
 0x3e7   : > { %v2193_v19 = vpop.f32.mrf.mxu0 }
 0x3e8   : > { %v2287_v62 = vpop.f32.mrf.mxu1  ;;  %v2292_v0 = vadd.f32 %v2285_v18, %v2198_v31 }
 0x3e9   : > { %v2385_v20 = vpop.f32.mrf.mxu0 }
 0x3ea   : > { %v2491_v39 = vpop.f32.mrf.mxu1  ;;  %v2396_v49 = vadd.f32 %v2385_v20, %v2290_v26 }
 0x3eb   : > { %v2387_v32 = vpop.f32.mrf.mxu0 }
 0x3ec   : > { %v2493_v35 = vpop.f32.mrf.mxu1  ;;  %v2397_v4 = vadd.f32 %v2387_v32, %v2291_v48  ;;  %v2502_v34 = vadd.f32 %v2491_v39, %v2396_v49  ;;  %v2199_v39 = vadd.f32 %v2193_v19, %v2093_v30 }
 0x3ee   : > { %v2391_v10 = vpop.f32.mrf.mxu0  ;;  %v2497_v54 = vpop.f32.mrf.mxu1  ;;  %v2503_v51 = vadd.f32 %v2493_v35, %v2397_v4  ;;  %v2293_v27 = vadd.f32 %v2287_v62, %v2199_v39 }
 0x3ef   : > { %v2398_v24 = vadd.f32 %v2391_v10, %v2292_v0  ;;  %v2728_v10 = vpop.permute.xlu0 %2727 }
 0x3f0   : > { %v2393_v33 = vpop.f32.mrf.mxu0  ;;  %v2499_v58 = vpop.f32.mrf.mxu1 }
 0x3f1   : > { %v2399_v36 = vadd.f32 %v2393_v33, %v2293_v27  ;;  %v2504_v37 = vadd.f32 %v2497_v54, %v2398_v24 }
 0x3f2   : > { %v2597_v43 = vpop.f32.mrf.mxu0 }
 0x3f3   : > { %v2608_v17 = vadd.f32 %v2597_v43, %v2502_v34  ;;  %v2703_v41 = vpop.f32.mrf.mxu1  ;;  %v2505_v18 = vadd.f32 %v2499_v58, %v2399_v36  ;;  %v3671_v58 = vld [vmem:[%s5137_s12] sm:$0xff]  ;;  %v3672_v43 = vld [vmem:[%s5137_s12 + $0x8] sm:$0xff] }
 0x3f4   : > { %v2599_v40 = vpop.f32.mrf.mxu0 }
 0x3f5   : > { %v2609_v46 = vadd.f32 %v2599_v40, %v2503_v51  ;;  %v2714_v38 = vadd.f32 %v2703_v41, %v2608_v17  ;;  %v2705_v1 = vpop.f32.mrf.mxu1 }
 0x3f6   : > { %v2603_v47 = vpop.f32.mrf.mxu0 }
 0x3f7   : > { %v2730_v56 = vadd.f32 %v2723_v53, %v2714_v38  ;;  %v2715_v11 = vadd.f32 %v2705_v1, %v2609_v46  ;;  %v2709_v19 = vpop.f32.mrf.mxu1  ;;  %v2610_v32 = vadd.f32 %v2603_v47, %v2504_v37 }
 0x3f8   : > { %v2605_v15 = vpop.f32.mrf.mxu0 }
 0x3f9   : > { %v4811_v3 = vmax.f32 %v2730_v56, 0.0  ;;  %v2731_v20 = vadd.f32 %v2723_v53, %v2715_v11  ;;  %v2611_v62 = vadd.f32 %v2605_v15, %v2505_v18  ;;  %v2711_v35 = vpop.f32.mrf.mxu1  ;;  %v2716_v48 = vadd.f32 %v2709_v19, %v2610_v32 }
 0x3fb   : > { %v4813_v26 = vmax.f32 %v2731_v20, 0.0  ;;  %2756 = vrot.lane.b32.xlu0 %v4811_v3, %s3929_s20  ;;  %v2717_v49 = vadd.f32 %v2711_v35, %v2611_v62  ;;  %v2732_v54 = vadd.f32 %v2728_v10, %v2716_v48 }
 0x3fd   : > { %2760 = vrot.lane.b32.xlu1 %v4813_v26, %s3929_s20  ;;  %v2733_v4 = vadd.f32 %v2728_v10, %v2717_v49  ;;  %v4837_v33 = vmax.f32 %v2732_v54, 0.0 }
 0x3ff   : > { %2738 = vrot.lane.b32.xlu0 %v4811_v3, %s3930_s23  ;;  %v4841_v34 = vmax.f32 %v2733_v4, 0.0 }
 0x401   : > { %2742 = vrot.lane.b32.xlu1 %v4813_v26, %s3930_s23 }
 0x403   : > { %2941 = vrot.lane.b32.xlu0 %v4811_v3, %s3931_s24 }
 0x405   : > { %2945 = vrot.lane.b32.xlu1 %v4813_v26, %s3931_s24 }
 0x407   : > { %3047 = vrot.lane.b32.xlu0 %v4811_v3, %s3932_s27 }
 0x409   : > { %3051 = vrot.lane.b32.xlu1 %v4813_v26, %s3932_s27 }
 0x40b   : > { %3247 = vrot.lane.b32.xlu0 %v4811_v3, %s3933_s28 }
 0x40d   : > { %3251 = vrot.lane.b32.xlu1 %v4813_v26, %s3933_s28 }
 0x40f   : > { %3353 = vrot.lane.b32.xlu0 %v4811_v3, %s3934_s29 }
 0x411   : > { %3357 = vrot.lane.b32.xlu1 %v4813_v26, %s3934_s29 }
 0x413   : > { %2758 = vrot.lane.b32.xlu0 %v4837_v33, %s3929_s20 }
 0x415   : > { %2762 = vrot.lane.b32.xlu1 %v4841_v34, %s3929_s20  ;;  %s460_s20 = scalar_lea.vmem %s5138_s13, %s3892_s17 }
 0x417   : > { %2740 = vrot.lane.b32.xlu0 %v4837_v33, %s3930_s23 }
 0x419   : > { %2744 = vrot.lane.b32.xlu1 %v4841_v34, %s3930_s23 }
 0x41b   : > { %2943 = vrot.lane.b32.xlu0 %v4837_v33, %s3931_s24 }
 0x41d   : > { %2947 = vrot.lane.b32.xlu1 %v4841_v34, %s3931_s24 }
 0x41f   : > { %3459 = vrot.lane.b32.xlu0 %v4811_v3, %s3935_s15 }
 0x421   : > { %3463 = vrot.lane.b32.xlu1 %v4813_v26, %s3935_s15 }
 0x423   : > { %3049 = vrot.lane.b32.xlu0 %v4837_v33, %s3932_s27 }
 0x425   : > { %3053 = vrot.lane.b32.xlu1 %v4841_v34, %s3932_s27 }
 0x427   : > { %3249 = vrot.lane.b32.xlu0 %v4837_v33, %s3933_s28 }
 0x429   : > { %3253 = vrot.lane.b32.xlu1 %v4841_v34, %s3933_s28 }
 0x42b   : > { %3355 = vrot.lane.b32.xlu0 %v4837_v33, %s3934_s29 }
 0x42d   : > { %3359 = vrot.lane.b32.xlu1 %v4841_v34, %s3934_s29 }
 0x42f   : > { %3461 = vrot.lane.b32.xlu0 %v4837_v33, %s3935_s15 }
 0x431   : > { %3465 = vrot.lane.b32.xlu1 %v4841_v34, %s3935_s15 }
 0x433   : > { %3567 = vrot.lane.b32.xlu0 %v4837_v33, %s3936_s16 }
 0x435   : > { %3571 = vrot.lane.b32.xlu1 %v4841_v34, %s3936_s16 }
 0x437   : > { %3565 = vrot.lane.b32.xlu0 %v4811_v3, %s3936_s16 }
 0x439   : > { %3569 = vrot.lane.b32.xlu1 %v4813_v26, %s3936_s16 }
 0x43b   : > { %3675 = vperm.xlu0 %3917, %v3671_v58  }
 0x43d   : > { %3680 = vperm.xlu1 %3918, %v3672_v43  }
 0x46d   : > { %v2757_v51 = vpop.permute.xlu0 %2756 }
 0x46f   : > { %v2761_v17 = vpop.permute.xlu1 %2760 }
 0x470   : > { %v2764_v31 = vsel %vm743_vm1, %v2757_v51, %v2761_v17  ;;  %v2766_v20 = vsel %vm743_vm1, %v2761_v17, %v2757_v51 }
 0x471   : > { %v2739_v41 = vpop.permute.xlu0 %2738  ;;  %v2768_v36 = vmul.f32 %v2766_v20, %v4207_v28  ;;  %v2769_v37 = vmul.f32 %v2764_v31, %v4210_v29  ;;  %v2755_v20 = vld [vmem:[%s5132_s7 + $0x8] sm:$0xff] }
 0x473   : > { %v2743_v40 = vpop.permute.xlu1 %2742 }
 0x474   : > { %v2746_v19 = vsel %vm712_vm2, %v2739_v41, %v2743_v40  ;;  %v2748_v18 = vsel %vm712_vm2, %v2743_v40, %v2739_v41  ;;  %v2754_v40 = vld [vmem:[%s5132_s7] sm:$0xff] }
 0x475   : > { %v2942_v21 = vpop.permute.xlu0 %2941  ;;  %v2750_v49 = vmul.f32 %v2748_v18, %v4234_v44  ;;  %v2751_v10 = vmul.f32 %v2746_v19, %v4237_v45 }
 0x477   : > { %v2946_v46 = vpop.permute.xlu1 %2945 }
 0x478   : > { %v2949_v4 = vsel %vm942_vm3, %v2942_v21, %v2946_v46 }
 0x479   : > { %v4889_v38 = vpop.permute.xlu0 %3047 }
 0x47b   : > { %v4891_v1 = vpop.permute.xlu1 %3051 }
 0x47d   : > { %v4893_v53 = vpop.permute.xlu0 %3247 }
 0x47f   : > { %v4895_v12 = vpop.permute.xlu1 %3251 }
 0x481   : > { %v4897_v55 = vpop.permute.xlu0 %3353 }
 0x483   : > { %v4899_v56 = vpop.permute.xlu1 %3357 }
 0x485   : > { %v2759_v11 = vpop.permute.xlu0 %2758 }
 0x487   : > { %v2763_v30 = vpop.permute.xlu1 %2762 }
 0x488   : > { %v2765_v39 = vsel %vm743_vm1, %v2759_v11, %v2763_v30  ;;  %v2767_v0 = vsel %vm743_vm1, %v2763_v30, %v2759_v11  ;;  %v2954_v11 = vmul.f32 %v2949_v4, %v4275_v63 }
 0x489   : > { %v2770_v27 = vmul.f32 %v2767_v0, %v4207_v28  ;;  %v2771_v24 = vmul.f32 %v2765_v39, %v4210_v29  ;;  %v2741_v47 = vpop.permute.xlu0 %2740  ;;  %v3856_v28 = vld [vmem:[%s5132_s7 + $0x10] sm:$0xff]  ;;  %v3055_v39 = vsel %vm1062_vm4, %v4889_v38, %v4891_v1 }
 0x48b   : > { %2809 = vmatprep.subr.mxu0 %v2771_v24  ;;  %v2745_v15 = vpop.permute.xlu1 %2744 }
 0x48c   : > { %v2747_v32 = vsel %vm712_vm2, %v2741_v47, %v2745_v15  ;;  %v2749_v62 = vsel %vm712_vm2, %v2745_v15, %v2741_v47  ;;  %2810 = vmatpush1.msra.mxu0 %v2770_v27  ;;  %v3153_v27 = vmul.f32 %v4811_v3, %v4121_v7  ;;  %v3257_v15 = vsel %vm1289_vm5, %v4895_v12, %v4893_v53 }
 0x48d   : > { %v2752_v29 = vmul.f32 %v2749_v62, %v4234_v44  ;;  %v2753_v35 = vmul.f32 %v2747_v32, %v4237_v45  ;;  %v2944_v48 = vpop.permute.xlu0 %2943  ;;  %2811 = vmatprep.subr.mxu0 %v2769_v37  ;;  %v3857_v44 = vld [vmem:[%s5132_s7 + $0x18] sm:$0xff]  ;;  %v2951_v45 = vsel %vm942_vm3, %v2946_v46, %v2942_v21  ;;  %v3862_v46 = vld [vmem:[%s5132_s7 + $0x20] sm:$0xff] }
 0x48e   : > { %2812 = vmatpush1.msra.mxu0 %v2768_v36  ;;  %v2953_v21 = vmul.f32 %v2951_v45, %v4272_v61  ;;  %v3255_v36 = vsel %vm1289_vm5, %v4893_v53, %v4895_v12  ;;  %v3870_v53 = vld [vmem:[%s5132_s7 + $0x40] sm:$0xff] }
 0x48f   : > { %3858 = vmatmul.mubr.msk.f32.vlgmr.msra.gmra.mxu0 %vm513_vm0, %v3856_v28  ;;  %2892 = vmatprep.subr.mxu1 %v2753_v35  ;;  %v2948_v54 = vpop.permute.xlu1 %2947  ;;  %v3259_v12 = vmul.f32 %v3255_v36, %v4369_v8  ;;  %v3260_v28 = vmul.f32 %v3257_v15, %v4350_v42 }
 0x490   : > { %v2950_v58 = vsel %vm942_vm3, %v2944_v48, %v2948_v54  ;;  %v2952_v43 = vsel %vm942_vm3, %v2948_v54, %v2944_v48  ;;  %2893 = vmatpush1.msra.mxu1 %v2752_v29  ;;  %2851 = vmatprep.mubr.f32.mxu0 %v5141_v2  ;;  %v3361_v29 = vsel %vm1409_vm6, %v4897_v55, %v4899_v56 }
 0x491   : > { %v2955_v51 = vmul.f32 %v2952_v43, %v4272_v61  ;;  %v2956_v17 = vmul.f32 %v2950_v58, %v4275_v63  ;;  %v4943_v41 = vpop.permute.xlu0 %3459  ;;  %2894 = vmatprep.subr.mxu1 %v2751_v10  ;;  %v3156_v63 = vmul.f32 %v4841_v34, %v4118_v6  ;;  %v3155_v61 = vmul.f32 %v4837_v33, %v4121_v7 }
 0x492   : > { %2895 = vmatpush1.msra.mxu1 %v2750_v49  ;;  %v3154_v34 = vmul.f32 %v4813_v26, %v4118_v6  ;;  %v3057_v33 = vsel %vm1062_vm4, %v4891_v1, %v4889_v38  ;;  %v3863_v6 = vld [vmem:[%s5132_s7 + $0x28] sm:$0xff]  ;;  %v3060_v1 = vmul.f32 %v3055_v39, %v4315_v25  ;;  %v3363_v48 = vsel %vm1409_vm6, %v4899_v56, %v4897_v55 }
 0x493   : > { %3859 = vmatmul.mubr.msk.f32.gmra.mxu0 %vm513_vm0, %v3857_v44  ;;  %2994 = vmatprep.subr.mxu0 %v2956_v17  ;;  %v4950_v30 = vpop.permute.xlu1 %3463  ;;  %v3059_v38 = vmul.f32 %v3057_v33, %v4312_v22  ;;  %v3871_v55 = vld [vmem:[%s5132_s7 + $0x48] sm:$0xff]  ;;  %v3365_v56 = vmul.f32 %v3361_v29, %v4372_v50  ;;  %v3366_v58 = vmul.f32 %v3363_v48, %v4383_v52  ;;  %v3882_v33 = vld [vmem:[%s5132_s7 + $0x70] sm:$0xff] }
 0x494   : > { %3860 = vmatmul.mubr.msk.f32.vlgmr.msra.gmra.mxu1 %vm513_vm0, %v2754_v40  ;;  %2995 = vmatpush1.msra.mxu0 %v2955_v51  ;;  %v3469_v44 = vsel %vm1529_vm7, %v4950_v30, %v4943_v41 }
 0x495   : > { %v3050_v31 = vpop.permute.xlu0 %3049  ;;  %2996 = vmatprep.subr.mxu0 %v2954_v11  ;;  %3030 = vmatprep.mubr.f32.mxu0 %v5141_v2 }
 0x496   : > { %2997 = vmatpush1.msra.mxu0 %v2953_v21  ;;  %2934 = vmatprep.mubr.f32.mxu1 %v5141_v2  ;;  %v3878_v21 = vld [vmem:[%s5132_s7 + $0x60] sm:$0xff] }
 0x497   : > { %3864 = vmatmul.mubr.msk.f32.vlgmr.msra.gmra.mxu0 %vm513_vm0, %v3862_v46  ;;  %v3054_v0 = vpop.permute.xlu1 %3053  ;;  %3194 = vmatprep.subr.mxu0 %v3156_v63  ;;  %v3472_v46 = vmul.f32 %v3469_v44, %v4419_v5 }
 0x498   : > { %v3056_v24 = vsel %vm1062_vm4, %v3050_v31, %v3054_v0  ;;  %v3058_v47 = vsel %vm1062_vm4, %v3054_v0, %v3050_v31  ;;  %3861 = vmatmul.mubr.msk.f32.gmra.mxu1 %vm513_vm0, %v2755_v20  ;;  %3195 = vmatpush1.msra.mxu0 %v3155_v61  ;;  %v3875_v20 = vld [vmem:[%s5132_s7 + $0x58] sm:$0xff] }
 0x499   : > { %v3061_v7 = vmul.f32 %v3058_v47, %v4312_v22  ;;  %v3062_v3 = vmul.f32 %v3056_v24, %v4315_v25  ;;  %v3250_v26 = vpop.permute.xlu0 %3249  ;;  %3196 = vmatprep.subr.mxu0 %v3154_v34  ;;  %3036 = vmatprep.mubr.f32.mxu0 %v5141_v2  ;;  %v3866_v25 = vld [vmem:[%s5132_s7 + $0x30] sm:$0xff] }
 0x49a   : > { %3197 = vmatpush1.msra.mxu0 %v3153_v27  ;;  %3136 = vmatprep.mubr.f32.mxu1 %v5141_v2 }
 0x49b   : > { %3865 = vmatmul.mubr.msk.f32.gmra.mxu0 %vm513_vm0, %v3863_v6  ;;  %3100 = vmatprep.subr.mxu1 %v3062_v3  ;;  %v3254_v37 = vpop.permute.xlu1 %3253 }
 0x49c   : > { %v3256_v19 = vsel %vm1289_vm5, %v3250_v26, %v3254_v37  ;;  %v3258_v22 = vsel %vm1289_vm5, %v3254_v37, %v3250_v26  ;;  %3101 = vmatpush1.msra.mxu1 %v3061_v7  ;;  %3230 = vmatprep.mubr.f32.mxu0 %v5141_v2 }
 0x49d   : > { %v3261_v18 = vmul.f32 %v3256_v19, %v4369_v8  ;;  %v3262_v32 = vmul.f32 %v3258_v22, %v4350_v42  ;;  %v3356_v62 = vpop.permute.xlu0 %3355  ;;  %3102 = vmatprep.subr.mxu1 %v3060_v1  ;;  %v3867_v8 = vld [vmem:[%s5132_s7 + $0x38] sm:$0xff] }
 0x49e   : > { %3103 = vmatpush1.msra.mxu1 %v3059_v38 }
 0x49f   : > { %3868 = vmatmul.mubr.msk.f32.vlgmr.msra.gmra.mxu1 %vm513_vm0, %v3866_v25  ;;  %3300 = vmatprep.subr.mxu1 %v3262_v32  ;;  %v3360_v35 = vpop.permute.xlu1 %3359 }
 0x4a0   : > { %v3362_v49 = vsel %vm1409_vm6, %v3356_v62, %v3360_v35  ;;  %v3364_v42 = vsel %vm1409_vm6, %v3360_v35, %v3356_v62  ;;  %3301 = vmatpush1.msra.mxu1 %v3261_v18  ;;  %3872 = vmatmul.mubr.msk.f32.vlgmr.msra.gmra.mxu0 %vm513_vm0, %v3870_v53 }
 0x4a1   : > { %v3367_v10 = vmul.f32 %v3362_v49, %v4372_v50  ;;  %v3368_v54 = vmul.f32 %v3364_v42, %v4383_v52  ;;  %v3462_v4 = vpop.permute.xlu0 %3461  ;;  %3302 = vmatprep.subr.mxu1 %v3260_v28  ;;  %3142 = vmatprep.mubr.f32.mxu1 %v5141_v2  ;;  %v3874_v50 = vld [vmem:[%s5132_s7 + $0x50] sm:$0xff]  ;;  %v3467_v52 = vsel %vm1529_vm7, %v4943_v41, %v4950_v30 }
 0x4a2   : > { %3303 = vmatpush1.msra.mxu1 %v3259_v12  ;;  %3236 = vmatprep.mubr.f32.mxu0 %v5141_v2  ;;  %v3471_v30 = vmul.f32 %v3467_v52, %v4414_v60 }
 0x4a3   : > { %3869 = vmatmul.mubr.msk.f32.gmra.mxu1 %vm513_vm0, %v3867_v8  ;;  %v3466_v43 = vpop.permute.xlu1 %3465  ;;  %3406 = vmatprep.subr.mxu0 %v3368_v54 }
 0x4a4   : > { %v3468_v45 = vsel %vm1529_vm7, %v3462_v4, %v3466_v43  ;;  %v3470_v51 = vsel %vm1529_vm7, %v3466_v43, %v3462_v4  ;;  %3407 = vmatpush1.msra.mxu0 %v3367_v10  ;;  %3336 = vmatprep.mubr.f32.mxu1 %v5141_v2 }
 0x4a5   : > { %v3473_v17 = vmul.f32 %v3468_v45, %v4414_v60  ;;  %v3474_v40 = vmul.f32 %v3470_v51, %v4419_v5  ;;  %v3568_v11 = vpop.permute.xlu0 %3567  ;;  %3873 = vmatmul.mubr.msk.f32.gmra.mxu0 %vm513_vm0, %v3871_v55  ;;  %3408 = vmatprep.subr.mxu0 %v3366_v58  ;;  %v3879_v60 = vld [vmem:[%s5132_s7 + $0x68] sm:$0xff] }
 0x4a6   : > { %3409 = vmatpush1.msra.mxu0 %v3365_v56  ;;  %3442 = vmatprep.mubr.f32.mxu0 %v5141_v2 }
 0x4a7   : > { %3876 = vmatmul.mubr.msk.f32.vlgmr.msra.gmra.mxu1 %vm513_vm0, %v3874_v50  ;;  %3512 = vmatprep.subr.mxu1 %v3474_v40  ;;  %v3572_v41 = vpop.permute.xlu1 %3571 }
 0x4a8   : > { %v3574_v31 = vsel %vm1649_vm8, %v3568_v11, %v3572_v41  ;;  %v3576_v63 = vsel %vm1649_vm8, %v3572_v41, %v3568_v11  ;;  %3513 = vmatpush1.msra.mxu1 %v3473_v17  ;;  %3342 = vmatprep.mubr.f32.mxu1 %v5141_v2 }
 0x4a9   : > { %v3579_v5 = vmul.f32 %v3574_v31, %v4423_v13  ;;  %v3580_v61 = vmul.f32 %v3576_v63, %v4426_v14  ;;  %3880 = vmatmul.mubr.msk.f32.vlgmr.msra.gmra.mxu0 %vm513_vm0, %v3878_v21  ;;  %3514 = vmatprep.subr.mxu1 %v3472_v46  ;;  %v3566_v39 = vpop.permute.xlu0 %3565 }
 0x4aa   : > { %3515 = vmatpush1.msra.mxu1 %v3471_v30  ;;  %3448 = vmatprep.mubr.f32.mxu0 %v5141_v2 }
 0x4ab   : > { %3877 = vmatmul.mubr.msk.f32.gmra.mxu1 %vm513_vm0, %v3875_v20  ;;  %v3570_v0 = vpop.permute.xlu1 %3569  ;;  %3618 = vmatprep.subr.mxu0 %v3580_v61 }
 0x4ac   : > { %v3573_v34 = vsel %vm1649_vm8, %v3566_v39, %v3570_v0  ;;  %v3575_v27 = vsel %vm1649_vm8, %v3570_v0, %v3566_v39  ;;  %3619 = vmatpush1.msra.mxu0 %v3579_v5  ;;  %3548 = vmatprep.mubr.f32.mxu1 %v5141_v2 }
 0x4ad   : > { %v3577_v24 = vmul.f32 %v3573_v34, %v4423_v13  ;;  %v3578_v47 = vmul.f32 %v3575_v27, %v4426_v14  ;;  %3881 = vmatmul.mubr.msk.f32.gmra.mxu0 %vm513_vm0, %v3879_v60  ;;  %v3883_v13 = vld [vmem:[%s5132_s7 + $0x78] sm:$0xff]  ;;  %v3887_v14 = vld [vmem:[%s5132_s7 + $0x88] sm:$0xff] }
 0x4ae   : > { %3654 = vmatprep.mubr.f32.mxu0 %v5141_v2 }
 0x4af   : > { %3884 = vmatmul.mubr.msk.f32.vlgmr.msra.gmra.mxu1 %vm513_vm0, %v3882_v33  ;;  %3620 = vmatprep.subr.mxu0 %v3578_v47 }
 0x4b0   : > { %3621 = vmatpush1.msra.mxu0 %v3577_v24  ;;  %3554 = vmatprep.mubr.f32.mxu1 %v5141_v2 }
 0x4b1   : > { %3888 = vmatmul.mubr.msk.f32.vlgmr.msra.gmra.mxu0 %vm513_vm0, %v3886_v23 }
 0x4b2   : > { %3660 = vmatprep.mubr.f32.mxu0 %v5141_v2 }
 0x4b3   : > { %3885 = vmatmul.mubr.msk.f32.gmra.mxu1 %vm513_vm0, %v3883_v13 }
 0x4b5   : > { %3889 = vmatmul.mubr.msk.f32.gmra.mxu0 %vm513_vm0, %v3887_v14 }
 0x4b6   : > { %v3676_v33 = vpop.permute.xlu0 %3675 }
 0x54f   : > { %v2847_v6 = vpop.f32.mrf.mxu0 }
 0x551   : > { %v2849_v7 = vpop.f32.mrf.mxu0 }
 0x553   : > { %v2853_v3 = vpop.f32.mrf.mxu0 }
 0x554   : > { %v2930_v26 = vpop.f32.mrf.mxu1 }
 0x555   : > { %v2855_v38 = vpop.f32.mrf.mxu0  ;;  %v2931_v18 = vadd.f32 %v2930_v26, %v2847_v6 }
 0x556   : > { %v2932_v1 = vpop.f32.mrf.mxu1 }
 0x557   : > { %v3032_v36 = vpop.f32.mrf.mxu0  ;;  %v2933_v53 = vadd.f32 %v2932_v1, %v2849_v7 }
 0x558   : > { %v2936_v37 = vpop.f32.mrf.mxu1  ;;  %v3043_v12 = vadd.f32 %v3032_v36, %v2931_v18 }
 0x559   : > { %v3034_v15 = vpop.f32.mrf.mxu0  ;;  %v2937_v35 = vadd.f32 %v2936_v37, %v2853_v3 }
 0x55a   : > { %v2938_v22 = vpop.f32.mrf.mxu1  ;;  %v3044_v48 = vadd.f32 %v3034_v15, %v2933_v53 }
 0x55b   : > { %v3038_v19 = vpop.f32.mrf.mxu0  ;;  %v2939_v10 = vadd.f32 %v2938_v22, %v2855_v38  ;;  %v3681_v22 = vpop.permute.xlu1 %3680 }
 0x55c   : > { %v3045_v54 = vadd.f32 %v3038_v19, %v2937_v35 }
 0x55d   : > { %v3040_v2 = vpop.f32.mrf.mxu0 }
 0x55e   : > { %v3046_v58 = vadd.f32 %v3040_v2, %v2939_v10 }
 0x55f   : > { %v3138_v25 = vpop.f32.mrf.mxu1 }
 0x560   : > { %v3232_v32 = vpop.f32.mrf.mxu0  ;;  %v3149_v49 = vadd.f32 %v3138_v25, %v3043_v12 }
 0x561   : > { %v3140_v62 = vpop.f32.mrf.mxu1 }
 0x562   : > { %v3234_v28 = vpop.f32.mrf.mxu0  ;;  %v3150_v4 = vadd.f32 %v3140_v62, %v3044_v48  ;;  %v3243_v43 = vadd.f32 %v3232_v32, %v3149_v49 }
 0x563   : > { %v3144_v29 = vpop.f32.mrf.mxu1 }
 0x564   : > { %v3151_v44 = vadd.f32 %v3144_v29, %v3045_v54  ;;  %v3244_v50 = vadd.f32 %v3234_v28, %v3150_v4 }
 0x565   : > { %v3146_v42 = vpop.f32.mrf.mxu1  ;;  %v3238_v8 = vpop.f32.mrf.mxu0 }
 0x566   : > { %v3152_v52 = vadd.f32 %v3146_v42, %v3046_v58  ;;  %v3245_v21 = vadd.f32 %v3238_v8, %v3151_v44 }
 0x567   : > { %v3240_v55 = vpop.f32.mrf.mxu0  ;;  %v3338_v56 = vpop.f32.mrf.mxu1 }
 0x568   : > { %v3349_v17 = vadd.f32 %v3338_v56, %v3243_v43  ;;  %v3246_v31 = vadd.f32 %v3240_v55, %v3152_v52 }
 0x569   : > { %v3340_v45 = vpop.f32.mrf.mxu1  ;;  %v3444_v51 = vpop.f32.mrf.mxu0 }
 0x56a   : > { %v3350_v46 = vadd.f32 %v3340_v45, %v3244_v50  ;;  %v3455_v63 = vadd.f32 %v3444_v51, %v3349_v17 }
 0x56b   : > { %v3344_v40 = vpop.f32.mrf.mxu1  ;;  %v3446_v11 = vpop.f32.mrf.mxu0 }
 0x56c   : > { %v3351_v20 = vadd.f32 %v3344_v40, %v3245_v21  ;;  %v3456_v60 = vadd.f32 %v3446_v11, %v3350_v46 }
 0x56d   : > { %v3346_v41 = vpop.f32.mrf.mxu1  ;;  %v3450_v30 = vpop.f32.mrf.mxu0 }
 0x56e   : > { %v3352_v39 = vadd.f32 %v3346_v41, %v3246_v31  ;;  %v3457_v24 = vadd.f32 %v3450_v30, %v3351_v20 }
 0x56f   : > { %v3452_v5 = vpop.f32.mrf.mxu0  ;;  %v3550_v61 = vpop.f32.mrf.mxu1 }
 0x570   : > { %v3561_v0 = vadd.f32 %v3550_v61, %v3455_v63  ;;  %v3458_v6 = vadd.f32 %v3452_v5, %v3352_v39 }
 0x571   : > { %v3552_v34 = vpop.f32.mrf.mxu1  ;;  %v3656_v27 = vpop.f32.mrf.mxu0 }
 0x572   : > { %v3562_v47 = vadd.f32 %v3552_v34, %v3456_v60  ;;  %v3667_v23 = vadd.f32 %v3656_v27, %v3561_v0 }
 0x573   : > { %v3556_v13 = vpop.f32.mrf.mxu1  ;;  %v3658_v14 = vpop.f32.mrf.mxu0 }
 0x574   : > { %v3683_v7 = vadd.f32 %v3676_v33, %v3667_v23  ;;  %v3563_v3 = vadd.f32 %v3556_v13, %v3457_v24  ;;  %v3668_v26 = vadd.f32 %v3658_v14, %v3562_v47 }
 0x575   : > { %v3558_v38 = vpop.f32.mrf.mxu1  ;;  %v3662_v1 = vpop.f32.mrf.mxu0 }
 0x576   : > { %v3687_v36 = vadd.f32 %v3683_v7, %v4505_v9  ;;  %v3684_v37 = vadd.f32 %v3676_v33, %v3668_v26  ;;  %v3564_v15 = vadd.f32 %v3558_v38, %v3458_v6  ;;  %v3669_v19 = vadd.f32 %v3662_v1, %v3563_v3 }
 0x577   : > { %v3664_v2 = vpop.f32.mrf.mxu0 }
 0x578   : > { %v3691_v25 = vmax.f32 %v3687_v36, 0.0  ;;  %v3688_v18 = vadd.f32 %v3684_v37, %v4507_v59  ;;  %v3685_v32 = vadd.f32 %v3681_v22, %v3669_v19  ;;  %v3670_v62 = vadd.f32 %v3664_v2, %v3564_v15 }
 0x57a   : > { %3695 = vst [vmem:[%s460_s20] sm:$0xff] %v3691_v25  ;;  %v3692_v53 = vmax.f32 %v3688_v18, 0.0  ;;  %v3689_v12 = vadd.f32 %v3685_v32, %v4533_v16  ;;  %v3686_v9 = vadd.f32 %v3681_v22, %v3670_v62 }
 0x57c   : > { %3696 = vst [vmem:[%s460_s20 + $0x8] sm:$0xff] %v3692_v53  ;;  %v3693_v28 = vmax.f32 %v3689_v12, 0.0  ;;  %v3690_v29 = vadd.f32 %v3686_v9, %v4537_v57 }
 0x57e   : > { %3697 = vst [vmem:[%s460_s20 + $0x10] sm:$0xff] %v3693_v28  ;;  %v3694_v35 = vmax.f32 %v3690_v29, 0.0 }
 0x580   : > { %3698 = vst [vmem:[%s460_s20 + $0x18] sm:$0xff] %v3694_v35 }
 0x581 PF: > { %s23_s25 = sadd.s32 1, %s3925_s25  }
 0x582   : > { %p20_p4 = scmp.ge.s32.totalorder %s23_s25, 4  }
 0x584   :  { %22 = sbr.rel (!%p20_p4) target bundleno = 1 (0x1), region = 137 }

// kernel: downsample_forward.7
= control target key start
LH: loop header
LB: loop body
LE: loop exit
PB: predicated region body
PF: predicated region fallthrough
CT: control target
= control target key end

     0   :  { %s4618_s25 = smov 0   ;;  %s5646_s0 = inlined_call_operand.vmem [shape: f32[2,144,128], index: 0, kind: input, shape index: {}]   ;;  %s5647_s1 = inlined_call_operand.vmem [shape: f32[2,16,128], index: 1, kind: input, shape index: {}]   ;;  %s5648_s2 = inlined_call_operand.vmem [shape: f32[9,1,128], index: 2, kind: input, shape index: {}]   ;;  %s5649_s3 = inlined_call_operand.vmem [shape: f32[24,144], index: 3, kind: input, shape index: {}]   ;;  %s5650_s4 = inlined_call_operand.vmem [shape: f32[24,16], index: 4, kind: input, shape index: {}]   ;;  %s5651_s5 = inlined_call_operand.vmem [shape: f32[9,24,24], index: 5, kind: input, shape index: {}]   ;;  %s5652_s6 = inlined_call_operand.vmem [shape: f32[9,24,24], index: 6, kind: input, shape index: {}]   ;;  %s5653_s7 = inlined_call_operand.vmem [shape: f32[9,24,24], index: 7, kind: input, shape index: {}]   ;;  %s5654_s8 = inlined_call_operand.vmem [shape: f32[24,1], index: 8, kind: input, shape index: {}]   ;;  %s5655_s9 = inlined_call_operand.vmem [shape: f32[24,1], index: 9, kind: input, shape index: {}]   ;;  %s5656_s10 = inlined_call_operand.vmem [shape: f32[24,1], index: 10, kind: input, shape index: {}]   ;;  %s5657_s11 = inlined_call_operand.vmem [shape: f32[24,1], index: 11, kind: input, shape index: {}]   ;;  %s5658_s12 = inlined_call_operand.vmem [shape: f32[24,1], index: 12, kind: input, shape index: {}]   ;;  %s5659_s13 = inlined_call_operand.vmem [shape: f32[2,24,128], index: 13, kind: output, shape index: {}]  }
   0x1 LB: > { %s3724_s26 = sadd.s32 4294967295, %s4535_s25   ;;  %p3728_p0 = scmp.ge.s32.totalorder %s4535_s25, 1  ;;  %s4535_s25 = sphi %s4618_s25, %s23_s25  }
   0x2   : > { %p397_p1 = scmp.lt.s32.totalorder %s4535_s25, 3 }
   0x4   : > { %p398_p2 = pnand %p3728_p0, %p397_p1 }
   0x5   : > { %p446_p3 = scmp.lt.s32.totalorder (!%p398_p2), %s3724_s26, 1  ;;  %s4540_s29 = smov (!%p398_p2), 8  }
   0x6   : > { %401 = sbr.rel (%p398_p2) target bundleno = 1410 (0x582), region = 72  ;;  %s4541_s30 = smov (!%p398_p2), 9  }
   0x7   : > { %s4542_s14 = smov (!%p398_p2), 7   ;;  %s4543_s15 = smov (!%p398_p2), 1  }
   0x8   : > { %s4545_s17 = smov (!%p398_p2), 121   ;;  %s5660_s18 = smov (!%p398_p2), 120  }
   0x9   : > { %s5664_s23 = smov (!%p398_p2), 120   ;;  %s5665_s24 = smov (!%p398_p2), 119  }
   0xb   : > { %v462_v0 = vld [vmem:[%s5649_s3 + $0x8] sm:$0xff]  ;;  %vm503_vm0 = vcmask 130048   ;;  %v4537_v1 = vmov 0.0   ;;  %s5667_s26 = smov (!%p446_p3, %s3724_s26), 1  ;;  %v4538_v2 = vmov 0   ;;  %v487_v3 = vld [vmem:[%s5654_s8 + $0x10] sm:$0xff] }
   0xc   : > { %513 = vmatprep.subr.mxu0 %v4537_v1  ;;  %3733 = vmatprep.mubr.msk.f32.mxu0 %vm503_vm0, %v462_v0  ;;  %v485_v4 = vld [vmem:[%s5654_s8] sm:$0xff]  ;;  %s4497_s16 = smul.u32 144, %s5667_s26  ;;  %v486_v5 = vld [vmem:[%s5654_s8 + $0x8] sm:$0xff]  ;;  %s3911_s19 = sshll.u32 %s5667_s26, 4  ;;  %vm4539_vm1 = vmmov 0   ;;  %v598_v16 = vld [vmem:[%s5650_s4 + $0x10] sm:$0xff] }
   0xd   : > { %4519 = vset.pattern.permute.xlu1 %v4538_v2  ;;  %4518 = vset.pattern.permute.xlu0 %v4538_v2  ;;  %s455_s22 = scalar_lea.vmem %s5647_s1, %s3911_s19  ;;  %v596_v10 = vld [vmem:[%s5650_s4] sm:$0xff]  ;;  %v597_v13 = vld [vmem:[%s5650_s4 + $0x8] sm:$0xff]  ;;  %v464_v30 = vld [vmem:[%s5649_s3 + $0x18] sm:$0xff]  ;;  %s5662_s19 = smov 119   ;;  %vm748_vm2 = vcmask 195584  }
   0xe   : > { %500 = vperm.xlu0 %4518, %v487_v3   ;;  %490 = vperm.xlu1 %4519, %v485_v4   ;;  %s4653_s27 = scalar_lea.vmem %s5646_s0, %s4497_s16  ;;  %v600_v6 = vld [vmem:[%s455_s22 + $0x8] sm:$0xff]  ;;  %v599_v7 = vld [vmem:[%s455_s22] sm:$0xff]  ;;  %v463_v31 = vld [vmem:[%s5649_s3 + $0x10] sm:$0xff]  ;;  %s4544_s16 = smov 127  }
   0xf   : > { %4079 = vmatprep.subr.mxu1 %v4537_v1  ;;  %4083 = vmatprep.mubr.msk.f32.mxu1 %vm4539_vm1, %v4537_v1  ;;  %v482_v8 = vld [vmem:[%s4653_s27 + $0x78] sm:$0xff]  ;;  %v481_v9 = vld [vmem:[%s4653_s27 + $0x70] sm:$0xff]  ;;  %v480_v11 = vld [vmem:[%s4653_s27 + $0x68] sm:$0xff] }
  0x10   : > { %4080 = vmatpush3.msra.mxu1 %v600_v6  ;;  %514 = vmatpush1.msra.mxu0 %v482_v8  ;;  %v479_v12 = vld [vmem:[%s4653_s27 + $0x60] sm:$0xff]  ;;  %v478_v14 = vld [vmem:[%s4653_s27 + $0x58] sm:$0xff]  ;;  %v477_v15 = vld [vmem:[%s4653_s27 + $0x50] sm:$0xff] }
  0x11   : > { %4081 = vmatprep.subr.mxu1 %v4537_v1  ;;  %515 = vmatprep.subr.mxu0 %v4537_v1  ;;  %v476_v17 = vld [vmem:[%s4653_s27 + $0x48] sm:$0xff]  ;;  %v475_v18 = vld [vmem:[%s4653_s27 + $0x40] sm:$0xff]  ;;  %v474_v19 = vld [vmem:[%s4653_s27 + $0x38] sm:$0xff] }
  0x12   : > { %495 = vperm.xlu0 %4518, %v486_v5   ;;  %4082 = vmatpush3.msra.mxu1 %v599_v7  ;;  %v473_v20 = vld [vmem:[%s4653_s27 + $0x30] sm:$0xff]  ;;  %v472_v21 = vld [vmem:[%s4653_s27 + $0x28] sm:$0xff]  ;;  %v471_v22 = vld [vmem:[%s4653_s27 + $0x20] sm:$0xff] }
  0x13   : > { %516 = vmatpush1.msra.mxu0 %v481_v9  ;;  %4084 = vmatmul.mubr.msk.f32.vlgmr.msra.gmra.mxu1 %vm503_vm0, %v596_v10  ;;  %v470_v23 = vld [vmem:[%s4653_s27 + $0x18] sm:$0xff]  ;;  %v469_v24 = vld [vmem:[%s4653_s27 + $0x10] sm:$0xff]  ;;  %v468_v25 = vld [vmem:[%s4653_s27 + $0x8] sm:$0xff] }
  0x14   : > { %517 = vmatprep.subr.mxu0 %v4537_v1  ;;  %4086 = vmatprep.mubr.msk.f32.mxu1 %vm4539_vm1, %v4537_v1  ;;  %v467_v26 = vld [vmem:[%s4653_s27] sm:$0xff]  ;;  %v484_v27 = vld [vmem:[%s4653_s27 + $0x88] sm:$0xff]  ;;  %v1714_v52 = vld [vmem:[%s5656_s10 + $0x10] sm:$0xff] }
  0x15   : > { %518 = vmatpush1.msra.mxu0 %v480_v11  ;;  %4092 = vmatprep.subr.mxu1 %v4537_v1  ;;  %v483_v28 = vld [vmem:[%s4653_s27 + $0x80] sm:$0xff]  ;;  %v466_v32 = vld [vmem:[%s5649_s3 + $0x28] sm:$0xff]  ;;  %v603_v56 = vld [vmem:[%s5655_s9 + $0x10] sm:$0xff] }
  0x16   : > { %519 = vmatprep.subr.mxu0 %v4537_v1  ;;  %v461_v29 = vld [vmem:[%s5649_s3] sm:$0xff]  ;;  %v1713_v55 = vld [vmem:[%s5656_s10 + $0x8] sm:$0xff]  ;;  %v3742_v8 = vld [vmem:[%s5651_s5 + $0x18] sm:$0xff] }
  0x17   : > { %520 = vmatpush1.msra.mxu0 %v479_v12  ;;  %4087 = vmatmul.mubr.msk.f32.gmra.mxu1 %vm503_vm0, %v597_v13  ;;  %v465_v33 = vld [vmem:[%s5649_s3 + $0x20] sm:$0xff]  ;;  %v602_v59 = vld [vmem:[%s5655_s9 + $0x8] sm:$0xff] }
  0x18   : > { %521 = vmatprep.subr.mxu0 %v4537_v1  ;;  %4089 = vmatprep.mubr.msk.f32.mxu1 %vm4539_vm1, %v4537_v1  ;;  %v1712_v58 = vld [vmem:[%s5656_s10] sm:$0xff] }
  0x19   : > { %522 = vmatpush1.msra.mxu0 %v478_v14  ;;  %v601_v60 = vld [vmem:[%s5655_s9] sm:$0xff] }
  0x1a   : > { %523 = vmatprep.subr.mxu0 %v4537_v1  ;;  %v4811_v62 = vld [vmem:[%s5648_s2 + $0x1] ss:$0 sm:$0xff]  ;;  %v4818_v4 = vld [vmem:[%s5648_s2] ss:$0 sm:$0xff]  ;;  %v4839_v14 = vld [vmem:[%s5648_s2 + $0x3] ss:$0 sm:$0xff] }
  0x1b   : > { %524 = vmatpush1.msra.mxu0 %v477_v15  ;;  %4090 = vmatmul.mubr.msk.f32.gmra.mxu1 %vm503_vm0, %v598_v16  ;;  %v3743_v13 = vld [vmem:[%s5651_s5 + $0x20] sm:$0xff] }
  0x1c   : > { %525 = vmatprep.subr.mxu0 %v4537_v1  ;;  %4098 = vmatprep.mubr.msk.f32.mxu1 %vm4539_vm1, %v4537_v1 }
  0x1d   : > { %526 = vmatpush1.msra.mxu0 %v476_v17 }
  0x1e   : > { %527 = vmatprep.subr.mxu0 %v4537_v1 }
  0x1f   : > { %528 = vmatpush1.msra.mxu0 %v475_v18 }
  0x20   : > { %529 = vmatprep.subr.mxu0 %v4537_v1 }
  0x21   : > { %530 = vmatpush1.msra.mxu0 %v474_v19  ;;  %v3744_v19 = vld [vmem:[%s5651_s5 + $0x28] sm:$0xff] }
  0x22   : > { %531 = vmatprep.subr.mxu0 %v4537_v1 }
  0x23   : > { %532 = vmatpush1.msra.mxu0 %v473_v20 }
  0x24   : > { %533 = vmatprep.subr.mxu0 %v4537_v1 }
  0x25   : > { %534 = vmatpush1.msra.mxu0 %v472_v21 }
  0x26   : > { %535 = vmatprep.subr.mxu0 %v4537_v1 }
  0x27   : > { %536 = vmatpush1.msra.mxu0 %v471_v22  ;;  %v724_v22 = vld [vmem:[%s5651_s5] sm:$0xff] }
  0x28   : > { %537 = vmatprep.subr.mxu0 %v4537_v1 }
  0x29   : > { %538 = vmatpush1.msra.mxu0 %v470_v23  ;;  %v4861_v23 = vld [vmem:[%s5648_s2 + $0x2] ss:$0 sm:$0xff] }
  0x2a   : > { %539 = vmatprep.subr.mxu0 %v4537_v1 }
  0x2b   : > { %540 = vmatpush1.msra.mxu0 %v469_v24 }
  0x2c   : > { %541 = vmatprep.subr.mxu0 %v4537_v1 }
  0x2d   : > { %542 = vmatpush1.msra.mxu0 %v468_v25 }
  0x2e   : > { %543 = vmatprep.subr.mxu0 %v4537_v1 }
  0x2f   : > { %544 = vmatpush1.msra.mxu0 %v467_v26 }
  0x30   : > { %573 = vmatprep.subr.mxu0 %v4537_v1 }
  0x31   : > { %574 = vmatpush2.msra.mxu0 %v484_v27 }
  0x32   : > { %575 = vmatprep.subr.mxu0 %v4537_v1 }
  0x33   : > { %576 = vmatpush2.msra.mxu0 %v483_v28 }
  0x34   : > { %578 = vmatmul.mubr.f32.vlgmr.msra.gmra.mxu0 %v461_v29  ;;  %4137 = vmatprep.subr.mxu0 %v4537_v1  ;;  %v725_v29 = vld [vmem:[%s5651_s5 + $0x8] sm:$0xff] }
  0x35   : > { %3734 = vmatprep.mubr.msk.f32.mxu0 %vm503_vm0, %v464_v30 }
  0x38   : > { %583 = vmatmul.mubr.f32.gmra.mxu0 %v463_v31 }
  0x39   : > { %3735 = vmatprep.mubr.msk.f32.mxu0 %vm503_vm0, %v466_v32  ;;  %v4878_v32 = vld [vmem:[%s5648_s2 + $0x5] ss:$0 sm:$0xff] }
  0x3c   : > { %588 = vmatmul.mubr.f32.gmra.mxu0 %v465_v33 }
  0x3d   : > { %4143 = vmatprep.mubr.msk.f32.mxu0 %vm4539_vm1, %v4537_v1 }
  0x89   : > { %v501_v34 = vpop.permute.xlu0 %500  ;;  %v491_v42 = vpop.permute.xlu1 %490 }
  0x8d   : > { %v496_v37 = vpop.permute.xlu0 %495 }
  0xd3   : > { %v4778_v49 = vpop.f32.mrf.mxu1 }
  0xd5   : > { %v4085_v50 = vpop.f32.mrf.mxu1 }
  0xd7   : > { %v4784_v51 = vpop.f32.mrf.mxu1 }
  0xd9   : > { %v4088_v53 = vpop.f32.mrf.mxu1 }
  0xdb   : > { %v4791_v54 = vpop.f32.mrf.mxu1 }
  0xdd   : > { %v4091_v57 = vpop.f32.mrf.mxu1 }
  0xf4   : > { %v579_v35 = vpop.f32.mrf.mxu0 }
  0xf5   : > { %v580_v46 = vadd.f32 %v579_v35, %v491_v42  ;;  %v3761_v35 = vld [vmem:[%s5651_s5 + $0x48] sm:$0xff]  ;;  %v3762_v42 = vld [vmem:[%s5651_s5 + $0x50] sm:$0xff] }
  0xf6   : > { %v581_v36 = vpop.f32.mrf.mxu0 }
  0xf7   : > { %v4740_v48 = vmax.f32 %v580_v46, 0.0 }
  0xf8   : > { %v584_v38 = vpop.f32.mrf.mxu0 }
  0xf9   : > { %v585_v39 = vadd.f32 %v584_v38, %v496_v37  ;;  %v726_v37 = vld [vmem:[%s5651_s5 + $0x10] sm:$0xff] }
  0xfa   : > { %v586_v40 = vpop.f32.mrf.mxu0 }
  0xfb   : > { %v4730_v41 = vmax.f32 %v585_v39, 0.0 }
  0xfc   : > { %v589_v43 = vpop.f32.mrf.mxu0 }
  0xfd   : > { %v590_v44 = vadd.f32 %v589_v43, %v501_v34  ;;  %729 = vrot.lane.b32.xlu0 %v4730_v41, %s4540_s29 }
  0xfe   : > { %v591_v45 = vpop.f32.mrf.mxu0 }
  0xff   : > { %v4734_v47 = vmax.f32 %v590_v44, 0.0  ;;  %v3753_v44 = vld [vmem:[%s5651_s5 + $0x30] sm:$0xff]  ;;  %v4915_v45 = vld [vmem:[%s5648_s2 + $0x4] ss:$0 sm:$0xff] }
 0x101   : > { %731 = vrot.lane.b32.xlu1 %v4734_v47, %s4540_s29  ;;  %712 = vrot.lane.b32.xlu0 %v4734_v47, %s4541_s30  ;;  %v1163_v46 = vmul.f32 %v4915_v45, %v4734_v47 }
 0x105   : > { %708 = vrot.lane.b32.xlu0 %v4740_v48, %s4541_s30  ;;  %727 = vrot.lane.b32.xlu1 %v4740_v48, %s4540_s29 }
 0x109   : > { %929 = vrot.lane.b32.xlu0 %v4730_v41, %s4542_s14  ;;  %710 = vrot.lane.b32.xlu1 %v4730_v41, %s4541_s30 }
 0x10d   : > { %1044 = vrot.lane.b32.xlu0 %v4734_v47, %s4543_s15  ;;  %931 = vrot.lane.b32.xlu1 %v4734_v47, %s4542_s14 }
 0x111   : > { %1040 = vrot.lane.b32.xlu0 %v4740_v48, %s4543_s15  ;;  %927 = vrot.lane.b32.xlu1 %v4740_v48, %s4542_s14 }
 0x115   : > { %1262 = vrot.lane.b32.xlu0 %v4730_v41, %s4544_s16  ;;  %1042 = vrot.lane.b32.xlu1 %v4730_v41, %s4543_s15 }
 0x119   : > { %1260 = vrot.lane.b32.xlu0 %v4740_v48, %s4544_s16  ;;  %1264 = vrot.lane.b32.xlu1 %v4734_v47, %s4544_s16 }
 0x11d   : > { %1373 = vrot.lane.b32.xlu0 %v4740_v48, %s4545_s17  ;;  %1377 = vrot.lane.b32.xlu1 %v4734_v47, %s4545_s17 }
 0x121   : > { %1488 = vrot.lane.b32.xlu0 %v4730_v41, %s5660_s18  ;;  %1375 = vrot.lane.b32.xlu1 %v4730_v41, %s4545_s17 }
 0x125   : > { %1486 = vrot.lane.b32.xlu0 %v4740_v48, %s5660_s18  ;;  %1490 = vrot.lane.b32.xlu1 %v4734_v47, %s5660_s18 }
 0x129   : > { %1599 = vrot.lane.b32.xlu0 %v4740_v48, %s5662_s19  ;;  %1603 = vrot.lane.b32.xlu1 %v4734_v47, %s5662_s19  ;;  %v3754_v47 = vld [vmem:[%s5651_s5 + $0x38] sm:$0xff] }
 0x12d   : > { %1727 = vperm.xlu0 %4518, %v1714_v52   ;;  %1601 = vrot.lane.b32.xlu1 %v4730_v41, %s5662_s19  ;;  %v3763_v52 = vld [vmem:[%s5651_s5 + $0x58] sm:$0xff] }
 0x131   : > { %1722 = vperm.xlu0 %4518, %v1713_v55   ;;  %616 = vperm.xlu1 %4519, %v603_v56   ;;  %v1162_v55 = vmul.f32 %v4915_v45, %v4730_v41  ;;  %v4938_v56 = vld [vmem:[%s5648_s2 + $0x7] ss:$0 sm:$0xff]  ;;  %v1161_v41 = vmul.f32 %v4915_v45, %v4740_v48 }
 0x132   : > { %v3755_v48 = vld [vmem:[%s5651_s5 + $0x40] sm:$0xff] }
 0x135   : > { %1717 = vperm.xlu0 %4518, %v1712_v58   ;;  %611 = vperm.xlu1 %4519, %v602_v59   ;;  %v3777_v58 = vld [vmem:[%s5651_s5 + $0x78] sm:$0xff] }
 0x139   : > { %606 = vperm.xlu1 %4519, %v601_v60  }
 0x16f   : > { %v730_v61 = vpop.permute.xlu0 %729 }
 0x170   : > { %v742_v3 = vmul.f32 %v4811_v62, %v730_v61 }
 0x173   : > { %v732_v63 = vpop.permute.xlu1 %731  ;;  %v713_v0 = vpop.permute.xlu0 %712 }
 0x174   : > { %v743_v2 = vmul.f32 %v4811_v62, %v732_v63  ;;  %v723_v9 = vmul.f32 %v4818_v4, %v713_v0  ;;  %v4962_v63 = vld [vmem:[%s5648_s2 + $0x6] ss:$0 sm:$0xff] }
 0x176   : > { %4093 = vmatpush3.msra.mxu1 %v743_v2  ;;  %v3769_v2 = vld [vmem:[%s5651_s5 + $0x60] sm:$0xff] }
 0x177   : > { %4094 = vmatprep.subr.mxu1 %v4537_v1  ;;  %v709_v5 = vpop.permute.xlu0 %708  ;;  %v728_v6 = vpop.permute.xlu1 %727 }
 0x178   : > { %v741_v7 = vmul.f32 %v4811_v62, %v728_v6  ;;  %4095 = vmatpush3.msra.mxu1 %v742_v3  ;;  %v721_v15 = vmul.f32 %v4818_v4, %v709_v5  ;;  %v3778_v3 = vld [vmem:[%s5651_s5 + $0x80] sm:$0xff] }
 0x179   : > { %4096 = vmatprep.subr.mxu1 %v4537_v1 }
 0x17a   : > { %4097 = vmatpush3.msra.mxu1 %v741_v7  ;;  %v3770_v7 = vld [vmem:[%s5651_s5 + $0x68] sm:$0xff] }
 0x17b   : > { %v930_v10 = vpop.permute.xlu0 %929  ;;  %4099 = vmatmul.mubr.msk.f32.vlgmr.msra.gmra.mxu1 %vm748_vm2, %v3742_v8  ;;  %4107 = vmatprep.subr.mxu1 %v4537_v1  ;;  %v711_v11 = vpop.permute.xlu1 %710 }
 0x17c   : > { %v722_v12 = vmul.f32 %v4818_v4, %v711_v11  ;;  %4108 = vmatpush3.msra.mxu1 %v723_v9  ;;  %4101 = vmatprep.mubr.msk.f32.mxu1 %vm4539_vm1, %v4537_v1  ;;  %v942_v27 = vmul.f32 %v4861_v23, %v930_v10  ;;  %v3779_v9 = vld [vmem:[%s5651_s5 + $0x88] sm:$0xff]  ;;  %v3771_v11 = vld [vmem:[%s5651_s5 + $0x70] sm:$0xff] }
 0x17d   : > { %4109 = vmatprep.subr.mxu1 %v4537_v1 }
 0x17e   : > { %4110 = vmatpush3.msra.mxu1 %v722_v12  ;;  %v3793_v12 = vld [vmem:[%s5651_s5 + $0xa8] sm:$0xff] }
 0x17f   : > { %v1045_v16 = vpop.permute.xlu0 %1044  ;;  %4102 = vmatmul.mubr.msk.f32.gmra.mxu1 %vm748_vm2, %v3743_v13  ;;  %4111 = vmatprep.subr.mxu1 %v4537_v1  ;;  %v932_v17 = vpop.permute.xlu1 %931  ;;  %v5013_v13 = vld [vmem:[%s5648_s2 + $0x8] ss:$0 sm:$0xff] }
 0x180   : > { %v1056_v18 = vmul.f32 %v4839_v14, %v1045_v16  ;;  %4112 = vmatpush3.msra.mxu1 %v721_v15  ;;  %4104 = vmatprep.mubr.msk.f32.mxu1 %vm4539_vm1, %v4537_v1  ;;  %v943_v24 = vmul.f32 %v4861_v23, %v932_v17  ;;  %v3785_v15 = vld [vmem:[%s5651_s5 + $0x90] sm:$0xff] }
 0x181   : > { %4122 = vmatprep.subr.mxu1 %v4537_v1 }
 0x182   : > { %4138 = vmatpush3.msra.mxu0 %v1056_v18  ;;  %v3794_v18 = vld [vmem:[%s5651_s5 + $0xb0] sm:$0xff] }
 0x183   : > { %v1041_v20 = vpop.permute.xlu0 %1040  ;;  %4105 = vmatmul.mubr.msk.f32.gmra.mxu1 %vm748_vm2, %v3744_v19  ;;  %v928_v21 = vpop.permute.xlu1 %927  ;;  %4139 = vmatprep.subr.mxu0 %v4537_v1 }
 0x184   : > { %4113 = vmatprep.mubr.msk.f32.mxu1 %vm4539_vm1, %v4537_v1  ;;  %v941_v30 = vmul.f32 %v4861_v23, %v928_v21  ;;  %v1054_v31 = vmul.f32 %v4839_v14, %v1041_v20  ;;  %v3786_v21 = vld [vmem:[%s5651_s5 + $0x98] sm:$0xff] }
 0x187   : > { %v1263_v25 = vpop.permute.xlu0 %1262  ;;  %4114 = vmatmul.mubr.msk.f32.vlgmr.msra.gmra.mxu1 %vm748_vm2, %v724_v22  ;;  %v1043_v26 = vpop.permute.xlu1 %1042 }
 0x188   : > { %4123 = vmatpush3.msra.mxu1 %v943_v24  ;;  %v1055_v28 = vmul.f32 %v4839_v14, %v1043_v26  ;;  %4116 = vmatprep.mubr.msk.f32.mxu1 %vm4539_vm1, %v4537_v1  ;;  %v1275_v38 = vmul.f32 %v4878_v32, %v1263_v25  ;;  %v3795_v24 = vld [vmem:[%s5651_s5 + $0xb8] sm:$0xff]  ;;  %v3787_v25 = vld [vmem:[%s5651_s5 + $0xa0] sm:$0xff] }
 0x189   : > { %4124 = vmatprep.subr.mxu1 %v4537_v1  ;;  %v3801_v26 = vld [vmem:[%s5651_s5 + $0xc0] sm:$0xff] }
 0x18a   : > { %4125 = vmatpush3.msra.mxu1 %v942_v27  ;;  %4140 = vmatpush3.msra.mxu0 %v1055_v28  ;;  %v3802_v27 = vld [vmem:[%s5651_s5 + $0xc8] sm:$0xff]  ;;  %v3803_v28 = vld [vmem:[%s5651_s5 + $0xd0] sm:$0xff] }
 0x18b   : > { %4126 = vmatprep.subr.mxu1 %v4537_v1  ;;  %v1261_v33 = vpop.permute.xlu0 %1260  ;;  %4117 = vmatmul.mubr.msk.f32.gmra.mxu1 %vm748_vm2, %v725_v29  ;;  %v1265_v34 = vpop.permute.xlu1 %1264 }
 0x18c   : > { %4127 = vmatpush3.msra.mxu1 %v941_v30  ;;  %4141 = vmatprep.subr.mxu0 %v4537_v1  ;;  %v1276_v36 = vmul.f32 %v4878_v32, %v1265_v34  ;;  %v1274_v43 = vmul.f32 %v4878_v32, %v1261_v33 }
 0x18d   : > { %4142 = vmatpush3.msra.mxu0 %v1054_v31  ;;  %4119 = vmatprep.mubr.msk.f32.mxu1 %vm4539_vm1, %v4537_v1 }
 0x18e   : > { %4167 = vmatprep.subr.mxu0 %v4537_v1  ;;  %4144 = vmatmul.mubr.msk.f32.vlgmr.msra.gmra.mxu0 %vm748_vm2, %v3761_v35 }
 0x18f   : > { %4168 = vmatpush3.msra.mxu0 %v1276_v36  ;;  %v4895_v39 = vpop.permute.xlu0 %1373  ;;  %4120 = vmatmul.mubr.msk.f32.gmra.mxu1 %vm748_vm2, %v726_v37  ;;  %v1378_v40 = vpop.permute.xlu1 %1377 }
 0x190   : > { %4169 = vmatprep.subr.mxu0 %v4537_v1  ;;  %4146 = vmatprep.mubr.msk.f32.mxu0 %vm4539_vm1, %v4537_v1  ;;  %v1389_v5 = vmul.f32 %v4962_v63, %v1378_v40  ;;  %v1387_v8 = vmul.f32 %v4962_v63, %v4895_v39 }
 0x191   : > { %4170 = vmatpush3.msra.mxu0 %v1275_v38  ;;  %4128 = vmatprep.mubr.msk.f32.mxu1 %vm4539_vm1, %v4537_v1 }
 0x192   : > { %4171 = vmatprep.subr.mxu0 %v4537_v1  ;;  %4147 = vmatmul.mubr.msk.f32.gmra.mxu0 %vm748_vm2, %v3762_v42 }
 0x193   : > { %4152 = vmatprep.subr.mxu1 %v4537_v1  ;;  %4172 = vmatpush3.msra.mxu0 %v1274_v43  ;;  %v1376_v50 = vpop.permute.xlu1 %1375  ;;  %v1489_v53 = vpop.permute.xlu0 %1488 }
 0x194   : > { %4129 = vmatmul.mubr.msk.f32.vlgmr.msra.gmra.mxu1 %vm748_vm2, %v3753_v44  ;;  %4149 = vmatprep.mubr.msk.f32.mxu0 %vm4539_vm1, %v4537_v1  ;;  %v1501_v61 = vmul.f32 %v4938_v56, %v1489_v53  ;;  %v1388_v6 = vmul.f32 %v4962_v63, %v1376_v50 }
 0x195   : > { %4153 = vmatpush3.msra.mxu1 %v1163_v46  ;;  %4131 = vmatprep.mubr.msk.f32.mxu1 %vm4539_vm1, %v4537_v1 }
 0x196   : > { %4154 = vmatprep.subr.mxu1 %v4537_v1  ;;  %4150 = vmatmul.mubr.msk.f32.gmra.mxu0 %vm748_vm2, %v3763_v52 }
 0x197   : > { %4155 = vmatpush3.msra.mxu1 %v1162_v55  ;;  %v1491_v57 = vpop.permute.xlu1 %1490  ;;  %4173 = vmatprep.mubr.msk.f32.mxu0 %vm4539_vm1, %v4537_v1  ;;  %v1487_v60 = vpop.permute.xlu0 %1486 }
 0x198   : > { %4156 = vmatprep.subr.mxu1 %v4537_v1  ;;  %4132 = vmatmul.mubr.msk.f32.gmra.mxu1 %vm748_vm2, %v3754_v47  ;;  %v1502_v59 = vmul.f32 %v4938_v56, %v1491_v57  ;;  %v1500_v0 = vmul.f32 %v4938_v56, %v1487_v60 }
 0x199   : > { %4157 = vmatpush3.msra.mxu1 %v1161_v41  ;;  %4197 = vmatprep.subr.mxu0 %v4537_v1 }
 0x19a   : > { %4134 = vmatprep.mubr.msk.f32.mxu1 %vm4539_vm1, %v4537_v1  ;;  %4174 = vmatmul.mubr.msk.f32.vlgmr.msra.gmra.mxu0 %vm748_vm2, %v3777_v58 }
 0x19b   : > { %4198 = vmatpush3.msra.mxu0 %v1502_v59  ;;  %4182 = vmatprep.subr.mxu1 %v4537_v1  ;;  %v1604_v10 = vpop.permute.xlu1 %1603  ;;  %v1600_v19 = vpop.permute.xlu0 %1599 }
 0x19c   : > { %4135 = vmatmul.mubr.msk.f32.gmra.mxu1 %vm748_vm2, %v3755_v48  ;;  %4199 = vmatprep.subr.mxu0 %v4537_v1  ;;  %v1615_v17 = vmul.f32 %v5013_v13, %v1604_v10  ;;  %v1613_v22 = vmul.f32 %v5013_v13, %v1600_v19 }
 0x19d   : > { %4200 = vmatpush3.msra.mxu0 %v1501_v61  ;;  %4158 = vmatprep.mubr.msk.f32.mxu1 %vm4539_vm1, %v4537_v1 }
 0x19e   : > { %4201 = vmatprep.subr.mxu0 %v4537_v1  ;;  %4176 = vmatprep.mubr.msk.f32.mxu0 %vm4539_vm1, %v4537_v1 }
 0x19f   : > { %4202 = vmatpush3.msra.mxu0 %v1500_v0  ;;  %v1602_v16 = vpop.permute.xlu1 %1601 }
 0x1a0   : > { %4159 = vmatmul.mubr.msk.f32.vlgmr.msra.gmra.mxu1 %vm748_vm2, %v3769_v2  ;;  %4177 = vmatmul.mubr.msk.f32.gmra.mxu0 %vm748_vm2, %v3778_v3  ;;  %v1614_v20 = vmul.f32 %v5013_v13, %v1602_v16 }
 0x1a1   : > { %4183 = vmatpush3.msra.mxu1 %v1389_v5  ;;  %4161 = vmatprep.mubr.msk.f32.mxu1 %vm4539_vm1, %v4537_v1 }
 0x1a2   : > { %4184 = vmatprep.subr.mxu1 %v4537_v1  ;;  %4179 = vmatprep.mubr.msk.f32.mxu0 %vm4539_vm1, %v4537_v1 }
 0x1a3   : > { %4185 = vmatpush3.msra.mxu1 %v1388_v6  ;;  %4227 = vmatprep.subr.mxu0 %v4537_v1 }
 0x1a4   : > { %4186 = vmatprep.subr.mxu1 %v4537_v1  ;;  %4162 = vmatmul.mubr.msk.f32.gmra.mxu1 %vm748_vm2, %v3770_v7 }
 0x1a5   : > { %4187 = vmatpush3.msra.mxu1 %v1387_v8  ;;  %4164 = vmatprep.mubr.msk.f32.mxu1 %vm4539_vm1, %v4537_v1 }
 0x1a6   : > { %4180 = vmatmul.mubr.msk.f32.gmra.mxu0 %vm748_vm2, %v3779_v9  ;;  %4212 = vmatprep.subr.mxu1 %v4537_v1 }
 0x1a7   : > { %4203 = vmatprep.mubr.msk.f32.mxu0 %vm4539_vm1, %v4537_v1 }
 0x1a8   : > { %4165 = vmatmul.mubr.msk.f32.gmra.mxu1 %vm748_vm2, %v3771_v11 }
 0x1a9   : > { %4188 = vmatprep.mubr.msk.f32.mxu1 %vm4539_vm1, %v4537_v1 }
 0x1aa   : > { %4204 = vmatmul.mubr.msk.f32.vlgmr.msra.gmra.mxu0 %vm748_vm2, %v3793_v12 }
 0x1ab   : > { %4206 = vmatprep.mubr.msk.f32.mxu0 %vm4539_vm1, %v4537_v1 }
 0x1ac   : > { %4189 = vmatmul.mubr.msk.f32.vlgmr.msra.gmra.mxu1 %vm748_vm2, %v3785_v15 }
 0x1ad   : > { %4213 = vmatpush3.msra.mxu1 %v1615_v17  ;;  %4191 = vmatprep.mubr.msk.f32.mxu1 %vm4539_vm1, %v4537_v1 }
 0x1ae   : > { %4214 = vmatprep.subr.mxu1 %v4537_v1  ;;  %4207 = vmatmul.mubr.msk.f32.gmra.mxu0 %vm748_vm2, %v3794_v18 }
 0x1af   : > { %4215 = vmatpush3.msra.mxu1 %v1614_v20  ;;  %4209 = vmatprep.mubr.msk.f32.mxu0 %vm4539_vm1, %v4537_v1 }
 0x1b0   : > { %4216 = vmatprep.subr.mxu1 %v4537_v1  ;;  %4192 = vmatmul.mubr.msk.f32.gmra.mxu1 %vm748_vm2, %v3786_v21 }
 0x1b1   : > { %4217 = vmatpush3.msra.mxu1 %v1613_v22  ;;  %4194 = vmatprep.mubr.msk.f32.mxu1 %vm4539_vm1, %v4537_v1 }
 0x1b2   : > { %4210 = vmatmul.mubr.msk.f32.gmra.mxu0 %vm748_vm2, %v3795_v24  ;;  %4242 = vmatprep.subr.mxu1 %v4537_v1 }
 0x1b3   : > { %4233 = vmatprep.mubr.msk.f32.mxu0 %vm4539_vm1, %v4537_v1 }
 0x1b4   : > { %4195 = vmatmul.mubr.msk.f32.gmra.mxu1 %vm748_vm2, %v3787_v25 }
 0x1b5   : > { %4218 = vmatprep.mubr.msk.f32.mxu1 %vm4539_vm1, %v4537_v1 }
 0x1b8   : > { %4219 = vmatmul.mubr.msk.f32.vlgmr.msra.gmra.mxu1 %vm748_vm2, %v3801_v26 }
 0x1b9   : > { %4221 = vmatprep.mubr.msk.f32.mxu1 %vm4539_vm1, %v4537_v1 }
 0x1bc   : > { %4222 = vmatmul.mubr.msk.f32.gmra.mxu1 %vm748_vm2, %v3802_v27 }
 0x1bd   : > { %4224 = vmatprep.mubr.msk.f32.mxu1 %vm4539_vm1, %v4537_v1 }
 0x1c0   : > { %4225 = vmatmul.mubr.msk.f32.gmra.mxu1 %vm748_vm2, %v3803_v28 }
 0x1c1   : > { %4248 = vmatprep.mubr.msk.f32.mxu1 %vm4539_vm1, %v4537_v1 }
 0x23b   : > { %v824_v29 = vpop.f32.mrf.mxu1 }
 0x23d   : > { %v4100_v30 = vpop.f32.mrf.mxu1 }
 0x23f   : > { %v829_v31 = vpop.f32.mrf.mxu1 }
 0x241   : > { %v4103_v33 = vpop.f32.mrf.mxu1 }
 0x243   : > { %v834_v34 = vpop.f32.mrf.mxu1 }
 0x245   : > { %v4106_v35 = vpop.f32.mrf.mxu1 }
 0x247   : > { %v913_v36 = vpop.f32.mrf.mxu1 }
 0x248   : > { %v914_v15 = vadd.f32 %v913_v36, %v824_v29  ;;  %v1728_v29 = vpop.permute.xlu0 %1727 }
 0x249   : > { %v4115_v37 = vpop.f32.mrf.mxu1 }
 0x24b   : > { %v918_v38 = vpop.f32.mrf.mxu1 }
 0x24c   : > { %v919_v10 = vadd.f32 %v918_v38, %v829_v31 }
 0x24d   : > { %v4118_v39 = vpop.f32.mrf.mxu1 }
 0x24e   : > { %v1136_v40 = vpop.f32.mrf.mxu0 }
 0x24f   : > { %v923_v42 = vpop.f32.mrf.mxu1 }
 0x250   : > { %v4145_v43 = vpop.f32.mrf.mxu0  ;;  %v924_v19 = vadd.f32 %v923_v42, %v834_v34 }
 0x251   : > { %v4121_v44 = vpop.f32.mrf.mxu1 }
 0x252   : > { %v1141_v46 = vpop.f32.mrf.mxu0  ;;  %v617_v44 = vpop.permute.xlu1 %616 }
 0x254   : > { %v1023_v50 = vpop.f32.mrf.mxu1  ;;  %v4148_v52 = vpop.f32.mrf.mxu0 }
 0x255   : > { %v1037_v20 = vadd.f32 %v1023_v50, %v914_v15 }
 0x256   : > { %v4130_v53 = vpop.f32.mrf.mxu1  ;;  %v1146_v55 = vpop.f32.mrf.mxu0 }
 0x257   : > { %v1150_v28 = vadd.f32 %v1136_v40, %v1037_v20  ;;  %v2673_v20 = vld [vmem:[%s5657_s11 + $0x10] sm:$0xff] }
 0x258   : > { %v1028_v47 = vpop.f32.mrf.mxu1  ;;  %v4151_v57 = vpop.f32.mrf.mxu0 }
 0x259   : > { %v1038_v16 = vadd.f32 %v1028_v47, %v919_v10  ;;  %v1723_v57 = vpop.permute.xlu0 %1722 }
 0x25a   : > { %v4133_v41 = vpop.f32.mrf.mxu1  ;;  %v1356_v58 = vpop.f32.mrf.mxu0 }
 0x25b   : > { %v1151_v24 = vadd.f32 %v1141_v46, %v1038_v16 }
 0x25c   : > { %v1033_v59 = vpop.f32.mrf.mxu1  ;;  %v4175_v48 = vpop.f32.mrf.mxu0 }
 0x25d   : > { %v1039_v25 = vadd.f32 %v1033_v59, %v924_v19  ;;  %v612_v59 = vpop.permute.xlu1 %611 }
 0x25e   : > { %v4136_v60 = vpop.f32.mrf.mxu1 }
 0x25f   : > { %v1152_v37 = vadd.f32 %v1146_v55, %v1039_v25 }
 0x260   : > { %v1243_v61 = vpop.f32.mrf.mxu1  ;;  %v1361_v0 = vpop.f32.mrf.mxu0 }
 0x261   : > { %v1257_v31 = vadd.f32 %v1243_v61, %v1150_v28 }
 0x262   : > { %v4160_v2 = vpop.f32.mrf.mxu1  ;;  %v4178_v3 = vpop.f32.mrf.mxu0 }
 0x263   : > { %v1370_v42 = vadd.f32 %v1356_v58, %v1257_v31  ;;  %v700_v2 = vadd.f32 %v4784_v51, %v612_v59  ;;  %v1718_v58 = vpop.permute.xlu0 %1717 }
 0x264   : > { %v1248_v5 = vpop.f32.mrf.mxu1 }
 0x265   : > { %v1258_v30 = vadd.f32 %v1248_v5, %v1151_v24 }
 0x266   : > { %v4163_v6 = vpop.f32.mrf.mxu1  ;;  %v1366_v7 = vpop.f32.mrf.mxu0 }
 0x267   : > { %v1371_v36 = vadd.f32 %v1361_v0, %v1258_v30 }
 0x268   : > { %v1253_v8 = vpop.f32.mrf.mxu1  ;;  %v4181_v9 = vpop.f32.mrf.mxu0 }
 0x269   : > { %v1259_v43 = vadd.f32 %v1253_v8, %v1152_v37  ;;  %v3807_v37 = vld [vmem:[%s5652_s6 + $0x18] sm:$0xff] }
 0x26a   : > { %v4166_v11 = vpop.f32.mrf.mxu1  ;;  %v1582_v12 = vpop.f32.mrf.mxu0 }
 0x26b   : > { %v1372_v46 = vadd.f32 %v1366_v7, %v1259_v43  ;;  %v607_v7 = vpop.permute.xlu1 %606  ;;  %v705_v11 = vadd.f32 %v4791_v54, %v617_v44 }
 0x26c   : > { %v1469_v17 = vpop.f32.mrf.mxu1  ;;  %v4205_v18 = vpop.f32.mrf.mxu0 }
 0x26d   : > { %v1483_v53 = vadd.f32 %v1469_v17, %v1370_v42  ;;  %v3809_v42 = vld [vmem:[%s5652_s6 + $0x28] sm:$0xff] }
 0x26e   : > { %v4190_v21 = vpop.f32.mrf.mxu1  ;;  %v1587_v22 = vpop.f32.mrf.mxu0 }
 0x26f   : > { %v1596_v55 = vadd.f32 %v1582_v12, %v1483_v53  ;;  %v695_v12 = vadd.f32 %v4778_v49, %v607_v7  ;;  %v2672_v49 = vld [vmem:[%s5657_s11 + $0x8] sm:$0xff]  ;;  %v2671_v21 = vld [vmem:[%s5657_s11] sm:$0xff] }
 0x270   : > { %v1474_v26 = vpop.f32.mrf.mxu1  ;;  %v4208_v27 = vpop.f32.mrf.mxu0 }
 0x271   : > { %v1484_v50 = vadd.f32 %v1474_v26, %v1371_v36  ;;  %v3808_v36 = vld [vmem:[%s5652_s6 + $0x20] sm:$0xff] }
 0x272   : > { %v4193_v33 = vpop.f32.mrf.mxu1  ;;  %v1592_v35 = vpop.f32.mrf.mxu0 }
 0x273   : > { %v1597_v40 = vadd.f32 %v1587_v22, %v1484_v50  ;;  %v1748_v50 = vld [vmem:[%s5652_s6] sm:$0xff] }
 0x274   : > { %v1479_v38 = vpop.f32.mrf.mxu1  ;;  %v4211_v39 = vpop.f32.mrf.mxu0 }
 0x275   : > { %v1485_v41 = vadd.f32 %v1479_v38, %v1372_v46 }
 0x276   : > { %v4196_v34 = vpop.f32.mrf.mxu1 }
 0x277   : > { %v1598_v0 = vadd.f32 %v1592_v35, %v1485_v41 }
 0x278   : > { %v1695_v52 = vpop.f32.mrf.mxu1 }
 0x279   : > { %v1709_v3 = vadd.f32 %v1695_v52, %v1596_v55 }
 0x27a   : > { %v4220_v47 = vpop.f32.mrf.mxu1 }
 0x27b   : > { %v1730_v15 = vadd.f32 %v1718_v58, %v1709_v3  ;;  %v1749_v47 = vld [vmem:[%s5652_s6 + $0x8] sm:$0xff] }
 0x27c   : > { %v1700_v48 = vpop.f32.mrf.mxu1 }
 0x27d   : > { %v1710_v60 = vadd.f32 %v1700_v48, %v1597_v40  ;;  %v1733_v51 = vadd.f32 %v1730_v15, %v695_v12  ;;  %v1750_v48 = vld [vmem:[%s5652_s6 + $0x10] sm:$0xff] }
 0x27e   : > { %v4223_v61 = vpop.f32.mrf.mxu1 }
 0x27f   : > { %v1731_v5 = vadd.f32 %v1723_v57, %v1710_v60  ;;  %v5088_v54 = vmax.f32 %v1733_v51, 0.0  ;;  %v3816_v57 = vld [vmem:[%s5652_s6 + $0x30] sm:$0xff]  ;;  %v3817_v60 = vld [vmem:[%s5652_s6 + $0x38] sm:$0xff] }
 0x280   : > { %v1705_v6 = vpop.f32.mrf.mxu1 }
 0x281   : > { %v1734_v8 = vadd.f32 %v1731_v5, %v700_v2  ;;  %v1711_v9 = vadd.f32 %v1705_v6, %v1598_v0  ;;  %v2152_v3 = vmul.f32 %v4915_v45, %v5088_v54  ;;  %v3822_v6 = vld [vmem:[%s5652_s6 + $0x48] sm:$0xff] }
 0x282   : > { %v4226_v10 = vpop.f32.mrf.mxu1 }
 0x283   : > { %v5077_v16 = vmax.f32 %v1734_v8, 0.0  ;;  %v1732_v17 = vadd.f32 %v1728_v29, %v1711_v9  ;;  %v3823_v9 = vld [vmem:[%s5652_s6 + $0x50] sm:$0xff]  ;;  %v3828_v10 = vld [vmem:[%s5652_s6 + $0x60] sm:$0xff] }
 0x285   : > { %v1735_v18 = vadd.f32 %v1732_v17, %v705_v11  ;;  %1753 = vrot.lane.b32.xlu0 %v5077_v16, %s4540_s29  ;;  %v2153_v55 = vmul.f32 %v4915_v45, %v5077_v16 }
 0x287   : > { %v5082_v19 = vmax.f32 %v1735_v18, 0.0  ;;  %v3824_v18 = vld [vmem:[%s5652_s6 + $0x58] sm:$0xff] }
 0x289   : > { %1743 = vrot.lane.b32.xlu0 %v5082_v19, %s4541_s30  ;;  %1755 = vrot.lane.b32.xlu1 %v5082_v19, %s4540_s29  ;;  %v2154_v41 = vmul.f32 %v4915_v45, %v5082_v19 }
 0x28d   : > { %1946 = vrot.lane.b32.xlu0 %v5082_v19, %s4542_s14  ;;  %1751 = vrot.lane.b32.xlu1 %v5088_v54, %s4540_s29 }
 0x291   : > { %1944 = vrot.lane.b32.xlu0 %v5077_v16, %s4542_s14  ;;  %1741 = vrot.lane.b32.xlu1 %v5077_v16, %s4541_s30 }
 0x295   : > { %2051 = vrot.lane.b32.xlu0 %v5082_v19, %s4543_s15  ;;  %1739 = vrot.lane.b32.xlu1 %v5088_v54, %s4541_s30 }
 0x299   : > { %2047 = vrot.lane.b32.xlu0 %v5088_v54, %s4543_s15  ;;  %1942 = vrot.lane.b32.xlu1 %v5088_v54, %s4542_s14 }
 0x29d   : > { %2253 = vrot.lane.b32.xlu0 %v5077_v16, %s4544_s16  ;;  %2049 = vrot.lane.b32.xlu1 %v5077_v16, %s4543_s15 }
 0x2a1   : > { %2251 = vrot.lane.b32.xlu0 %v5088_v54, %s4544_s16  ;;  %2255 = vrot.lane.b32.xlu1 %v5082_v19, %s4544_s16 }
 0x2a5   : > { %2356 = vrot.lane.b32.xlu0 %v5088_v54, %s4545_s17  ;;  %2360 = vrot.lane.b32.xlu1 %v5082_v19, %s4545_s17 }
 0x2a9   : > { %2463 = vrot.lane.b32.xlu0 %v5077_v16, %s5664_s23  ;;  %2358 = vrot.lane.b32.xlu1 %v5077_v16, %s4545_s17 }
 0x2ad   : > { %2461 = vrot.lane.b32.xlu0 %v5088_v54, %s5664_s23  ;;  %2465 = vrot.lane.b32.xlu1 %v5082_v19, %s5664_s23 }
 0x2b1   : > { %2566 = vrot.lane.b32.xlu0 %v5088_v54, %s5665_s24  ;;  %2570 = vrot.lane.b32.xlu1 %v5082_v19, %s5665_s24 }
 0x2b5   : > { %2681 = vperm.xlu0 %4518, %v2672_v49   ;;  %2568 = vrot.lane.b32.xlu1 %v5077_v16, %s5665_s24 }
 0x2b9   : > { %2686 = vperm.xlu1 %4519, %v2673_v20  }
 0x2bd   : > { %2676 = vperm.xlu1 %4519, %v2671_v21   ;;  %v3834_v21 = vld [vmem:[%s5652_s6 + $0x78] sm:$0xff] }
 0x2f7   : > { %v1754_v22 = vpop.permute.xlu0 %1753 }
 0x2f8   : > { %v1758_v28 = vmul.f32 %v4811_v62, %v1754_v22 }
 0x2fb   : > { %v1744_v24 = vpop.permute.xlu0 %1743  ;;  %v1756_v25 = vpop.permute.xlu1 %1755 }
 0x2fc   : > { %v1747_v26 = vmul.f32 %v4818_v4, %v1744_v24  ;;  %v1759_v27 = vmul.f32 %v4811_v62, %v1756_v25 }
 0x2fe   : > { %4228 = vmatpush3.msra.mxu0 %v1759_v27  ;;  %4243 = vmatpush3.msra.mxu1 %v1747_v26  ;;  %v3835_v26 = vld [vmem:[%s5652_s6 + $0x80] sm:$0xff] }
 0x2ff   : > { %v1947_v30 = vpop.permute.xlu0 %1946  ;;  %4229 = vmatprep.subr.mxu0 %v4537_v1  ;;  %v1752_v33 = vpop.permute.xlu1 %1751  ;;  %4244 = vmatprep.subr.mxu1 %v4537_v1 }
 0x300   : > { %v1757_v35 = vmul.f32 %v4811_v62, %v1752_v33  ;;  %4230 = vmatpush3.msra.mxu0 %v1758_v28  ;;  %v1950_v31 = vmul.f32 %v4861_v23, %v1947_v30  ;;  %v3840_v28 = vld [vmem:[%s5652_s6 + $0x90] sm:$0xff] }
 0x301   : > { %4231 = vmatprep.subr.mxu0 %v4537_v1 }
 0x302   : > { %4232 = vmatpush3.msra.mxu0 %v1757_v35 }
 0x303   : > { %v1945_v38 = vpop.permute.xlu0 %1944  ;;  %4234 = vmatmul.mubr.msk.f32.vlgmr.msra.gmra.mxu0 %vm748_vm2, %v3807_v37  ;;  %4257 = vmatprep.subr.mxu0 %v4537_v1  ;;  %v1742_v39 = vpop.permute.xlu1 %1741 }
 0x304   : > { %v1949_v29 = vmul.f32 %v4861_v23, %v1945_v38  ;;  %v1746_v62 = vmul.f32 %v4818_v4, %v1742_v39  ;;  %4258 = vmatpush3.msra.mxu0 %v1950_v31  ;;  %4236 = vmatprep.mubr.msk.f32.mxu0 %vm4539_vm1, %v4537_v1  ;;  %v3836_v31 = vld [vmem:[%s5652_s6 + $0x88] sm:$0xff] }
 0x305   : > { %4259 = vmatprep.subr.mxu0 %v4537_v1  ;;  %v3846_v39 = vld [vmem:[%s5652_s6 + $0xa8] sm:$0xff] }
 0x306   : > { %4245 = vmatpush3.msra.mxu1 %v1746_v62  ;;  %4260 = vmatpush3.msra.mxu0 %v1949_v29  ;;  %v3842_v29 = vld [vmem:[%s5652_s6 + $0xa0] sm:$0xff] }
 0x307   : > { %v2052_v43 = vpop.permute.xlu0 %2051  ;;  %4237 = vmatmul.mubr.msk.f32.gmra.mxu0 %vm748_vm2, %v3808_v36  ;;  %v1740_v44 = vpop.permute.xlu1 %1739  ;;  %4246 = vmatprep.subr.mxu1 %v4537_v1  ;;  %v3852_v62 = vld [vmem:[%s5652_s6 + $0xc0] sm:$0xff]  ;;  %v3848_v36 = vld [vmem:[%s5652_s6 + $0xb8] sm:$0xff] }
 0x308   : > { %v1745_v34 = vmul.f32 %v4818_v4, %v1740_v44  ;;  %4239 = vmatprep.mubr.msk.f32.mxu0 %vm4539_vm1, %v4537_v1  ;;  %4261 = vmatprep.subr.mxu0 %v4537_v1  ;;  %v2055_v52 = vmul.f32 %v4839_v14, %v2052_v43  ;;  %v3853_v43 = vld [vmem:[%s5652_s6 + $0xc8] sm:$0xff]  ;;  %v3854_v44 = vld [vmem:[%s5652_s6 + $0xd0] sm:$0xff] }
 0x30a   : > { %4247 = vmatpush3.msra.mxu1 %v1745_v34 }
 0x30b   : > { %v2048_v46 = vpop.permute.xlu0 %2047  ;;  %4240 = vmatmul.mubr.msk.f32.gmra.mxu0 %vm748_vm2, %v3809_v42  ;;  %4249 = vmatmul.mubr.msk.f32.vlgmr.msra.gmra.mxu1 %vm748_vm2, %v1748_v50  ;;  %v1943_v4 = vpop.permute.xlu1 %1942 }
 0x30c   : > { %4272 = vmatprep.subr.mxu1 %v4537_v1  ;;  %v1948_v53 = vmul.f32 %v4861_v23, %v1943_v4  ;;  %4251 = vmatprep.mubr.msk.f32.mxu1 %vm4539_vm1, %v4537_v1  ;;  %v2053_v61 = vmul.f32 %v4839_v14, %v2048_v46 }
 0x30d   : > { %4273 = vmatpush3.msra.mxu1 %v2055_v52  ;;  %4263 = vmatprep.mubr.msk.f32.mxu0 %vm4539_vm1, %v4537_v1 }
 0x30e   : > { %4262 = vmatpush3.msra.mxu0 %v1948_v53  ;;  %4274 = vmatprep.subr.mxu1 %v4537_v1 }
 0x30f   : > { %v2254_v40 = vpop.permute.xlu0 %2253  ;;  %4252 = vmatmul.mubr.msk.f32.gmra.mxu1 %vm748_vm2, %v1749_v47  ;;  %4264 = vmatmul.mubr.msk.f32.vlgmr.msra.gmra.mxu0 %vm748_vm2, %v3816_v57  ;;  %v2050_v23 = vpop.permute.xlu1 %2049 }
 0x310   : > { %4287 = vmatprep.subr.mxu0 %v4537_v1  ;;  %v2054_v59 = vmul.f32 %v4839_v14, %v2050_v23  ;;  %4254 = vmatprep.mubr.msk.f32.mxu1 %vm4539_vm1, %v4537_v1  ;;  %v3818_v14 = vld [vmem:[%s5652_s6 + $0x40] sm:$0xff]  ;;  %v2258_v8 = vmul.f32 %v4878_v32, %v2254_v40 }
 0x311   : > { %4288 = vmatpush3.msra.mxu0 %v2154_v41  ;;  %4266 = vmatprep.mubr.msk.f32.mxu0 %vm4539_vm1, %v4537_v1 }
 0x312   : > { %4289 = vmatprep.subr.mxu0 %v4537_v1  ;;  %4275 = vmatpush3.msra.mxu1 %v2054_v59 }
 0x313   : > { %4290 = vmatpush3.msra.mxu0 %v2153_v55  ;;  %v2252_v2 = vpop.permute.xlu0 %2251  ;;  %4255 = vmatmul.mubr.msk.f32.gmra.mxu1 %vm748_vm2, %v1750_v48  ;;  %v2256_v0 = vpop.permute.xlu1 %2255 }
 0x314   : > { %4267 = vmatmul.mubr.msk.f32.gmra.mxu0 %vm748_vm2, %v3817_v60  ;;  %4276 = vmatprep.subr.mxu1 %v4537_v1  ;;  %v2259_v5 = vmul.f32 %v4878_v32, %v2256_v0  ;;  %v2257_v11 = vmul.f32 %v4878_v32, %v2252_v2  ;;  %v3829_v32 = vld [vmem:[%s5652_s6 + $0x68] sm:$0xff] }
 0x315   : > { %4291 = vmatprep.subr.mxu0 %v4537_v1  ;;  %4277 = vmatpush3.msra.mxu1 %v2053_v61 }
 0x316   : > { %4292 = vmatpush3.msra.mxu0 %v2152_v3  ;;  %4269 = vmatprep.mubr.msk.f32.mxu0 %vm4539_vm1, %v4537_v1 }
 0x317   : > { %4278 = vmatprep.mubr.msk.f32.mxu1 %vm4539_vm1, %v4537_v1  ;;  %4302 = vmatprep.subr.mxu1 %v4537_v1  ;;  %v2357_v45 = vpop.permute.xlu0 %2356  ;;  %v2361_v58 = vpop.permute.xlu1 %2360 }
 0x318   : > { %4270 = vmatmul.mubr.msk.f32.gmra.mxu0 %vm748_vm2, %v3818_v14  ;;  %4279 = vmatmul.mubr.msk.f32.vlgmr.msra.gmra.mxu1 %vm748_vm2, %v3822_v6  ;;  %v2364_v7 = vmul.f32 %v4962_v63, %v2361_v58  ;;  %v2362_v49 = vmul.f32 %v4962_v63, %v2357_v45 }
 0x319   : > { %4303 = vmatpush3.msra.mxu1 %v2259_v5  ;;  %4281 = vmatprep.mubr.msk.f32.mxu1 %vm4539_vm1, %v4537_v1 }
 0x31a   : > { %4304 = vmatprep.subr.mxu1 %v4537_v1  ;;  %4293 = vmatprep.mubr.msk.f32.mxu0 %vm4539_vm1, %v4537_v1 }
 0x31b   : > { %4305 = vmatpush3.msra.mxu1 %v2258_v8  ;;  %4317 = vmatprep.subr.mxu0 %v4537_v1  ;;  %v2359_v15 = vpop.permute.xlu1 %2358  ;;  %v2464_v12 = vpop.permute.xlu0 %2463 }
 0x31c   : > { %4306 = vmatprep.subr.mxu1 %v4537_v1  ;;  %4282 = vmatmul.mubr.msk.f32.gmra.mxu1 %vm748_vm2, %v3823_v9  ;;  %v2363_v17 = vmul.f32 %v4962_v63, %v2359_v15  ;;  %v3830_v63 = vld [vmem:[%s5652_s6 + $0x70] sm:$0xff]  ;;  %v2468_v25 = vmul.f32 %v4938_v56, %v2464_v12 }
 0x31d   : > { %4307 = vmatpush3.msra.mxu1 %v2257_v11  ;;  %4294 = vmatmul.mubr.msk.f32.vlgmr.msra.gmra.mxu0 %vm748_vm2, %v3828_v10 }
 0x31e   : > { %4318 = vmatpush3.msra.mxu0 %v2364_v7  ;;  %4284 = vmatprep.mubr.msk.f32.mxu1 %vm4539_vm1, %v4537_v1 }
 0x31f   : > { %4319 = vmatprep.subr.mxu0 %v4537_v1  ;;  %4296 = vmatprep.mubr.msk.f32.mxu0 %vm4539_vm1, %v4537_v1  ;;  %v2466_v51 = vpop.permute.xlu1 %2465  ;;  %v2462_v22 = vpop.permute.xlu0 %2461 }
 0x320   : > { %4320 = vmatpush3.msra.mxu0 %v2363_v17  ;;  %4285 = vmatmul.mubr.msk.f32.gmra.mxu1 %vm748_vm2, %v3824_v18  ;;  %v2469_v20 = vmul.f32 %v4938_v56, %v2466_v51  ;;  %v2467_v30 = vmul.f32 %v4938_v56, %v2462_v22  ;;  %v3841_v56 = vld [vmem:[%s5652_s6 + $0x98] sm:$0xff] }
 0x321   : > { %4297 = vmatmul.mubr.msk.f32.gmra.mxu0 %vm748_vm2, %v3829_v32  ;;  %4321 = vmatprep.subr.mxu0 %v4537_v1 }
 0x322   : > { %4322 = vmatpush3.msra.mxu0 %v2362_v49  ;;  %4299 = vmatprep.mubr.msk.f32.mxu0 %vm4539_vm1, %v4537_v1 }
 0x323   : > { %4308 = vmatprep.mubr.msk.f32.mxu1 %vm4539_vm1, %v4537_v1  ;;  %4332 = vmatprep.subr.mxu1 %v4537_v1  ;;  %v2571_v24 = vpop.permute.xlu1 %2570  ;;  %v2567_v37 = vpop.permute.xlu0 %2566 }
 0x324   : > { %4309 = vmatmul.mubr.msk.f32.vlgmr.msra.gmra.mxu1 %vm748_vm2, %v3834_v21  ;;  %4347 = vmatprep.subr.mxu0 %v4537_v1  ;;  %v2574_v27 = vmul.f32 %v5013_v13, %v2571_v24  ;;  %v2572_v38 = vmul.f32 %v5013_v13, %v2567_v37 }
 0x325   : > { %4333 = vmatpush3.msra.mxu1 %v2469_v20  ;;  %4300 = vmatmul.mubr.msk.f32.gmra.mxu0 %vm748_vm2, %v3830_v63 }
 0x326   : > { %4334 = vmatprep.subr.mxu1 %v4537_v1  ;;  %4311 = vmatprep.mubr.msk.f32.mxu1 %vm4539_vm1, %v4537_v1 }
 0x327   : > { %4335 = vmatpush3.msra.mxu1 %v2468_v25  ;;  %4323 = vmatprep.mubr.msk.f32.mxu0 %vm4539_vm1, %v4537_v1  ;;  %v2569_v33 = vpop.permute.xlu1 %2568 }
 0x328   : > { %4336 = vmatprep.subr.mxu1 %v4537_v1  ;;  %4312 = vmatmul.mubr.msk.f32.gmra.mxu1 %vm748_vm2, %v3835_v26  ;;  %v2573_v35 = vmul.f32 %v5013_v13, %v2569_v33  ;;  %v3847_v13 = vld [vmem:[%s5652_s6 + $0xb0] sm:$0xff] }
 0x329   : > { %4337 = vmatpush3.msra.mxu1 %v2467_v30  ;;  %4324 = vmatmul.mubr.msk.f32.vlgmr.msra.gmra.mxu0 %vm748_vm2, %v3840_v28 }
 0x32a   : > { %4348 = vmatpush3.msra.mxu0 %v2574_v27  ;;  %4314 = vmatprep.mubr.msk.f32.mxu1 %vm4539_vm1, %v4537_v1 }
 0x32b   : > { %4349 = vmatprep.subr.mxu0 %v4537_v1  ;;  %4326 = vmatprep.mubr.msk.f32.mxu0 %vm4539_vm1, %v4537_v1 }
 0x32c   : > { %4350 = vmatpush3.msra.mxu0 %v2573_v35  ;;  %4315 = vmatmul.mubr.msk.f32.gmra.mxu1 %vm748_vm2, %v3836_v31 }
 0x32d   : > { %4327 = vmatmul.mubr.msk.f32.gmra.mxu0 %vm748_vm2, %v3841_v56  ;;  %4351 = vmatprep.subr.mxu0 %v4537_v1 }
 0x32e   : > { %4352 = vmatpush3.msra.mxu0 %v2572_v38  ;;  %4329 = vmatprep.mubr.msk.f32.mxu0 %vm4539_vm1, %v4537_v1 }
 0x32f   : > { %4338 = vmatprep.mubr.msk.f32.mxu1 %vm4539_vm1, %v4537_v1  ;;  %4362 = vmatprep.subr.mxu1 %v4537_v1 }
 0x330   : > { %4339 = vmatmul.mubr.msk.f32.vlgmr.msra.gmra.mxu1 %vm748_vm2, %v3846_v39  ;;  %4377 = vmatprep.subr.mxu0 %v4537_v1 }
 0x331   : > { %4330 = vmatmul.mubr.msk.f32.gmra.mxu0 %vm748_vm2, %v3842_v29  ;;  %4341 = vmatprep.mubr.msk.f32.mxu1 %vm4539_vm1, %v4537_v1 }
 0x332   : > { %4353 = vmatprep.mubr.msk.f32.mxu0 %vm4539_vm1, %v4537_v1 }
 0x334   : > { %4342 = vmatmul.mubr.msk.f32.gmra.mxu1 %vm748_vm2, %v3847_v13 }
 0x335   : > { %4354 = vmatmul.mubr.msk.f32.vlgmr.msra.gmra.mxu0 %vm748_vm2, %v3852_v62  ;;  %4344 = vmatprep.mubr.msk.f32.mxu1 %vm4539_vm1, %v4537_v1 }
 0x336   : > { %4356 = vmatprep.mubr.msk.f32.mxu0 %vm4539_vm1, %v4537_v1 }
 0x338   : > { %4345 = vmatmul.mubr.msk.f32.gmra.mxu1 %vm748_vm2, %v3848_v36 }
 0x339   : > { %4357 = vmatmul.mubr.msk.f32.gmra.mxu0 %vm748_vm2, %v3853_v43  ;;  %4368 = vmatprep.mubr.msk.f32.mxu1 %vm4539_vm1, %v4537_v1 }
 0x33a   : > { %4359 = vmatprep.mubr.msk.f32.mxu0 %vm4539_vm1, %v4537_v1 }
 0x33d   : > { %4360 = vmatmul.mubr.msk.f32.gmra.mxu0 %vm748_vm2, %v3854_v44 }
 0x33e   : > { %4383 = vmatprep.mubr.msk.f32.mxu0 %vm4539_vm1, %v4537_v1 }
 0x3c3   : > { %v1839_v34 = vpop.f32.mrf.mxu0 }
 0x3c5   : > { %v4235_v42 = vpop.f32.mrf.mxu0 }
 0x3c7   : > { %v1844_v50 = vpop.f32.mrf.mxu0 }
 0x3c9   : > { %v4238_v52 = vpop.f32.mrf.mxu0 }
 0x3cb   : > { %v1849_v46 = vpop.f32.mrf.mxu0  ;;  %v1928_v4 = vpop.f32.mrf.mxu1 }
 0x3cc   : > { %v1929_v25 = vadd.f32 %v1928_v4, %v1839_v34 }
 0x3cd   : > { %v4241_v53 = vpop.f32.mrf.mxu0  ;;  %v4250_v47 = vpop.f32.mrf.mxu1 }
 0x3ce   : > { %v2682_v47 = vpop.permute.xlu0 %2681 }
 0x3cf   : > { %v1933_v57 = vpop.f32.mrf.mxu1  ;;  %v2030_v40 = vpop.f32.mrf.mxu0 }
 0x3d0   : > { %v1934_v49 = vadd.f32 %v1933_v57, %v1844_v50  ;;  %v2044_v33 = vadd.f32 %v2030_v40, %v1929_v25  ;;  %v4522_v25 = vld [vmem:[%s5648_s2 + $0x2] ss:$0 sm:$0xff] }
 0x3d1   : > { %v4253_v23 = vpop.f32.mrf.mxu1  ;;  %v4265_v41 = vpop.f32.mrf.mxu0 }
 0x3d3   : > { %v1938_v59 = vpop.f32.mrf.mxu1 }
 0x3d4   : > { %v2035_v48 = vpop.f32.mrf.mxu0  ;;  %v1939_v26 = vadd.f32 %v1938_v59, %v1849_v46  ;;  %v2687_v59 = vpop.permute.xlu1 %2686 }
 0x3d5   : > { %v4256_v55 = vpop.f32.mrf.mxu1  ;;  %v2045_v63 = vadd.f32 %v2035_v48, %v1934_v49 }
 0x3d6   : > { %v4268_v60 = vpop.f32.mrf.mxu0 }
 0x3d8   : > { %v2040_v61 = vpop.f32.mrf.mxu0  ;;  %v2135_v2 = vpop.f32.mrf.mxu1 }
 0x3d9   : > { %v2046_v35 = vadd.f32 %v2040_v61, %v1939_v26  ;;  %v2149_v38 = vadd.f32 %v2135_v2, %v2044_v33 }
 0x3da   : > { %v4271_v0 = vpop.f32.mrf.mxu0  ;;  %v4280_v3 = vpop.f32.mrf.mxu1 }
 0x3dc   : > { %v2140_v5 = vpop.f32.mrf.mxu1 }
 0x3dd   : > { %v2234_v14 = vpop.f32.mrf.mxu0  ;;  %v2150_v27 = vadd.f32 %v2140_v5, %v2045_v63 }
 0x3de   : > { %v4283_v6 = vpop.f32.mrf.mxu1  ;;  %v2248_v36 = vadd.f32 %v2234_v14, %v2149_v38  ;;  %v3860_v38 = vld [vmem:[%s5653_s7 + $0x28] sm:$0xff] }
 0x3df   : > { %v4295_v45 = vpop.f32.mrf.mxu0 }
 0x3e0   : > { %v2145_v58 = vpop.f32.mrf.mxu1  ;;  %v2677_v45 = vpop.permute.xlu1 %2676 }
 0x3e1   : > { %v2239_v8 = vpop.f32.mrf.mxu0  ;;  %v2151_v39 = vadd.f32 %v2145_v58, %v2046_v35  ;;  %v3859_v35 = vld [vmem:[%s5653_s7 + $0x20] sm:$0xff] }
 0x3e2   : > { %v4286_v9 = vpop.f32.mrf.mxu1  ;;  %v2249_v37 = vadd.f32 %v2239_v8, %v2150_v27 }
 0x3e3   : > { %v4298_v7 = vpop.f32.mrf.mxu0 }
 0x3e4   : > { %v2339_v10 = vpop.f32.mrf.mxu1  ;;  %v3628_v7 = vld [vmem:[%s5658_s12 + $0x8] sm:$0xff] }
 0x3e5   : > { %v2244_v11 = vpop.f32.mrf.mxu0  ;;  %v2353_v34 = vadd.f32 %v2339_v10, %v2248_v36  ;;  %v3627_v10 = vld [vmem:[%s5658_s12] sm:$0xff] }
 0x3e6   : > { %v4310_v15 = vpop.f32.mrf.mxu1  ;;  %v2250_v43 = vadd.f32 %v2244_v11, %v2151_v39  ;;  %v3629_v11 = vld [vmem:[%s5658_s12 + $0x10] sm:$0xff]  ;;  %v2704_v39 = vld [vmem:[%s5653_s7] sm:$0xff] }
 0x3e7   : > { %v4301_v17 = vpop.f32.mrf.mxu0 }
 0x3e8   : > { %v2344_v12 = vpop.f32.mrf.mxu1 }
 0x3e9   : > { %v2444_v18 = vpop.f32.mrf.mxu0  ;;  %v2354_v29 = vadd.f32 %v2344_v12, %v2249_v37 }
 0x3ea   : > { %v4313_v32 = vpop.f32.mrf.mxu1  ;;  %v2458_v57 = vadd.f32 %v2444_v18, %v2353_v34  ;;  %v4520_v18 = vld [vmem:[%s5648_s2] ss:$0 sm:$0xff] }
 0x3eb   : > { %v4325_v51 = vpop.f32.mrf.mxu0 }
 0x3ec   : > { %v2349_v20 = vpop.f32.mrf.mxu1  ;;  %v4521_v51 = vld [vmem:[%s5648_s2 + $0x1] ss:$0 sm:$0xff] }
 0x3ed   : > { %v2449_v21 = vpop.f32.mrf.mxu0  ;;  %v2355_v52 = vadd.f32 %v2349_v20, %v2250_v43 }
 0x3ee   : > { %v4316_v22 = vpop.f32.mrf.mxu1  ;;  %v2459_v44 = vadd.f32 %v2449_v21, %v2354_v29  ;;  %v4523_v29 = vld [vmem:[%s5648_s2 + $0x3] ss:$0 sm:$0xff] }
 0x3ef   : > { %v4328_v24 = vpop.f32.mrf.mxu0 }
 0x3f0   : > { %v2549_v28 = vpop.f32.mrf.mxu1  ;;  %v3858_v24 = vld [vmem:[%s5653_s7 + $0x18] sm:$0xff] }
 0x3f1   : > { %v2454_v30 = vpop.f32.mrf.mxu0  ;;  %v2563_v55 = vadd.f32 %v2549_v28, %v2458_v57  ;;  %v3868_v57 = vld [vmem:[%s5653_s7 + $0x38] sm:$0xff] }
 0x3f2   : > { %v4340_v31 = vpop.f32.mrf.mxu1  ;;  %v2460_v40 = vadd.f32 %v2454_v30, %v2355_v52  ;;  %v4524_v52 = vld [vmem:[%s5648_s2 + $0x4] ss:$0 sm:$0xff] }
 0x3f3   : > { %v4331_v56 = vpop.f32.mrf.mxu0 }
 0x3f4   : > { %v2554_v13 = vpop.f32.mrf.mxu1 }
 0x3f5   : > { %v2654_v62 = vpop.f32.mrf.mxu0  ;;  %v2564_v46 = vadd.f32 %v2554_v13, %v2459_v44  ;;  %v2705_v44 = vld [vmem:[%s5653_s7 + $0x8] sm:$0xff] }
 0x3f6   : > { %v4343_v42 = vpop.f32.mrf.mxu1  ;;  %v2668_v0 = vadd.f32 %v2654_v62, %v2563_v55 }
 0x3f7   : > { %v4355_v50 = vpop.f32.mrf.mxu0  ;;  %v3867_v42 = vld [vmem:[%s5653_s7 + $0x30] sm:$0xff] }
 0x3f8   : > { %v2559_v4 = vpop.f32.mrf.mxu1  ;;  %v2689_v58 = vadd.f32 %v2677_v45, %v2668_v0  ;;  %v3879_v45 = vld [vmem:[%s5653_s7 + $0x60] sm:$0xff] }
 0x3f9   : > { %v2659_v53 = vpop.f32.mrf.mxu0  ;;  %v2565_v60 = vadd.f32 %v2559_v4, %v2460_v40 }
 0x3fa   : > { %v2669_v23 = vadd.f32 %v2659_v53, %v2564_v46  ;;  %v4346_v41 = vpop.f32.mrf.mxu1  ;;  %v5370_v9 = vmax.f32 %v2689_v58, 0.0  ;;  %v2706_v53 = vld [vmem:[%s5653_s7 + $0x10] sm:$0xff] }
 0x3fb   : > { %v4358_v48 = vpop.f32.mrf.mxu0 }
 0x3fc   : > { %v2690_v61 = vadd.f32 %v2682_v47, %v2669_v23  ;;  %v4525_v48 = vld [vmem:[%s5648_s2 + $0x5] ss:$0 sm:$0xff] }
 0x3fd   : > { %v2664_v2 = vpop.f32.mrf.mxu0 }
 0x3fe   : > { %v5360_v3 = vmax.f32 %v2690_v61, 0.0  ;;  %v2670_v5 = vadd.f32 %v2664_v2, %v2565_v60  ;;  %v3869_v60 = vld [vmem:[%s5653_s7 + $0x40] sm:$0xff]  ;;  %v3873_v61 = vld [vmem:[%s5653_s7 + $0x48] sm:$0xff] }
 0x3ff   : > { %v4361_v14 = vpop.f32.mrf.mxu0 }
 0x400   : > { %v2691_v6 = vadd.f32 %v2687_v59, %v2670_v5  ;;  %2709 = vrot.lane.b32.xlu1 %v5360_v3, %s4540_s29  ;;  %v3109_v47 = vmul.f32 %v4524_v52, %v5360_v3  ;;  %v3108_v59 = vmul.f32 %v4524_v52, %v5370_v9  ;;  %v3874_v5 = vld [vmem:[%s5653_s7 + $0x50] sm:$0xff]  ;;  %v4526_v14 = vld [vmem:[%s5648_s2 + $0x6] ss:$0 sm:$0xff] }
 0x402   : > { %v5364_v8 = vmax.f32 %v2691_v6, 0.0 }
 0x404   : > { %2699 = vrot.lane.b32.xlu1 %v5364_v8, %s4541_s30  ;;  %2711 = vrot.lane.b32.xlu0 %v5364_v8, %s4540_s29  ;;  %v3110_v46 = vmul.f32 %v4524_v52, %v5364_v8 }
 0x408   : > { %2902 = vrot.lane.b32.xlu1 %v5364_v8, %s4542_s14  ;;  %2707 = vrot.lane.b32.xlu0 %v5370_v9, %s4540_s29 }
 0x40c   : > { %2900 = vrot.lane.b32.xlu1 %v5360_v3, %s4542_s14  ;;  %2697 = vrot.lane.b32.xlu0 %v5360_v3, %s4541_s30 }
 0x410   : > { %3007 = vrot.lane.b32.xlu1 %v5364_v8, %s4543_s15  ;;  %2695 = vrot.lane.b32.xlu0 %v5370_v9, %s4541_s30 }
 0x414   : > { %3003 = vrot.lane.b32.xlu1 %v5370_v9, %s4543_s15  ;;  %2898 = vrot.lane.b32.xlu0 %v5370_v9, %s4542_s14 }
 0x418   : > { %3209 = vrot.lane.b32.xlu1 %v5360_v3, %s4544_s16  ;;  %3005 = vrot.lane.b32.xlu0 %v5360_v3, %s4543_s15  ;;  %s4498_s15 = smul.u32 24, %s5667_s26 }
 0x41c   : > { %3207 = vrot.lane.b32.xlu1 %v5370_v9, %s4544_s16  ;;  %3211 = vrot.lane.b32.xlu0 %v5364_v8, %s4544_s16 }
 0x420   : > { %3312 = vrot.lane.b32.xlu1 %v5370_v9, %s4545_s17  ;;  %3316 = vrot.lane.b32.xlu0 %v5364_v8, %s4545_s17 }
 0x424   : > { %3419 = vrot.lane.b32.xlu1 %v5360_v3, %s5664_s23  ;;  %3314 = vrot.lane.b32.xlu0 %v5360_v3, %s4545_s17 }
 0x428   : > { %3417 = vrot.lane.b32.xlu1 %v5370_v9, %s5664_s23  ;;  %3421 = vrot.lane.b32.xlu0 %v5364_v8, %s5664_s23  ;;  %s460_s23 = scalar_lea.vmem %s5659_s13, %s4498_s15 }
 0x42c   : > { %3522 = vrot.lane.b32.xlu1 %v5370_v9, %s5665_s24  ;;  %3526 = vrot.lane.b32.xlu0 %v5364_v8, %s5665_s24 }
 0x430   : > { %3637 = vperm.xlu1 %4519, %v3628_v7   ;;  %3524 = vrot.lane.b32.xlu0 %v5360_v3, %s5665_s24 }
 0x434   : > { %3632 = vperm.xlu0 %4518, %v3627_v10   ;;  %v3875_v10 = vld [vmem:[%s5653_s7 + $0x58] sm:$0xff] }
 0x438   : > { %3642 = vperm.xlu0 %4518, %v3629_v11   ;;  %v3880_v11 = vld [vmem:[%s5653_s7 + $0x68] sm:$0xff] }
 0x472   : > { %v2710_v15 = vpop.permute.xlu1 %2709 }
 0x473   : > { %v2714_v20 = vmul.f32 %v4521_v51, %v2710_v15 }
 0x476   : > { %v2700_v17 = vpop.permute.xlu1 %2699  ;;  %v2712_v12 = vpop.permute.xlu0 %2711 }
 0x477   : > { %v2703_v32 = vmul.f32 %v4520_v18, %v2700_v17  ;;  %v2715_v49 = vmul.f32 %v4521_v51, %v2712_v12  ;;  %v4527_v12 = vld [vmem:[%s5648_s2 + $0x7] ss:$0 sm:$0xff] }
 0x479   : > { %4363 = vmatpush3.msra.mxu1 %v2715_v49  ;;  %4378 = vmatpush3.msra.mxu0 %v2703_v32  ;;  %v3885_v32 = vld [vmem:[%s5653_s7 + $0x78] sm:$0xff] }
 0x47a   : > { %v2903_v21 = vpop.permute.xlu1 %2902  ;;  %4364 = vmatprep.subr.mxu1 %v4537_v1  ;;  %v2708_v63 = vpop.permute.xlu0 %2707  ;;  %4379 = vmatprep.subr.mxu0 %v4537_v1 }
 0x47b   : > { %v2713_v22 = vmul.f32 %v4521_v51, %v2708_v63  ;;  %4365 = vmatpush3.msra.mxu1 %v2714_v20  ;;  %v2906_v26 = vmul.f32 %v4522_v25, %v2903_v21  ;;  %v3881_v51 = vld [vmem:[%s5653_s7 + $0x70] sm:$0xff]  ;;  %v3886_v63 = vld [vmem:[%s5653_s7 + $0x80] sm:$0xff] }
 0x47c   : > { %4366 = vmatprep.subr.mxu1 %v4537_v1 }
 0x47d   : > { %4367 = vmatpush3.msra.mxu1 %v2713_v22  ;;  %v4528_v22 = vld [vmem:[%s5648_s2 + $0x8] ss:$0 sm:$0xff] }
 0x47e   : > { %v2901_v27 = vpop.permute.xlu1 %2900  ;;  %4369 = vmatmul.mubr.msk.f32.vlgmr.msra.gmra.mxu1 %vm748_vm2, %v3858_v24  ;;  %4392 = vmatprep.subr.mxu1 %v4537_v1  ;;  %v2698_v28 = vpop.permute.xlu0 %2697 }
 0x47f   : > { %v2905_v30 = vmul.f32 %v4522_v25, %v2901_v27  ;;  %v2702_v33 = vmul.f32 %v4520_v18, %v2698_v28  ;;  %4393 = vmatpush3.msra.mxu1 %v2906_v26  ;;  %4371 = vmatprep.mubr.msk.f32.mxu1 %vm4539_vm1, %v4537_v1 }
 0x480   : > { %4394 = vmatprep.subr.mxu1 %v4537_v1 }
 0x481   : > { %4380 = vmatpush3.msra.mxu0 %v2702_v33  ;;  %4395 = vmatpush3.msra.mxu1 %v2905_v30  ;;  %v3887_v33 = vld [vmem:[%s5653_s7 + $0x88] sm:$0xff] }
 0x482   : > { %v3008_v37 = vpop.permute.xlu1 %3007  ;;  %4372 = vmatmul.mubr.msk.f32.gmra.mxu1 %vm748_vm2, %v3859_v35  ;;  %v2696_v31 = vpop.permute.xlu0 %2695  ;;  %4381 = vmatprep.subr.mxu0 %v4537_v1  ;;  %v3892_v35 = vld [vmem:[%s5653_s7 + $0x98] sm:$0xff] }
 0x483   : > { %v2701_v56 = vmul.f32 %v4520_v18, %v2696_v31  ;;  %4374 = vmatprep.mubr.msk.f32.mxu1 %vm4539_vm1, %v4537_v1  ;;  %4396 = vmatprep.subr.mxu1 %v4537_v1  ;;  %v3011_v13 = vmul.f32 %v4523_v29, %v3008_v37  ;;  %v3897_v31 = vld [vmem:[%s5653_s7 + $0xa8] sm:$0xff] }
 0x485   : > { %4382 = vmatpush3.msra.mxu0 %v2701_v56  ;;  %v3893_v56 = vld [vmem:[%s5653_s7 + $0xa0] sm:$0xff] }
 0x486   : > { %v3004_v62 = vpop.permute.xlu1 %3003  ;;  %4375 = vmatmul.mubr.msk.f32.gmra.mxu1 %vm748_vm2, %v3860_v38  ;;  %4384 = vmatmul.mubr.msk.f32.vlgmr.msra.gmra.mxu0 %vm748_vm2, %v2704_v39  ;;  %v2899_v36 = vpop.permute.xlu0 %2898  ;;  %v3898_v38 = vld [vmem:[%s5653_s7 + $0xb0] sm:$0xff]  ;;  %v3903_v39 = vld [vmem:[%s5653_s7 + $0xc0] sm:$0xff] }
 0x487   : > { %4407 = vmatprep.subr.mxu0 %v4537_v1  ;;  %v2904_v43 = vmul.f32 %v4522_v25, %v2899_v36  ;;  %4386 = vmatprep.mubr.msk.f32.mxu0 %vm4539_vm1, %v4537_v1  ;;  %v3009_v40 = vmul.f32 %v4523_v29, %v3004_v62  ;;  %v3891_v25 = vld [vmem:[%s5653_s7 + $0x90] sm:$0xff] }
 0x488   : > { %4408 = vmatpush3.msra.mxu0 %v3011_v13  ;;  %4398 = vmatprep.mubr.msk.f32.mxu1 %vm4539_vm1, %v4537_v1  ;;  %v3904_v13 = vld [vmem:[%s5653_s7 + $0xc8] sm:$0xff]  ;;  %v3905_v62 = vld [vmem:[%s5653_s7 + $0xd0] sm:$0xff] }
 0x489   : > { %4397 = vmatpush3.msra.mxu1 %v2904_v43  ;;  %4409 = vmatprep.subr.mxu0 %v4537_v1 }
 0x48a   : > { %v3210_v50 = vpop.permute.xlu1 %3209  ;;  %4387 = vmatmul.mubr.msk.f32.gmra.mxu0 %vm748_vm2, %v2705_v44  ;;  %4399 = vmatmul.mubr.msk.f32.vlgmr.msra.gmra.mxu1 %vm748_vm2, %v3867_v42  ;;  %v3006_v34 = vpop.permute.xlu0 %3005 }
 0x48b   : > { %4422 = vmatprep.subr.mxu1 %v4537_v1  ;;  %v3010_v4 = vmul.f32 %v4523_v29, %v3006_v34  ;;  %4389 = vmatprep.mubr.msk.f32.mxu0 %vm4539_vm1, %v4537_v1  ;;  %v3214_v3 = vmul.f32 %v4525_v48, %v3210_v50  ;;  %v3899_v29 = vld [vmem:[%s5653_s7 + $0xb8] sm:$0xff] }
 0x48c   : > { %4423 = vmatpush3.msra.mxu1 %v3110_v46  ;;  %4401 = vmatprep.mubr.msk.f32.mxu1 %vm4539_vm1, %v4537_v1 }
 0x48d   : > { %4424 = vmatprep.subr.mxu1 %v4537_v1  ;;  %4410 = vmatpush3.msra.mxu0 %v3010_v4 }
 0x48e   : > { %4425 = vmatpush3.msra.mxu1 %v3109_v47  ;;  %v3208_v23 = vpop.permute.xlu1 %3207  ;;  %4390 = vmatmul.mubr.msk.f32.gmra.mxu0 %vm748_vm2, %v2706_v53  ;;  %v3212_v41 = vpop.permute.xlu0 %3211 }
 0x48f   : > { %4402 = vmatmul.mubr.msk.f32.gmra.mxu1 %vm748_vm2, %v3868_v57  ;;  %4411 = vmatprep.subr.mxu0 %v4537_v1  ;;  %v3215_v55 = vmul.f32 %v4525_v48, %v3212_v41  ;;  %v3213_v58 = vmul.f32 %v4525_v48, %v3208_v23 }
 0x490   : > { %4426 = vmatprep.subr.mxu1 %v4537_v1  ;;  %4412 = vmatpush3.msra.mxu0 %v3009_v40 }
 0x491   : > { %4427 = vmatpush3.msra.mxu1 %v3108_v59  ;;  %4404 = vmatprep.mubr.msk.f32.mxu1 %vm4539_vm1, %v4537_v1 }
 0x492   : > { %4413 = vmatprep.mubr.msk.f32.mxu0 %vm4539_vm1, %v4537_v1  ;;  %4437 = vmatprep.subr.mxu0 %v4537_v1  ;;  %v3313_v2 = vpop.permute.xlu1 %3312  ;;  %v3317_v0 = vpop.permute.xlu0 %3316 }
 0x493   : > { %4405 = vmatmul.mubr.msk.f32.gmra.mxu1 %vm748_vm2, %v3869_v60  ;;  %4414 = vmatmul.mubr.msk.f32.vlgmr.msra.gmra.mxu0 %vm748_vm2, %v3873_v61  ;;  %v3320_v6 = vmul.f32 %v4526_v14, %v3317_v0  ;;  %v3318_v17 = vmul.f32 %v4526_v14, %v3313_v2 }
 0x494   : > { %4438 = vmatpush3.msra.mxu0 %v3215_v55  ;;  %4416 = vmatprep.mubr.msk.f32.mxu0 %vm4539_vm1, %v4537_v1 }
 0x495   : > { %4439 = vmatprep.subr.mxu0 %v4537_v1  ;;  %4428 = vmatprep.mubr.msk.f32.mxu1 %vm4539_vm1, %v4537_v1 }
 0x496   : > { %4440 = vmatpush3.msra.mxu0 %v3214_v3  ;;  %4452 = vmatprep.subr.mxu1 %v4537_v1  ;;  %v3315_v8 = vpop.permute.xlu0 %3314  ;;  %v3420_v7 = vpop.permute.xlu1 %3419 }
 0x497   : > { %4441 = vmatprep.subr.mxu0 %v4537_v1  ;;  %4417 = vmatmul.mubr.msk.f32.gmra.mxu0 %vm748_vm2, %v3874_v5  ;;  %v3319_v9 = vmul.f32 %v4526_v14, %v3315_v8  ;;  %v3424_v21 = vmul.f32 %v4527_v12, %v3420_v7 }
 0x498   : > { %4442 = vmatpush3.msra.mxu0 %v3213_v58  ;;  %4429 = vmatmul.mubr.msk.f32.vlgmr.msra.gmra.mxu1 %vm748_vm2, %v3879_v45 }
 0x499   : > { %4453 = vmatpush3.msra.mxu1 %v3320_v6  ;;  %4419 = vmatprep.mubr.msk.f32.mxu0 %vm4539_vm1, %v4537_v1 }
 0x49a   : > { %4454 = vmatprep.subr.mxu1 %v4537_v1  ;;  %4431 = vmatprep.mubr.msk.f32.mxu1 %vm4539_vm1, %v4537_v1  ;;  %v3422_v15 = vpop.permute.xlu0 %3421  ;;  %v3418_v49 = vpop.permute.xlu1 %3417 }
 0x49b   : > { %4455 = vmatpush3.msra.mxu1 %v3319_v9  ;;  %4420 = vmatmul.mubr.msk.f32.gmra.mxu0 %vm748_vm2, %v3875_v10  ;;  %v3425_v18 = vmul.f32 %v4527_v12, %v3422_v15  ;;  %v3423_v26 = vmul.f32 %v4527_v12, %v3418_v49 }
 0x49c   : > { %4432 = vmatmul.mubr.msk.f32.gmra.mxu1 %vm748_vm2, %v3880_v11  ;;  %4456 = vmatprep.subr.mxu1 %v4537_v1 }
 0x49d   : > { %4457 = vmatpush3.msra.mxu1 %v3318_v17  ;;  %4434 = vmatprep.mubr.msk.f32.mxu1 %vm4539_vm1, %v4537_v1 }
 0x49e   : > { %4443 = vmatprep.mubr.msk.f32.mxu0 %vm4539_vm1, %v4537_v1  ;;  %4467 = vmatprep.subr.mxu0 %v4537_v1  ;;  %v3527_v20 = vpop.permute.xlu0 %3526  ;;  %v3523_v30 = vpop.permute.xlu1 %3522 }
 0x49f   : > { %4444 = vmatmul.mubr.msk.f32.vlgmr.msra.gmra.mxu0 %vm748_vm2, %v3885_v32  ;;  %4482 = vmatprep.subr.mxu1 %v4537_v1  ;;  %v3530_v24 = vmul.f32 %v4528_v22, %v3527_v20  ;;  %v3528_v37 = vmul.f32 %v4528_v22, %v3523_v30 }
 0x4a0   : > { %4468 = vmatpush3.msra.mxu0 %v3425_v18  ;;  %4435 = vmatmul.mubr.msk.f32.gmra.mxu1 %vm748_vm2, %v3881_v51 }
 0x4a1   : > { %4469 = vmatprep.subr.mxu0 %v4537_v1  ;;  %4446 = vmatprep.mubr.msk.f32.mxu0 %vm4539_vm1, %v4537_v1 }
 0x4a2   : > { %4470 = vmatpush3.msra.mxu0 %v3424_v21  ;;  %4458 = vmatprep.mubr.msk.f32.mxu1 %vm4539_vm1, %v4537_v1  ;;  %v3525_v27 = vpop.permute.xlu0 %3524 }
 0x4a3   : > { %4471 = vmatprep.subr.mxu0 %v4537_v1  ;;  %4447 = vmatmul.mubr.msk.f32.gmra.mxu0 %vm748_vm2, %v3886_v63  ;;  %v3529_v28 = vmul.f32 %v4528_v22, %v3525_v27 }
 0x4a4   : > { %4472 = vmatpush3.msra.mxu0 %v3423_v26  ;;  %4459 = vmatmul.mubr.msk.f32.vlgmr.msra.gmra.mxu1 %vm748_vm2, %v3891_v25 }
 0x4a5   : > { %4483 = vmatpush3.msra.mxu1 %v3530_v24  ;;  %4449 = vmatprep.mubr.msk.f32.mxu0 %vm4539_vm1, %v4537_v1 }
 0x4a6   : > { %4484 = vmatprep.subr.mxu1 %v4537_v1  ;;  %4461 = vmatprep.mubr.msk.f32.mxu1 %vm4539_vm1, %v4537_v1 }
 0x4a7   : > { %4485 = vmatpush3.msra.mxu1 %v3529_v28  ;;  %4450 = vmatmul.mubr.msk.f32.gmra.mxu0 %vm748_vm2, %v3887_v33 }
 0x4a8   : > { %4462 = vmatmul.mubr.msk.f32.gmra.mxu1 %vm748_vm2, %v3892_v35  ;;  %4486 = vmatprep.subr.mxu1 %v4537_v1 }
 0x4a9   : > { %4487 = vmatpush3.msra.mxu1 %v3528_v37  ;;  %4464 = vmatprep.mubr.msk.f32.mxu1 %vm4539_vm1, %v4537_v1 }
 0x4aa   : > { %4473 = vmatprep.mubr.msk.f32.mxu0 %vm4539_vm1, %v4537_v1 }
 0x4ab   : > { %4474 = vmatmul.mubr.msk.f32.vlgmr.msra.gmra.mxu0 %vm748_vm2, %v3897_v31 }
 0x4ac   : > { %4465 = vmatmul.mubr.msk.f32.gmra.mxu1 %vm748_vm2, %v3893_v56  ;;  %4476 = vmatprep.mubr.msk.f32.mxu0 %vm4539_vm1, %v4537_v1 }
 0x4ad   : > { %4488 = vmatprep.mubr.msk.f32.mxu1 %vm4539_vm1, %v4537_v1 }
 0x4af   : > { %4477 = vmatmul.mubr.msk.f32.gmra.mxu0 %vm748_vm2, %v3898_v38 }
 0x4b0   : > { %4489 = vmatmul.mubr.msk.f32.vlgmr.msra.gmra.mxu1 %vm748_vm2, %v3903_v39  ;;  %4479 = vmatprep.mubr.msk.f32.mxu0 %vm4539_vm1, %v4537_v1 }
 0x4b1   : > { %4491 = vmatprep.mubr.msk.f32.mxu1 %vm4539_vm1, %v4537_v1 }
 0x4b3   : > { %4480 = vmatmul.mubr.msk.f32.gmra.mxu0 %vm748_vm2, %v3899_v29 }
 0x4b4   : > { %4492 = vmatmul.mubr.msk.f32.gmra.mxu1 %vm748_vm2, %v3904_v13 }
 0x4b5   : > { %4494 = vmatprep.mubr.msk.f32.mxu1 %vm4539_vm1, %v4537_v1 }
 0x4b8   : > { %4495 = vmatmul.mubr.msk.f32.gmra.mxu1 %vm748_vm2, %v3905_v62 }
 0x53e   : > { %v2795_v36 = vpop.f32.mrf.mxu1 }
 0x540   : > { %v4370_v43 = vpop.f32.mrf.mxu1 }
 0x542   : > { %v2800_v44 = vpop.f32.mrf.mxu1 }
 0x544   : > { %v4373_v42 = vpop.f32.mrf.mxu1 }
 0x546   : > { %v2805_v50 = vpop.f32.mrf.mxu1  ;;  %v2884_v34 = vpop.f32.mrf.mxu0 }
 0x547   : > { %v2885_v10 = vadd.f32 %v2884_v34, %v2795_v36 }
 0x548   : > { %v4376_v52 = vpop.f32.mrf.mxu1  ;;  %v4385_v46 = vpop.f32.mrf.mxu0 }
 0x54a   : > { %v2889_v4 = vpop.f32.mrf.mxu0  ;;  %v2986_v53 = vpop.f32.mrf.mxu1 }
 0x54b   : > { %v3000_v17 = vadd.f32 %v2986_v53, %v2885_v10  ;;  %v2890_v32 = vadd.f32 %v2889_v4, %v2800_v44 }
 0x54c   : > { %v4388_v47 = vpop.f32.mrf.mxu0  ;;  %v4400_v57 = vpop.f32.mrf.mxu1 }
 0x54e   : > { %v2894_v40 = vpop.f32.mrf.mxu0 }
 0x54f   : > { %v2991_v1 = vpop.f32.mrf.mxu1  ;;  %v2895_v25 = vadd.f32 %v2894_v40, %v2805_v50  ;;  %v3633_v50 = vpop.permute.xlu0 %3632 }
 0x550   : > { %v4391_v23 = vpop.f32.mrf.mxu0  ;;  %v3001_v21 = vadd.f32 %v2991_v1, %v2890_v32 }
 0x551   : > { %v4403_v41 = vpop.f32.mrf.mxu1 }
 0x552   : > { %v3638_v41 = vpop.permute.xlu1 %3637 }
 0x553   : > { %v2996_v59 = vpop.f32.mrf.mxu1  ;;  %v3091_v48 = vpop.f32.mrf.mxu0 }
 0x554   : > { %v3105_v51 = vadd.f32 %v3091_v48, %v3000_v17  ;;  %v3002_v33 = vadd.f32 %v2996_v59, %v2895_v25 }
 0x555   : > { %v4406_v55 = vpop.f32.mrf.mxu1  ;;  %v4415_v60 = vpop.f32.mrf.mxu0 }
 0x557   : > { %v3096_v61 = vpop.f32.mrf.mxu0 }
 0x558   : > { %v3190_v2 = vpop.f32.mrf.mxu1  ;;  %v3106_v26 = vadd.f32 %v3096_v61, %v3001_v21 }
 0x559   : > { %v4418_v0 = vpop.f32.mrf.mxu0  ;;  %v3204_v63 = vadd.f32 %v3190_v2, %v3105_v51 }
 0x55a   : > { %v4430_v3 = vpop.f32.mrf.mxu1 }
 0x55b   : > { %v3101_v5 = vpop.f32.mrf.mxu0  ;;  %v3643_v3 = vpop.permute.xlu0 %3642 }
 0x55c   : > { %v3195_v14 = vpop.f32.mrf.mxu1  ;;  %v3107_v38 = vadd.f32 %v3101_v5, %v3002_v33 }
 0x55d   : > { %v4421_v6 = vpop.f32.mrf.mxu0  ;;  %v3205_v35 = vadd.f32 %v3195_v14, %v3106_v26 }
 0x55e   : > { %v4433_v45 = vpop.f32.mrf.mxu1 }
 0x55f   : > { %v3295_v58 = vpop.f32.mrf.mxu0 }
 0x560   : > { %v3200_v8 = vpop.f32.mrf.mxu1  ;;  %v3309_v27 = vadd.f32 %v3295_v58, %v3204_v63 }
 0x561   : > { %v4445_v9 = vpop.f32.mrf.mxu0  ;;  %v3206_v36 = vadd.f32 %v3200_v8, %v3107_v38 }
 0x562   : > { %v4436_v7 = vpop.f32.mrf.mxu1 }
 0x563   : > { %v3300_v11 = vpop.f32.mrf.mxu0 }
 0x564   : > { %v3400_v15 = vpop.f32.mrf.mxu1  ;;  %v3310_v39 = vadd.f32 %v3300_v11, %v3205_v35 }
 0x565   : > { %v4448_v12 = vpop.f32.mrf.mxu0  ;;  %v3414_v37 = vadd.f32 %v3400_v15, %v3309_v27 }
 0x566   : > { %v4460_v18 = vpop.f32.mrf.mxu1 }
 0x567   : > { %v3305_v49 = vpop.f32.mrf.mxu0 }
 0x568   : > { %v3405_v20 = vpop.f32.mrf.mxu1  ;;  %v3311_v52 = vadd.f32 %v3305_v49, %v3206_v36 }
 0x569   : > { %v4451_v22 = vpop.f32.mrf.mxu0  ;;  %v3415_v43 = vadd.f32 %v3405_v20, %v3310_v39 }
 0x56a   : > { %v4463_v24 = vpop.f32.mrf.mxu1 }
 0x56b   : > { %v3505_v28 = vpop.f32.mrf.mxu0 }
 0x56c   : > { %v3410_v30 = vpop.f32.mrf.mxu1  ;;  %v3519_v29 = vadd.f32 %v3505_v28, %v3414_v37 }
 0x56d   : > { %v4475_v31 = vpop.f32.mrf.mxu0  ;;  %v3416_v57 = vadd.f32 %v3410_v30, %v3311_v52 }
 0x56e   : > { %v4466_v56 = vpop.f32.mrf.mxu1 }
 0x56f   : > { %v3510_v13 = vpop.f32.mrf.mxu0 }
 0x570   : > { %v3610_v62 = vpop.f32.mrf.mxu1  ;;  %v3520_v46 = vadd.f32 %v3510_v13, %v3415_v43 }
 0x571   : > { %v3624_v44 = vadd.f32 %v3610_v62, %v3519_v29  ;;  %v4478_v42 = vpop.f32.mrf.mxu0 }
 0x572   : > { %v4490_v34 = vpop.f32.mrf.mxu1 }
 0x573   : > { %v3645_v4 = vadd.f32 %v3633_v50, %v3624_v44  ;;  %v3515_v53 = vpop.f32.mrf.mxu0 }
 0x574   : > { %v3615_v47 = vpop.f32.mrf.mxu1  ;;  %v3521_v55 = vadd.f32 %v3515_v53, %v3416_v57 }
 0x575   : > { %v3648_v40 = vadd.f32 %v3645_v4, %v5088_v54  ;;  %v3625_v1 = vadd.f32 %v3615_v47, %v3520_v46  ;;  %v4481_v23 = vpop.f32.mrf.mxu0 }
 0x576   : > { %v4493_v59 = vpop.f32.mrf.mxu1 }
 0x577   : > { %v3651_v48 = vmax.f32 %v3648_v40, 0.0  ;;  %v3646_v60 = vadd.f32 %v3638_v41, %v3625_v1 }
 0x578   : > { %v3620_v61 = vpop.f32.mrf.mxu1 }
 0x579   : > { %3654 = vst [vmem:[%s460_s23] sm:$0xff] %v3651_v48  ;;  %v3649_v2 = vadd.f32 %v3646_v60, %v5077_v16  ;;  %v3626_v0 = vadd.f32 %v3620_v61, %v3521_v55 }
 0x57a   : > { %v4496_v5 = vpop.f32.mrf.mxu1 }
 0x57b   : > { %v3652_v14 = vmax.f32 %v3649_v2, 0.0  ;;  %v3647_v54 = vadd.f32 %v3643_v3, %v3626_v0 }
 0x57d   : > { %3655 = vst [vmem:[%s460_s23 + $0x8] sm:$0xff] %v3652_v14  ;;  %v3650_v6 = vadd.f32 %v3647_v54, %v5082_v19 }
 0x57f   : > { %v3653_v45 = vmax.f32 %v3650_v6, 0.0 }
 0x581   : > { %3656 = vst [vmem:[%s460_s23 + $0x10] sm:$0xff] %v3653_v45 }
 0x582 PF: > { %s23_s25 = sadd.s32 1, %s4535_s25  }
 0x583   : > { %p20_p4 = scmp.ge.s32.totalorder %s23_s25, 4  }
 0x585   :  { %22 = sbr.rel (!%p20_p4) target bundleno = 1 (0x1), region = 137 }

// kernel: downsample_forward.8
= control target key start
LH: loop header
LB: loop body
LE: loop exit
PB: predicated region body
PF: predicated region fallthrough
CT: control target
= control target key end

     0   :  { %s3893_s25 = smov 0   ;;  %s4457_s0 = inlined_call_operand.vmem [shape: f32[2,216,128], index: 0, kind: input, shape index: {}]   ;;  %s4458_s1 = inlined_call_operand.vmem [shape: f32[2,24,128], index: 1, kind: input, shape index: {}]   ;;  %s4459_s2 = inlined_call_operand.vmem [shape: f32[9,1,128], index: 2, kind: input, shape index: {}]   ;;  %s4460_s3 = inlined_call_operand.vmem [shape: f32[16,216], index: 3, kind: input, shape index: {}]   ;;  %s4461_s4 = inlined_call_operand.vmem [shape: f32[16,24], index: 4, kind: input, shape index: {}]   ;;  %s4462_s5 = inlined_call_operand.vmem [shape: f32[9,16,16], index: 5, kind: input, shape index: {}]   ;;  %s4463_s6 = inlined_call_operand.vmem [shape: f32[9,16,16], index: 6, kind: input, shape index: {}]   ;;  %s4464_s7 = inlined_call_operand.vmem [shape: f32[9,16,16], index: 7, kind: input, shape index: {}]   ;;  %s4465_s8 = inlined_call_operand.vmem [shape: f32[16,1], index: 8, kind: input, shape index: {}]   ;;  %s4466_s9 = inlined_call_operand.vmem [shape: f32[16,1], index: 9, kind: input, shape index: {}]   ;;  %s4467_s10 = inlined_call_operand.vmem [shape: f32[16,1], index: 10, kind: input, shape index: {}]   ;;  %s4468_s11 = inlined_call_operand.vmem [shape: f32[16,1], index: 11, kind: input, shape index: {}]   ;;  %s4469_s12 = inlined_call_operand.vmem [shape: f32[16,1], index: 12, kind: input, shape index: {}]   ;;  %s4470_s13 = inlined_call_operand.vmem [shape: f32[2,16,128], index: 13, kind: output, shape index: {}]  }
   0x1 LB: > { %s3337_s26 = sadd.s32 4294967295, %s3811_s25   ;;  %p3341_p0 = scmp.ge.s32.totalorder %s3811_s25, 1  ;;  %s3811_s25 = sphi %s3893_s25, %s23_s25  }
   0x2   : > { %p397_p1 = scmp.lt.s32.totalorder %s3811_s25, 3 }
   0x4   : > { %p398_p2 = pnand %p3341_p0, %p397_p1 }
   0x5   : > { %p446_p3 = scmp.lt.s32.totalorder (!%p398_p2), %s3337_s26, 1  ;;  %s3817_s23 = smov (!%p398_p2), 3  }
   0x6   : > { %401 = sbr.rel (%p398_p2) target bundleno = 1328 (0x530), region = 72  ;;  %s3818_s24 = smov (!%p398_p2), 1  }
   0x7   : > { %s3820_s28 = smov (!%p398_p2), 125   ;;  %s4471_s29 = smov (!%p398_p2), 124  }
   0x8   : > { %s3822_s30 = smov (!%p398_p2), 123   ;;  %s4473_s18 = smov (!%p398_p2), 124  }
   0xb   : > { %v462_v0 = vld [vmem:[%s4460_s3 + $0x8] sm:$0xff]  ;;  %vm504_vm0 = vcmask 719872   ;;  %v3813_v1 = vmov 0.0   ;;  %vm605_vm1 = vcmask 195584   ;;  %s4475_s26 = smov (!%p446_p3, %s3337_s26), 1  ;;  %v3814_v3 = vmov 0  }
   0xc   : > { %511 = vmatprep.subr.mxu0 %v3813_v1  ;;  %3346 = vmatprep.mubr.msk.f32.mxu0 %vm504_vm0, %v462_v0  ;;  %v493_v2 = vld [vmem:[%s4465_s8 + $0x8] sm:$0xff]  ;;  %v588_v4 = vld [vmem:[%s4461_s4] sm:$0xff]  ;;  %s3783_s16 = smul.u32 216, %s4475_s26  ;;  %v464_v38 = vld [vmem:[%s4460_s3 + $0x18] sm:$0xff]  ;;  %vm719_vm2 = vcmask 130048  }
   0xd   : > { %3803 = vset.pattern.permute.xlu0 %v3814_v3  ;;  %3804 = vset.pattern.permute.xlu1 %v3814_v3  ;;  %v492_v5 = vld [vmem:[%s4465_s8] sm:$0xff]  ;;  %s3784_s22 = smul.u32 24, %s4475_s26  ;;  %v589_v17 = vld [vmem:[%s4461_s4 + $0x8] sm:$0xff]  ;;  %v463_v39 = vld [vmem:[%s4460_s3 + $0x10] sm:$0xff] }
   0xe   : > { %501 = vperm.xlu0 %3803, %v493_v2   ;;  %3591 = vmatprep.mubr.msk.f32.mxu1 %vm605_vm1, %v588_v4  ;;  %s3922_s21 = scalar_lea.vmem %s4457_s0, %s3783_s16  ;;  %v461_v37 = vld [vmem:[%s4460_s3] sm:$0xff]  ;;  %v3353_v43 = vld [vmem:[%s4462_s5 + $0x10] sm:$0xff]  ;;  %v594_v51 = vld [vmem:[%s4466_s9 + $0x8] sm:$0xff] }
   0xf   : > { %v480_v6 = vld [vmem:[%s3922_s21 + $0x78] sm:$0xff]  ;;  %v479_v7 = vld [vmem:[%s3922_s21 + $0x70] sm:$0xff]  ;;  %v478_v8 = vld [vmem:[%s3922_s21 + $0x68] sm:$0xff]  ;;  %s455_s27 = scalar_lea.vmem %s4458_s1, %s3784_s22  ;;  %s3816_s22 = smov 4  }
  0x10   : > { %512 = vmatpush1.msra.mxu0 %v480_v6  ;;  %v477_v9 = vld [vmem:[%s3922_s21 + $0x60] sm:$0xff]  ;;  %v476_v10 = vld [vmem:[%s3922_s21 + $0x58] sm:$0xff]  ;;  %v475_v11 = vld [vmem:[%s3922_s21 + $0x50] sm:$0xff] }
  0x11   : > { %513 = vmatprep.subr.mxu0 %v3813_v1  ;;  %v592_v12 = vld [vmem:[%s455_s27 + $0x10] sm:$0xff]  ;;  %v591_v13 = vld [vmem:[%s455_s27 + $0x8] sm:$0xff]  ;;  %v590_v15 = vld [vmem:[%s455_s27] sm:$0xff]  ;;  %s3819_s27 = smov 127  }
  0x12   : > { %496 = vperm.xlu0 %3803, %v492_v5   ;;  %514 = vmatpush1.msra.mxu0 %v479_v7  ;;  %v474_v14 = vld [vmem:[%s3922_s21 + $0x48] sm:$0xff]  ;;  %v473_v16 = vld [vmem:[%s3922_s21 + $0x40] sm:$0xff]  ;;  %v472_v18 = vld [vmem:[%s3922_s21 + $0x38] sm:$0xff] }
  0x13   : > { %515 = vmatprep.subr.mxu0 %v3813_v1  ;;  %3585 = vmatprep.subr.mxu1 %v592_v12  ;;  %v471_v19 = vld [vmem:[%s3922_s21 + $0x30] sm:$0xff]  ;;  %v470_v20 = vld [vmem:[%s3922_s21 + $0x28] sm:$0xff]  ;;  %v469_v21 = vld [vmem:[%s3922_s21 + $0x20] sm:$0xff] }
  0x14   : > { %516 = vmatpush1.msra.mxu0 %v478_v8  ;;  %3586 = vmatpush3.msra.mxu1 %v592_v12  ;;  %v468_v22 = vld [vmem:[%s3922_s21 + $0x18] sm:$0xff]  ;;  %v467_v23 = vld [vmem:[%s3922_s21 + $0x10] sm:$0xff]  ;;  %v466_v24 = vld [vmem:[%s3922_s21 + $0x8] sm:$0xff] }
  0x15   : > { %517 = vmatprep.subr.mxu0 %v3813_v1  ;;  %3587 = vmatprep.subr.mxu1 %v591_v13  ;;  %v465_v25 = vld [vmem:[%s3922_s21] sm:$0xff]  ;;  %v491_v26 = vld [vmem:[%s3922_s21 + $0xd0] sm:$0xff]  ;;  %v490_v27 = vld [vmem:[%s3922_s21 + $0xc8] sm:$0xff] }
  0x16   : > { %518 = vmatpush1.msra.mxu0 %v477_v9  ;;  %3588 = vmatpush3.msra.mxu1 %v591_v13  ;;  %v489_v28 = vld [vmem:[%s3922_s21 + $0xc0] sm:$0xff]  ;;  %v488_v29 = vld [vmem:[%s3922_s21 + $0xb8] sm:$0xff]  ;;  %v487_v30 = vld [vmem:[%s3922_s21 + $0xb0] sm:$0xff] }
  0x17   : > { %519 = vmatprep.subr.mxu0 %v3813_v1  ;;  %3589 = vmatprep.subr.mxu1 %v590_v15  ;;  %v486_v31 = vld [vmem:[%s3922_s21 + $0xa8] sm:$0xff]  ;;  %v485_v32 = vld [vmem:[%s3922_s21 + $0xa0] sm:$0xff]  ;;  %v484_v33 = vld [vmem:[%s3922_s21 + $0x98] sm:$0xff] }
  0x18   : > { %520 = vmatpush1.msra.mxu0 %v476_v10  ;;  %3590 = vmatpush3.msra.mxu1 %v590_v15  ;;  %v483_v34 = vld [vmem:[%s3922_s21 + $0x90] sm:$0xff]  ;;  %v482_v35 = vld [vmem:[%s3922_s21 + $0x88] sm:$0xff]  ;;  %v481_v36 = vld [vmem:[%s3922_s21 + $0x80] sm:$0xff]  ;;  %s3815_s21 = smov 5  }
  0x19   : > { %521 = vmatprep.subr.mxu0 %v3813_v1  ;;  %3592 = vmatmul.mubr.msk.f32.vlgmr.msra.gmra.mxu1 %vm605_vm1, %v589_v17  ;;  %v593_v52 = vld [vmem:[%s4466_s9] sm:$0xff]  ;;  %v1579_v53 = vld [vmem:[%s4467_s10 + $0x8] sm:$0xff]  ;;  %v3354_v63 = vld [vmem:[%s4462_s5 + $0x18] sm:$0xff] }
  0x1a   : > { %522 = vmatpush1.msra.mxu0 %v475_v11  ;;  %3598 = vmatprep.mubr.msk.f32.mxu1 %vm719_vm2, %v3353_v43  ;;  %v1578_v54 = vld [vmem:[%s4467_s10] sm:$0xff]  ;;  %v701_v6 = vld [vmem:[%s4462_s5 + $0x8] sm:$0xff]  ;;  %v3367_v15 = vld [vmem:[%s4462_s5 + $0x30] sm:$0xff] }
  0x1b   : > { %523 = vmatprep.subr.mxu0 %v3813_v1  ;;  %v4050_v55 = vld [vmem:[%s4459_s2 + $0x1] ss:$0 sm:$0xff]  ;;  %v4056_v59 = vld [vmem:[%s4459_s2] ss:$0 sm:$0xff]  ;;  %v4069_v2 = vld [vmem:[%s4459_s2 + $0x2] ss:$0 sm:$0xff] }
  0x1c   : > { %524 = vmatpush1.msra.mxu0 %v474_v14  ;;  %v3361_v8 = vld [vmem:[%s4462_s5 + $0x20] sm:$0xff]  ;;  %v3362_v13 = vld [vmem:[%s4462_s5 + $0x28] sm:$0xff] }
  0x1d   : > { %525 = vmatprep.subr.mxu0 %v3813_v1  ;;  %v4084_v9 = vld [vmem:[%s4459_s2 + $0x3] ss:$0 sm:$0xff] }
  0x1e   : > { %526 = vmatpush1.msra.mxu0 %v473_v16 }
  0x1f   : > { %527 = vmatprep.subr.mxu0 %v3813_v1 }
  0x20   : > { %528 = vmatpush1.msra.mxu0 %v472_v18  ;;  %v3368_v18 = vld [vmem:[%s4462_s5 + $0x38] sm:$0xff] }
  0x21   : > { %529 = vmatprep.subr.mxu0 %v3813_v1 }
  0x22   : > { %530 = vmatpush1.msra.mxu0 %v471_v19  ;;  %v4105_v19 = vld [vmem:[%s4459_s2 + $0x4] ss:$0 sm:$0xff] }
  0x23   : > { %531 = vmatprep.subr.mxu0 %v3813_v1 }
  0x24   : > { %532 = vmatpush1.msra.mxu0 %v470_v20 }
  0x25   : > { %533 = vmatprep.subr.mxu0 %v3813_v1 }
  0x26   : > { %534 = vmatpush1.msra.mxu0 %v469_v21  ;;  %v3373_v21 = vld [vmem:[%s4462_s5 + $0x40] sm:$0xff] }
  0x27   : > { %535 = vmatprep.subr.mxu0 %v3813_v1 }
  0x28   : > { %536 = vmatpush1.msra.mxu0 %v468_v22  ;;  %v4115_v22 = vld [vmem:[%s4459_s2 + $0x5] ss:$0 sm:$0xff] }
  0x29   : > { %537 = vmatprep.subr.mxu0 %v3813_v1 }
  0x2a   : > { %538 = vmatpush1.msra.mxu0 %v467_v23 }
  0x2b   : > { %539 = vmatprep.subr.mxu0 %v3813_v1 }
  0x2c   : > { %540 = vmatpush1.msra.mxu0 %v466_v24 }
  0x2d   : > { %541 = vmatprep.subr.mxu0 %v3813_v1 }
  0x2e   : > { %542 = vmatpush1.msra.mxu0 %v465_v25 }
  0x2f   : > { %553 = vmatprep.subr.mxu0 %v3813_v1 }
  0x30   : > { %554 = vmatpush2.msra.mxu0 %v491_v26  ;;  %v3374_v26 = vld [vmem:[%s4462_s5 + $0x48] sm:$0xff] }
  0x31   : > { %555 = vmatprep.subr.mxu0 %v3813_v1 }
  0x32   : > { %556 = vmatpush2.msra.mxu0 %v490_v27 }
  0x33   : > { %557 = vmatprep.subr.mxu0 %v3813_v1 }
  0x34   : > { %558 = vmatpush2.msra.mxu0 %v489_v28  ;;  %v3379_v28 = vld [vmem:[%s4462_s5 + $0x50] sm:$0xff] }
  0x35   : > { %559 = vmatprep.subr.mxu0 %v3813_v1 }
  0x36   : > { %560 = vmatpush2.msra.mxu0 %v488_v29  ;;  %v4131_v29 = vld [vmem:[%s4459_s2 + $0x6] ss:$0 sm:$0xff] }
  0x37   : > { %561 = vmatprep.subr.mxu0 %v3813_v1 }
  0x38   : > { %562 = vmatpush2.msra.mxu0 %v487_v30 }
  0x39   : > { %563 = vmatprep.subr.mxu0 %v3813_v1 }
  0x3a   : > { %564 = vmatpush2.msra.mxu0 %v486_v31 }
  0x3b   : > { %565 = vmatprep.subr.mxu0 %v3813_v1 }
  0x3c   : > { %566 = vmatpush2.msra.mxu0 %v485_v32 }
  0x3d   : > { %567 = vmatprep.subr.mxu0 %v3813_v1 }
  0x3e   : > { %568 = vmatpush2.msra.mxu0 %v484_v33  ;;  %v3380_v33 = vld [vmem:[%s4462_s5 + $0x58] sm:$0xff] }
  0x3f   : > { %569 = vmatprep.subr.mxu0 %v3813_v1 }
  0x40   : > { %570 = vmatpush2.msra.mxu0 %v483_v34 }
  0x41   : > { %571 = vmatprep.subr.mxu0 %v3813_v1 }
  0x42   : > { %572 = vmatpush2.msra.mxu0 %v482_v35  ;;  %v3385_v35 = vld [vmem:[%s4462_s5 + $0x60] sm:$0xff] }
  0x43   : > { %573 = vmatprep.subr.mxu0 %v3813_v1  ;;  %v700_v1 = vld [vmem:[%s4462_s5] sm:$0xff] }
  0x44   : > { %574 = vmatpush2.msra.mxu0 %v481_v36  ;;  %v4146_v36 = vld [vmem:[%s4459_s2 + $0x7] ss:$0 sm:$0xff] }
  0x45   : > { %576 = vmatmul.mubr.f32.vlgmr.msra.gmra.mxu0 %v461_v37 }
  0x46   : > { %3347 = vmatprep.mubr.msk.f32.mxu0 %vm504_vm0, %v464_v38 }
  0x49   : > { %581 = vmatmul.mubr.f32.gmra.mxu0 %v463_v39  ;;  %v3386_v39 = vld [vmem:[%s4462_s5 + $0x68] sm:$0xff] }
  0x89   : > { %v502_v40 = vpop.permute.xlu0 %501 }
  0x8d   : > { %v497_v44 = vpop.permute.xlu0 %496 }
 0x105   : > { %v577_v41 = vpop.f32.mrf.mxu0 }
 0x106   : > { %v578_v48 = vadd.f32 %v577_v41, %v497_v44  ;;  %v3391_v41 = vld [vmem:[%s4462_s5 + $0x70] sm:$0xff] }
 0x107   : > { %v579_v42 = vpop.f32.mrf.mxu0 }
 0x108   : > { %v4005_v50 = vmax.f32 %v578_v48, 0.0  ;;  %v4161_v42 = vld [vmem:[%s4459_s2 + $0x8] ss:$0 sm:$0xff]  ;;  %v3397_v48 = vld [vmem:[%s4462_s5 + $0x80] sm:$0xff] }
 0x109   : > { %v582_v45 = vpop.f32.mrf.mxu0 }
 0x10a   : > { %v583_v46 = vadd.f32 %v582_v45, %v502_v40  ;;  %v1090_v25 = vmul.f32 %v4105_v19, %v4005_v50 }
 0x10b   : > { %v584_v47 = vpop.f32.mrf.mxu0 }
 0x10c   : > { %v3999_v49 = vmax.f32 %v583_v46, 0.0  ;;  %v3392_v46 = vld [vmem:[%s4462_s5 + $0x78] sm:$0xff] }
 0x10e   : > { %689 = vrot.lane.b32.xlu0 %v3999_v49, %s3815_s21  ;;  %704 = vrot.lane.b32.xlu1 %v3999_v49, %s3816_s22  ;;  %v1091_v20 = vmul.f32 %v4105_v19, %v3999_v49 }
 0x112   : > { %884 = vrot.lane.b32.xlu0 %v3999_v49, %s3817_s23  ;;  %702 = vrot.lane.b32.xlu1 %v4005_v50, %s3816_s22 }
 0x116   : > { %984 = vrot.lane.b32.xlu0 %v3999_v49, %s3818_s24  ;;  %687 = vrot.lane.b32.xlu1 %v4005_v50, %s3815_s21 }
 0x11a   : > { %1180 = vrot.lane.b32.xlu0 %v3999_v49, %s3819_s27  ;;  %882 = vrot.lane.b32.xlu1 %v4005_v50, %s3817_s23 }
 0x11e   : > { %1280 = vrot.lane.b32.xlu0 %v3999_v49, %s3820_s28  ;;  %982 = vrot.lane.b32.xlu1 %v4005_v50, %s3818_s24 }
 0x122   : > { %1380 = vrot.lane.b32.xlu0 %v3999_v49, %s4471_s29  ;;  %1178 = vrot.lane.b32.xlu1 %v4005_v50, %s3819_s27 }
 0x126   : > { %1480 = vrot.lane.b32.xlu0 %v3999_v49, %s3822_s30  ;;  %1278 = vrot.lane.b32.xlu1 %v4005_v50, %s3820_s28 }
 0x12a   : > { %602 = vperm.xlu0 %3803, %v594_v51   ;;  %1378 = vrot.lane.b32.xlu1 %v4005_v50, %s4471_s29  ;;  %v3593_v51 = vpop.f32.mrf.mxu1 }
 0x12e   : > { %597 = vperm.xlu0 %3803, %v593_v52   ;;  %1478 = vrot.lane.b32.xlu1 %v4005_v50, %s3822_s30  ;;  %v3398_v50 = vld [vmem:[%s4462_s5 + $0x88] sm:$0xff]  ;;  %v678_v52 = vpop.f32.mrf.mxu1 }
 0x132   : > { %1587 = vperm.xlu1 %3804, %v1579_v53  }
 0x136   : > { %1582 = vperm.xlu1 %3804, %v1578_v54  }
 0x180   : > { %v690_v56 = vpop.permute.xlu0 %689  ;;  %v705_v57 = vpop.permute.xlu1 %704 }
 0x181   : > { %v715_v58 = vmul.f32 %v4050_v55, %v705_v57  ;;  %v699_v0 = vmul.f32 %v4056_v59, %v690_v56 }
 0x183   : > { %3594 = vmatprep.subr.mxu1 %v715_v58 }
 0x184   : > { %v885_v60 = vpop.permute.xlu0 %884  ;;  %3595 = vmatpush3.msra.mxu1 %v715_v58  ;;  %v703_v61 = vpop.permute.xlu1 %702 }
 0x185   : > { %v714_v62 = vmul.f32 %v4050_v55, %v703_v61  ;;  %v895_v7 = vmul.f32 %v4069_v2, %v885_v60 }
 0x187   : > { %3596 = vmatprep.subr.mxu1 %v714_v62 }
 0x188   : > { %v985_v3 = vpop.permute.xlu0 %984  ;;  %3597 = vmatpush3.msra.mxu1 %v714_v62  ;;  %v688_v4 = vpop.permute.xlu1 %687 }
 0x189   : > { %v698_v5 = vmul.f32 %v4056_v59, %v688_v4  ;;  %3599 = vmatmul.mubr.msk.f32.vlgmr.msra.gmra.mxu1 %vm719_vm2, %v3354_v63  ;;  %3601 = vmatprep.subr.mxu1 %v699_v0  ;;  %v995_v14 = vmul.f32 %v4084_v9, %v985_v3 }
 0x18a   : > { %3602 = vmatpush3.msra.mxu1 %v699_v0  ;;  %3605 = vmatprep.mubr.msk.f32.mxu1 %vm719_vm2, %v700_v1 }
 0x18b   : > { %3603 = vmatprep.subr.mxu1 %v698_v5 }
 0x18c   : > { %3604 = vmatpush3.msra.mxu1 %v698_v5  ;;  %v883_v10 = vpop.permute.xlu1 %882  ;;  %v1181_v12 = vpop.permute.xlu0 %1180 }
 0x18d   : > { %v894_v11 = vmul.f32 %v4069_v2, %v883_v10  ;;  %3606 = vmatmul.mubr.msk.f32.vlgmr.msra.gmra.mxu1 %vm719_vm2, %v701_v6  ;;  %3608 = vmatprep.subr.mxu1 %v895_v7  ;;  %v1191_v27 = vmul.f32 %v4115_v22, %v1181_v12 }
 0x18e   : > { %3609 = vmatpush3.msra.mxu1 %v895_v7  ;;  %3612 = vmatprep.mubr.msk.f32.mxu1 %vm719_vm2, %v3361_v8 }
 0x18f   : > { %3610 = vmatprep.subr.mxu1 %v894_v11 }
 0x190   : > { %3611 = vmatpush3.msra.mxu1 %v894_v11  ;;  %v983_v16 = vpop.permute.xlu1 %982  ;;  %v1281_v23 = vpop.permute.xlu0 %1280 }
 0x191   : > { %v994_v17 = vmul.f32 %v4084_v9, %v983_v16  ;;  %3613 = vmatmul.mubr.msk.f32.vlgmr.msra.gmra.mxu1 %vm719_vm2, %v3362_v13  ;;  %3615 = vmatprep.subr.mxu1 %v995_v14  ;;  %v1291_v34 = vmul.f32 %v4131_v29, %v1281_v23 }
 0x192   : > { %3616 = vmatpush3.msra.mxu1 %v995_v14  ;;  %3619 = vmatprep.mubr.msk.f32.mxu1 %vm719_vm2, %v3367_v15 }
 0x193   : > { %3617 = vmatprep.subr.mxu1 %v994_v17 }
 0x194   : > { %3618 = vmatpush3.msra.mxu1 %v994_v17  ;;  %v1179_v24 = vpop.permute.xlu1 %1178  ;;  %v1381_v32 = vpop.permute.xlu0 %1380 }
 0x195   : > { %3620 = vmatmul.mubr.msk.f32.vlgmr.msra.gmra.mxu1 %vm719_vm2, %v3368_v18  ;;  %3622 = vmatprep.subr.mxu1 %v1091_v20  ;;  %v1190_v31 = vmul.f32 %v4115_v22, %v1179_v24  ;;  %v1391_v40 = vmul.f32 %v4146_v36, %v1381_v32 }
 0x196   : > { %3623 = vmatpush3.msra.mxu1 %v1091_v20  ;;  %3626 = vmatprep.mubr.msk.f32.mxu1 %vm719_vm2, %v3373_v21 }
 0x197   : > { %3624 = vmatprep.subr.mxu1 %v1090_v25 }
 0x198   : > { %v1279_v30 = vpop.permute.xlu1 %1278  ;;  %3625 = vmatpush3.msra.mxu1 %v1090_v25  ;;  %v1481_v43 = vpop.permute.xlu0 %1480 }
 0x199   : > { %3627 = vmatmul.mubr.msk.f32.vlgmr.msra.gmra.mxu1 %vm719_vm2, %v3374_v26  ;;  %3629 = vmatprep.subr.mxu1 %v1191_v27  ;;  %v1290_v38 = vmul.f32 %v4131_v29, %v1279_v30  ;;  %v1491_v47 = vmul.f32 %v4161_v42, %v1481_v43 }
 0x19a   : > { %3630 = vmatpush3.msra.mxu1 %v1191_v27  ;;  %3633 = vmatprep.mubr.msk.f32.mxu1 %vm719_vm2, %v3379_v28  ;;  %v3401_v27 = vld [vmem:[%s4463_s6 + $0x10] sm:$0xff] }
 0x19b   : > { %3631 = vmatprep.subr.mxu1 %v1190_v31 }
 0x19c   : > { %v1379_v37 = vpop.permute.xlu1 %1378  ;;  %3632 = vmatpush3.msra.mxu1 %v1190_v31 }
 0x19d   : > { %3634 = vmatmul.mubr.msk.f32.vlgmr.msra.gmra.mxu1 %vm719_vm2, %v3380_v33  ;;  %3636 = vmatprep.subr.mxu1 %v1291_v34  ;;  %v1390_v44 = vmul.f32 %v4146_v36, %v1379_v37 }
 0x19e   : > { %3637 = vmatpush3.msra.mxu1 %v1291_v34  ;;  %3640 = vmatprep.mubr.msk.f32.mxu1 %vm719_vm2, %v3385_v35 }
 0x19f   : > { %3638 = vmatprep.subr.mxu1 %v1290_v38 }
 0x1a0   : > { %3639 = vmatpush3.msra.mxu1 %v1290_v38  ;;  %v1479_v45 = vpop.permute.xlu1 %1478 }
 0x1a1   : > { %3641 = vmatmul.mubr.msk.f32.vlgmr.msra.gmra.mxu1 %vm719_vm2, %v3386_v39  ;;  %3643 = vmatprep.subr.mxu1 %v1391_v40  ;;  %v1490_v49 = vmul.f32 %v4161_v42, %v1479_v45 }
 0x1a2   : > { %3644 = vmatpush3.msra.mxu1 %v1391_v40  ;;  %3647 = vmatprep.mubr.msk.f32.mxu1 %vm719_vm2, %v3391_v41 }
 0x1a3   : > { %3645 = vmatprep.subr.mxu1 %v1390_v44 }
 0x1a4   : > { %3646 = vmatpush3.msra.mxu1 %v1390_v44 }
 0x1a5   : > { %3648 = vmatmul.mubr.msk.f32.vlgmr.msra.gmra.mxu1 %vm719_vm2, %v3392_v46  ;;  %3650 = vmatprep.subr.mxu1 %v1491_v47  ;;  %v603_v16 = vpop.permute.xlu0 %602 }
 0x1a6   : > { %3651 = vmatpush3.msra.mxu1 %v1491_v47  ;;  %3654 = vmatprep.mubr.msk.f32.mxu1 %vm719_vm2, %v3397_v48  ;;  %v684_v33 = vadd.f32 %v3593_v51, %v603_v16  ;;  %v3415_v47 = vld [vmem:[%s4463_s6 + $0x40] sm:$0xff]  ;;  %v3416_v48 = vld [vmem:[%s4463_s6 + $0x48] sm:$0xff] }
 0x1a7   : > { %3652 = vmatprep.subr.mxu1 %v1490_v49  ;;  %3689 = vmatprep.mubr.msk.f32.mxu0 %vm719_vm2, %v3415_v47  ;;  %v2415_v51 = vld [vmem:[%s4468_s11] sm:$0xff] }
 0x1a8   : > { %3653 = vmatpush3.msra.mxu1 %v1490_v49  ;;  %v3423_v49 = vld [vmem:[%s4463_s6 + $0x60] sm:$0xff] }
 0x1a9   : > { %3655 = vmatmul.mubr.msk.f32.vlgmr.msra.gmra.mxu1 %vm719_vm2, %v3398_v50  ;;  %v598_v31 = vpop.permute.xlu0 %597  ;;  %v2416_v50 = vld [vmem:[%s4468_s11 + $0x8] sm:$0xff] }
 0x1aa   : > { %3661 = vmatprep.mubr.msk.f32.mxu1 %vm719_vm2, %v3401_v27  ;;  %v679_v38 = vadd.f32 %v678_v52, %v598_v31 }
 0x1ad   : > { %v1588_v21 = vpop.permute.xlu1 %1587 }
 0x1b1   : > { %v1583_v37 = vpop.permute.xlu1 %1582 }
 0x249   : > { %v3600_v53 = vpop.f32.mrf.mxu1 }
 0x24b   : > { %v792_v54 = vpop.f32.mrf.mxu1 }
 0x24d   : > { %v3607_v56 = vpop.f32.mrf.mxu1 }
 0x24e   : > { %v879_v1 = vadd.f32 %v3607_v56, %v3600_v53 }
 0x24f   : > { %v873_v57 = vpop.f32.mrf.mxu1 }
 0x250   : > { %v874_v4 = vadd.f32 %v873_v57, %v792_v54 }
 0x251   : > { %v3614_v58 = vpop.f32.mrf.mxu1 }
 0x252   : > { %v981_v5 = vadd.f32 %v3614_v58, %v879_v1  ;;  %v3402_v58 = vld [vmem:[%s4463_s6 + $0x18] sm:$0xff]  ;;  %v1603_v1 = vld [vmem:[%s4463_s6 + $0x8] sm:$0xff] }
 0x253   : > { %v971_v60 = vpop.f32.mrf.mxu1 }
 0x254   : > { %v980_v7 = vadd.f32 %v971_v60, %v874_v4  ;;  %v3407_v4 = vld [vmem:[%s4463_s6 + $0x20] sm:$0xff] }
 0x255   : > { %v3621_v61 = vpop.f32.mrf.mxu1 }
 0x256   : > { %v1081_v8 = vadd.f32 %v3621_v61, %v981_v5  ;;  %v1602_v61 = vld [vmem:[%s4463_s6] sm:$0xff] }
 0x257   : > { %v1071_v62 = vpop.f32.mrf.mxu1 }
 0x258   : > { %v1080_v11 = vadd.f32 %v1071_v62, %v980_v7 }
 0x259   : > { %v3628_v63 = vpop.f32.mrf.mxu1 }
 0x25a   : > { %v1177_v12 = vadd.f32 %v3628_v63, %v1081_v8  ;;  %v3408_v8 = vld [vmem:[%s4463_s6 + $0x28] sm:$0xff] }
 0x25b   : > { %v1167_v0 = vpop.f32.mrf.mxu1 }
 0x25c   : > { %v1176_v14 = vadd.f32 %v1167_v0, %v1080_v11  ;;  %v3411_v11 = vld [vmem:[%s4463_s6 + $0x30] sm:$0xff] }
 0x25d   : > { %v3635_v3 = vpop.f32.mrf.mxu1 }
 0x25e   : > { %v1277_v15 = vadd.f32 %v3635_v3, %v1177_v12 }
 0x25f   : > { %v1267_v6 = vpop.f32.mrf.mxu1 }
 0x260   : > { %v1276_v18 = vadd.f32 %v1267_v6, %v1176_v14 }
 0x261   : > { %v3642_v10 = vpop.f32.mrf.mxu1 }
 0x262   : > { %v1377_v20 = vadd.f32 %v3642_v10, %v1277_v15  ;;  %v3412_v15 = vld [vmem:[%s4463_s6 + $0x38] sm:$0xff] }
 0x263   : > { %v1367_v13 = vpop.f32.mrf.mxu1 }
 0x264   : > { %v1376_v24 = vadd.f32 %v1367_v13, %v1276_v18 }
 0x265   : > { %v3649_v17 = vpop.f32.mrf.mxu1 }
 0x266   : > { %v1477_v25 = vadd.f32 %v3649_v17, %v1377_v20  ;;  %v3419_v17 = vld [vmem:[%s4463_s6 + $0x50] sm:$0xff] }
 0x267   : > { %v1467_v23 = vpop.f32.mrf.mxu1 }
 0x268   : > { %v1476_v28 = vadd.f32 %v1467_v23, %v1376_v24  ;;  %v3420_v23 = vld [vmem:[%s4463_s6 + $0x58] sm:$0xff] }
 0x269   : > { %v3656_v26 = vpop.f32.mrf.mxu1 }
 0x26a   : > { %v1577_v30 = vadd.f32 %v3656_v26, %v1477_v25  ;;  %v3427_v25 = vld [vmem:[%s4463_s6 + $0x70] sm:$0xff] }
 0x26b   : > { %v1567_v32 = vpop.f32.mrf.mxu1 }
 0x26c   : > { %v1591_v34 = vadd.f32 %v1588_v21, %v1577_v30  ;;  %v1576_v35 = vadd.f32 %v1567_v32, %v1476_v28  ;;  %v3424_v30 = vld [vmem:[%s4463_s6 + $0x68] sm:$0xff]  ;;  %v3431_v32 = vld [vmem:[%s4463_s6 + $0x80] sm:$0xff] }
 0x26e   : > { %v1593_v39 = vadd.f32 %v1591_v34, %v684_v33  ;;  %v1590_v40 = vadd.f32 %v1583_v37, %v1576_v35  ;;  %v3428_v37 = vld [vmem:[%s4463_s6 + $0x78] sm:$0xff] }
 0x270   : > { %v4184_v41 = vmax.f32 %v1593_v39, 0.0  ;;  %v1592_v43 = vadd.f32 %v1590_v40, %v679_v38 }
 0x272   : > { %v4186_v44 = vmax.f32 %v1592_v43, 0.0  ;;  %1606 = vrot.lane.b32.xlu0 %v4184_v41, %s3816_s22  ;;  %v1960_v45 = vmul.f32 %v4105_v19, %v4184_v41  ;;  %v3432_v43 = vld [vmem:[%s4463_s6 + $0x88] sm:$0xff] }
 0x274   : > { %3685 = vmatprep.subr.mxu0 %v1960_v45  ;;  %1604 = vrot.lane.b32.xlu1 %v4186_v44, %s3816_s22  ;;  %v1959_v46 = vmul.f32 %v4105_v19, %v4186_v44 }
 0x275   : > { %3686 = vmatpush3.msra.mxu0 %v1960_v45 }
 0x276   : > { %1598 = vrot.lane.b32.xlu0 %v4184_v41, %s3815_s21  ;;  %3687 = vmatprep.subr.mxu0 %v1959_v46 }
 0x277   : > { %3688 = vmatpush3.msra.mxu0 %v1959_v46 }
 0x278   : > { %1596 = vrot.lane.b32.xlu1 %v4186_v44, %s3815_s21  ;;  %3690 = vmatmul.mubr.msk.f32.vlgmr.msra.gmra.mxu0 %vm719_vm2, %v3416_v48 }
 0x279   : > { %3703 = vmatprep.mubr.msk.f32.mxu0 %vm719_vm2, %v3423_v49 }
 0x27a   : > { %1777 = vrot.lane.b32.xlu0 %v4184_v41, %s3817_s23 }
 0x27c   : > { %1775 = vrot.lane.b32.xlu1 %v4186_v44, %s3817_s23 }
 0x27e   : > { %1869 = vrot.lane.b32.xlu0 %v4184_v41, %s3818_s24 }
 0x280   : > { %1867 = vrot.lane.b32.xlu1 %v4186_v44, %s3818_s24 }
 0x282   : > { %2049 = vrot.lane.b32.xlu0 %v4184_v41, %s3819_s27 }
 0x284   : > { %2047 = vrot.lane.b32.xlu1 %v4186_v44, %s3819_s27 }
 0x286   : > { %2141 = vrot.lane.b32.xlu0 %v4184_v41, %s3820_s28 }
 0x288   : > { %2139 = vrot.lane.b32.xlu1 %v4186_v44, %s3820_s28 }
 0x28a   : > { %2233 = vrot.lane.b32.xlu0 %v4184_v41, %s4473_s18 }
 0x28c   : > { %2231 = vrot.lane.b32.xlu1 %v4186_v44, %s4473_s18 }
 0x28e   : > { %2325 = vrot.lane.b32.xlu0 %v4184_v41, %s3822_s30 }
 0x290   : > { %2323 = vrot.lane.b32.xlu1 %v4186_v44, %s3822_s30 }
 0x292   : > { %2424 = vperm.xlu0 %3803, %v2416_v50  }
 0x294   : > { %2419 = vperm.xlu1 %3804, %v2415_v51  }
 0x2e4   : > { %v1607_v52 = vpop.permute.xlu0 %1606 }
 0x2e5   : > { %v1609_v53 = vmul.f32 %v4050_v55, %v1607_v52 }
 0x2e6   : > { %v1605_v54 = vpop.permute.xlu1 %1604 }
 0x2e7   : > { %v1608_v56 = vmul.f32 %v4050_v55, %v1605_v54  ;;  %3657 = vmatprep.subr.mxu1 %v1609_v53 }
 0x2e8   : > { %3658 = vmatpush3.msra.mxu1 %v1609_v53  ;;  %v1599_v57 = vpop.permute.xlu0 %1598 }
 0x2e9   : > { %v1601_v60 = vmul.f32 %v4056_v59, %v1599_v57  ;;  %3659 = vmatprep.subr.mxu1 %v1608_v56 }
 0x2ea   : > { %3660 = vmatpush3.msra.mxu1 %v1608_v56  ;;  %v1597_v62 = vpop.permute.xlu1 %1596 }
 0x2eb   : > { %v1600_v63 = vmul.f32 %v4056_v59, %v1597_v62  ;;  %3662 = vmatmul.mubr.msk.f32.vlgmr.msra.gmra.mxu1 %vm719_vm2, %v3402_v58  ;;  %3664 = vmatprep.subr.mxu1 %v1601_v60 }
 0x2ec   : > { %v1778_v0 = vpop.permute.xlu0 %1777  ;;  %3665 = vmatpush3.msra.mxu1 %v1601_v60  ;;  %3668 = vmatprep.mubr.msk.f32.mxu1 %vm719_vm2, %v1602_v61 }
 0x2ed   : > { %v1780_v3 = vmul.f32 %v4069_v2, %v1778_v0  ;;  %3666 = vmatprep.subr.mxu1 %v1600_v63 }
 0x2ee   : > { %3667 = vmatpush3.msra.mxu1 %v1600_v63  ;;  %v1776_v5 = vpop.permute.xlu1 %1775 }
 0x2ef   : > { %v1779_v6 = vmul.f32 %v4069_v2, %v1776_v5  ;;  %3669 = vmatmul.mubr.msk.f32.vlgmr.msra.gmra.mxu1 %vm719_vm2, %v1603_v1  ;;  %3671 = vmatprep.subr.mxu1 %v1780_v3 }
 0x2f0   : > { %v1870_v7 = vpop.permute.xlu0 %1869  ;;  %3672 = vmatpush3.msra.mxu1 %v1780_v3  ;;  %3675 = vmatprep.mubr.msk.f32.mxu1 %vm719_vm2, %v3407_v4 }
 0x2f1   : > { %v1872_v10 = vmul.f32 %v4084_v9, %v1870_v7  ;;  %3673 = vmatprep.subr.mxu1 %v1779_v6 }
 0x2f2   : > { %3674 = vmatpush3.msra.mxu1 %v1779_v6  ;;  %v1868_v12 = vpop.permute.xlu1 %1867 }
 0x2f3   : > { %v1871_v13 = vmul.f32 %v4084_v9, %v1868_v12  ;;  %3676 = vmatmul.mubr.msk.f32.vlgmr.msra.gmra.mxu1 %vm719_vm2, %v3408_v8  ;;  %3678 = vmatprep.subr.mxu1 %v1872_v10 }
 0x2f4   : > { %v2050_v14 = vpop.permute.xlu0 %2049  ;;  %3679 = vmatpush3.msra.mxu1 %v1872_v10  ;;  %3682 = vmatprep.mubr.msk.f32.mxu1 %vm719_vm2, %v3411_v11 }
 0x2f5   : > { %v2052_v16 = vmul.f32 %v4115_v22, %v2050_v14  ;;  %3680 = vmatprep.subr.mxu1 %v1871_v13 }
 0x2f6   : > { %3681 = vmatpush3.msra.mxu1 %v1871_v13  ;;  %v2048_v18 = vpop.permute.xlu1 %2047 }
 0x2f7   : > { %v2051_v20 = vmul.f32 %v4115_v22, %v2048_v18  ;;  %3683 = vmatmul.mubr.msk.f32.vlgmr.msra.gmra.mxu1 %vm719_vm2, %v3412_v15  ;;  %3692 = vmatprep.subr.mxu1 %v2052_v16 }
 0x2f8   : > { %v2142_v21 = vpop.permute.xlu0 %2141  ;;  %3693 = vmatpush3.msra.mxu1 %v2052_v16  ;;  %3696 = vmatprep.mubr.msk.f32.mxu1 %vm719_vm2, %v3419_v17 }
 0x2f9   : > { %v2144_v24 = vmul.f32 %v4131_v29, %v2142_v21  ;;  %3694 = vmatprep.subr.mxu1 %v2051_v20 }
 0x2fa   : > { %3695 = vmatpush3.msra.mxu1 %v2051_v20  ;;  %v2140_v26 = vpop.permute.xlu1 %2139  ;;  %v2437_v20 = vld [vmem:[%s4464_s7] sm:$0xff] }
 0x2fb   : > { %v2143_v27 = vmul.f32 %v4131_v29, %v2140_v26  ;;  %3697 = vmatmul.mubr.msk.f32.vlgmr.msra.gmra.mxu1 %vm719_vm2, %v3420_v23  ;;  %3699 = vmatprep.subr.mxu0 %v2144_v24 }
 0x2fc   : > { %v2234_v28 = vpop.permute.xlu0 %2233  ;;  %3700 = vmatpush3.msra.mxu0 %v2144_v24  ;;  %3710 = vmatprep.mubr.msk.f32.mxu1 %vm719_vm2, %v3427_v25 }
 0x2fd   : > { %v2236_v31 = vmul.f32 %v4146_v36, %v2234_v28  ;;  %3701 = vmatprep.subr.mxu0 %v2143_v27 }
 0x2fe   : > { %v2232_v33 = vpop.permute.xlu1 %2231  ;;  %3702 = vmatpush3.msra.mxu0 %v2143_v27  ;;  %v3435_v27 = vld [vmem:[%s4464_s7 + $0x10] sm:$0xff] }
 0x2ff   : > { %v2235_v34 = vmul.f32 %v4146_v36, %v2232_v33  ;;  %3704 = vmatmul.mubr.msk.f32.vlgmr.msra.gmra.mxu0 %vm719_vm2, %v3424_v30  ;;  %3706 = vmatprep.subr.mxu1 %v2236_v31  ;;  %v3251_v30 = vld [vmem:[%s4469_s12 + $0x8] sm:$0xff] }
 0x300   : > { %v2326_v35 = vpop.permute.xlu0 %2325  ;;  %3707 = vmatpush3.msra.mxu1 %v2236_v31  ;;  %3717 = vmatprep.mubr.msk.f32.mxu0 %vm719_vm2, %v3431_v32  ;;  %v3250_v31 = vld [vmem:[%s4469_s12] sm:$0xff] }
 0x301   : > { %v2328_v38 = vmul.f32 %v4161_v42, %v2326_v35  ;;  %3708 = vmatprep.subr.mxu1 %v2235_v34 }
 0x302   : > { %3709 = vmatpush3.msra.mxu1 %v2235_v34  ;;  %v2324_v39 = vpop.permute.xlu1 %2323 }
 0x303   : > { %v2327_v40 = vmul.f32 %v4161_v42, %v2324_v39  ;;  %3711 = vmatmul.mubr.msk.f32.vlgmr.msra.gmra.mxu1 %vm719_vm2, %v3428_v37  ;;  %3713 = vmatprep.subr.mxu0 %v2328_v38 }
 0x304   : > { %3714 = vmatpush3.msra.mxu0 %v2328_v38  ;;  %3724 = vmatprep.mubr.msk.f32.mxu1 %vm719_vm2, %v3435_v27 }
 0x305   : > { %3715 = vmatprep.subr.mxu0 %v2327_v40 }
 0x306   : > { %3716 = vmatpush3.msra.mxu0 %v2327_v40  ;;  %v2438_v40 = vld [vmem:[%s4464_s7 + $0x8] sm:$0xff] }
 0x307   : > { %3718 = vmatmul.mubr.msk.f32.vlgmr.msra.gmra.mxu0 %vm719_vm2, %v3432_v43  ;;  %v3445_v43 = vld [vmem:[%s4464_s7 + $0x30] sm:$0xff] }
 0x308   : > { %3731 = vmatprep.mubr.msk.f32.mxu0 %vm719_vm2, %v2437_v20 }
 0x30d   : > { %v2425_v17 = vpop.permute.xlu0 %2424 }
 0x30f   : > { %v2420_v24 = vpop.permute.xlu1 %2419 }
 0x338   : > { %v3691_v57 = vpop.f32.mrf.mxu0 }
 0x33a   : > { %v2036_v62 = vpop.f32.mrf.mxu0 }
 0x3ab   : > { %v3663_v45 = vpop.f32.mrf.mxu1 }
 0x3ad   : > { %v1685_v46 = vpop.f32.mrf.mxu1 }
 0x3af   : > { %v3670_v47 = vpop.f32.mrf.mxu1 }
 0x3b0   : > { %v1772_v50 = vadd.f32 %v3670_v47, %v3663_v45 }
 0x3b1   : > { %v1766_v48 = vpop.f32.mrf.mxu1 }
 0x3b2   : > { %v1767_v53 = vadd.f32 %v1766_v48, %v1685_v46 }
 0x3b3   : > { %v3677_v49 = vpop.f32.mrf.mxu1 }
 0x3b4   : > { %v1866_v54 = vadd.f32 %v3677_v49, %v1772_v50 }
 0x3b5   : > { %v1856_v51 = vpop.f32.mrf.mxu1 }
 0x3b6   : > { %v1865_v58 = vadd.f32 %v1856_v51, %v1767_v53  ;;  %v3436_v51 = vld [vmem:[%s4464_s7 + $0x18] sm:$0xff] }
 0x3b7   : > { %v3684_v52 = vpop.f32.mrf.mxu1  ;;  %v3446_v53 = vld [vmem:[%s4464_s7 + $0x38] sm:$0xff] }
 0x3b8   : > { %v1958_v60 = vadd.f32 %v3684_v52, %v1866_v54 }
 0x3b9   : > { %v1948_v56 = vpop.f32.mrf.mxu1 }
 0x3ba   : > { %v1957_v61 = vadd.f32 %v1948_v56, %v1865_v58  ;;  %v2046_v0 = vadd.f32 %v3691_v57, %v1958_v60  ;;  %v3441_v57 = vld [vmem:[%s4464_s7 + $0x20] sm:$0xff]  ;;  %v3442_v58 = vld [vmem:[%s4464_s7 + $0x28] sm:$0xff] }
 0x3bb   : > { %v3698_v63 = vpop.f32.mrf.mxu1 }
 0x3bc   : > { %v2045_v3 = vadd.f32 %v2036_v62, %v1957_v61  ;;  %v2138_v5 = vadd.f32 %v3698_v63, %v2046_v0  ;;  %v3449_v63 = vld [vmem:[%s4464_s7 + $0x40] sm:$0xff]  ;;  %v3453_v0 = vld [vmem:[%s4464_s7 + $0x50] sm:$0xff] }
 0x3bd   : > { %v2128_v4 = vpop.f32.mrf.mxu1 }
 0x3be   : > { %v2137_v8 = vadd.f32 %v2128_v4, %v2045_v3 }
 0x3bf   : > { %v3705_v1 = vpop.f32.mrf.mxu0 }
 0x3c0   : > { %v2230_v10 = vadd.f32 %v3705_v1, %v2138_v5  ;;  %v3450_v1 = vld [vmem:[%s4464_s7 + $0x48] sm:$0xff] }
 0x3c1   : > { %v2220_v6 = vpop.f32.mrf.mxu0 }
 0x3c2   : > { %v2229_v12 = vadd.f32 %v2220_v6, %v2137_v8  ;;  %v3457_v8 = vld [vmem:[%s4464_s7 + $0x60] sm:$0xff] }
 0x3c3   : > { %v3712_v7 = vpop.f32.mrf.mxu1 }
 0x3c4   : > { %v2322_v13 = vadd.f32 %v3712_v7, %v2230_v10 }
 0x3c5   : > { %v2312_v11 = vpop.f32.mrf.mxu1 }
 0x3c6   : > { %v2321_v15 = vadd.f32 %v2312_v11, %v2229_v12  ;;  %v3458_v12 = vld [vmem:[%s4464_s7 + $0x68] sm:$0xff] }
 0x3c7   : > { %v3719_v14 = vpop.f32.mrf.mxu0 }
 0x3c8   : > { %v2414_v16 = vadd.f32 %v3719_v14, %v2322_v13  ;;  %v3461_v14 = vld [vmem:[%s4464_s7 + $0x70] sm:$0xff] }
 0x3c9   : > { %v2404_v18 = vpop.f32.mrf.mxu0 }
 0x3ca   : > { %v2428_v21 = vadd.f32 %v2425_v17, %v2414_v16  ;;  %v2413_v23 = vadd.f32 %v2404_v18, %v2321_v15  ;;  %v3465_v15 = vld [vmem:[%s4464_s7 + $0x80] sm:$0xff]  ;;  %v3466_v17 = vld [vmem:[%s4464_s7 + $0x88] sm:$0xff] }
 0x3cc   : > { %v4318_v25 = vmax.f32 %v2428_v21, 0.0  ;;  %v2427_v26 = vadd.f32 %v2420_v24, %v2413_v23 }
 0x3ce   : > { %2433 = vrot.lane.b32.xlu1 %v4318_v25, %s3815_s21  ;;  %2441 = vrot.lane.b32.xlu0 %v4318_v25, %s3816_s22  ;;  %v4327_v28 = vmax.f32 %v2427_v26, 0.0  ;;  %v2795_v62 = vmul.f32 %v4105_v19, %v4318_v25 }
 0x3d2   : > { %2612 = vrot.lane.b32.xlu0 %v4318_v25, %s3817_s23  ;;  %2431 = vrot.lane.b32.xlu1 %v4327_v28, %s3815_s21 }
 0x3d6   : > { %2704 = vrot.lane.b32.xlu0 %v4318_v25, %s3818_s24  ;;  %2610 = vrot.lane.b32.xlu1 %v4327_v28, %s3817_s23 }
 0x3da   : > { %2702 = vrot.lane.b32.xlu1 %v4327_v28, %s3818_s24  ;;  %2439 = vrot.lane.b32.xlu0 %v4327_v28, %s3816_s22 }
 0x3de   : > { %2882 = vrot.lane.b32.xlu1 %v4327_v28, %s3819_s27  ;;  %2884 = vrot.lane.b32.xlu0 %v4318_v25, %s3819_s27 }
 0x3e2   : > { %2974 = vrot.lane.b32.xlu1 %v4327_v28, %s3820_s28  ;;  %2976 = vrot.lane.b32.xlu0 %v4318_v25, %s3820_s28 }
 0x3e6   : > { %3066 = vrot.lane.b32.xlu1 %v4327_v28, %s4473_s18  ;;  %3068 = vrot.lane.b32.xlu0 %v4318_v25, %s4473_s18 }
 0x3ea   : > { %3158 = vrot.lane.b32.xlu1 %v4327_v28, %s3822_s30  ;;  %3160 = vrot.lane.b32.xlu0 %v4318_v25, %s3822_s30  ;;  %s3471_s30 = sshll.u32 %s4475_s26, 4 }
 0x3eb   : > { %s460_s20 = scalar_lea.vmem %s4470_s13, %s3471_s30 }
 0x3ee   : > { %3259 = vperm.xlu1 %3804, %v3251_v30   ;;  %3254 = vperm.xlu0 %3803, %v3250_v31  }
 0x440   : > { %v2434_v32 = vpop.permute.xlu1 %2433  ;;  %v2442_v33 = vpop.permute.xlu0 %2441 }
 0x441   : > { %v2436_v34 = vmul.f32 %v4056_v59, %v2434_v32  ;;  %v2444_v35 = vmul.f32 %v4050_v55, %v2442_v33 }
 0x443   : > { %3720 = vmatprep.subr.mxu1 %v2444_v35  ;;  %3727 = vmatprep.subr.mxu0 %v2436_v34 }
 0x444   : > { %3721 = vmatpush3.msra.mxu1 %v2444_v35  ;;  %3728 = vmatpush3.msra.mxu0 %v2436_v34  ;;  %v2613_v37 = vpop.permute.xlu0 %2612  ;;  %v2432_v38 = vpop.permute.xlu1 %2431 }
 0x445   : > { %v2435_v39 = vmul.f32 %v4056_v59, %v2432_v38  ;;  %v2615_v52 = vmul.f32 %v4069_v2, %v2613_v37 }
 0x447   : > { %3729 = vmatprep.subr.mxu0 %v2435_v39 }
 0x448   : > { %v2705_v45 = vpop.permute.xlu0 %2704  ;;  %3730 = vmatpush3.msra.mxu0 %v2435_v39  ;;  %v2611_v46 = vpop.permute.xlu1 %2610 }
 0x449   : > { %v2707_v47 = vmul.f32 %v4084_v9, %v2705_v45  ;;  %3732 = vmatmul.mubr.msk.f32.vlgmr.msra.gmra.mxu0 %vm719_vm2, %v2438_v40 }
 0x44a   : > { %3745 = vmatprep.mubr.msk.f32.mxu0 %vm719_vm2, %v3445_v43 }
 0x44b   : > { %3741 = vmatprep.subr.mxu0 %v2707_v47 }
 0x44c   : > { %3742 = vmatpush3.msra.mxu0 %v2707_v47  ;;  %v2703_v59 = vpop.permute.xlu1 %2702  ;;  %v2440_v48 = vpop.permute.xlu0 %2439 }
 0x44d   : > { %v2706_v49 = vmul.f32 %v4084_v9, %v2703_v59  ;;  %v2443_v50 = vmul.f32 %v4050_v55, %v2440_v48  ;;  %v2614_v9 = vmul.f32 %v4069_v2, %v2611_v46 }
 0x44f   : > { %3722 = vmatprep.subr.mxu1 %v2443_v50  ;;  %3743 = vmatprep.subr.mxu0 %v2706_v49 }
 0x450   : > { %3744 = vmatpush3.msra.mxu0 %v2706_v49  ;;  %v2883_v54 = vpop.permute.xlu1 %2882  ;;  %3723 = vmatpush3.msra.mxu1 %v2443_v50  ;;  %v2885_v56 = vpop.permute.xlu0 %2884 }
 0x451   : > { %v2887_v55 = vmul.f32 %v4115_v22, %v2885_v56  ;;  %3725 = vmatmul.mubr.msk.f32.vlgmr.msra.gmra.mxu1 %vm719_vm2, %v3436_v51  ;;  %3734 = vmatprep.subr.mxu1 %v2615_v52  ;;  %v2886_v2 = vmul.f32 %v4115_v22, %v2883_v54  ;;  %v2794_v22 = vmul.f32 %v4105_v19, %v4327_v28  ;;  %v3454_v19 = vld [vmem:[%s4464_s7 + $0x58] sm:$0xff] }
 0x452   : > { %3735 = vmatpush3.msra.mxu1 %v2615_v52  ;;  %3746 = vmatmul.mubr.msk.f32.vlgmr.msra.gmra.mxu0 %vm719_vm2, %v3446_v53 }
 0x453   : > { %3736 = vmatprep.subr.mxu1 %v2614_v9  ;;  %3755 = vmatprep.subr.mxu0 %v2887_v55 }
 0x454   : > { %v2975_v60 = vpop.permute.xlu1 %2974  ;;  %3737 = vmatpush3.msra.mxu1 %v2614_v9  ;;  %3738 = vmatprep.mubr.msk.f32.mxu1 %vm719_vm2, %v3441_v57  ;;  %v2977_v61 = vpop.permute.xlu0 %2976 }
 0x455   : > { %3756 = vmatpush3.msra.mxu0 %v2887_v55  ;;  %3739 = vmatmul.mubr.msk.f32.vlgmr.msra.gmra.mxu1 %vm719_vm2, %v3442_v58  ;;  %v2979_v3 = vmul.f32 %v4131_v29, %v2977_v61  ;;  %v2978_v7 = vmul.f32 %v4131_v29, %v2975_v60 }
 0x456   : > { %3748 = vmatprep.subr.mxu1 %v2795_v62  ;;  %3757 = vmatprep.subr.mxu0 %v2886_v2 }
 0x457   : > { %3749 = vmatpush3.msra.mxu1 %v2795_v62  ;;  %3758 = vmatpush3.msra.mxu0 %v2886_v2 }
 0x458   : > { %3750 = vmatprep.subr.mxu1 %v2794_v22  ;;  %v3067_v4 = vpop.permute.xlu1 %3066  ;;  %3752 = vmatprep.mubr.msk.f32.mxu1 %vm719_vm2, %v3449_v63  ;;  %v3069_v5 = vpop.permute.xlu0 %3068 }
 0x459   : > { %v3071_v6 = vmul.f32 %v4146_v36, %v3069_v5  ;;  %3751 = vmatpush3.msra.mxu1 %v2794_v22  ;;  %3759 = vmatprep.mubr.msk.f32.mxu0 %vm719_vm2, %v3453_v0  ;;  %v3070_v10 = vmul.f32 %v4146_v36, %v3067_v4  ;;  %v3462_v36 = vld [vmem:[%s4464_s7 + $0x78] sm:$0xff] }
 0x45a   : > { %3753 = vmatmul.mubr.msk.f32.vlgmr.msra.gmra.mxu1 %vm719_vm2, %v3450_v1  ;;  %3762 = vmatprep.subr.mxu1 %v2979_v3 }
 0x45b   : > { %3763 = vmatpush3.msra.mxu1 %v2979_v3  ;;  %3760 = vmatmul.mubr.msk.f32.vlgmr.msra.gmra.mxu0 %vm719_vm2, %v3454_v19 }
 0x45c   : > { %3764 = vmatprep.subr.mxu1 %v2978_v7  ;;  %3769 = vmatprep.subr.mxu0 %v3071_v6  ;;  %v3161_v11 = vpop.permute.xlu0 %3160  ;;  %v3159_v29 = vpop.permute.xlu1 %3158 }
 0x45d   : > { %3770 = vmatpush3.msra.mxu0 %v3071_v6  ;;  %v3163_v13 = vmul.f32 %v4161_v42, %v3161_v11  ;;  %3765 = vmatpush3.msra.mxu1 %v2978_v7  ;;  %v3162_v16 = vmul.f32 %v4161_v42, %v3159_v29 }
 0x45e   : > { %3766 = vmatprep.mubr.msk.f32.mxu1 %vm719_vm2, %v3457_v8  ;;  %3771 = vmatprep.subr.mxu0 %v3070_v10 }
 0x45f   : > { %3767 = vmatmul.mubr.msk.f32.vlgmr.msra.gmra.mxu1 %vm719_vm2, %v3458_v12  ;;  %3772 = vmatpush3.msra.mxu0 %v3070_v10 }
 0x460   : > { %3773 = vmatprep.mubr.msk.f32.mxu0 %vm719_vm2, %v3461_v14  ;;  %3776 = vmatprep.subr.mxu1 %v3163_v13 }
 0x461   : > { %3774 = vmatmul.mubr.msk.f32.vlgmr.msra.gmra.mxu0 %vm719_vm2, %v3462_v36  ;;  %3777 = vmatpush3.msra.mxu1 %v3163_v13 }
 0x462   : > { %3778 = vmatprep.subr.mxu1 %v3162_v16  ;;  %3780 = vmatprep.mubr.msk.f32.mxu1 %vm719_vm2, %v3465_v15 }
 0x463   : > { %3779 = vmatpush3.msra.mxu1 %v3162_v16 }
 0x464   : > { %3781 = vmatmul.mubr.msk.f32.vlgmr.msra.gmra.mxu1 %vm719_vm2, %v3466_v17 }
 0x469   : > { %v3260_v56 = vpop.permute.xlu1 %3259  ;;  %v3255_v58 = vpop.permute.xlu0 %3254 }
 0x509   : > { %v3733_v18 = vpop.f32.mrf.mxu0 }
 0x50b   : > { %v2601_v21 = vpop.f32.mrf.mxu0 }
 0x511   : > { %v3726_v20 = vpop.f32.mrf.mxu1 }
 0x512   : > { %v2607_v42 = vadd.f32 %v3733_v18, %v3726_v20  ;;  %v3747_v24 = vpop.f32.mrf.mxu0 }
 0x513   : > { %v2520_v23 = vpop.f32.mrf.mxu1 }
 0x514   : > { %v2602_v26 = vadd.f32 %v2601_v21, %v2520_v23  ;;  %v2783_v30 = vpop.f32.mrf.mxu0 }
 0x515   : > { %v3740_v25 = vpop.f32.mrf.mxu1 }
 0x516   : > { %v2701_v27 = vadd.f32 %v3740_v25, %v2607_v42 }
 0x517   : > { %v2691_v28 = vpop.f32.mrf.mxu1 }
 0x518   : > { %v2700_v31 = vadd.f32 %v2691_v28, %v2602_v26  ;;  %v2793_v32 = vadd.f32 %v3747_v24, %v2701_v27 }
 0x51a   : > { %v2792_v33 = vadd.f32 %v2783_v30, %v2700_v31  ;;  %v3754_v34 = vpop.f32.mrf.mxu1 }
 0x51b   : > { %v2881_v35 = vadd.f32 %v3754_v34, %v2793_v32  ;;  %v3761_v37 = vpop.f32.mrf.mxu0 }
 0x51c   : > { %v2871_v38 = vpop.f32.mrf.mxu1 }
 0x51d   : > { %v2880_v39 = vadd.f32 %v2871_v38, %v2792_v33  ;;  %v2973_v40 = vadd.f32 %v3761_v37, %v2881_v35  ;;  %v2963_v43 = vpop.f32.mrf.mxu0 }
 0x51f   : > { %v2972_v45 = vadd.f32 %v2963_v43, %v2880_v39  ;;  %v3768_v46 = vpop.f32.mrf.mxu1 }
 0x520   : > { %v3065_v47 = vadd.f32 %v3768_v46, %v2973_v40 }
 0x521   : > { %v3055_v59 = vpop.f32.mrf.mxu1  ;;  %v3775_v48 = vpop.f32.mrf.mxu0 }
 0x522   : > { %v3064_v49 = vadd.f32 %v3055_v59, %v2972_v45  ;;  %v3157_v50 = vadd.f32 %v3775_v48, %v3065_v47 }
 0x523   : > { %v3147_v51 = vpop.f32.mrf.mxu0 }
 0x524   : > { %v3782_v52 = vpop.f32.mrf.mxu1  ;;  %v3156_v53 = vadd.f32 %v3147_v51, %v3064_v49 }
 0x525   : > { %v3249_v54 = vadd.f32 %v3782_v52, %v3157_v50 }
 0x526   : > { %v3239_v9 = vpop.f32.mrf.mxu1 }
 0x527   : > { %v3263_v55 = vadd.f32 %v3260_v56, %v3249_v54  ;;  %v3248_v57 = vadd.f32 %v3239_v9, %v3156_v53 }
 0x529   : > { %v3265_v2 = vadd.f32 %v3263_v55, %v4184_v41  ;;  %v3262_v60 = vadd.f32 %v3255_v58, %v3248_v57 }
 0x52b   : > { %v3267_v61 = vmax.f32 %v3265_v2, 0.0  ;;  %v3264_v62 = vadd.f32 %v3262_v60, %v4186_v44 }
 0x52d   : > { %3269 = vst [vmem:[%s460_s20 + $0x8] sm:$0xff] %v3267_v61  ;;  %v3266_v63 = vmax.f32 %v3264_v62, 0.0 }
 0x52f   : > { %3268 = vst [vmem:[%s460_s20] sm:$0xff] %v3266_v63 }
 0x530 PF: > { %s23_s25 = sadd.s32 1, %s3811_s25  }
 0x531   : > { %p20_p4 = scmp.ge.s32.totalorder %s23_s25, 4  }
 0x533   :  { %22 = sbr.rel (!%p20_p4) target bundleno = 1 (0x1), region = 137 }

// kernel: downsample_forward.9
= control target key start
LH: loop header
LB: loop body
LE: loop exit
PB: predicated region body
PF: predicated region fallthrough
CT: control target
= control target key end

     0   :  { %s3410_s25 = smov 0   ;;  %s3824_s0 = inlined_call_operand.vmem [shape: f32[2,144,128], index: 0, kind: input, shape index: {}]   ;;  %s3825_s1 = inlined_call_operand.vmem [shape: f32[2,16,128], index: 1, kind: input, shape index: {}]   ;;  %s3826_s2 = inlined_call_operand.vmem [shape: f32[9,1,128], index: 2, kind: input, shape index: {}]   ;;  %s3827_s3 = inlined_call_operand.vmem [shape: f32[4,144], index: 3, kind: input, shape index: {}]   ;;  %s3828_s4 = inlined_call_operand.vmem [shape: f32[4,16], index: 4, kind: input, shape index: {}]   ;;  %s3829_s5 = inlined_call_operand.vmem [shape: f32[9,4,4], index: 5, kind: input, shape index: {}]   ;;  %s3830_s6 = inlined_call_operand.vmem [shape: f32[9,4,4], index: 6, kind: input, shape index: {}]   ;;  %s3831_s7 = inlined_call_operand.vmem [shape: f32[9,4,4], index: 7, kind: input, shape index: {}]   ;;  %s3832_s8 = inlined_call_operand.vmem [shape: f32[4,1], index: 8, kind: input, shape index: {}]   ;;  %s3833_s9 = inlined_call_operand.vmem [shape: f32[4,1], index: 9, kind: input, shape index: {}]   ;;  %s3834_s10 = inlined_call_operand.vmem [shape: f32[4,1], index: 10, kind: input, shape index: {}]   ;;  %s3835_s11 = inlined_call_operand.vmem [shape: f32[4,1], index: 11, kind: input, shape index: {}]   ;;  %s3836_s12 = inlined_call_operand.vmem [shape: f32[4,1], index: 12, kind: input, shape index: {}]   ;;  %s3837_s13 = inlined_call_operand.vmem [shape: f32[2,4,128], index: 13, kind: output, shape index: {}]  }
   0x1 LB: > { %s2994_s26 = sadd.s32 4294967295, %s3329_s25   ;;  %p2998_p0 = scmp.ge.s32.totalorder %s3329_s25, 1  ;;  %s3329_s25 = sphi %s3410_s25, %s23_s25  }
   0x2   : > { %p397_p1 = scmp.lt.s32.totalorder %s3329_s25, 3 }
   0x4   : > { %p398_p2 = pnand %p2998_p0, %p397_p1 }
   0x5   : > { %p445_p3 = scmp.lt.s32.totalorder (!%p398_p2), %s2994_s26, 1  ;;  %s3334_s24 = smov (!%p398_p2), 3  }
   0x6   : > { %401 = sbr.rel (%p398_p2) target bundleno = 1268 (0x4f4), region = 72  ;;  %s3335_s27 = smov (!%p398_p2), 2  }
   0x7   : > { %s3336_s28 = smov (!%p398_p2), 1   ;;  %s3337_s29 = smov (!%p398_p2), 127  }
   0x8   : > { %s3338_s30 = smov (!%p398_p2), 126  }
   0xb   : > { %v3421_v0 = vld [vmem:[%s3827_s3] sm:$0xff]  ;;  %vm486_vm0 = vcmask 130048   ;;  %v3331_v1 = vmov 0.0   ;;  %v3332_v3 = vmov 0   ;;  %s3839_s26 = smov (!%p445_p3, %s2994_s26), 1  ;;  %vm3333_vm1 = vmmov 0  }
   0xc   : > { %489 = vmatprep.subr.mxu0 %v3331_v1  ;;  %v485_v2 = vcombine.high %v3421_v0, %v3421_v0  ;;  %3320 = vset.pattern.permute.xlu0 %v3332_v3  ;;  %v478_v4 = vld [vmem:[%s3832_s8] sm:$0xf]  ;;  %s3302_s14 = smul.u32 144, %s3839_s26  ;;  %s3102_s18 = sshll.u32 %s3839_s26, 4  ;;  %vm670_vm2 = vcmask 1043456   ;;  %vm666_vm3 = vcmask 31744  }
   0xd   : > { %481 = vperm.xlu0 %3320, %v478_v4   ;;  %3160 = vmatprep.subr.mxu1 %v3331_v1  ;;  %s454_s21 = scalar_lea.vmem %s3825_s1, %s3102_s18  ;;  %v560_v25 = vld [vmem:[%s3828_s4] sm:$0xf]  ;;  %v3008_v40 = vld [vmem:[%s3829_s5 + $0x4] sm:$0xf]  ;;  %v3540_v47 = vld [vmem:[%s3826_s2 + $0x8] ss:$0 sm:$0xff] }
   0xe   : > { %3003 = vmatprep.mubr.msk.f32.mxu0 %vm486_vm0, %v485_v2  ;;  %3321 = vset.pattern.permute.xlu1 %v3332_v3  ;;  %s3437_s17 = scalar_lea.vmem %s3824_s0, %s3302_s14  ;;  %v562_v23 = vld [vmem:[%s454_s21 + $0x8] sm:$0xff]  ;;  %v561_v24 = vld [vmem:[%s454_s21] sm:$0xff]  ;;  %s3339_s14 = smov 125   ;;  %v3025_v58 = vld [vmem:[%s3829_s5 + $0x10] sm:$0xf] }
   0xf   : > { %v475_v5 = vld [vmem:[%s3437_s17 + $0x78] sm:$0xff]  ;;  %v474_v6 = vld [vmem:[%s3437_s17 + $0x70] sm:$0xff]  ;;  %v473_v7 = vld [vmem:[%s3437_s17 + $0x68] sm:$0xff]  ;;  %3164 = vmatprep.mubr.msk.f32.mxu1 %vm3333_vm1, %v3331_v1  ;;  %3161 = vmatpush3.msra.mxu1 %v562_v23 }
  0x10   : > { %490 = vmatpush1.msra.mxu0 %v475_v5  ;;  %v472_v8 = vld [vmem:[%s3437_s17 + $0x60] sm:$0xff]  ;;  %v471_v9 = vld [vmem:[%s3437_s17 + $0x58] sm:$0xff]  ;;  %v470_v10 = vld [vmem:[%s3437_s17 + $0x50] sm:$0xff]  ;;  %3162 = vmatprep.subr.mxu1 %v3331_v1 }
  0x11   : > { %491 = vmatprep.subr.mxu0 %v3331_v1  ;;  %v469_v11 = vld [vmem:[%s3437_s17 + $0x48] sm:$0xff]  ;;  %v468_v12 = vld [vmem:[%s3437_s17 + $0x40] sm:$0xff]  ;;  %v467_v13 = vld [vmem:[%s3437_s17 + $0x38] sm:$0xff]  ;;  %3163 = vmatpush3.msra.mxu1 %v561_v24 }
  0x12   : > { %492 = vmatpush1.msra.mxu0 %v474_v6  ;;  %v466_v14 = vld [vmem:[%s3437_s17 + $0x30] sm:$0xff]  ;;  %v465_v15 = vld [vmem:[%s3437_s17 + $0x28] sm:$0xff]  ;;  %v464_v16 = vld [vmem:[%s3437_s17 + $0x20] sm:$0xff]  ;;  %3165 = vmatmul.mubr.msk.f32.vlgmr.msra.gmra.mxu1 %vm486_vm0, %v560_v25 }
  0x13   : > { %493 = vmatprep.subr.mxu0 %v3331_v1  ;;  %v463_v17 = vld [vmem:[%s3437_s17 + $0x18] sm:$0xff]  ;;  %v462_v18 = vld [vmem:[%s3437_s17 + $0x10] sm:$0xff]  ;;  %v461_v19 = vld [vmem:[%s3437_s17 + $0x8] sm:$0xff]  ;;  %3167 = vmatprep.subr.mxu1 %v3331_v1 }
  0x14   : > { %494 = vmatpush1.msra.mxu0 %v473_v7  ;;  %v460_v20 = vld [vmem:[%s3437_s17] sm:$0xff]  ;;  %v477_v21 = vld [vmem:[%s3437_s17 + $0x88] sm:$0xff]  ;;  %3169 = vmatprep.mubr.msk.f32.mxu1 %vm3333_vm1, %v3331_v1  ;;  %v3030_v61 = vld [vmem:[%s3829_s5 + $0x14] sm:$0xf] }
  0x15   : > { %495 = vmatprep.subr.mxu0 %v3331_v1  ;;  %v476_v22 = vld [vmem:[%s3437_s17 + $0x80] sm:$0xff]  ;;  %v3015_v51 = vld [vmem:[%s3829_s5 + $0x8] sm:$0xf]  ;;  %v3020_v55 = vld [vmem:[%s3829_s5 + $0xc] sm:$0xf] }
  0x16   : > { %496 = vmatpush1.msra.mxu0 %v472_v8  ;;  %v1444_v31 = vld [vmem:[%s3834_s10] sm:$0xf]  ;;  %v3565_v54 = vld [vmem:[%s3826_s2 + $0x4] ss:$0 sm:$0xff]  ;;  %v3582_v57 = vld [vmem:[%s3826_s2 + $0x5] ss:$0 sm:$0xff] }
  0x17   : > { %497 = vmatprep.subr.mxu0 %v3331_v1  ;;  %v563_v32 = vld [vmem:[%s3833_s9] sm:$0xf]  ;;  %v3596_v60 = vld [vmem:[%s3826_s2 + $0x6] ss:$0 sm:$0xff]  ;;  %v3610_v63 = vld [vmem:[%s3826_s2 + $0x7] ss:$0 sm:$0xff] }
  0x18   : > { %498 = vmatpush1.msra.mxu0 %v471_v9  ;;  %v3509_v35 = vld [vmem:[%s3826_s2 + $0x1] ss:$0 sm:$0xff]  ;;  %v3514_v36 = vld [vmem:[%s3826_s2] ss:$0 sm:$0xff]  ;;  %v3523_v41 = vld [vmem:[%s3826_s2 + $0x2] ss:$0 sm:$0xff] }
  0x19   : > { %499 = vmatprep.subr.mxu0 %v3331_v1  ;;  %v652_v46 = vld [vmem:[%s3829_s5] sm:$0xf]  ;;  %v3035_v2 = vld [vmem:[%s3829_s5 + $0x18] sm:$0xf]  ;;  %v3040_v4 = vld [vmem:[%s3829_s5 + $0x1c] sm:$0xf] }
  0x1a   : > { %500 = vmatpush1.msra.mxu0 %v470_v10  ;;  %v3545_v48 = vld [vmem:[%s3826_s2 + $0x3] ss:$0 sm:$0xff] }
  0x1b   : > { %501 = vmatprep.subr.mxu0 %v3331_v1  ;;  %v3045_v52 = vld [vmem:[%s3829_s5 + $0x20] sm:$0xf] }
  0x1c   : > { %502 = vmatpush1.msra.mxu0 %v469_v11 }
  0x1d   : > { %503 = vmatprep.subr.mxu0 %v3331_v1 }
  0x1e   : > { %504 = vmatpush1.msra.mxu0 %v468_v12 }
  0x1f   : > { %505 = vmatprep.subr.mxu0 %v3331_v1 }
  0x20   : > { %506 = vmatpush1.msra.mxu0 %v467_v13 }
  0x21   : > { %507 = vmatprep.subr.mxu0 %v3331_v1 }
  0x22   : > { %508 = vmatpush1.msra.mxu0 %v466_v14 }
  0x23   : > { %509 = vmatprep.subr.mxu0 %v3331_v1 }
  0x24   : > { %510 = vmatpush1.msra.mxu0 %v465_v15 }
  0x25   : > { %511 = vmatprep.subr.mxu0 %v3331_v1 }
  0x26   : > { %512 = vmatpush1.msra.mxu0 %v464_v16 }
  0x27   : > { %513 = vmatprep.subr.mxu0 %v3331_v1 }
  0x28   : > { %514 = vmatpush1.msra.mxu0 %v463_v17 }
  0x29   : > { %515 = vmatprep.subr.mxu0 %v3331_v1 }
  0x2a   : > { %516 = vmatpush1.msra.mxu0 %v462_v18 }
  0x2b   : > { %517 = vmatprep.subr.mxu0 %v3331_v1 }
  0x2c   : > { %518 = vmatpush1.msra.mxu0 %v461_v19 }
  0x2d   : > { %519 = vmatprep.subr.mxu0 %v3331_v1 }
  0x2e   : > { %520 = vmatpush1.msra.mxu0 %v460_v20 }
  0x2f   : > { %549 = vmatprep.subr.mxu0 %v3331_v1 }
  0x30   : > { %550 = vmatpush2.msra.mxu0 %v477_v21 }
  0x31   : > { %551 = vmatprep.subr.mxu0 %v3331_v1 }
  0x32   : > { %552 = vmatpush2.msra.mxu0 %v476_v22 }
  0x33   : > { %554 = vmatmul.mubr.f32.vlgmr.msra.gmra.mxu0 %v3421_v0  ;;  %3207 = vmatprep.subr.mxu0 %v3331_v1 }
  0x34   : > { %3209 = vmatprep.mubr.msk.f32.mxu0 %vm3333_vm1, %v3331_v1 }
  0x88   : > { %v482_v26 = vpop.permute.xlu0 %481 }
  0xd2   : > { %v3504_v33 = vpop.f32.mrf.mxu1 }
  0xd4   : > { %v3166_v34 = vpop.f32.mrf.mxu1 }
  0xf3   : > { %v555_v27 = vpop.f32.mrf.mxu0 }
  0xf4   : > { %v556_v28 = vadd.f32 %v555_v27, %v482_v26 }
  0xf5   : > { %v557_v29 = vpop.f32.mrf.mxu0 }
  0xf6   : > { %v559_v30 = vmax.f32 %v556_v28, 0.0 }
  0xf8   : > { %642 = vrot.lane.b32.xlu1 %v559_v30, %s3334_s24  ;;  %653 = vrot.lane.b32.xlu0 %v559_v30, %s3335_s27  ;;  %v1006_v56 = vmul.f32 %v3565_v54, %v559_v30 }
  0xfc   : > { %820 = vrot.lane.b32.xlu1 %v559_v30, %s3336_s28  ;;  %1086 = vrot.lane.b32.xlu0 %v559_v30, %s3337_s29 }
 0x100   : > { %1264 = vrot.lane.b32.xlu1 %v559_v30, %s3338_s30  ;;  %1354 = vrot.lane.b32.xlu0 %v559_v30, %s3339_s14 }
 0x104   : > { %1447 = vperm.xlu0 %3320, %v1444_v31   ;;  %566 = vperm.xlu1 %3321, %v563_v32  }
 0x16a   : > { %v643_v37 = vpop.permute.xlu1 %642  ;;  %v654_v38 = vpop.permute.xlu0 %653 }
 0x16b   : > { %v663_v39 = vmul.f32 %v3509_v35, %v654_v38  ;;  %v651_v42 = vmul.f32 %v3514_v36, %v643_v37 }
 0x16d   : > { %3168 = vmatpush3.msk.msra.mxu1 %vm670_vm2, %v663_v39 }
 0x16e   : > { %v821_v43 = vpop.permute.xlu1 %820  ;;  %3170 = vmatmul.mubr.msk.f32.vlgmr.msra.gmra.mxu1 %vm666_vm3, %v3008_v40  ;;  %3172 = vmatprep.subr.mxu1 %v3331_v1  ;;  %v1087_v44 = vpop.permute.xlu0 %1086 }
 0x16f   : > { %v830_v45 = vmul.f32 %v3523_v41, %v821_v43  ;;  %3173 = vmatpush3.msk.msra.mxu1 %vm670_vm2, %v651_v42  ;;  %3174 = vmatprep.mubr.msk.f32.mxu1 %vm3333_vm1, %v3331_v1  ;;  %v918_v53 = vmul.f32 %v3545_v48, %v821_v43  ;;  %v1096_v59 = vmul.f32 %v3582_v57, %v1087_v44 }
 0x170   : > { %3177 = vmatprep.subr.mxu1 %v3331_v1  ;;  %v1184_v62 = vmul.f32 %v3596_v60, %v1087_v44 }
 0x172   : > { %3175 = vmatmul.mubr.msk.f32.vlgmr.msra.gmra.mxu1 %vm666_vm3, %v652_v46  ;;  %v1355_v49 = vpop.permute.xlu0 %1354  ;;  %v1265_v0 = vpop.permute.xlu1 %1264  ;;  %v3048_v46 = vld [vmem:[%s3830_s6 + $0x4] sm:$0xf] }
 0x173   : > { %3178 = vmatpush3.msk.msra.mxu1 %vm670_vm2, %v830_v45  ;;  %v1364_v50 = vmul.f32 %v3540_v47, %v1355_v49  ;;  %3179 = vmatprep.mubr.msk.f32.mxu1 %vm3333_vm1, %v3331_v1  ;;  %v1274_v3 = vmul.f32 %v3610_v63, %v1265_v0  ;;  %v1456_v45 = vld [vmem:[%s3830_s6] sm:$0xf]  ;;  %v3062_v0 = vld [vmem:[%s3830_s6 + $0x14] sm:$0xf] }
 0x174   : > { %3182 = vmatprep.subr.mxu1 %v3331_v1 }
 0x175   : > { %3208 = vmatpush3.msk.msra.mxu0 %vm670_vm2, %v1364_v50 }
 0x176   : > { %3180 = vmatmul.mubr.msk.f32.vlgmr.msra.gmra.mxu1 %vm666_vm3, %v3015_v51  ;;  %3210 = vmatmul.mubr.msk.f32.vlgmr.msra.gmra.mxu0 %vm666_vm3, %v3045_v52  ;;  %v3053_v52 = vld [vmem:[%s3830_s6 + $0x8] sm:$0xf] }
 0x177   : > { %3183 = vmatpush3.msk.msra.mxu1 %vm670_vm2, %v918_v53  ;;  %3184 = vmatprep.mubr.msk.f32.mxu1 %vm3333_vm1, %v3331_v1 }
 0x178   : > { %3187 = vmatprep.subr.mxu1 %v3331_v1  ;;  %3217 = vmatprep.subr.mxu0 %v3331_v1 }
 0x179   : > { %3219 = vmatprep.mubr.msk.f32.mxu0 %vm3333_vm1, %v3331_v1 }
 0x17a   : > { %3185 = vmatmul.mubr.msk.f32.vlgmr.msra.gmra.mxu1 %vm666_vm3, %v3020_v55  ;;  %v3056_v55 = vld [vmem:[%s3830_s6 + $0xc] sm:$0xf] }
 0x17b   : > { %3188 = vmatpush3.msk.msra.mxu1 %vm670_vm2, %v1006_v56  ;;  %3189 = vmatprep.mubr.msk.f32.mxu1 %vm3333_vm1, %v3331_v1 }
 0x17c   : > { %3192 = vmatprep.subr.mxu1 %v3331_v1 }
 0x17e   : > { %3190 = vmatmul.mubr.msk.f32.vlgmr.msra.gmra.mxu1 %vm666_vm3, %v3025_v58 }
 0x17f   : > { %3193 = vmatpush3.msk.msra.mxu1 %vm670_vm2, %v1096_v59  ;;  %3194 = vmatprep.mubr.msk.f32.mxu1 %vm3333_vm1, %v3331_v1  ;;  %v567_v29 = vpop.permute.xlu1 %566  ;;  %v1448_v32 = vpop.permute.xlu0 %1447 }
 0x180   : > { %3197 = vmatprep.subr.mxu1 %v3331_v1  ;;  %v639_v34 = vadd.f32 %v3504_v33, %v567_v29  ;;  %v2182_v33 = vld [vmem:[%s3835_s11] sm:$0xf] }
 0x182   : > { %3195 = vmatmul.mubr.msk.f32.vlgmr.msra.gmra.mxu1 %vm666_vm3, %v3030_v61  ;;  %v3059_v61 = vld [vmem:[%s3830_s6 + $0x10] sm:$0xf] }
 0x183   : > { %3198 = vmatpush3.msk.msra.mxu1 %vm670_vm2, %v1184_v62  ;;  %3199 = vmatprep.mubr.msk.f32.mxu1 %vm3333_vm1, %v3331_v1 }
 0x184   : > { %3202 = vmatprep.subr.mxu1 %v3331_v1 }
 0x186   : > { %3200 = vmatmul.mubr.msk.f32.vlgmr.msra.gmra.mxu1 %vm666_vm3, %v3035_v2 }
 0x187   : > { %3203 = vmatpush3.msk.msra.mxu1 %vm670_vm2, %v1274_v3  ;;  %3204 = vmatprep.mubr.msk.f32.mxu1 %vm3333_vm1, %v3331_v1 }
 0x188   : > { %3212 = vmatprep.subr.mxu1 %v3331_v1 }
 0x18a   : > { %3205 = vmatmul.mubr.msk.f32.vlgmr.msra.gmra.mxu1 %vm666_vm3, %v3040_v4  ;;  %v3065_v4 = vld [vmem:[%s3830_s6 + $0x18] sm:$0xf] }
 0x18b   : > { %3214 = vmatprep.mubr.msk.f32.mxu1 %vm3333_vm1, %v3331_v1 }
 0x22e   : > { %v740_v5 = vpop.f32.mrf.mxu1 }
 0x230   : > { %v3171_v6 = vpop.f32.mrf.mxu1 }
 0x232   : > { %v816_v7 = vpop.f32.mrf.mxu1 }
 0x233   : > { %v817_v16 = vadd.f32 %v816_v7, %v740_v5  ;;  %v3068_v5 = vld [vmem:[%s3830_s6 + $0x1c] sm:$0xf]  ;;  %v3071_v7 = vld [vmem:[%s3830_s6 + $0x20] sm:$0xf] }
 0x234   : > { %v3176_v8 = vpop.f32.mrf.mxu1 }
 0x236   : > { %v905_v9 = vpop.f32.mrf.mxu1  ;;  %v1439_v10 = vpop.f32.mrf.mxu0 }
 0x237   : > { %v909_v18 = vadd.f32 %v905_v9, %v817_v16 }
 0x238   : > { %v3181_v11 = vpop.f32.mrf.mxu1  ;;  %v3211_v12 = vpop.f32.mrf.mxu0 }
 0x23a   : > { %v993_v13 = vpop.f32.mrf.mxu1 }
 0x23b   : > { %v997_v20 = vadd.f32 %v993_v13, %v909_v18 }
 0x23c   : > { %v3186_v14 = vpop.f32.mrf.mxu1 }
 0x23e   : > { %v1081_v15 = vpop.f32.mrf.mxu1 }
 0x23f   : > { %v1085_v22 = vadd.f32 %v1081_v15, %v997_v20 }
 0x240   : > { %v3191_v17 = vpop.f32.mrf.mxu1 }
 0x242   : > { %v1171_v19 = vpop.f32.mrf.mxu1 }
 0x243   : > { %v1175_v24 = vadd.f32 %v1171_v19, %v1085_v22 }
 0x244   : > { %v3196_v21 = vpop.f32.mrf.mxu1 }
 0x246   : > { %v1259_v23 = vpop.f32.mrf.mxu1 }
 0x247   : > { %v1263_v26 = vadd.f32 %v1259_v23, %v1175_v24 }
 0x248   : > { %v3201_v25 = vpop.f32.mrf.mxu1 }
 0x24a   : > { %v1349_v27 = vpop.f32.mrf.mxu1 }
 0x24b   : > { %v1353_v28 = vadd.f32 %v1349_v27, %v1263_v26 }
 0x24c   : > { %v3206_v30 = vpop.f32.mrf.mxu1 }
 0x24d   : > { %v1443_v31 = vadd.f32 %v1439_v10, %v1353_v28 }
 0x24f   : > { %v1450_v37 = vadd.f32 %v1448_v32, %v1443_v31 }
 0x251   : > { %v1451_v38 = vadd.f32 %v1450_v37, %v639_v34 }
 0x253   : > { %v3633_v39 = vmax.f32 %v1451_v38, 0.0 }
 0x255   : > { %1453 = vrot.lane.b32.xlu0 %v3633_v39, %s3334_s24  ;;  %1457 = vrot.lane.b32.xlu1 %v3633_v39, %s3335_s27  ;;  %v1776_v58 = vmul.f32 %v3565_v54, %v3633_v39 }
 0x259   : > { %1856 = vrot.lane.b32.xlu0 %v3633_v39, %s3337_s29  ;;  %1614 = vrot.lane.b32.xlu1 %v3633_v39, %s3336_s28 }
 0x25d   : > { %2100 = vrot.lane.b32.xlu0 %v3633_v39, %s3339_s14  ;;  %2018 = vrot.lane.b32.xlu1 %v3633_v39, %s3338_s30 }
 0x261   : > { %2185 = vperm.xlu1 %3321, %v2182_v33  }
 0x2c7   : > { %v1454_v40 = vpop.permute.xlu0 %1453  ;;  %v1458_v42 = vpop.permute.xlu1 %1457 }
 0x2c8   : > { %v1455_v43 = vmul.f32 %v3514_v36, %v1454_v40  ;;  %v1459_v44 = vmul.f32 %v3509_v35, %v1458_v42  ;;  %v2919_v40 = vld [vmem:[%s3836_s12] sm:$0xf] }
 0x2ca   : > { %3213 = vmatpush3.msk.msra.mxu1 %vm670_vm2, %v1459_v44  ;;  %3218 = vmatpush3.msk.msra.mxu0 %vm670_vm2, %v1455_v43 }
 0x2cb   : > { %3220 = vmatmul.mubr.msk.f32.vlgmr.msra.gmra.mxu0 %vm666_vm3, %v1456_v45  ;;  %3215 = vmatmul.mubr.msk.f32.vlgmr.msra.gmra.mxu1 %vm666_vm3, %v3048_v46  ;;  %v1615_v49 = vpop.permute.xlu1 %1614  ;;  %v1857_v53 = vpop.permute.xlu0 %1856  ;;  %v2193_v46 = vld [vmem:[%s3831_s7] sm:$0xf] }
 0x2cc   : > { %v1616_v50 = vmul.f32 %v3523_v41, %v1615_v49  ;;  %v1696_v51 = vmul.f32 %v3545_v48, %v1615_v49  ;;  %3222 = vmatprep.subr.mxu1 %v3331_v1  ;;  %3227 = vmatprep.subr.mxu0 %v3331_v1  ;;  %v1858_v59 = vmul.f32 %v3582_v57, %v1857_v53  ;;  %v3074_v49 = vld [vmem:[%s3831_s7 + $0x4] sm:$0xf] }
 0x2cd   : > { %3224 = vmatprep.mubr.msk.f32.mxu1 %vm3333_vm1, %v3331_v1  ;;  %3229 = vmatprep.mubr.msk.f32.mxu0 %vm3333_vm1, %v3331_v1  ;;  %v1938_v2 = vmul.f32 %v3596_v60, %v1857_v53  ;;  %v3082_v53 = vld [vmem:[%s3831_s7 + $0xc] sm:$0xf] }
 0x2ce   : > { %3223 = vmatpush3.msk.msra.mxu1 %vm670_vm2, %v1616_v50  ;;  %3228 = vmatpush3.msk.msra.mxu0 %vm670_vm2, %v1696_v51  ;;  %v3079_v51 = vld [vmem:[%s3831_s7 + $0x8] sm:$0xf] }
 0x2cf   : > { %3225 = vmatmul.mubr.msk.f32.vlgmr.msra.gmra.mxu1 %vm666_vm3, %v3053_v52  ;;  %v2019_v56 = vpop.permute.xlu1 %2018  ;;  %3230 = vmatmul.mubr.msk.f32.vlgmr.msra.gmra.mxu0 %vm666_vm3, %v3056_v55  ;;  %v2101_v3 = vpop.permute.xlu0 %2100 }
 0x2d0   : > { %3232 = vmatprep.subr.mxu1 %v3331_v1  ;;  %3237 = vmatprep.subr.mxu0 %v3331_v1  ;;  %v2020_v62 = vmul.f32 %v3610_v63, %v2019_v56  ;;  %v2102_v6 = vmul.f32 %v3540_v47, %v2101_v3  ;;  %v3085_v56 = vld [vmem:[%s3831_s7 + $0x10] sm:$0xf] }
 0x2d1   : > { %3233 = vmatpush3.msk.msra.mxu1 %vm670_vm2, %v1776_v58  ;;  %3238 = vmatpush3.msk.msra.mxu0 %vm670_vm2, %v1858_v59 }
 0x2d2   : > { %3234 = vmatprep.mubr.msk.f32.mxu1 %vm3333_vm1, %v3331_v1  ;;  %3239 = vmatprep.mubr.msk.f32.mxu0 %vm3333_vm1, %v3331_v1 }
 0x2d3   : > { %3242 = vmatprep.subr.mxu1 %v3331_v1  ;;  %3247 = vmatprep.subr.mxu0 %v3331_v1 }
 0x2d4   : > { %3235 = vmatmul.mubr.msk.f32.vlgmr.msra.gmra.mxu1 %vm666_vm3, %v3059_v61  ;;  %3240 = vmatmul.mubr.msk.f32.vlgmr.msra.gmra.mxu0 %vm666_vm3, %v3062_v0 }
 0x2d5   : > { %3243 = vmatpush3.msk.msra.mxu1 %vm670_vm2, %v1938_v2  ;;  %3248 = vmatpush3.msk.msra.mxu0 %vm670_vm2, %v2020_v62  ;;  %v3097_v62 = vld [vmem:[%s3831_s7 + $0x20] sm:$0xf] }
 0x2d6   : > { %3244 = vmatprep.mubr.msk.f32.mxu1 %vm3333_vm1, %v3331_v1  ;;  %3249 = vmatprep.mubr.msk.f32.mxu0 %vm3333_vm1, %v3331_v1 }
 0x2d7   : > { %3252 = vmatprep.subr.mxu1 %v3331_v1  ;;  %3257 = vmatprep.subr.mxu0 %v3331_v1 }
 0x2d8   : > { %3245 = vmatmul.mubr.msk.f32.vlgmr.msra.gmra.mxu1 %vm666_vm3, %v3065_v4  ;;  %3250 = vmatmul.mubr.msk.f32.vlgmr.msra.gmra.mxu0 %vm666_vm3, %v3068_v5 }
 0x2d9   : > { %3253 = vmatpush3.msk.msra.mxu1 %vm670_vm2, %v2102_v6  ;;  %3254 = vmatprep.mubr.msk.f32.mxu1 %vm3333_vm1, %v3331_v1 }
 0x2da   : > { %3262 = vmatprep.subr.mxu1 %v3331_v1  ;;  %3259 = vmatprep.mubr.msk.f32.mxu0 %vm3333_vm1, %v3331_v1 }
 0x2dc   : > { %3255 = vmatmul.mubr.msk.f32.vlgmr.msra.gmra.mxu1 %vm666_vm3, %v3071_v7  ;;  %v2186_v34 = vpop.permute.xlu1 %2185 }
 0x2dd   : > { %3264 = vmatprep.mubr.msk.f32.mxu1 %vm3333_vm1, %v3331_v1 }
 0x38b   : > { %v1534_v8 = vpop.f32.mrf.mxu1  ;;  %v1610_v9 = vpop.f32.mrf.mxu0 }
 0x38c   : > { %v1611_v12 = vadd.f32 %v1610_v9, %v1534_v8 }
 0x38d   : > { %v3216_v10 = vpop.f32.mrf.mxu1  ;;  %v3221_v11 = vpop.f32.mrf.mxu0 }
 0x38f   : > { %v1691_v13 = vpop.f32.mrf.mxu1  ;;  %v1771_v15 = vpop.f32.mrf.mxu0 }
 0x390   : > { %v1695_v14 = vadd.f32 %v1691_v13, %v1611_v12 }
 0x391   : > { %v3226_v16 = vpop.f32.mrf.mxu1  ;;  %v3231_v18 = vpop.f32.mrf.mxu0 }
 0x392   : > { %v1775_v17 = vadd.f32 %v1771_v15, %v1695_v14 }
 0x394   : > { %v1851_v19 = vpop.f32.mrf.mxu1  ;;  %v1933_v21 = vpop.f32.mrf.mxu0 }
 0x395   : > { %v1855_v20 = vadd.f32 %v1851_v19, %v1775_v17 }
 0x396   : > { %v3236_v22 = vpop.f32.mrf.mxu1  ;;  %v3241_v24 = vpop.f32.mrf.mxu0 }
 0x397   : > { %v1937_v23 = vadd.f32 %v1933_v21, %v1855_v20 }
 0x398   : > { %v2013_v25 = vpop.f32.mrf.mxu1  ;;  %v2095_v27 = vpop.f32.mrf.mxu0 }
 0x399   : > { %v2017_v26 = vadd.f32 %v2013_v25, %v1937_v23 }
 0x39a   : > { %v3246_v28 = vpop.f32.mrf.mxu1  ;;  %v3251_v30 = vpop.f32.mrf.mxu0 }
 0x39b   : > { %v2099_v29 = vadd.f32 %v2095_v27, %v2017_v26 }
 0x39c   : > { %v2177_v31 = vpop.f32.mrf.mxu1 }
 0x39d   : > { %v2181_v32 = vadd.f32 %v2177_v31, %v2099_v29 }
 0x39e   : > { %v3256_v37 = vpop.f32.mrf.mxu1 }
 0x39f   : > { %v2188_v38 = vadd.f32 %v2186_v34, %v2181_v32 }
 0x3a1   : > { %v2189_v33 = vmax.f32 %v2188_v38, 0.0 }
 0x3a3   : > { %2190 = vrot.lane.b32.xlu1 %v2189_v33, %s3334_s24  ;;  %2194 = vrot.lane.b32.xlu0 %v2189_v33, %s3335_s27 }
 0x3a7   : > { %2593 = vrot.lane.b32.xlu1 %v2189_v33, %s3337_s29  ;;  %2351 = vrot.lane.b32.xlu0 %v2189_v33, %s3336_s28  ;;  %s3002_s29 = sshll.u32 %s3839_s26, 2 }
 0x3a8   : > { %s458_s23 = scalar_lea.vmem %s3837_s13, %s3002_s29 }
 0x3ab   : > { %2837 = vrot.lane.b32.xlu1 %v2189_v33, %s3339_s14  ;;  %2755 = vrot.lane.b32.xlu0 %v2189_v33, %s3338_s30 }
 0x3af   : > { %2922 = vperm.xlu0 %3320, %v2919_v40  }
 0x415   : > { %v2191_v42 = vpop.permute.xlu1 %2190  ;;  %v2195_v43 = vpop.permute.xlu0 %2194 }
 0x416   : > { %v2192_v44 = vmul.f32 %v3514_v36, %v2191_v42  ;;  %v2196_v45 = vmul.f32 %v3509_v35, %v2195_v43 }
 0x418   : > { %3258 = vmatpush3.msk.msra.mxu0 %vm670_vm2, %v2196_v45  ;;  %3263 = vmatpush3.msk.msra.mxu1 %vm670_vm2, %v2192_v44 }
 0x419   : > { %3265 = vmatmul.mubr.msk.f32.vlgmr.msra.gmra.mxu1 %vm666_vm3, %v2193_v46  ;;  %3260 = vmatmul.mubr.msk.f32.vlgmr.msra.gmra.mxu0 %vm666_vm3, %v3074_v49  ;;  %v2352_v50 = vpop.permute.xlu0 %2351  ;;  %v2594_v52 = vpop.permute.xlu1 %2593 }
 0x41a   : > { %v2353_v36 = vmul.f32 %v3523_v41, %v2352_v50  ;;  %v2433_v35 = vmul.f32 %v3545_v48, %v2352_v50  ;;  %3267 = vmatprep.subr.mxu0 %v3331_v1  ;;  %3272 = vmatprep.subr.mxu1 %v3331_v1  ;;  %v2513_v48 = vmul.f32 %v3565_v54, %v2189_v33  ;;  %v3088_v54 = vld [vmem:[%s3831_s7 + $0x14] sm:$0xf] }
 0x41b   : > { %3269 = vmatprep.mubr.msk.f32.mxu0 %vm3333_vm1, %v3331_v1  ;;  %3274 = vmatprep.mubr.msk.f32.mxu1 %vm3333_vm1, %v3331_v1  ;;  %v2595_v55 = vmul.f32 %v3582_v57, %v2594_v52  ;;  %v2675_v57 = vmul.f32 %v3596_v60, %v2594_v52  ;;  %v3094_v60 = vld [vmem:[%s3831_s7 + $0x1c] sm:$0xf] }
 0x41c   : > { %3268 = vmatpush3.msk.msra.mxu0 %vm670_vm2, %v2353_v36  ;;  %3273 = vmatpush3.msk.msra.mxu1 %vm670_vm2, %v2433_v35 }
 0x41d   : > { %3270 = vmatmul.mubr.msk.f32.vlgmr.msra.gmra.mxu0 %vm666_vm3, %v3079_v51  ;;  %v2756_v41 = vpop.permute.xlu0 %2755  ;;  %3275 = vmatmul.mubr.msk.f32.vlgmr.msra.gmra.mxu1 %vm666_vm3, %v3082_v53  ;;  %v2838_v59 = vpop.permute.xlu1 %2837 }
 0x41e   : > { %3277 = vmatprep.subr.mxu0 %v3331_v1  ;;  %3282 = vmatprep.subr.mxu1 %v3331_v1  ;;  %v2757_v58 = vmul.f32 %v3610_v63, %v2756_v41  ;;  %v3091_v63 = vld [vmem:[%s3831_s7 + $0x18] sm:$0xf]  ;;  %v2839_v61 = vmul.f32 %v3540_v47, %v2838_v59 }
 0x41f   : > { %3278 = vmatpush3.msk.msra.mxu0 %vm670_vm2, %v2513_v48  ;;  %3283 = vmatpush3.msk.msra.mxu1 %vm670_vm2, %v2595_v55 }
 0x420   : > { %3279 = vmatprep.mubr.msk.f32.mxu0 %vm3333_vm1, %v3331_v1  ;;  %3284 = vmatprep.mubr.msk.f32.mxu1 %vm3333_vm1, %v3331_v1 }
 0x421   : > { %3287 = vmatprep.subr.mxu0 %v3331_v1  ;;  %3292 = vmatprep.subr.mxu1 %v3331_v1 }
 0x422   : > { %3280 = vmatmul.mubr.msk.f32.vlgmr.msra.gmra.mxu0 %vm666_vm3, %v3085_v56  ;;  %3285 = vmatmul.mubr.msk.f32.vlgmr.msra.gmra.mxu1 %vm666_vm3, %v3088_v54 }
 0x423   : > { %3288 = vmatpush3.msk.msra.mxu0 %vm670_vm2, %v2675_v57  ;;  %3293 = vmatpush3.msk.msra.mxu1 %vm670_vm2, %v2757_v58 }
 0x424   : > { %3289 = vmatprep.mubr.msk.f32.mxu0 %vm3333_vm1, %v3331_v1  ;;  %3297 = vmatprep.subr.mxu0 %v3331_v1 }
 0x425   : > { %3294 = vmatprep.mubr.msk.f32.mxu1 %vm3333_vm1, %v3331_v1 }
 0x426   : > { %3290 = vmatmul.mubr.msk.f32.vlgmr.msra.gmra.mxu0 %vm666_vm3, %v3091_v63  ;;  %3295 = vmatmul.mubr.msk.f32.vlgmr.msra.gmra.mxu1 %vm666_vm3, %v3094_v60 }
 0x427   : > { %3298 = vmatpush3.msk.msra.mxu0 %vm670_vm2, %v2839_v61  ;;  %3299 = vmatprep.mubr.msk.f32.mxu0 %vm3333_vm1, %v3331_v1 }
 0x42a   : > { %3300 = vmatmul.mubr.msk.f32.vlgmr.msra.gmra.mxu0 %vm666_vm3, %v3097_v62  ;;  %v2923_v24 = vpop.permute.xlu0 %2922 }
 0x4d9   : > { %v2271_v47 = vpop.f32.mrf.mxu0  ;;  %v2347_v0 = vpop.f32.mrf.mxu1 }
 0x4da   : > { %v2348_v4 = vadd.f32 %v2347_v0, %v2271_v47 }
 0x4db   : > { %v3261_v2 = vpop.f32.mrf.mxu0  ;;  %v3266_v3 = vpop.f32.mrf.mxu1 }
 0x4dd   : > { %v2428_v5 = vpop.f32.mrf.mxu0  ;;  %v2508_v7 = vpop.f32.mrf.mxu1 }
 0x4de   : > { %v2432_v6 = vadd.f32 %v2428_v5, %v2348_v4 }
 0x4df   : > { %v3271_v8 = vpop.f32.mrf.mxu0  ;;  %v3276_v10 = vpop.f32.mrf.mxu1 }
 0x4e0   : > { %v2512_v9 = vadd.f32 %v2508_v7, %v2432_v6 }
 0x4e2   : > { %v2588_v11 = vpop.f32.mrf.mxu0  ;;  %v2670_v13 = vpop.f32.mrf.mxu1 }
 0x4e3   : > { %v2592_v12 = vadd.f32 %v2588_v11, %v2512_v9 }
 0x4e4   : > { %v3281_v14 = vpop.f32.mrf.mxu0  ;;  %v3286_v1 = vpop.f32.mrf.mxu1 }
 0x4e5   : > { %v2674_v15 = vadd.f32 %v2670_v13, %v2592_v12 }
 0x4e6   : > { %v2750_v16 = vpop.f32.mrf.mxu0  ;;  %v2832_v18 = vpop.f32.mrf.mxu1 }
 0x4e7   : > { %v2754_v17 = vadd.f32 %v2750_v16, %v2674_v15 }
 0x4e8   : > { %v3291_v19 = vpop.f32.mrf.mxu0  ;;  %v3296_v21 = vpop.f32.mrf.mxu1 }
 0x4e9   : > { %v2836_v20 = vadd.f32 %v2832_v18, %v2754_v17 }
 0x4ea   : > { %v2914_v22 = vpop.f32.mrf.mxu0 }
 0x4eb   : > { %v2918_v23 = vadd.f32 %v2914_v22, %v2836_v20 }
 0x4ec   : > { %v3301_v25 = vpop.f32.mrf.mxu0 }
 0x4ed   : > { %v2925_v26 = vadd.f32 %v2923_v24, %v2918_v23 }
 0x4ef   : > { %v2926_v27 = vadd.f32 %v2925_v26, %v3633_v39 }
 0x4f1   : > { %v2927_v28 = vmax.f32 %v2926_v27, 0.0 }
 0x4f3   : > { %2928 = vst [vmem:[%s458_s23] sm:$0xf] %v2927_v28 }
 0x4f4 PF: > { %s23_s25 = sadd.s32 1, %s3329_s25  }
 0x4f5   : > { %p20_p4 = scmp.ge.s32.totalorder %s23_s25, 4  }
 0x4f7   :  { %22 = sbr.rel (!%p20_p4) target bundleno = 1 (0x1), region = 137 }

</bundles_post_ra>
